<compile_context>
chip_gen: v7x
topology: tpu7x:2x2x1
jax: 0.10.0
libtpu: 0.0.40
codegen_flags: <defaults>
</compile_context>

<pallas_src>
import jax
import jax.numpy as jnp
from jax.experimental import pallas as pl
from jax.experimental.pallas import tpu as pltpu


def _silu(x):
    # SiLU / swish: x * sigmoid(x)
    return x / (1.0 + jnp.exp(-x))


# ---------------------------------------------------------------------------
# Kernel 1: Gram products  A = chrs^T @ chrs  (P,P)  and  c = rets^T @ chrs  (1,P).
# Reduction over batch tiles; outputs stay resident in VMEM (accumulator pattern).
# ---------------------------------------------------------------------------
def _gram_kernel(xt_ref, x_ref, rt_ref, a_ref, c_ref):
    @pl.when(pl.program_id(0) == 0)
    def _():
        a_ref[...] = jnp.zeros_like(a_ref)
        c_ref[...] = jnp.zeros_like(c_ref)

    x = x_ref[...]                                        # (tile_n, P) f32
    a_ref[...] += jnp.dot(xt_ref[...], x, preferred_element_type=jnp.float32)
    c_ref[...] += jnp.dot(rt_ref[...], x, preferred_element_type=jnp.float32)


# ---------------------------------------------------------------------------
# Kernel 2: threshold port_rets + factor MLP (single tiny invocation, row-vector layout).
# ---------------------------------------------------------------------------
def _factor_kernel(p_ref, wf1_ref, wf2_ref, port_ref, fac_ref):
    p = p_ref[...]                                        # (1, P) f32
    p = jnp.where(jnp.abs(p) > 0.5, jnp.zeros_like(p), p)
    port_ref[...] = p
    h = _silu(jnp.dot(p.astype(jnp.bfloat16), wf1_ref[...],
                      preferred_element_type=jnp.float32))        # (1, H) f32
    f = _silu(jnp.dot(h.astype(jnp.bfloat16), wf2_ref[...],
                      preferred_element_type=jnp.float32))        # (1, K) f32
    fac_ref[...] = f


# ---------------------------------------------------------------------------
# Kernel 3: beta MLP (transposed: features on sublanes, batch on lanes) + pred_rets.
# ---------------------------------------------------------------------------
def _make_beta_kernel(layer_sizes):
    offs = [0]
    for s in layer_sizes:
        offs.append(offs[-1] + s)
    n_layers = len(layer_sizes)

    def beta_kernel(xt_ref, *refs):
        w_refs = refs[:n_layers]
        scl_ref, sft_ref, fac_ref, betas_ref, pred_ref = refs[n_layers:]
        scl = scl_ref[...]                                # (sum(sizes), 1) f32
        sft = sft_ref[...]
        h = xt_ref[...]                                   # (P, tile_n) bf16
        for li in range(n_layers):
            z = jnp.dot(w_refs[li][...], h, preferred_element_type=jnp.float32)
            a = _silu(z)                                  # (out, tile_n) f32
            s = scl[offs[li]:offs[li + 1], :]
            t = sft[offs[li]:offs[li + 1], :]
            h = s * a + t                                 # inference-mode BatchNorm1d
            if li + 1 < n_layers:
                h = h.astype(jnp.bfloat16)                # bf16 operands for next MXU dot
        betas_ref[...] = h                                # (K, tile_n) f32, lane-dense
        # pred_rets^T = sum_k factors[k] * betas^T[k, :]
        pred_ref[...] = jnp.sum(fac_ref[...] * h, axis=0, keepdims=True)

    return beta_kernel


def gkx_forward(chrs, rets, params, *, tile_n=512):
    """GKXModel forward. chrs: (N, P) f32, rets: (N, 1) f32.

    params: {"beta_w": [(out,in)]*4, "beta_bn": [(gamma,beta,mean,var)]*4,
             "factor_w": [(out,in)]*2}   (PyTorch weight layout)
    Returns (pred_rets (N,1), betas (N,K), factors (K,), port_rets (P,),
             factor_intermediates (K,)).
    """
    f32, bf16 = jnp.float32, jnp.bfloat16
    N, P = chrs.shape
    beta_ws, beta_bns, factor_ws = params["beta_w"], params["beta_bn"], params["factor_w"]
    K = beta_ws[-1].shape[0]
    layer_sizes = [w.shape[0] for w in beta_ws]

    # Large lane-dense batch tiles, but keep >= 2 grid steps when possible so the
    # "parallel" axis can be sharded across v7x's two TensorCores.
    tile_n = min(tile_n, max(128, pl.next_power_of_2(pl.cdiv(N, 2))))
    n_pad = tile_n * pl.cdiv(N, tile_n)
    if n_pad != N:
        chrs = jnp.pad(chrs, ((0, n_pad - N), (0, 0)))    # zero rows don't affect X^T X
        rets = jnp.pad(rets, ((0, n_pad - N), (0, 0)))
    grid = (n_pad // tile_n,)

    chrs_t = chrs.T                                       # (P, n_pad) f32, batch on lanes
    rets_t = rets.T                                       # (1, n_pad) f32

    # ---- Kernel 1: A = X^T X, c = r^T X (f32 reduction over batch tiles) ----
    a_mat, c_row = pl.pallas_call(
        _gram_kernel,
        out_shape=(jax.ShapeDtypeStruct((P, P), f32),
                   jax.ShapeDtypeStruct((1, P), f32)),
        grid=grid,
        in_specs=[
            pl.BlockSpec((P, tile_n), lambda i: (0, i)),
            pl.BlockSpec((tile_n, P), lambda i: (i, 0)),
            pl.BlockSpec((1, tile_n), lambda i: (0, i)),
        ],
        out_specs=(pl.BlockSpec((P, P), lambda i: (0, 0)),
                   pl.BlockSpec((1, P), lambda i: (0, 0))),
        compiler_params=pltpu.CompilerParams(dimension_semantics=("arbitrary",)),
    )(chrs_t, chrs, rets_t)

    # TODO(synk): torch.inverse / the PxP linear solve has no Pallas primitive; done with
    # jnp.linalg.solve between the kernels.
    port_raw = jnp.linalg.solve(a_mat, c_row.T).reshape(1, P)

    # ---- Kernel 2: threshold + factor MLP ----
    wf1 = factor_ws[0].T.astype(bf16)                     # (P, H)
    wf2 = factor_ws[1].T.astype(bf16)                     # (H, K)
    port_row, fac_row = pl.pallas_call(
        _factor_kernel,
        out_shape=(jax.ShapeDtypeStruct((1, P), f32),
                   jax.ShapeDtypeStruct((1, K), f32)),
    )(port_raw, wf1, wf2)

    # ---- Kernel 3: beta MLP + pred_rets (transposed, lane-dense) ----
    eps = 1e-5
    scales, shifts = [], []
    for g, b, m, v in beta_bns:                           # fold eval-mode BN to affine
        s = g / jnp.sqrt(v + eps)
        scales.append(s)
        shifts.append(b - m * s)
    scl_cat = jnp.concatenate(scales).reshape(-1, 1).astype(f32)   # (sum(sizes), 1)
    sft_cat = jnp.concatenate(shifts).reshape(-1, 1).astype(f32)

    chrs_t_bf = chrs_t.astype(bf16)
    w_bf = [w.astype(bf16) for w in beta_ws]
    fac_col = fac_row.reshape(K, 1)

    def _rep(shape):
        return pl.BlockSpec(shape, lambda i: tuple(0 for _ in shape))

    in_specs = [pl.BlockSpec((P, tile_n), lambda i: (0, i))]
    in_specs += [_rep(w.shape) for w in w_bf]
    in_specs += [_rep(scl_cat.shape), _rep(sft_cat.shape), _rep((K, 1))]

    dims = [P] + layer_sizes
    cost = pl.CostEstimate(
        flops=2 * n_pad * sum(a * b for a, b in zip(dims[:-1], dims[1:])),
        transcendentals=n_pad * sum(layer_sizes),
        bytes_accessed=chrs_t_bf.size * 2 + (K + 1) * n_pad * 4
                       + sum(w.size * 2 for w in w_bf),
    )

    betas_t, pred_t = pl.pallas_call(
        _make_beta_kernel(layer_sizes),
        out_shape=(jax.ShapeDtypeStruct((K, n_pad), f32),
                   jax.ShapeDtypeStruct((1, n_pad), f32)),
        grid=grid,
        in_specs=in_specs,
        out_specs=(pl.BlockSpec((K, tile_n), lambda i: (0, i)),
                   pl.BlockSpec((1, tile_n), lambda i: (0, i))),
        compiler_params=pltpu.CompilerParams(dimension_semantics=("parallel",)),
        cost_estimate=cost,
    )(chrs_t_bf, *w_bf, scl_cat, sft_cat, fac_col)

    betas = betas_t[:, :N].T                              # (N, K)
    pred_rets = pred_t[:, :N].T                           # (N, 1)
    factors = fac_row.reshape(K)
    port_rets = port_row.reshape(P)
    factor_intermediates = factors                        # factor head is Identity
    return pred_rets, betas, factors, port_rets, factor_intermediates


def init_params(key, *, num_chrs=95, num_factors=6,
                beta_arch=(32, 16, 8), factor_arch=(32,)):
    """PyTorch-layout params: Linear weights (out, in); BN as (gamma, beta, mean, var)."""
    beta_dims = [num_chrs, *beta_arch, num_factors]
    factor_dims = [num_chrs, *factor_arch, num_factors]

    def linear_w(k, fan_in, fan_out):
        bound = 1.0 / (fan_in ** 0.5)
        return jax.random.uniform(k, (fan_out, fan_in), jnp.float32, -bound, bound)

    beta_w, beta_bn, factor_w = [], [], []
    for din, dout in zip(beta_dims[:-1], beta_dims[1:]):
        key, kw, kg, kb, km, kv = jax.random.split(key, 6)
        beta_w.append(linear_w(kw, din, dout))
        beta_bn.append((
            jax.random.uniform(kg, (dout,), jnp.float32, 0.5, 1.5),    # gamma
            jax.random.uniform(kb, (dout,), jnp.float32, -0.5, 0.5),   # beta
            0.1 * jax.random.normal(km, (dout,), jnp.float32),         # running_mean
            jax.random.uniform(kv, (dout,), jnp.float32, 0.5, 1.5),    # running_var
        ))
    for din, dout in zip(factor_dims[:-1], factor_dims[1:]):
        key, kw = jax.random.split(key)
        factor_w.append(linear_w(kw, din, dout))
    return {"beta_w": beta_w, "beta_bn": beta_bn, "factor_w": factor_w}


def gkx_reference(chrs, rets, params, eps=1e-5):
    """Pure-JAX reference mirroring the kernels' bf16-MXU-input / f32-accumulate math."""
    hp = jax.lax.Precision.HIGHEST
    bf16, f32 = jnp.bfloat16, jnp.float32

    a_mat = jnp.dot(chrs.T, chrs, precision=hp)
    c = jnp.dot(chrs.T, rets, precision=hp)
    port = jnp.linalg.solve(a_mat, c).reshape(-1)
    port = jnp.where(jnp.abs(port) > 0.5, 0.0, port)

    # factor model: SiLU after every Linear, no bias, Identity head
    h = port.astype(bf16)
    z = None
    for w in params["factor_w"]:
        z = _silu(jnp.dot(h, w.T.astype(bf16), preferred_element_type=f32))
        h = z.astype(bf16)
    factors = z
    factor_intermediates = factors

    # beta model: SiLU + eval-mode BatchNorm after every Linear, no bias
    x = chrs.astype(bf16)
    y = None
    for w, (g, b, m, v) in zip(params["beta_w"], params["beta_bn"]):
        z = _silu(jnp.dot(x, w.T.astype(bf16), preferred_element_type=f32))
        s = g / jnp.sqrt(v + eps)
        t = b - m * s
        y = z * s[None, :] + t[None, :]
        x = y.astype(bf16)
    betas = y

    pred_rets = jnp.sum(betas * factors[None, :], axis=1, keepdims=True)
    return pred_rets, betas, factors, port, factor_intermediates


if __name__ == "__main__":
    N, P, K = 256, 95, 6        # assets, characteristics, factors (module defaults)
    key = jax.random.PRNGKey(0)
    kc, kr, kp = jax.random.split(key, 3)

    # Inputs are snapped to the bf16 grid so the Pallas-vs-XLA check is independent of
    # the MXU's f32 multi-pass precision mode (all matmul products are then exact).
    chrs = jax.random.normal(kc, (N, P), jnp.float32).astype(jnp.bfloat16).astype(jnp.float32)
    rets = jax.random.normal(kr, (N, 1), jnp.float32).astype(jnp.bfloat16).astype(jnp.float32)
    params = init_params(kp, num_chrs=P, num_factors=K)

    outs = jax.jit(gkx_forward)(chrs, rets, params)
    outs = jax.block_until_ready(outs)
    refs = gkx_reference(chrs, rets, params)

    names = ["pred_rets", "betas", "factors", "port_rets", "factor_intermediates"]
    expected_shapes = [(N, 1), (N, K), (K,), (P,), (K,)]
    for name, shp, o, r in zip(names, expected_shapes, outs, refs):
        assert o.shape == shp, (name, o.shape, shp)
        assert jnp.allclose(o, r, rtol=1e-2, atol=5e-4), (
            name, float(jnp.max(jnp.abs(o - r))))

    print("KERNEL_OK")
</pallas_src>

<mosaic_0001>
module attributes {stable_mosaic.version = 11 : i64} {
  func.func @_gram_kernel(%arg0: i32, %arg1: memref<95x128xf32, #tpu.memory_space<vmem>>, %arg2: memref<128x95xf32, #tpu.memory_space<vmem>>, %arg3: memref<1x128xf32, #tpu.memory_space<vmem>>, %arg4: memref<95x95xf32, #tpu.memory_space<vmem>>, %arg5: memref<1x95xf32, #tpu.memory_space<vmem>>) attributes {dimension_semantics = [#tpu.dimension_semantics<arbitrary>], iteration_bounds = array<i64: 2>, scalar_prefetch = 0 : i64, scratch_operands = 0 : i64, tpu.core_type = #tpu.core_type<tc>, window_params = [{transform_indices = @transform_0, window_bounds = array<i64: 95, 128>}, {transform_indices = @transform_1, window_bounds = array<i64: 128, 95>}, {transform_indices = @transform_2, window_bounds = array<i64: 1, 128>}, {pipeline_mode = #tpu.pipeline_mode<synchronous>, transform_indices = @transform_3, window_bounds = array<i64: 95, 95>}, {pipeline_mode = #tpu.pipeline_mode<synchronous>, transform_indices = @transform_4, window_bounds = array<i64: 1, 95>}]} {
    %c0_i32 = arith.constant 0 : i32
    %0 = arith.cmpi eq, %arg0, %c0_i32 : i32
    %1 = arith.extui %0 : i1 to i32
    %c0_i32_0 = arith.constant 0 : i32
    %2 = arith.cmpi ne, %1, %c0_i32_0 : i32
    scf.if %2 {
      %cst_15 = arith.constant 0.000000e+00 : f32
      %14 = vector.broadcast %cst_15 : f32 to vector<95x95xf32>
      %c0_16 = arith.constant 0 : index
      %c0_17 = arith.constant 0 : index
      %15 = vector.load %arg4[%c0_16, %c0_17] : memref<95x95xf32, #tpu.memory_space<vmem>>, vector<95x95xf32>
      tpu.vector_store %arg4[%c0_16, %c0_17], %14 {strides = array<i32>} : memref<95x95xf32, #tpu.memory_space<vmem>>, vector<95x95xf32>,
      %cst_18 = arith.constant 0.000000e+00 : f32
      %16 = vector.broadcast %cst_18 : f32 to vector<1x95xf32>
      %c0_19 = arith.constant 0 : index
      %c0_20 = arith.constant 0 : index
      %17 = vector.load %arg5[%c0_19, %c0_20] : memref<1x95xf32, #tpu.memory_space<vmem>>, vector<1x95xf32>
      tpu.vector_store %arg5[%c0_19, %c0_20], %16 {strides = array<i32>} : memref<1x95xf32, #tpu.memory_space<vmem>>, vector<1x95xf32>,
    } else {
    }
    %c0 = arith.constant 0 : index
    %c0_1 = arith.constant 0 : index
    %3 = vector.load %arg2[%c0, %c0_1] : memref<128x95xf32, #tpu.memory_space<vmem>>, vector<128x95xf32>
    %c0_2 = arith.constant 0 : index
    %c0_3 = arith.constant 0 : index
    %4 = vector.load %arg4[%c0_2, %c0_3] : memref<95x95xf32, #tpu.memory_space<vmem>>, vector<95x95xf32>
    %c0_4 = arith.constant 0 : index
    %c0_5 = arith.constant 0 : index
    %5 = vector.load %arg1[%c0_4, %c0_5] : memref<95x128xf32, #tpu.memory_space<vmem>>, vector<95x128xf32>
    %cst = arith.constant dense<0.000000e+00> : vector<95x95xf32>
    %6 = tpu.matmul %5, %3, %cst {dimension_numbers = #tpu.dot_dimension_numbers<[1], [0], [0], [1], [0, 0, 1, 1], [], []>} : vector<95x128xf32>, vector<128x95xf32>, vector<95x95xf32> -> vector<95x95xf32>
    %7 = arith.addf %4, %6 : vector<95x95xf32>
    %c0_6 = arith.constant 0 : index
    %c0_7 = arith.constant 0 : index
    %8 = vector.load %arg4[%c0_6, %c0_7] : memref<95x95xf32, #tpu.memory_space<vmem>>, vector<95x95xf32>
    tpu.vector_store %arg4[%c0_6, %c0_7], %7 {strides = array<i32>} : memref<95x95xf32, #tpu.memory_space<vmem>>, vector<95x95xf32>,
    %c0_8 = arith.constant 0 : index
    %c0_9 = arith.constant 0 : index
    %9 = vector.load %arg5[%c0_8, %c0_9] : memref<1x95xf32, #tpu.memory_space<vmem>>, vector<1x95xf32>
    %c0_10 = arith.constant 0 : index
    %c0_11 = arith.constant 0 : index
    %10 = vector.load %arg3[%c0_10, %c0_11] : memref<1x128xf32, #tpu.memory_space<vmem>>, vector<1x128xf32>
    %cst_12 = arith.constant dense<0.000000e+00> : vector<1x95xf32>
    %11 = tpu.matmul %10, %3, %cst_12 {dimension_numbers = #tpu.dot_dimension_numbers<[1], [0], [0], [1], [0, 0, 1, 1], [], []>} : vector<1x128xf32>, vector<128x95xf32>, vector<1x95xf32> -> vector<1x95xf32>
    %12 = arith.addf %9, %11 : vector<1x95xf32>
    %c0_13 = arith.constant 0 : index
    %c0_14 = arith.constant 0 : index
    %13 = vector.load %arg5[%c0_13, %c0_14] : memref<1x95xf32, #tpu.memory_space<vmem>>, vector<1x95xf32>
    tpu.vector_store %arg5[%c0_13, %c0_14], %12 {strides = array<i32>} : memref<1x95xf32, #tpu.memory_space<vmem>>, vector<1x95xf32>,
    return
  }
  func.func @transform_0(%arg0: i32) -> (i32, i32) {
    %c0_i32 = arith.constant 0 : i32
    %c0_i32_0 = arith.constant 0 : i32
    return %c0_i32, %arg0 : i32, i32
  }
  func.func @transform_1(%arg0: i32) -> (i32, i32) {
    %c0_i32 = arith.constant 0 : i32
    %c0_i32_0 = arith.constant 0 : i32
    return %arg0, %c0_i32 : i32, i32
  }
  func.func @transform_2(%arg0: i32) -> (i32, i32) {
    %c0_i32 = arith.constant 0 : i32
    %c0_i32_0 = arith.constant 0 : i32
    return %c0_i32, %arg0 : i32, i32
  }
  func.func @transform_3(%arg0: i32) -> (i32, i32) {
    %c0_i32 = arith.constant 0 : i32
    %c0_i32_0 = arith.constant 0 : i32
    %c0_i32_1 = arith.constant 0 : i32
    return %c0_i32, %c0_i32_0 : i32, i32
  }
  func.func @transform_4(%arg0: i32) -> (i32, i32) {
    %c0_i32 = arith.constant 0 : i32
    %c0_i32_0 = arith.constant 0 : i32
    %c0_i32_1 = arith.constant 0 : i32
    return %c0_i32, %c0_i32_0 : i32, i32
  }
}

module attributes {stable_mosaic.version = 11 : i64} {
  func.func @_factor_kernel(%arg0: memref<1x95xf32, #tpu.memory_space<vmem>>, %arg1: memref<95x32xbf16, #tpu.memory_space<vmem>>, %arg2: memref<32x6xbf16, #tpu.memory_space<vmem>>, %arg3: memref<1x95xf32, #tpu.memory_space<vmem>>, %arg4: memref<1x6xf32, #tpu.memory_space<vmem>>) attributes {dimension_semantics = [], scalar_prefetch = 0 : i64, scratch_operands = 0 : i64, tpu.core_type = #tpu.core_type<tc>} {
    %c0 = arith.constant 0 : index
    %c0_0 = arith.constant 0 : index
    %0 = vector.load %arg0[%c0, %c0_0] : memref<1x95xf32, #tpu.memory_space<vmem>>, vector<1x95xf32>
    %1 = math.absf %0 : vector<1x95xf32>
    %cst = arith.constant 5.000000e-01 : f32
    %2 = vector.broadcast %cst : f32 to vector<1x95xf32>
    %3 = arith.cmpf ogt, %1, %2 : vector<1x95xf32>
    %cst_1 = arith.constant 0.000000e+00 : f32
    %4 = vector.broadcast %cst_1 : f32 to vector<1x95xf32>
    %5 = arith.select %3, %4, %0 : vector<1x95xi1>, vector<1x95xf32>
    %c0_2 = arith.constant 0 : index
    %c0_3 = arith.constant 0 : index
    %6 = vector.load %arg3[%c0_2, %c0_3] : memref<1x95xf32, #tpu.memory_space<vmem>>, vector<1x95xf32>
    tpu.vector_store %arg3[%c0_2, %c0_3], %5 {strides = array<i32>} : memref<1x95xf32, #tpu.memory_space<vmem>>, vector<1x95xf32>,
    %7 = arith.truncf %5 : vector<1x95xf32> to vector<1x95xbf16>
    %c0_4 = arith.constant 0 : index
    %c0_5 = arith.constant 0 : index
    %8 = vector.load %arg1[%c0_4, %c0_5] : memref<95x32xbf16, #tpu.memory_space<vmem>>, vector<95x32xbf16>
    %cst_6 = arith.constant dense<0.000000e+00> : vector<1x32xf32>
    %9 = tpu.matmul %7, %8, %cst_6 {dimension_numbers = #tpu.dot_dimension_numbers<[1], [0], [0], [1], [0, 0, 1, 1], [], []>} : vector<1x95xbf16>, vector<95x32xbf16>, vector<1x32xf32> -> vector<1x32xf32>
    %cst_7 = arith.constant 0.000000e+00 : f32
    %10 = vector.broadcast %cst_7 : f32 to vector<1x32xf32>
    %11 = arith.subf %10, %9 : vector<1x32xf32>
    %12 = math.exp %11 : vector<1x32xf32>
    %cst_8 = arith.constant 1.000000e+00 : f32
    %13 = vector.broadcast %cst_8 : f32 to vector<1x32xf32>
    %14 = arith.addf %13, %12 : vector<1x32xf32>
    %15 = arith.divf %9, %14 : vector<1x32xf32>
    %16 = arith.truncf %15 : vector<1x32xf32> to vector<1x32xbf16>
    %c0_9 = arith.constant 0 : index
    %c0_10 = arith.constant 0 : index
    %17 = vector.load %arg2[%c0_9, %c0_10] : memref<32x6xbf16, #tpu.memory_space<vmem>>, vector<32x6xbf16>
    %cst_11 = arith.constant dense<0.000000e+00> : vector<1x6xf32>
    %18 = tpu.matmul %16, %17, %cst_11 {dimension_numbers = #tpu.dot_dimension_numbers<[1], [0], [0], [1], [0, 0, 1, 1], [], []>} : vector<1x32xbf16>, vector<32x6xbf16>, vector<1x6xf32> -> vector<1x6xf32>
    %cst_12 = arith.constant 0.000000e+00 : f32
    %19 = vector.broadcast %cst_12 : f32 to vector<1x6xf32>
    %20 = arith.subf %19, %18 : vector<1x6xf32>
    %21 = math.exp %20 : vector<1x6xf32>
    %cst_13 = arith.constant 1.000000e+00 : f32
    %22 = vector.broadcast %cst_13 : f32 to vector<1x6xf32>
    %23 = arith.addf %22, %21 : vector<1x6xf32>
    %24 = arith.divf %18, %23 : vector<1x6xf32>
    %c0_14 = arith.constant 0 : index
    %c0_15 = arith.constant 0 : index
    %25 = vector.load %arg4[%c0_14, %c0_15] : memref<1x6xf32, #tpu.memory_space<vmem>>, vector<1x6xf32>
    tpu.vector_store %arg4[%c0_14, %c0_15], %24 {strides = array<i32>} : memref<1x6xf32, #tpu.memory_space<vmem>>, vector<1x6xf32>,
    return
  }
}

module attributes {stable_mosaic.version = 11 : i64} {
  func.func @beta_kernel(%arg0: i32, %arg1: memref<95x128xbf16, #tpu.memory_space<vmem>>, %arg2: memref<32x95xbf16, #tpu.memory_space<vmem>>, %arg3: memref<16x32xbf16, #tpu.memory_space<vmem>>, %arg4: memref<8x16xbf16, #tpu.memory_space<vmem>>, %arg5: memref<6x8xbf16, #tpu.memory_space<vmem>>, %arg6: memref<62x1xf32, #tpu.memory_space<vmem>>, %arg7: memref<62x1xf32, #tpu.memory_space<vmem>>, %arg8: memref<6x1xf32, #tpu.memory_space<vmem>>, %arg9: memref<6x128xf32, #tpu.memory_space<vmem>>, %arg10: memref<1x128xf32, #tpu.memory_space<vmem>>) attributes {dimension_semantics = [#tpu.dimension_semantics<parallel>], iteration_bounds = array<i64: 2>, scalar_prefetch = 0 : i64, scratch_operands = 0 : i64, tpu.core_type = #tpu.core_type<tc>, window_params = [{transform_indices = @transform_0, window_bounds = array<i64: 95, 128>}, {pipeline_mode = #tpu.pipeline_mode<synchronous>, transform_indices = @transform_1, window_bounds = array<i64: 32, 95>}, {pipeline_mode = #tpu.pipeline_mode<synchronous>, transform_indices = @transform_2, window_bounds = array<i64: 16, 32>}, {pipeline_mode = #tpu.pipeline_mode<synchronous>, transform_indices = @transform_3, window_bounds = array<i64: 8, 16>}, {pipeline_mode = #tpu.pipeline_mode<synchronous>, transform_indices = @transform_4, window_bounds = array<i64: 6, 8>}, {pipeline_mode = #tpu.pipeline_mode<synchronous>, transform_indices = @transform_5, window_bounds = array<i64: 62, 1>}, {pipeline_mode = #tpu.pipeline_mode<synchronous>, transform_indices = @transform_6, window_bounds = array<i64: 62, 1>}, {pipeline_mode = #tpu.pipeline_mode<synchronous>, transform_indices = @transform_7, window_bounds = array<i64: 6, 1>}, {transform_indices = @transform_8, window_bounds = array<i64: 6, 128>}, {transform_indices = @transform_9, window_bounds = array<i64: 1, 128>}]} {
    %c0 = arith.constant 0 : index
    %c0_0 = arith.constant 0 : index
    %0 = vector.load %arg6[%c0, %c0_0] : memref<62x1xf32, #tpu.memory_space<vmem>>, vector<62x1xf32>
    %c0_1 = arith.constant 0 : index
    %c0_2 = arith.constant 0 : index
    %1 = vector.load %arg7[%c0_1, %c0_2] : memref<62x1xf32, #tpu.memory_space<vmem>>, vector<62x1xf32>
    %c0_3 = arith.constant 0 : index
    %c0_4 = arith.constant 0 : index
    %2 = vector.load %arg1[%c0_3, %c0_4] : memref<95x128xbf16, #tpu.memory_space<vmem>>, vector<95x128xbf16>
    %c0_5 = arith.constant 0 : index
    %c0_6 = arith.constant 0 : index
    %3 = vector.load %arg2[%c0_5, %c0_6] : memref<32x95xbf16, #tpu.memory_space<vmem>>, vector<32x95xbf16>
    %cst = arith.constant dense<0.000000e+00> : vector<32x128xf32>
    %4 = tpu.matmul %3, %2, %cst {dimension_numbers = #tpu.dot_dimension_numbers<[1], [0], [0], [1], [0, 0, 1, 1], [], []>} : vector<32x95xbf16>, vector<95x128xbf16>, vector<32x128xf32> -> vector<32x128xf32>
    %cst_7 = arith.constant 0.000000e+00 : f32
    %5 = vector.broadcast %cst_7 : f32 to vector<32x128xf32>
    %6 = arith.subf %5, %4 : vector<32x128xf32>
    %7 = math.exp %6 : vector<32x128xf32>
    %cst_8 = arith.constant 1.000000e+00 : f32
    %8 = vector.broadcast %cst_8 : f32 to vector<32x128xf32>
    %9 = arith.addf %8, %7 : vector<32x128xf32>
    %10 = arith.divf %4, %9 : vector<32x128xf32>
    %11 = vector.extract_strided_slice %0 {offsets = [0, 0], sizes = [32, 1], strides = [1, 1]} : vector<62x1xf32> to vector<32x1xf32>
    %12 = vector.extract_strided_slice %1 {offsets = [0, 0], sizes = [32, 1], strides = [1, 1]} : vector<62x1xf32> to vector<32x1xf32>
    %13 = vector.broadcast %11 : vector<32x1xf32> to vector<32x128xf32>
    %14 = arith.mulf %13, %10 : vector<32x128xf32>
    %15 = vector.broadcast %12 : vector<32x1xf32> to vector<32x128xf32>
    %16 = arith.addf %14, %15 : vector<32x128xf32>
    %17 = arith.truncf %16 : vector<32x128xf32> to vector<32x128xbf16>
    %c0_9 = arith.constant 0 : index
    %c0_10 = arith.constant 0 : index
    %18 = vector.load %arg3[%c0_9, %c0_10] : memref<16x32xbf16, #tpu.memory_space<vmem>>, vector<16x32xbf16>
    %cst_11 = arith.constant dense<0.000000e+00> : vector<16x128xf32>
    %19 = tpu.matmul %18, %17, %cst_11 {dimension_numbers = #tpu.dot_dimension_numbers<[1], [0], [0], [1], [0, 0, 1, 1], [], []>} : vector<16x32xbf16>, vector<32x128xbf16>, vector<16x128xf32> -> vector<16x128xf32>
    %cst_12 = arith.constant 0.000000e+00 : f32
    %20 = vector.broadcast %cst_12 : f32 to vector<16x128xf32>
    %21 = arith.subf %20, %19 : vector<16x128xf32>
    %22 = math.exp %21 : vector<16x128xf32>
    %cst_13 = arith.constant 1.000000e+00 : f32
    %23 = vector.broadcast %cst_13 : f32 to vector<16x128xf32>
    %24 = arith.addf %23, %22 : vector<16x128xf32>
    %25 = arith.divf %19, %24 : vector<16x128xf32>
    %26 = vector.extract_strided_slice %0 {offsets = [32, 0], sizes = [16, 1], strides = [1, 1]} : vector<62x1xf32> to vector<16x1xf32>
    %27 = vector.extract_strided_slice %1 {offsets = [32, 0], sizes = [16, 1], strides = [1, 1]} : vector<62x1xf32> to vector<16x1xf32>
    %28 = vector.broadcast %26 : vector<16x1xf32> to vector<16x128xf32>
    %29 = arith.mulf %28, %25 : vector<16x128xf32>
    %30 = vector.broadcast %27 : vector<16x1xf32> to vector<16x128xf32>
    %31 = arith.addf %29, %30 : vector<16x128xf32>
    %32 = arith.truncf %31 : vector<16x128xf32> to vector<16x128xbf16>
    %c0_14 = arith.constant 0 : index
    %c0_15 = arith.constant 0 : index
    %33 = vector.load %arg4[%c0_14, %c0_15] : memref<8x16xbf16, #tpu.memory_space<vmem>>, vector<8x16xbf16>
    %cst_16 = arith.constant dense<0.000000e+00> : vector<8x128xf32>
    %34 = tpu.matmul %33, %32, %cst_16 {dimension_numbers = #tpu.dot_dimension_numbers<[1], [0], [0], [1], [0, 0, 1, 1], [], []>} : vector<8x16xbf16>, vector<16x128xbf16>, vector<8x128xf32> -> vector<8x128xf32>
    %cst_17 = arith.constant 0.000000e+00 : f32
    %35 = vector.broadcast %cst_17 : f32 to vector<8x128xf32>
    %36 = arith.subf %35, %34 : vector<8x128xf32>
    %37 = math.exp %36 : vector<8x128xf32>
    %cst_18 = arith.constant 1.000000e+00 : f32
    %38 = vector.broadcast %cst_18 : f32 to vector<8x128xf32>
    %39 = arith.addf %38, %37 : vector<8x128xf32>
    %40 = arith.divf %34, %39 : vector<8x128xf32>
    %41 = vector.extract_strided_slice %0 {offsets = [48, 0], sizes = [8, 1], strides = [1, 1]} : vector<62x1xf32> to vector<8x1xf32>
    %42 = vector.extract_strided_slice %1 {offsets = [48, 0], sizes = [8, 1], strides = [1, 1]} : vector<62x1xf32> to vector<8x1xf32>
    %43 = vector.broadcast %41 : vector<8x1xf32> to vector<8x128xf32>
    %44 = arith.mulf %43, %40 : vector<8x128xf32>
    %45 = vector.broadcast %42 : vector<8x1xf32> to vector<8x128xf32>
    %46 = arith.addf %44, %45 : vector<8x128xf32>
    %47 = arith.truncf %46 : vector<8x128xf32> to vector<8x128xbf16>
    %c0_19 = arith.constant 0 : index
    %c0_20 = arith.constant 0 : index
    %48 = vector.load %arg5[%c0_19, %c0_20] : memref<6x8xbf16, #tpu.memory_space<vmem>>, vector<6x8xbf16>
    %cst_21 = arith.constant dense<0.000000e+00> : vector<6x128xf32>
    %49 = tpu.matmul %48, %47, %cst_21 {dimension_numbers = #tpu.dot_dimension_numbers<[1], [0], [0], [1], [0, 0, 1, 1], [], []>} : vector<6x8xbf16>, vector<8x128xbf16>, vector<6x128xf32> -> vector<6x128xf32>
    %cst_22 = arith.constant 0.000000e+00 : f32
    %50 = vector.broadcast %cst_22 : f32 to vector<6x128xf32>
    %51 = arith.subf %50, %49 : vector<6x128xf32>
    %52 = math.exp %51 : vector<6x128xf32>
    %cst_23 = arith.constant 1.000000e+00 : f32
    %53 = vector.broadcast %cst_23 : f32 to vector<6x128xf32>
    %54 = arith.addf %53, %52 : vector<6x128xf32>
    %55 = arith.divf %49, %54 : vector<6x128xf32>
    %56 = vector.extract_strided_slice %0 {offsets = [56, 0], sizes = [6, 1], strides = [1, 1]} : vector<62x1xf32> to vector<6x1xf32>
    %57 = vector.extract_strided_slice %1 {offsets = [56, 0], sizes = [6, 1], strides = [1, 1]} : vector<62x1xf32> to vector<6x1xf32>
    %58 = vector.broadcast %56 : vector<6x1xf32> to vector<6x128xf32>
    %59 = arith.mulf %58, %55 : vector<6x128xf32>
    %60 = vector.broadcast %57 : vector<6x1xf32> to vector<6x128xf32>
    %61 = arith.addf %59, %60 : vector<6x128xf32>
    %c0_24 = arith.constant 0 : index
    %c0_25 = arith.constant 0 : index
    %62 = vector.load %arg9[%c0_24, %c0_25] : memref<6x128xf32, #tpu.memory_space<vmem>>, vector<6x128xf32>
    tpu.vector_store %arg9[%c0_24, %c0_25], %61 {strides = array<i32>} : memref<6x128xf32, #tpu.memory_space<vmem>>, vector<6x128xf32>,
    %c0_26 = arith.constant 0 : index
    %c0_27 = arith.constant 0 : index
    %63 = vector.load %arg8[%c0_26, %c0_27] : memref<6x1xf32, #tpu.memory_space<vmem>>, vector<6x1xf32>
    %64 = vector.broadcast %63 : vector<6x1xf32> to vector<6x128xf32>
    %65 = arith.mulf %64, %61 : vector<6x128xf32>
    %cst_28 = arith.constant dense<0.000000e+00> : vector<128xf32>
    %66 = vector.multi_reduction <add>, %65, %cst_28 [0] : vector<6x128xf32> to vector<128xf32>
    %67 = vector.shape_cast %66 : vector<128xf32> to vector<1x128xf32>
    %c0_29 = arith.constant 0 : index
    %c0_30 = arith.constant 0 : index
    %68 = vector.load %arg10[%c0_29, %c0_30] : memref<1x128xf32, #tpu.memory_space<vmem>>, vector<1x128xf32>
    tpu.vector_store %arg10[%c0_29, %c0_30], %67 {strides = array<i32>} : memref<1x128xf32, #tpu.memory_space<vmem>>, vector<1x128xf32>,
    return
  }
  func.func @transform_0(%arg0: i32) -> (i32, i32) {
    %c0_i32 = arith.constant 0 : i32
    %c0_i32_0 = arith.constant 0 : i32
    return %c0_i32, %arg0 : i32, i32
  }
  func.func @transform_1(%arg0: i32) -> (i32, i32) {
    %c0_i32 = arith.constant 0 : i32
    %c0_i32_0 = arith.constant 0 : i32
    %c0_i32_1 = arith.constant 0 : i32
    return %c0_i32, %c0_i32_0 : i32, i32
  }
  func.func @transform_2(%arg0: i32) -> (i32, i32) {
    %c0_i32 = arith.constant 0 : i32
    %c0_i32_0 = arith.constant 0 : i32
    %c0_i32_1 = arith.constant 0 : i32
    return %c0_i32, %c0_i32_0 : i32, i32
  }
  func.func @transform_3(%arg0: i32) -> (i32, i32) {
    %c0_i32 = arith.constant 0 : i32
    %c0_i32_0 = arith.constant 0 : i32
    %c0_i32_1 = arith.constant 0 : i32
    return %c0_i32, %c0_i32_0 : i32, i32
  }
  func.func @transform_4(%arg0: i32) -> (i32, i32) {
    %c0_i32 = arith.constant 0 : i32
    %c0_i32_0 = arith.constant 0 : i32
    %c0_i32_1 = arith.constant 0 : i32
    return %c0_i32, %c0_i32_0 : i32, i32
  }
  func.func @transform_5(%arg0: i32) -> (i32, i32) {
    %c0_i32 = arith.constant 0 : i32
    %c0_i32_0 = arith.constant 0 : i32
    %c0_i32_1 = arith.constant 0 : i32
    return %c0_i32, %c0_i32_0 : i32, i32
  }
  func.func @transform_6(%arg0: i32) -> (i32, i32) {
    %c0_i32 = arith.constant 0 : i32
    %c0_i32_0 = arith.constant 0 : i32
    %c0_i32_1 = arith.constant 0 : i32
    return %c0_i32, %c0_i32_0 : i32, i32
  }
  func.func @transform_7(%arg0: i32) -> (i32, i32) {
    %c0_i32 = arith.constant 0 : i32
    %c0_i32_0 = arith.constant 0 : i32
    %c0_i32_1 = arith.constant 0 : i32
    return %c0_i32, %c0_i32_0 : i32, i32
  }
  func.func @transform_8(%arg0: i32) -> (i32, i32) {
    %c0_i32 = arith.constant 0 : i32
    %c0_i32_0 = arith.constant 0 : i32
    return %c0_i32, %arg0 : i32, i32
  }
  func.func @transform_9(%arg0: i32) -> (i32, i32) {
    %c0_i32 = arith.constant 0 : i32
    %c0_i32_0 = arith.constant 0 : i32
    return %c0_i32, %arg0 : i32, i32
  }
}

</mosaic_0001>

<bundles_post_ra>
// kernel: custom-call.8
= control target key start
LH: loop header
LB: loop body
LE: loop exit
PB: predicated region body
PF: predicated region fallthrough
CT: control target
= control target key end

     0   :  { %5 = vsyncpa [#allocation4], 0  ;;  %s1093_s18 = smov [#allocation0]   ;;  %s1485_s0 = inlined_call_operand.vmem [shape: f32[95,95], index: 0, kind: input, shape index: {}]   ;;  %s1486_s1 = inlined_call_operand.vmem [shape: f32[95,95], index: 1, kind: output, shape index: {0}]   ;;  %s1487_s2 = inlined_call_operand.hbm [shape: s32[95], index: 2, kind: output, shape index: {1}]   ;;  %s1488_s3 = inlined_call_operand.vmem [shape: s32[95], index: 3, kind: output, shape index: {2}]  }
   0x1   :  { %s1163_s14 = scalar_lea.vmem %s1485_s0, 88  ;;  %v20_v0 = vld [vmem:[%s1485_s0] sm:$0xff]   ;;  %s1097_s21 = smov %s1485_s0  }
   0x2   :  { %s830_s17 = sadd.s32 4294967232, %s1163_s14  ;;  %v1089_v1 = vmov %v20_v0  }
   0x3 LB: > { %28 = vst [vmem:[%s1095_s18] sm:$0xff] %v1091_v1  ;;  %v29_v2 = vld [vmem:[%s1099_s21 + $0x8] sm:$0xff]  ;;  %v31_v3 = vld [vmem:[%s1099_s21 + $0x10] sm:$0xff]  ;;  %v33_v4 = vld [vmem:[%s1099_s21 + $0x18] sm:$0xff]  ;;  %s43_s0 = scalar_lea.vmem %s1099_s21, 64   ;;  %s44_s22 = scalar_lea.vmem %s1095_s18, 64   ;;  %s1099_s21 = sphi %s1097_s21, %s1098_s21   ;;  %s1095_s18 = sphi %s1093_s18, %s1094_s18   ;;  %v1091_v1 = vphi %v1089_v1, %v45_v1  }
   0x4   : > { %30 = vst [vmem:[%s1095_s18 + $0x8] sm:$0xff] %v29_v2  ;;  %32 = vst [vmem:[%s1095_s18 + $0x10] sm:$0xff] %v31_v3  ;;  %v35_v5 = vld [vmem:[%s1099_s21 + $0x20] sm:$0xff]  ;;  %v37_v6 = vld [vmem:[%s1099_s21 + $0x28] sm:$0xff]  ;;  %p25_p0 = scmp.gt.s32.totalorder %s43_s0, %s830_s17 }
   0x5   : > { %34 = vst [vmem:[%s1095_s18 + $0x18] sm:$0xff] %v33_v4  ;;  %v39_v7 = vld [vmem:[%s1099_s21 + $0x30] sm:$0xff]  ;;  %36 = vst [vmem:[%s1095_s18 + $0x20] sm:$0xff] %v35_v5  ;;  %v41_v8 = vld [vmem:[%s1099_s21 + $0x38] sm:$0xff]  ;;  %p774_p1 = scmp.gt.s32.totalorder (%p25_p0), %s43_s0, %s1163_s14 }
   0x6   : > { %38 = vst [vmem:[%s1095_s18 + $0x28] sm:$0xff] %v37_v6  ;;  %40 = vst [vmem:[%s1095_s18 + $0x30] sm:$0xff] %v39_v7  ;;  %v45_v1 = vld [vmem:[%s1099_s21 + $0x40] sm:$0xff]   ;;  %s1098_s21 = smov %s43_s0   ;;  %27 = sbr.rel (!%p25_p0) target bundleno = 3 (0x3), region = 192 }
   0x7   : > { %42 = vst [vmem:[%s1095_s18 + $0x38] sm:$0xff] %v41_v8  ;;  %s1094_s18 = smov %s44_s22  }
   0xd   :  { %775 = sbr.rel (%p774_p1) target bundleno = 30 (0x1e), region = 197  ;;  %s1101_s23 = smov (!%p774_p1), %s44_s22  }
   0xe   :  { %s1105_s24 = smov (!%p774_p1), %s43_s0  }
  0x14 LB: > { %v53_v9 = vld [vmem:[%s1107_s24] sm:$0xff]  ;;  %s55_s24 = scalar_lea.vmem %s1107_s24, 8   ;;  %s1107_s24 = sphi %s1105_s24, %s55_s24   ;;  %s1103_s23 = sphi %s1101_s23, %s56_s23  }
  0x15   : > { %54 = vst [vmem:[%s1103_s23] sm:$0xff] %v53_v9  ;;  %s56_s23 = scalar_lea.vmem %s1103_s23, 8   ;;  %p50_p2 = scmp.gt.s32.totalorder %s55_s24, %s1163_s14 }
  0x17   :  { %52 = sbr.rel (!%p50_p2) target bundleno = 20 (0x14), region = 203 }
  0x1e PF:  { %v68_v10 = vld [vmem:[#allocation0] sm:$0xff]  ;;  %v72_v11 = vld [vmem:[#allocation0 + $0x8] sm:$0xff]  ;;  %v76_v12 = vld [vmem:[#allocation0 + $0x10] sm:$0xff]  ;;  %v115_v13 = vlaneseq  ;;  %v1137_v17 = vmov 0   ;;  %s1109_s25 = smov 0  }
  0x1f   :  { %69 = vst [vmem:[#allocation1] sm:$0xff] %v68_v10  ;;  %73 = vst [vmem:[#allocation1 + $0x8] sm:$0xff] %v72_v11  ;;  %v80_v14 = vld [vmem:[#allocation0 + $0x18] sm:$0xff]  ;;  %v84_v15 = vld [vmem:[#allocation0 + $0x20] sm:$0xff] }
  0x20   :  { %77 = vst [vmem:[#allocation1 + $0x10] sm:$0xff] %v76_v12  ;;  %v88_v16 = vld [vmem:[#allocation0 + $0x28] sm:$0xff]  ;;  %114 = vst [vmem:[#allocation2] sm:$0x1] %v1137_v17  ;;  %v92_v18 = vld [vmem:[#allocation0 + $0x30] sm:$0xff]  ;;  %v1177_v21 = vshrl.u32 %v115_v13, 7 }
  0x21   :  { %81 = vst [vmem:[#allocation1 + $0x18] sm:$0xff] %v80_v14  ;;  %85 = vst [vmem:[#allocation1 + $0x20] sm:$0xff] %v84_v15  ;;  %v96_v19 = vld [vmem:[#allocation0 + $0x38] sm:$0xff]  ;;  %v100_v20 = vld [vmem:[#allocation0 + $0x40] sm:$0xff] }
  0x22   :  { %89 = vst [vmem:[#allocation1 + $0x28] sm:$0xff] %v88_v16  ;;  %93 = vst [vmem:[#allocation1 + $0x30] sm:$0xff] %v92_v18  ;;  %v104_v22 = vld [vmem:[#allocation0 + $0x48] sm:$0xff]  ;;  %v108_v23 = vld [vmem:[#allocation0 + $0x50] sm:$0xff] }
  0x23   :  { %97 = vst [vmem:[#allocation1 + $0x38] sm:$0xff] %v96_v19  ;;  %101 = vst [vmem:[#allocation1 + $0x40] sm:$0xff] %v100_v20  ;;  %v112_v24 = vld [vmem:[#allocation0 + $0x58] sm:$0xff] }
  0x24   :  { %105 = vst [vmem:[#allocation1 + $0x48] sm:$0xff] %v104_v22  ;;  %109 = vst [vmem:[#allocation1 + $0x50] sm:$0xff] %v108_v23 }
  0x25   :  { %113 = vst [vmem:[#allocation1 + $0x58] sm:$0xff] %v112_v24 }
  0x26 LB: > { %s832_s26 = sshll.u32 %s1111_s25, 3  ;;  %s123_s25 = sadd.s32 1, %s1111_s25   ;;  %s1111_s25 = sphi %s1109_s25, %s123_s25  }
  0x27   : > { %v127_v25 = vstv %s832_s26  ;;  %s125_s27 = scalar_lea.vmem [#allocation7], %s832_s26  ;;  %p120_p3 = scmp.ge.s32.totalorder %s123_s25, 12  }
  0x28   : > { %v128_v26 = vadd.s32 %v127_v25, %v1177_v21  ;;  %s1180_s28 = smov (%p120_p3), 0  }
  0x29   :  { %122 = sbr.rel (!%p120_p3) target bundleno = 38 (0x26), region = 214 }
  0x2a   : > { %129 = vst [vmem:[%s125_s27] sm:$0xff] %v128_v26 }
  0x30 LB: > { %v140_v27 = vld [vmem:[#allocation1] sm:$0xff]  ;;  %v152_v28 = vld [vmem:[#allocation1 + $0x8] sm:$0xff]  ;;  %v1186_v29 = vadd.s32 8, %v1177_v21  ;;  %v1189_v31 = vstv %s1115_s28  ;;  %v164_v33 = vld [vmem:[#allocation1 + $0x10] sm:$0xff]  ;;  %v1194_v34 = vadd.s32 16, %v1177_v21  ;;  %v1201_v39 = vadd.s32 24, %v1177_v21  ;;  %s1115_s28 = sphi %s1180_s28, %s135_s28  }
  0x31   : > { %v141_v30 = vand.u32 2147483647, %v140_v27  ;;  %v153_v32 = vand.u32 2147483647, %v152_v28  ;;  %vm144_vm0 = vcmp.ge.s32.totalorder %v1177_v21, %v1189_v31  ;;  %v165_v37 = vand.u32 2147483647, %v164_v33 }
  0x32   : > { %vm156_vm3 = vcmp.ge.s32.totalorder %v1186_v29, %v1189_v31  ;;  %v176_v38 = vld [vmem:[#allocation1 + $0x18] sm:$0xff]  ;;  %vm168_vm6 = vcmp.ge.s32.totalorder %v1194_v34, %v1189_v31  ;;  %v188_v43 = vld [vmem:[#allocation1 + $0x20] sm:$0xff]  ;;  %v1207_v44 = vadd.s32 32, %v1177_v21  ;;  %vm180_vm9 = vcmp.ge.s32.totalorder %v1201_v39, %v1189_v31  ;;  %v200_v48 = vld [vmem:[#allocation1 + $0x28] sm:$0xff]  ;;  %s318_s29 = ssub.s32 128, %s1115_s28  ;;  %s330_s30 = scalar_lea.vmem [#allocation1], %s1115_s28 }
  0x33   : > { %vm834_vm1 = vcmp.gt.f32.partialorder %v141_v30, -inf  ;;  %v177_v42 = vand.u32 2147483647, %v176_v38  ;;  %v189_v47 = vand.u32 2147483647, %v188_v43  ;;  %v1213_v49 = vadd.s32 40, %v1177_v21 }
  0x34   : > { %vm148_vm2 = vmand %vm144_vm0, %vm834_vm1  ;;  %vm192_vm12 = vcmp.ge.s32.totalorder %v1207_v44, %v1189_v31  ;;  %v201_v52 = vand.u32 2147483647, %v200_v48  ;;  %v212_v53 = vld [vmem:[#allocation1 + $0x30] sm:$0xff]  ;;  %v1219_v54 = vadd.s32 48, %v1177_v21  ;;  %v224_v58 = vld [vmem:[#allocation1 + $0x38] sm:$0xff]  ;;  %v1225_v59 = vadd.s32 56, %v1177_v21 }
  0x35   : > { %v149_v35 = vsel %vm148_vm2, %v1177_v21, %v1189_v31  ;;  %v150_v36 = vsel %vm148_vm2, %v141_v30, -inf  ;;  %vm204_vm15 = vcmp.ge.s32.totalorder %v1213_v49, %v1189_v31  ;;  %v213_v57 = vand.u32 2147483647, %v212_v53  ;;  %v236_v63 = vld [vmem:[#allocation1 + $0x40] sm:$0xff]  ;;  %v248_v4 = vld [vmem:[#allocation1 + $0x48] sm:$0xff]  ;;  %v260_v9 = vld [vmem:[#allocation1 + $0x50] sm:$0xff] }
  0x36   : > { %vm159_vm4 = vcmp.lt.f32.partialorder %v150_v36, %v153_v32  ;;  %vm216_vm2 = vcmp.ge.s32.totalorder %v1219_v54, %v1189_v31  ;;  %v225_v62 = vand.u32 2147483647, %v224_v58  ;;  %v1231_v0 = vadd.s32 64, %v1177_v21  ;;  %v272_v16 = vld [vmem:[#allocation1 + $0x58] sm:$0xff]  ;;  %s336_s5 = scalar_lea.vmem [#allocation7], %s1115_s28  ;;  %s135_s28 = sadd.s32 1, %s1115_s28  }
  0x37   : > { %vm160_vm5 = vmand %vm156_vm3, %vm159_vm4  ;;  %v237_v3 = vand.u32 2147483647, %v236_v63  ;;  %v1237_v5 = vadd.s32 72, %v1177_v21  ;;  %v249_v8 = vand.u32 2147483647, %v248_v4  ;;  %v1243_v10 = vadd.s32 88, %v1177_v21 }
  0x38   : > { %v161_v40 = vsel %vm160_vm5, %v1186_v29, %v149_v35  ;;  %v162_v41 = vsel %vm160_vm5, %v153_v32, %v150_v36  ;;  %vm228_vm5 = vcmp.ge.s32.totalorder %v1225_v59, %v1189_v31  ;;  %v1246_v11 = vadd.s32 80, %v1177_v21  ;;  %v327_v63 = vld [vmem:[#allocation2] ss:$0 sm:$0xff]  ;;  %p132_p4 = scmp.ge.s32.totalorder %s135_s28, 95  }
  0x39   : > { %vm171_vm7 = vcmp.lt.f32.partialorder %v162_v41, %v165_v37  ;;  %v261_v15 = vand.u32 2147483647, %v260_v9  ;;  %v273_v19 = vand.u32 2147483647, %v272_v16  ;;  %s1138_s8 = smov (%p132_p4), [#allocation1 + $0x58]   ;;  %s1121_s12 = smov (%p132_p4), %s1486_s1  }
  0x3a   : > { %vm172_vm8 = vmand %vm168_vm6, %vm171_vm7  ;;  %s1464_s9 = sadd.s32 (%p132_p4), 4294967232, %s1138_s8  ;;  %s1125_s13 = smov (%p132_p4), [#allocation1]  }
  0x3b   : > { %v173_v45 = vsel %vm172_vm8, %v1194_v34, %v161_v40  ;;  %v174_v46 = vsel %vm172_vm8, %v165_v37, %v162_v41  ;;  %vm240_vm8 = vcmp.ge.s32.totalorder %v1231_v0, %v1189_v31 }
  0x3c   : > { %vm183_vm10 = vcmp.lt.f32.partialorder %v174_v46, %v177_v42 }
  0x3d   : > { %vm184_vm11 = vmand %vm180_vm9, %vm183_vm10 }
  0x3e   : > { %v185_v50 = vsel %vm184_vm11, %v1201_v39, %v173_v45  ;;  %v186_v51 = vsel %vm184_vm11, %v177_v42, %v174_v46  ;;  %vm252_vm11 = vcmp.ge.s32.totalorder %v1237_v5, %v1189_v31 }
  0x3f   : > { %vm195_vm13 = vcmp.lt.f32.partialorder %v186_v51, %v189_v47 }
  0x40   : > { %vm196_vm14 = vmand %vm192_vm12, %vm195_vm13  ;;  %vm276_vm13 = vcmp.ge.s32.totalorder %v1243_v10, %v1189_v31 }
  0x41   : > { %v197_v55 = vsel %vm196_vm14, %v1207_v44, %v185_v50  ;;  %v198_v56 = vsel %vm196_vm14, %v189_v47, %v186_v51  ;;  %vm277_vm14 = vcmp.lt.s32.totalorder %v1243_v10, 95 }
  0x42   : > { %vm207_vm0 = vcmp.lt.f32.partialorder %v198_v56, %v201_v52 }
  0x43   : > { %vm208_vm1 = vmand %vm204_vm15, %vm207_vm0  ;;  %vm264_vm0 = vcmp.ge.s32.totalorder %v1246_v11, %v1189_v31 }
  0x44   : > { %v209_v60 = vsel %vm208_vm1, %v1213_v49, %v197_v55  ;;  %v210_v61 = vsel %vm208_vm1, %v201_v52, %v198_v56 }
  0x45   : > { %vm219_vm3 = vcmp.lt.f32.partialorder %v210_v61, %v213_v57 }
  0x46   : > { %vm220_vm4 = vmand %vm216_vm2, %vm219_vm3 }
  0x47   : > { %v221_v1 = vsel %vm220_vm4, %v1219_v54, %v209_v60  ;;  %v222_v2 = vsel %vm220_vm4, %v213_v57, %v210_v61  ;;  %vm278_vm2 = vmand %vm276_vm13, %vm277_vm14  ;;  %v1261_v61 = vand.u32 127, %v115_v13 }
  0x48   : > { %vm231_vm6 = vcmp.lt.f32.partialorder %v222_v2, %v225_v62 }
  0x49   : > { %vm232_vm7 = vmand %vm228_vm5, %vm231_vm6  ;;  %vm1265_vm13 = vcmp.eq.s32.totalorder %v1261_v61, %v1189_v31 }
  0x4a   : > { %v233_v6 = vsel %vm232_vm7, %v1225_v59, %v221_v1  ;;  %v234_v7 = vsel %vm232_vm7, %v225_v62, %v222_v2  ;;  %v332_v1 = vld [vmem:[%s330_s30] ss:$0 sm:$0xff] }
  0x4b   : > { %vm243_vm9 = vcmp.lt.f32.partialorder %v234_v7, %v237_v3  ;;  %v338_v2 = vld [vmem:[%s336_s5] ss:$0 sm:$0xff] }
  0x4c   : > { %vm244_vm10 = vmand %vm240_vm8, %vm243_vm9 }
  0x4d   : > { %v245_v12 = vsel %vm244_vm10, %v1231_v0, %v233_v6  ;;  %v246_v14 = vsel %vm244_vm10, %v237_v3, %v234_v7 }
  0x4e   : > { %vm255_vm12 = vcmp.lt.f32.partialorder %v246_v14, %v249_v8 }
  0x4f   : > { %vm256_vm15 = vmand %vm252_vm11, %vm255_vm12 }
  0x50   : > { %v257_v17 = vsel %vm256_vm15, %v1237_v5, %v245_v12  ;;  %v258_v18 = vsel %vm256_vm15, %v249_v8, %v246_v14  ;;  %vm371_vm15 = vcmp.gt.s32.totalorder %v1186_v29, %v1189_v31 }
  0x51   : > { %vm267_vm1 = vcmp.lt.f32.partialorder %v258_v18, %v261_v15 }
  0x52   : > { %vm268_vm3 = vmand %vm264_vm0, %vm267_vm1  ;;  %vm356_vm0 = vcmp.gt.s32.totalorder %v1177_v21, %v1189_v31  ;;  %vm386_vm1 = vcmp.gt.s32.totalorder %v1194_v34, %v1189_v31 }
  0x53   : > { %v269_v20 = vsel %vm268_vm3, %v1246_v11, %v257_v17  ;;  %v270_v22 = vsel %vm268_vm3, %v261_v15, %v258_v18  ;;  %vm506_vm3 = vcmp.gt.s32.totalorder %v1246_v11, %v1189_v31 }
  0x54   : > { %vm279_vm4 = vcmp.lt.f32.partialorder %v270_v22, %v273_v19 }
  0x55   : > { %vm280_vm5 = vmand %vm278_vm2, %vm279_vm4  ;;  %vm401_vm4 = vcmp.gt.s32.totalorder %v1201_v39, %v1189_v31 }
  0x56   : > { %v281_v23 = vsel %vm280_vm5, %v1243_v10, %v269_v20  ;;  %v282_v24 = vsel %vm280_vm5, %v273_v19, %v270_v22  ;;  %vm416_vm5 = vcmp.gt.s32.totalorder %v1207_v44, %v1189_v31 }
  0x57   : > { %v283_v25 = vrot.slane %v282_v24, 1  ;;  %v284_v26 = vrot.slane %v281_v23, 1 }
  0x59   : > { %vm285_vm6 = vcmp.ge.f32.partialorder %v283_v25, %v282_v24  ;;  %v288_v27 = vrot.slane %v283_v25, 1  ;;  %v289_v28 = vrot.slane %v284_v26, 1 }
  0x5a   : > { %v286_v30 = vsel %vm285_vm6, %v283_v25, %v282_v24  ;;  %v287_v32 = vsel %vm285_vm6, %v284_v26, %v281_v23  ;;  %vm431_vm6 = vcmp.gt.s32.totalorder %v1213_v49, %v1189_v31 }
  0x5b   : > { %vm290_vm7 = vcmp.ge.f32.partialorder %v288_v27, %v286_v30  ;;  %v293_v33 = vrot.slane %v288_v27, 1  ;;  %v294_v35 = vrot.slane %v289_v28, 1 }
  0x5c   : > { %v291_v36 = vsel %vm290_vm7, %v288_v27, %v286_v30  ;;  %v292_v37 = vsel %vm290_vm7, %v289_v28, %v287_v32  ;;  %vm1329_vm7 = vmand %vm371_vm15, %vm1265_vm13 }
  0x5d   : > { %vm295_vm8 = vcmp.ge.f32.partialorder %v293_v33, %v291_v36  ;;  %v298_v38 = vrot.slane %v293_v33, 1  ;;  %v299_v40 = vrot.slane %v294_v35, 1 }
  0x5e   : > { %v296_v41 = vsel %vm295_vm8, %v293_v33, %v291_v36  ;;  %v297_v42 = vsel %vm295_vm8, %v294_v35, %v292_v37  ;;  %vm446_vm8 = vcmp.gt.s32.totalorder %v1219_v54, %v1189_v31 }
  0x5f   : > { %vm300_vm9 = vcmp.ge.f32.partialorder %v298_v38, %v296_v41  ;;  %v303_v43 = vrot.slane %v298_v38, 1  ;;  %v304_v45 = vrot.slane %v299_v40, 1 }
  0x60   : > { %v301_v46 = vsel %vm300_vm9, %v298_v38, %v296_v41  ;;  %v302_v47 = vsel %vm300_vm9, %v299_v40, %v297_v42  ;;  %vm1342_vm9 = vmand %vm356_vm0, %vm1265_vm13 }
  0x61   : > { %vm305_vm10 = vcmp.ge.f32.partialorder %v303_v43, %v301_v46  ;;  %v308_v48 = vrot.slane %v303_v43, 1  ;;  %v309_v50 = vrot.slane %v304_v45, 1 }
  0x62   : > { %v306_v51 = vsel %vm305_vm10, %v303_v43, %v301_v46  ;;  %v307_v52 = vsel %vm305_vm10, %v304_v45, %v302_v47  ;;  %vm390_vm10 = vmand %vm386_vm1, %vm1265_vm13 }
  0x63   : > { %vm310_vm11 = vcmp.ge.f32.partialorder %v308_v48, %v306_v51  ;;  %v313_v53 = vrot.slane %v308_v48, 1  ;;  %v314_v55 = vrot.slane %v309_v50, 1 }
  0x64   : > { %v311_v56 = vsel %vm310_vm11, %v308_v48, %v306_v51  ;;  %v312_v57 = vsel %vm310_vm11, %v309_v50, %v307_v52  ;;  %vm461_vm11 = vcmp.gt.s32.totalorder %v1225_v59, %v1189_v31 }
  0x65   : > { %vm315_vm12 = vcmp.ge.f32.partialorder %v313_v53, %v311_v56 }
  0x66   : > { %v317_v58 = vsel %vm315_vm12, %v314_v55, %v312_v57  ;;  %vm510_vm12 = vmand %vm506_vm3, %vm1265_vm13 }
  0x67   : > { %319 = vrot.lane.b32.xlu0 %v317_v58, %s318_s29 }
  0xd9   : > { %v320_v60 = vpop.permute.xlu0 %319 }
  0xda   : > { %842 = vpush %v320_v60 }
 0x10b   : > { %s843_s4 = spop %842 }
 0x10c   : > { %v326_v3 = vstv %s843_s4  ;;  %s331_s6 = scalar_lea.vmem [#allocation1], %s843_s4  ;;  %s337_s7 = scalar_lea.vmem [#allocation7], %s843_s4 }
 0x10d   : > { %v328_v4 = vsel %vm1265_vm13, %v326_v3, %v327_v63  ;;  %v1273_v6 = vld [vmem:[%s331_s6] ss:$0 sm:$0xff] }
 0x10e   : > { %v339_v7 = vld [vmem:[%s337_s7] ss:$0 sm:$0xff]  ;;  %329 = vst [vmem:[#allocation2] sm:$0x1] %v328_v4  ;;  %334 = vst [vmem:[%s331_s6] sm:$0x1] %v332_v1  ;;  %vm342_vm14 = vcmp.ne.f32.partialorder %v1273_v6, 0.0 }
 0x10f   : > { %340 = vst [vmem:[%s337_s7] sm:$0x1] %v338_v2  ;;  %335 = vst [vmem:[%s330_s30] sm:$0x1] %v1273_v6 }
 0x110   : > { %341 = vst [vmem:[%s336_s5] sm:$0x1] %v339_v7  ;;  %vm343_vm2 = vmand %vm1265_vm13, %vm342_vm14 }
 0x111   : > { %v1288_v8 = vsel %vm343_vm2, %v1273_v6, 1.0  ;;  %vm405_vm14 = vmand %vm401_vm4, %vm1265_vm13 }
 0x112   : > { %v372_v9 = vsel %vm371_vm15, %v1288_v8, 1.0  ;;  %v357_v12 = vsel %vm356_vm0, %v1288_v8, 1.0  ;;  %v387_v14 = vsel %vm386_vm1, %v1288_v8, 1.0  ;;  %v507_v15 = vsel %vm506_vm3, %v1288_v8, 1.0  ;;  %vm420_vm0 = vmand %vm416_vm5, %vm1265_vm13 }
 0x113   : > { %975 = vrcp.f32 %v372_v9  ;;  %v402_v16 = vsel %vm401_vm4, %v1288_v8, 1.0  ;;  %v417_v17 = vsel %vm416_vm5, %v1288_v8, 1.0  ;;  %v432_v18 = vsel %vm431_vm6, %v1288_v8, 1.0  ;;  %vm435_vm2 = vmand %vm431_vm6, %vm1265_vm13 }
 0x114   : > { %977 = vrcp.f32 %v357_v12  ;;  %v447_v36 = vsel %vm446_vm8, %v1288_v8, 1.0  ;;  %v462_v34 = vsel %vm461_vm11, %v1288_v8, 1.0  ;;  %vm476_vm15 = vcmp.gt.s32.totalorder %v1231_v0, %v1189_v31  ;;  %vm450_vm4 = vmand %vm446_vm8, %vm1265_vm13 }
 0x115   : > { %979 = vrcp.f32 %v387_v14  ;;  %v477_v50 = vsel %vm476_vm15, %v1288_v8, 1.0  ;;  %vm491_vm1 = vcmp.gt.s32.totalorder %v1237_v5, %v1189_v31  ;;  %vm521_vm3 = vcmp.gt.s32.totalorder %v1243_v10, %v1189_v31  ;;  %vm465_vm5 = vmand %vm461_vm11, %vm1265_vm13 }
 0x116   : > { %981 = vrcp.f32 %v507_v15  ;;  %v368_v20 = vld [vmem:[#allocation1 + $0x8] sm:$0xff]  ;;  %v353_v25 = vld [vmem:[#allocation1] sm:$0xff]  ;;  %v383_v28 = vld [vmem:[#allocation1 + $0x10] sm:$0xff]  ;;  %v492_v55 = vsel %vm491_vm1, %v1288_v8, 1.0  ;;  %v522_v60 = vsel %vm521_vm3, %v1288_v8, 1.0 }
 0x117   : > { %983 = vrcp.f32 %v402_v16  ;;  %v503_v35 = vld [vmem:[#allocation1 + $0x50] sm:$0xff]  ;;  %v398_v41 = vld [vmem:[#allocation1 + $0x18] sm:$0xff]  ;;  %v413_v11 = vld [vmem:[#allocation1 + $0x20] sm:$0xff] }
 0x118   : > { %985 = vrcp.f32 %v417_v17  ;;  %v428_v39 = vld [vmem:[#allocation1 + $0x28] sm:$0xff]  ;;  %v443_v44 = vld [vmem:[#allocation1 + $0x30] sm:$0xff]  ;;  %v458_v49 = vld [vmem:[#allocation1 + $0x38] sm:$0xff] }
 0x119   : > { %987 = vrcp.f32 %v432_v18  ;;  %v473_v4 = vld [vmem:[#allocation1 + $0x40] sm:$0xff]  ;;  %vm480_vm6 = vmand %vm476_vm15, %vm1265_vm13  ;;  %v488_v54 = vld [vmem:[#allocation1 + $0x48] sm:$0xff] }
 0x11a   : > { %989 = vrcp.f32 %v447_v36  ;;  %v518_v59 = vld [vmem:[#allocation1 + $0x58] sm:$0xff]  ;;  %vm525_vm8 = vmand %vm521_vm3, %vm1265_vm13  ;;  %v552_v21 = vld [vmem:[#allocation7 + $0x50] sm:$0xff] (%p132_p4) }
 0x11b   : > { %991 = vrcp.f32 %v462_v34  ;;  %v550_v13 = vld [vmem:[#allocation7 + $0x48] sm:$0xff] (%p132_p4) }
 0x11c   : > { %993 = vrcp.f32 %v477_v50 }
 0x11d   : > { %v976_v19 = vpop.eup %975  ;;  %995 = vrcp.f32 %v492_v55  ;;  %v536_v55 = vld [vmem:[#allocation7 + $0x10] sm:$0xff] (%p132_p4) }
 0x11e   : > { %v978_v23 = vpop.eup %977  ;;  %v1335_v24 = vmul.f32 %v976_v19, %v368_v20  ;;  %997 = vrcp.f32 %v522_v60  ;;  %v542_v60 = vld [vmem:[#allocation7 + $0x28] sm:$0xff] (%p132_p4) }
 0x11f   : > { %v980_v29 = vpop.eup %979  ;;  %v1346_v27 = vmul.f32 %v978_v23, %v353_v25 }
 0x120   : > { %v982_v30 = vpop.eup %981  ;;  %v376_v32 = vsel %vm1329_vm7, %v1335_v24, 0.0  ;;  %v1351_v33 = vmul.f32 %v980_v29, %v383_v28  ;;  %vm495_vm7 = vmand %vm491_vm1, %vm1265_vm13 }
 0x121   : > { %v984_v37 = vpop.eup %983  ;;  %377 = vadd.xlane.f32.xlu1 %v376_v32  ;;  %v361_v38 = vsel %vm1342_vm9, %v1346_v27, 0.0  ;;  %v1365_v40 = vmul.f32 %v982_v30, %v503_v35  ;;  %vm348_vm9 = vcmp.gt.s32.totalorder %v1261_v61, %v1189_v31 }
 0x122   : > { %362 = vadd.xlane.f32.xlu0 %v361_v38  ;;  %v391_v42 = vsel %vm390_vm10, %v1351_v33, 0.0  ;;  %v1375_v43 = vmul.f32 %v984_v37, %v398_v41  ;;  %v986_v45 = vpop.eup %985  ;;  %v349_v18 = vsel %vm348_vm9, %v1273_v6, 0.0 }
 0x123   : > { %v511_v46 = vsel %vm510_vm12, %v1365_v40, 0.0  ;;  %v1390_v48 = vmul.f32 %v986_v45, %v413_v11  ;;  %v988_v51 = vpop.eup %987 }
 0x124   : > { %v406_v47 = vsel %vm405_vm14, %v1375_v43, 0.0  ;;  %v1404_v53 = vmul.f32 %v988_v51, %v428_v39  ;;  %v990_v56 = vpop.eup %989 }
 0x125   : > { %392 = vadd.xlane.f32.xlu1 %v391_v42  ;;  %v421_v52 = vsel %vm420_vm0, %v1390_v48, 0.0  ;;  %v1418_v58 = vmul.f32 %v990_v56, %v443_v44  ;;  %v992_v63 = vpop.eup %991  ;;  %v595_v56 = vld [vmem:[#allocation2] sm:$0x1] (%p132_p4)  ;;  %v538_v44 = vld [vmem:[#allocation7 + $0x18] sm:$0xff] (%p132_p4) }
 0x126   : > { %512 = vadd.xlane.f32.xlu0 %v511_v46  ;;  %v436_v57 = vsel %vm435_vm2, %v1404_v53, 0.0  ;;  %v464_v2 = vmul.f32 %v992_v63, %v458_v49  ;;  %v994_v3 = vpop.eup %993  ;;  %597 = vst [vmem:[#allocation3] sm:$0x1] (%p132_p4), %v595_v56  ;;  %v544_v63 = vld [vmem:[#allocation7 + $0x30] sm:$0xff] (%p132_p4)  ;;  %v546_v49 = vld [vmem:[#allocation7 + $0x38] sm:$0xff] (%p132_p4) }
 0x127   : > { %v451_v1 = vsel %vm450_vm4, %v1418_v58, 0.0  ;;  %v479_v8 = vmul.f32 %v994_v3, %v473_v4  ;;  %v996_v9 = vpop.eup %995 }
 0x128   : > { %v466_v7 = vsel %vm465_vm5, %v464_v2, 0.0  ;;  %v494_v14 = vmul.f32 %v996_v9, %v488_v54  ;;  %v998_v15 = vpop.eup %997 }
 0x129   : > { %407 = vadd.xlane.f32.xlu1 %v406_v47  ;;  %v481_v12 = vsel %vm480_vm6, %v479_v8, 0.0  ;;  %v524_v17 = vmul.f32 %v998_v15, %v518_v59 }
 0x12a   : > { %v496_v16 = vsel %vm495_vm7, %v494_v14, 0.0 }
 0x12b   : > { %v526_v0 = vsel %vm525_vm8, %v524_v17, 0.0 }
 0x12d   : > { %422 = vadd.xlane.f32.xlu1 %v421_v52  ;;  %v532_v52 = vld [vmem:[#allocation7] sm:$0xff] (%p132_p4) }
 0x131   : > { %437 = vadd.xlane.f32.xlu1 %v436_v57 }
 0x135   : > { %452 = vadd.xlane.f32.xlu1 %v451_v1  ;;  %v548_v1 = vld [vmem:[#allocation7 + $0x40] sm:$0xff] (%p132_p4) }
 0x139   : > { %467 = vadd.xlane.f32.xlu1 %v466_v7 }
 0x13d   : > { %482 = vadd.xlane.f32.xlu1 %v481_v12 }
 0x141   : > { %497 = vadd.xlane.f32.xlu1 %v496_v16 }
 0x145   : > { %527 = vadd.xlane.f32.xlu1 %v526_v0 }
 0x153   :  { %559 = vxpose.xlu0.b32.start [1/12] (short) (narrow) (%p132_p4), %v532_v52, 8 }
 0x1ae   : > { %v378_v19 = vpop.xlane.xlu1 %377 }
 0x1af   : > { %v379_v5 = vmul.f32 %v378_v19, %v349_v18  ;;  %v363_v20 = vpop.xlane.xlu0 %362 }
 0x1b0   : > { %v364_v22 = vmul.f32 %v363_v20, %v349_v18 }
 0x1b1   : > { %v380_v23 = vsub.f32 %v1335_v24, %v379_v5 }
 0x1b2   : > { %v365_v25 = vsub.f32 %v1346_v27, %v364_v22  ;;  %v393_v62 = vpop.xlane.xlu1 %392 }
 0x1b3   : > { %381 = vst [vmem:[#allocation1 + $0x8] sm:$0xff] %v380_v23  ;;  %v394_v26 = vmul.f32 %v393_v62, %v349_v18  ;;  %v513_v10 = vpop.xlane.xlu0 %512 }
 0x1b4   : > { %366 = vst [vmem:[#allocation1] sm:$0xff] %v365_v25  ;;  %v514_v29 = vmul.f32 %v513_v10, %v349_v18 }
 0x1b5   : > { %v395_v28 = vsub.f32 %v1351_v33, %v394_v26 }
 0x1b6   : > { %v515_v31 = vsub.f32 %v1365_v40, %v514_v29  ;;  %v408_v61 = vpop.xlane.xlu1 %407 }
 0x1b7   : > { %396 = vst [vmem:[#allocation1 + $0x10] sm:$0xff] %v395_v28  ;;  %v409_v6 = vmul.f32 %v408_v61, %v349_v18 }
 0x1b8   : > { %516 = vst [vmem:[#allocation1 + $0x50] sm:$0xff] %v515_v31 }
 0x1b9   : > { %v410_v30 = vsub.f32 %v1375_v43, %v409_v6 }
 0x1ba   : > { %v423_v32 = vpop.xlane.xlu1 %422 }
 0x1bb   : > { %411 = vst [vmem:[#allocation1 + $0x18] sm:$0xff] %v410_v30  ;;  %v424_v24 = vmul.f32 %v423_v32, %v349_v18  ;;  %v618_v57 = vld [vmem:[#allocation1] sm:$0xff] (%p132_p4)  }
 0x1bc   :  { %v1117_v7 = vmov (%p132_p4), %v618_v57  }
 0x1bd   : > { %v425_v27 = vsub.f32 %v1390_v48, %v424_v24 }
 0x1be   : > { %v438_v35 = vpop.xlane.xlu1 %437 }
 0x1bf   : > { %426 = vst [vmem:[#allocation1 + $0x20] sm:$0xff] %v425_v27  ;;  %v439_v36 = vmul.f32 %v438_v35, %v349_v18 }
 0x1c1   : > { %v440_v37 = vsub.f32 %v1404_v53, %v439_v36  ;;  %v534_v53 = vld [vmem:[#allocation7 + $0x8] sm:$0xff] (%p132_p4) }
 0x1c2   : > { %v453_v38 = vpop.xlane.xlu1 %452  ;;  %560 = vxpose.xlu0.b32.cont [2/12] (short) (narrow) (%p132_p4), %v534_v53, 8 }
 0x1c3   : > { %441 = vst [vmem:[#allocation1 + $0x28] sm:$0xff] %v440_v37  ;;  %v454_v33 = vmul.f32 %v453_v38, %v349_v18 }
 0x1c5   : > { %v455_v40 = vsub.f32 %v1418_v58, %v454_v33  ;;  %v540_v58 = vld [vmem:[#allocation7 + $0x20] sm:$0xff] (%p132_p4) }
 0x1c6   : > { %v468_v41 = vpop.xlane.xlu1 %467  ;;  %561 = vxpose.xlu0.b32.cont [3/12] (short) (narrow) (%p132_p4), %v536_v55, 8 }
 0x1c7   : > { %456 = vst [vmem:[#allocation1 + $0x30] sm:$0xff] %v455_v40  ;;  %v469_v42 = vmul.f32 %v468_v41, %v349_v18 }
 0x1c9   : > { %v470_v34 = vsub.f32 %v464_v2, %v469_v42  ;;  %v554_v2 = vld [vmem:[#allocation7 + $0x58] sm:$0xff] (%p132_p4) }
 0x1ca   : > { %v483_v43 = vpop.xlane.xlu1 %482  ;;  %562 = vxpose.xlu0.b32.cont [4/12] (short) (narrow) (%p132_p4), %v538_v44, 8 }
 0x1cb   : > { %471 = vst [vmem:[#allocation1 + $0x38] sm:$0xff] %v470_v34  ;;  %v484_v45 = vmul.f32 %v483_v43, %v349_v18 }
 0x1cd   : > { %v485_v46 = vsub.f32 %v479_v8, %v484_v45 }
 0x1ce   : > { %v498_v11 = vpop.xlane.xlu1 %497  ;;  %563 = vxpose.xlu0.b32.cont [5/12] (short) (narrow) (%p132_p4), %v540_v58, 8 }
 0x1cf   : > { %486 = vst [vmem:[#allocation1 + $0x40] sm:$0xff] %v485_v46  ;;  %v499_v47 = vmul.f32 %v498_v11, %v349_v18 }
 0x1d1   : > { %v500_v48 = vsub.f32 %v494_v14, %v499_v47  ;;  %134 = sbr.rel (!%p132_p4) target bundleno = 48 (0x30), region = 225 }
 0x1d2   : > { %v528_v50 = vpop.xlane.xlu1 %527  ;;  %564 = vxpose.xlu0.b32.cont [6/12] (short) (narrow) (%p132_p4), %v542_v60, 8 }
 0x1d3   : > { %501 = vst [vmem:[#allocation1 + $0x48] sm:$0xff] %v500_v48  ;;  %v529_v51 = vmul.f32 %v528_v50, %v349_v18 }
 0x1d5   : > { %v530_v39 = vsub.f32 %v524_v17, %v529_v51 }
 0x1d6   :  { %565 = vxpose.xlu0.b32.cont [7/12] (short) (narrow) (%p132_p4), %v544_v63, 8 }
 0x1d7   : > { %531 = vst [vmem:[#allocation1 + $0x58] sm:$0xff] %v530_v39 }
 0x1da   :  { %566 = vxpose.xlu0.b32.cont [8/12] (short) (narrow) %v546_v49, 8 }
 0x1de   :  { %567 = vxpose.xlu0.b32.cont [9/12] (short) (narrow) %v548_v1, 8 }
 0x1e2   :  { %568 = vxpose.xlu0.b32.cont [10/12] (short) (narrow) %v550_v13, 8 }
 0x1e6   :  { %569 = vxpose.xlu0.b32.cont [11/12] (short) (narrow) %v552_v21, 8 }
 0x1ea   :  { %570 = vxpose.xlu0.b32.end [12/12] (short) (narrow) %v554_v2, 8 }
 0x23e   :  { %v575_v3 = vpop.trf.xlu0 }
 0x23f   :  { %591 = vst [vmem:[#allocation5] sm:$0x1] %v575_v3 }
 0x246   :  { %v601_v4 = vld [vmem:[#allocation5] sm:$0x1] }
 0x247   :  { %603 = vst [vmem:[#allocation6] sm:$0x1] %v601_v4 }
 0x248 LB: > { %626 = vst [vmem:[%s1123_s12] sm:$0xff] %v1119_v7  ;;  %v627_v8 = vld [vmem:[%s1127_s13 + $0x8] sm:$0xff]  ;;  %v629_v9 = vld [vmem:[%s1127_s13 + $0x10] sm:$0xff]  ;;  %v631_v54 = vld [vmem:[%s1127_s13 + $0x18] sm:$0xff]  ;;  %s641_s1 = scalar_lea.vmem %s1127_s13, 64   ;;  %s642_s14 = scalar_lea.vmem %s1123_s12, 64   ;;  %s1127_s13 = sphi %s1125_s13, %s1126_s13   ;;  %s1123_s12 = sphi %s1121_s12, %s1122_s12   ;;  %v1119_v7 = vphi %v1117_v7, %v643_v7  }
 0x249   : > { %628 = vst [vmem:[%s1123_s12 + $0x8] sm:$0xff] %v627_v8  ;;  %630 = vst [vmem:[%s1123_s12 + $0x10] sm:$0xff] %v629_v9  ;;  %v633_v12 = vld [vmem:[%s1127_s13 + $0x20] sm:$0xff]  ;;  %v635_v14 = vld [vmem:[%s1127_s13 + $0x28] sm:$0xff]  ;;  %p623_p5 = scmp.gt.s32.totalorder %s641_s1, %s1464_s9 }
 0x24a   : > { %632 = vst [vmem:[%s1123_s12 + $0x18] sm:$0xff] %v631_v54  ;;  %v637_v15 = vld [vmem:[%s1127_s13 + $0x30] sm:$0xff]  ;;  %634 = vst [vmem:[%s1123_s12 + $0x20] sm:$0xff] %v633_v12  ;;  %v639_v59 = vld [vmem:[%s1127_s13 + $0x38] sm:$0xff]  ;;  %p804_p6 = scmp.gt.s32.totalorder (%p623_p5), %s641_s1, [#allocation1 + $0x58] }
 0x24b   : > { %636 = vst [vmem:[%s1123_s12 + $0x28] sm:$0xff] %v635_v14  ;;  %638 = vst [vmem:[%s1123_s12 + $0x30] sm:$0xff] %v637_v15  ;;  %v643_v7 = vld [vmem:[%s1127_s13 + $0x40] sm:$0xff]   ;;  %s1126_s13 = smov %s641_s1   ;;  %625 = sbr.rel (!%p623_p5) target bundleno = 584 (0x248), region = 236 }
 0x24c   : > { %640 = vst [vmem:[%s1123_s12 + $0x38] sm:$0xff] %v639_v59  ;;  %s1122_s12 = smov %s642_s14  }
 0x252   :  { %805 = sbr.rel (%p804_p6) target bundleno = 611 (0x263), region = 241  ;;  %s1129_s15 = smov (!%p804_p6), %s642_s14  }
 0x253   :  { %s1133_s16 = smov (!%p804_p6), %s641_s1  }
 0x259 LB: > { %v651_v16 = vld [vmem:[%s1135_s16] sm:$0xff]  ;;  %s653_s16 = scalar_lea.vmem %s1135_s16, 8   ;;  %s1135_s16 = sphi %s1133_s16, %s653_s16   ;;  %s1131_s15 = sphi %s1129_s15, %s654_s15  }
 0x25a   : > { %652 = vst [vmem:[%s1131_s15] sm:$0xff] %v651_v16  ;;  %s654_s15 = scalar_lea.vmem %s1131_s15, 8   ;;  %p648_p7 = scmp.gt.s32.totalorder %s653_s16, [#allocation1 + $0x58] }
 0x25c   :  { %650 = sbr.rel (!%p648_p7) target bundleno = 601 (0x259), region = 247 }
 0x263 PF:  { %v737_v17 = vld [vmem:[#allocation6] sm:$0x1]  ;;  %s1139_s17 = smov [#allocation3]  }
 0x264   :  { %s671_s18 = sshll.u32 %s1139_s17, 4  ;;  %738 = vst [vmem:[%s1488_s3] sm:$0x1] %v737_v17  ;;  %s672_s18 = int_to_ptr.vmem [resolvable:$true] %s671_s18 }
 0x265   :  { %s999_s21 = scalar_lea.vmem %s672_s18, 16  ;;  %s1003_s0 = scalar_lea.vmem %s672_s18, 32 }
 0x266   :  { %p1000_p8 = scmp.ne.s32.totalorder %s672_s18, %s999_s21  ;;  %p1004_p9 = scmp.lt.s32.totalorder %s672_s18, %s672_s18 }
 0x267   :  { %p1005_p10 = scmp.lt.s32.totalorder %s1003_s0, %s999_s21 }
 0x269   :  { %p1006_p11 = por %p1005_p10, %p1004_p9 }
 0x26b   :  { %p1007_p12 = pnand %p1006_p11, %p1000_p8 }
 0x26d   :  { %1010 = shalt.err (!%p1007_p12)
}
 0x26e   :  { %s1011_s24 = scalar_lea.hbm %s1487_s2, 16 }
 0x26f   :  { %p1012_p13 = scmp.ne.s32.totalorder %s1487_s2, %s1011_s24  ;;  %p1015_p0 = scmp.lt.u32.totalorder %s1011_s24, %s1487_s2 }
 0x271   :  { %p1017_p1 = pnand %p1015_p0, %p1012_p13 }
 0x273   :  { %1020 = shalt.err (!%p1017_p1)
}
 0x274   :  { %674 = dma.vmem_to_hbm [thread:$0]  %s672_s18, 16, %s1487_s2, [#allocation4]  }
 0x275   :  { %1087 = dma.done.wait [#allocation4], 16  }
 0x276   :  { %1088 = vsyncadd [#allocation4], 4294967280 }
 0x277   :  { %744 = vsyncpa [#allocation4], 1 }

// kernel: custom-call.10
= control target key start
LH: loop header
LB: loop body
LE: loop exit
PB: predicated region body
PF: predicated region fallthrough
CT: control target
= control target key end

     0   :  { %v78_v0 = vlaneseq  ;;  %v3548_v9 = vmov -1.0   ;;  %v3549_v53 = vmov 0.0   ;;  %s5052_s0 = inlined_call_operand.vmem [shape: f32[1,95,95], index: 0, kind: input, shape index: {}]   ;;  %s5053_s1 = inlined_call_operand.vmem [shape: f32[1,95,95], index: 1, kind: output, shape index: {}]  }
   0x1   :  { %v51_v1 = vld [vmem:[%s5052_s0] sm:$0xff]  ;;  %v53_v36 = vld [vmem:[%s5052_s0 + $0x8] sm:$0xff] }
   0x2   :  { %v3563_v2 = vand.u32 127, %v78_v0  ;;  %v3565_v3 = vshrl.u32 %v78_v0, 7 }
   0x4   :  { %vm84_vm0 = vcmp.eq.s32.totalorder %v3565_v3, %v3563_v2  ;;  %vm80_vm1 = vcmp.lt.s32.totalorder %v3563_v2, 95  ;;  %vm89_vm2 = vcmp.ge.s32.totalorder %v3565_v3, %v3563_v2  ;;  %vm279_vm4 = vcmp.eq.s32.totalorder %v3563_v2, 0 }
   0x5   :  { %v86_v4 = vsel %vm84_vm0, %v51_v1, 0.0  ;;  %vm90_vm3 = vmand %vm89_vm2, %vm80_vm1  ;;  %vm276_vm5 = vcmp.eq.s32.totalorder %v3563_v2, %v3565_v3  ;;  %v280_v10 = vsel %vm279_vm4, 1.0, %v3548_v9  ;;  %vm364_vm6 = vcmp.eq.s32.totalorder %v3563_v2, 1 }
   0x6   :  { %87 = vadd.xlane.f32.xlu0 %v86_v4  ;;  %v91_v6 = vsel %vm90_vm3, %v51_v1, 0.0  ;;  %v281_v11 = vsel %vm276_vm5, %v280_v10, 0.0  ;;  %vm374_vm7 = vcmp.eq.s32.totalorder %v3563_v2, 2  ;;  %vm384_vm8 = vcmp.eq.s32.totalorder %v3563_v2, 3 }
   0x7   :  { %vm394_vm9 = vcmp.eq.s32.totalorder %v3563_v2, 4  ;;  %v99_v31 = vadd.s32 8, %v3565_v3  ;;  %vm404_vm11 = vcmp.eq.s32.totalorder %v3563_v2, 5  ;;  %vm414_vm14 = vcmp.eq.s32.totalorder %v3563_v2, 6 }
   0x8   :  { %vm424_vm0 = vcmp.eq.s32.totalorder %v3563_v2, 7  ;;  %vm434_vm2 = vcmp.eq.s32.totalorder %v3563_v2, 8  ;;  %vm448_vm3 = vcmp.eq.s32.totalorder %v3563_v2, 9  ;;  %vm462_vm4 = vcmp.eq.s32.totalorder %v3563_v2, 10 }
   0x9   :  { %vm100_vm10 = vcmp.eq.s32.totalorder %v99_v31, %v3563_v2  ;;  %vm105_vm12 = vcmp.ge.s32.totalorder %v99_v31, %v3563_v2  ;;  %vm287_vm15 = vcmp.eq.s32.totalorder %v3563_v2, %v99_v31  ;;  %vm476_vm5 = vcmp.eq.s32.totalorder %v3563_v2, 11 }
   0xa   :  { %v102_v37 = vsel %vm100_vm10, %v53_v36, 0.0  ;;  %vm106_vm13 = vmand %vm105_vm12, %vm80_vm1  ;;  %v288_v54 = vsel %vm287_vm15, -1.0, %v3549_v53  ;;  %vm532_vm12 = vcmp.eq.s32.totalorder %v3563_v2, 15  ;;  %vm564_vm15 = vcmp.eq.s32.totalorder %v3563_v2, 17 }
   0xb   :  { %v107_v44 = vsel %vm106_vm13, %v53_v36, 0.0 }
  0x93   :  { %v3569_v5 = vpop.xlane.xlu0 %87 }
  0x94   :  { %3524 = vrcp.f32 %v3569_v5 }
  0x9e   :  { %v3577_v7 = vpop.eup %3524 }
  0x9f   :  { %v93_v8 = vmul.f32 %v3577_v7, %v91_v6 }
  0xa1   :  { %94 = vst [vmem:[#allocation2] sm:$0xff] %v93_v8 }
  0xa8   :  { %v360_v12 = vld [vmem:[#allocation2 + $0x1] ss:$0 sm:$0xff]  ;;  %v370_v15 = vld [vmem:[#allocation2 + $0x2] ss:$0 sm:$0xff]  ;;  %v380_v20 = vld [vmem:[#allocation2 + $0x3] ss:$0 sm:$0xff] }
  0xa9   :  { %v361_v13 = vxor.u32 2147483648, %v360_v12  ;;  %v371_v17 = vxor.u32 2147483648, %v370_v15  ;;  %v381_v22 = vxor.u32 2147483648, %v380_v20  ;;  %v390_v25 = vld [vmem:[#allocation2 + $0x4] ss:$0 sm:$0xff] }
  0xaa   :  { %v391_v27 = vxor.u32 2147483648, %v390_v25  ;;  %v400_v30 = vld [vmem:[#allocation2 + $0x5] ss:$0 sm:$0xff]  ;;  %v410_v38 = vld [vmem:[#allocation2 + $0x6] ss:$0 sm:$0xff] }
  0xab   :  { %v365_v14 = vmul.f32 %v361_v13, %v281_v11  ;;  %v401_v33 = vxor.u32 2147483648, %v400_v30  ;;  %v411_v40 = vxor.u32 2147483648, %v410_v38  ;;  %v420_v47 = vld [vmem:[#allocation2 + $0x7] ss:$0 sm:$0xff] }
  0xac   :  { %v421_v50 = vxor.u32 2147483648, %v420_v47  ;;  %v115_v47 = vadd.s32 16, %v3565_v3 }
  0xad   :  { %366 = vadd.xlane.f32.xlu0 %v365_v14 }
  0xae   :  { %vm121_vm10 = vcmp.ge.s32.totalorder %v115_v47, %v3563_v2  ;;  %vm294_vm13 = vcmp.eq.s32.totalorder %v3563_v2, %v115_v47 }
 0x13a   :  { %v367_v16 = vpop.xlane.xlu0 %366 }
 0x13b   :  { %v368_v18 = vsel %vm364_vm6, %v367_v16, %v281_v11  ;;  %vm490_vm6 = vcmp.eq.s32.totalorder %v3563_v2, 12 }
 0x13c   :  { %v375_v19 = vmul.f32 %v371_v17, %v368_v18 }
 0x13e   :  { %376 = vadd.xlane.f32.xlu1 %v375_v19 }
 0x1cb   :  { %v377_v21 = vpop.xlane.xlu1 %376 }
 0x1cc   :  { %v378_v23 = vsel %vm374_vm7, %v377_v21, %v368_v18  ;;  %vm504_vm7 = vcmp.eq.s32.totalorder %v3563_v2, 13 }
 0x1cd   :  { %v385_v24 = vmul.f32 %v381_v22, %v378_v23 }
 0x1cf   :  { %386 = vadd.xlane.f32.xlu1 %v385_v24 }
 0x25c   :  { %v387_v26 = vpop.xlane.xlu1 %386 }
 0x25d   :  { %v388_v28 = vsel %vm384_vm8, %v387_v26, %v378_v23  ;;  %vm116_vm8 = vcmp.eq.s32.totalorder %v115_v47, %v3563_v2 }
 0x25e   :  { %v395_v29 = vmul.f32 %v391_v27, %v388_v28 }
 0x260   :  { %396 = vadd.xlane.f32.xlu0 %v395_v29 }
 0x2ed   :  { %v397_v32 = vpop.xlane.xlu0 %396 }
 0x2ee   :  { %v398_v34 = vsel %vm394_vm9, %v397_v32, %v388_v28  ;;  %vm518_vm9 = vcmp.eq.s32.totalorder %v3563_v2, 14 }
 0x2ef   :  { %v405_v35 = vmul.f32 %v401_v33, %v398_v34 }
 0x2f1   :  { %406 = vadd.xlane.f32.xlu1 %v405_v35 }
 0x2f5   :  { %103 = vadd.xlane.f32.xlu1 %v102_v37 }
 0x37e   :  { %v407_v39 = vpop.xlane.xlu1 %406 }
 0x37f   :  { %v408_v41 = vsel %vm404_vm11, %v407_v39, %v398_v34  ;;  %vm122_vm11 = vmand %vm121_vm10, %vm80_vm1 }
 0x380   :  { %v415_v42 = vmul.f32 %v411_v40, %v408_v41 }
 0x382   :  { %416 = vadd.xlane.f32.xlu0 %v415_v42  ;;  %v3593_v43 = vpop.xlane.xlu1 %103 }
 0x383   :  { %3526 = vrcp.f32 %v3593_v43 }
 0x38d   :  { %v3599_v45 = vpop.eup %3526 }
 0x38e   :  { %v109_v46 = vmul.f32 %v3599_v45, %v107_v44 }
 0x390   :  { %110 = vst [vmem:[#allocation2 + $0x8] sm:$0xff] %v109_v46 }
 0x397   :  { %v430_v48 = vld [vmem:[#allocation2 + $0x8] ss:$0 sm:$0xff]  ;;  %v444_v59 = vld [vmem:[#allocation2 + $0x9] ss:$0 sm:$0xff]  ;;  %v458_v6 = vld [vmem:[#allocation2 + $0xa] ss:$0 sm:$0xff] }
 0x398   :  { %v431_v51 = vxor.u32 2147483648, %v430_v48  ;;  %v445_v62 = vxor.u32 2147483648, %v444_v59  ;;  %v459_v10 = vxor.u32 2147483648, %v458_v6  ;;  %v472_v15 = vld [vmem:[#allocation2 + $0xb] ss:$0 sm:$0xff] }
 0x399   :  { %v473_v18 = vxor.u32 2147483648, %v472_v15  ;;  %v486_v23 = vld [vmem:[#allocation2 + $0xc] ss:$0 sm:$0xff]  ;;  %v500_v31 = vld [vmem:[#allocation2 + $0xd] ss:$0 sm:$0xff] }
 0x39a   :  { %v439_v56 = vmul.f32 %v431_v51, %v288_v54  ;;  %v487_v26 = vxor.u32 2147483648, %v486_v23  ;;  %v501_v34 = vxor.u32 2147483648, %v500_v31  ;;  %v514_v39 = vld [vmem:[#allocation2 + $0xe] ss:$0 sm:$0xff] }
 0x39b   :  { %v515_v42 = vxor.u32 2147483648, %v514_v39 }
 0x40f   :  { %v417_v49 = vpop.xlane.xlu0 %416 }
 0x410   :  { %v418_v52 = vsel %vm414_vm14, %v417_v49, %v408_v41  ;;  %vm546_vm14 = vcmp.eq.s32.totalorder %v3563_v2, 16 }
 0x411   :  { %v425_v55 = vmul.f32 %v421_v50, %v418_v52 }
 0x413   :  { %426 = vadd.xlane.f32.xlu0 %v425_v55  ;;  %v528_v55 = vld [vmem:[#allocation2 + $0xf] ss:$0 sm:$0xff] }
 0x417   :  { %440 = vadd.xlane.f32.xlu0 %v439_v56 }
 0x4a0   :  { %v427_v57 = vpop.xlane.xlu0 %426 }
 0x4a1   :  { %v428_v58 = vsel %vm424_vm0, %v427_v57, %v418_v52  ;;  %v529_v57 = vxor.u32 2147483648, %v528_v55  ;;  %vm582_vm0 = vcmp.eq.s32.totalorder %v3563_v2, 18 }
 0x4a2   :  { %v435_v60 = vmul.f32 %v431_v51, %v428_v58  ;;  %v55_v51 = vld [vmem:[%s5052_s0 + $0x10] sm:$0xff] }
 0x4a4   :  { %v441_v61 = vpop.xlane.xlu0 %440  ;;  %436 = vadd.xlane.f32.xlu1 %v435_v60 }
 0x4a5   :  { %v442_v63 = vsel %vm434_vm2, %v441_v61, %v288_v54  ;;  %v118_v54 = vsel %vm116_vm8, %v55_v51, 0.0 }
 0x4a6   :  { %v453_v0 = vmul.f32 %v445_v62, %v442_v63 }
 0x4a8   :  { %454 = vadd.xlane.f32.xlu0 %v453_v0 }
 0x531   :  { %v437_v1 = vpop.xlane.xlu1 %436 }
 0x532   :  { %v438_v4 = vsel %vm434_vm2, %v437_v1, %v428_v58  ;;  %vm600_vm2 = vcmp.eq.s32.totalorder %v3563_v2, 19 }
 0x533   :  { %v449_v8 = vmul.f32 %v445_v62, %v438_v4 }
 0x535   :  { %v455_v9 = vpop.xlane.xlu0 %454  ;;  %450 = vadd.xlane.f32.xlu1 %v449_v8 }
 0x536   :  { %v456_v11 = vsel %vm448_vm3, %v455_v9, %v442_v63  ;;  %v123_v63 = vsel %vm122_vm11, %v55_v51, 0.0  ;;  %vm690_vm11 = vcmp.eq.s32.totalorder %v3563_v2, 24 }
 0x537   :  { %v467_v12 = vmul.f32 %v459_v10, %v456_v11 }
 0x539   :  { %468 = vadd.xlane.f32.xlu0 %v467_v12 }
 0x5c2   :  { %v451_v13 = vpop.xlane.xlu1 %450 }
 0x5c3   :  { %v452_v14 = vsel %vm448_vm3, %v451_v13, %v438_v4  ;;  %vm618_vm3 = vcmp.eq.s32.totalorder %v3563_v2, 20 }
 0x5c4   :  { %v463_v16 = vmul.f32 %v459_v10, %v452_v14 }
 0x5c6   :  { %v469_v17 = vpop.xlane.xlu0 %468  ;;  %464 = vadd.xlane.f32.xlu1 %v463_v16 }
 0x5c7   :  { %v470_v19 = vsel %vm462_vm4, %v469_v17, %v456_v11 }
 0x5c8   :  { %v481_v20 = vmul.f32 %v473_v18, %v470_v19 }
 0x5ca   :  { %482 = vadd.xlane.f32.xlu0 %v481_v20 }
 0x653   :  { %v465_v21 = vpop.xlane.xlu1 %464 }
 0x654   :  { %v466_v22 = vsel %vm462_vm4, %v465_v21, %v452_v14  ;;  %v295_v14 = vsel %vm294_vm13, -1.0, %v3549_v53  ;;  %vm636_vm4 = vcmp.eq.s32.totalorder %v3563_v2, 21  ;;  %vm734_vm13 = vcmp.eq.s32.totalorder %v3563_v2, 26 }
 0x655   :  { %v477_v24 = vmul.f32 %v473_v18, %v466_v22 }
 0x657   :  { %v483_v25 = vpop.xlane.xlu0 %482  ;;  %478 = vadd.xlane.f32.xlu1 %v477_v24 }
 0x658   :  { %v484_v27 = vsel %vm476_vm5, %v483_v25, %v470_v19 }
 0x659   :  { %v495_v28 = vmul.f32 %v487_v26, %v484_v27 }
 0x65b   :  { %496 = vadd.xlane.f32.xlu0 %v495_v28 }
 0x6e4   :  { %v479_v29 = vpop.xlane.xlu1 %478 }
 0x6e5   :  { %v480_v30 = vsel %vm476_vm5, %v479_v29, %v466_v22 }
 0x6e6   :  { %v491_v32 = vmul.f32 %v487_v26, %v480_v30 }
 0x6e8   :  { %v497_v33 = vpop.xlane.xlu0 %496  ;;  %492 = vadd.xlane.f32.xlu1 %v491_v32 }
 0x6e9   :  { %v498_v35 = vsel %vm490_vm6, %v497_v33, %v484_v27 }
 0x6ea   :  { %v509_v36 = vmul.f32 %v501_v34, %v498_v35 }
 0x6ec   :  { %510 = vadd.xlane.f32.xlu0 %v509_v36 }
 0x775   :  { %v493_v37 = vpop.xlane.xlu1 %492 }
 0x776   :  { %v494_v38 = vsel %vm490_vm6, %v493_v37, %v480_v30  ;;  %vm654_vm6 = vcmp.eq.s32.totalorder %v3563_v2, 22 }
 0x777   :  { %v505_v40 = vmul.f32 %v501_v34, %v494_v38 }
 0x779   :  { %v511_v41 = vpop.xlane.xlu0 %510  ;;  %506 = vadd.xlane.f32.xlu1 %v505_v40 }
 0x77a   :  { %v512_v44 = vsel %vm504_vm7, %v511_v41, %v498_v35 }
 0x77b   :  { %v523_v46 = vmul.f32 %v515_v42, %v512_v44 }
 0x77d   :  { %524 = vadd.xlane.f32.xlu0 %v523_v46 }
 0x806   :  { %v507_v48 = vpop.xlane.xlu1 %506 }
 0x807   :  { %v508_v49 = vsel %vm504_vm7, %v507_v48, %v494_v38 }
 0x808   :  { %v519_v50 = vmul.f32 %v515_v42, %v508_v49 }
 0x80a   :  { %v525_v52 = vpop.xlane.xlu0 %524  ;;  %520 = vadd.xlane.f32.xlu1 %v519_v50 }
 0x80b   :  { %v526_v56 = vsel %vm518_vm9, %v525_v52, %v512_v44 }
 0x80c   :  { %v537_v58 = vmul.f32 %v529_v57, %v526_v56 }
 0x80e   :  { %119 = vadd.xlane.f32.xlu1 %v118_v54 }
 0x812   :  { %538 = vadd.xlane.f32.xlu1 %v537_v58 }
 0x897   :  { %v521_v59 = vpop.xlane.xlu1 %520 }
 0x898   :  { %v522_v60 = vsel %vm518_vm9, %v521_v59, %v508_v49  ;;  %vm672_vm9 = vcmp.eq.s32.totalorder %v3563_v2, 23 }
 0x899   :  { %v533_v61 = vmul.f32 %v529_v57, %v522_v60 }
 0x89b   :  { %534 = vadd.xlane.f32.xlu0 %v533_v61  ;;  %v3618_v62 = vpop.xlane.xlu1 %119 }
 0x89c   :  { %3528 = vrcp.f32 %v3618_v62 }
 0x89f   :  { %v539_v4 = vpop.xlane.xlu1 %538 }
 0x8a0   :  { %v540_v9 = vsel %vm532_vm12, %v539_v4, %v526_v56 }
 0x8a6   :  { %v3624_v0 = vpop.eup %3528 }
 0x8a7   :  { %v125_v1 = vmul.f32 %v3624_v0, %v123_v63 }
 0x8a9   :  { %126 = vst [vmem:[#allocation2 + $0x10] sm:$0xff] %v125_v1 }
 0x8b0   :  { %v542_v6 = vld [vmem:[#allocation2 + $0x10] ss:$0 sm:$0xff]  ;;  %v560_v16 = vld [vmem:[#allocation2 + $0x11] ss:$0 sm:$0xff]  ;;  %v578_v27 = vld [vmem:[#allocation2 + $0x12] ss:$0 sm:$0xff] }
 0x8b1   :  { %v543_v8 = vxor.u32 2147483648, %v542_v6  ;;  %v561_v18 = vxor.u32 2147483648, %v560_v16  ;;  %v579_v29 = vxor.u32 2147483648, %v578_v27  ;;  %v596_v38 = vld [vmem:[#allocation2 + $0x13] ss:$0 sm:$0xff] }
 0x8b2   :  { %v597_v40 = vxor.u32 2147483648, %v596_v38  ;;  %v614_v51 = vld [vmem:[#allocation2 + $0x14] ss:$0 sm:$0xff]  ;;  %v632_v1 = vld [vmem:[#allocation2 + $0x15] ss:$0 sm:$0xff] }
 0x8b3   :  { %v551_v10 = vmul.f32 %v543_v8, %v540_v9  ;;  %v555_v15 = vmul.f32 %v543_v8, %v295_v14  ;;  %v615_v54 = vxor.u32 2147483648, %v614_v51  ;;  %v633_v6 = vxor.u32 2147483648, %v632_v1  ;;  %v650_v16 = vld [vmem:[#allocation2 + $0x16] ss:$0 sm:$0xff] }
 0x8b5   :  { %552 = vadd.xlane.f32.xlu1 %v551_v10 }
 0x928   :  { %v535_v11 = vpop.xlane.xlu0 %534 }
 0x929   :  { %v536_v12 = vsel %vm532_vm12, %v535_v11, %v522_v60  ;;  %vm712_vm12 = vcmp.eq.s32.totalorder %v3563_v2, 25 }
 0x92a   :  { %v547_v13 = vmul.f32 %v543_v8, %v536_v12 }
 0x92c   :  { %548 = vadd.xlane.f32.xlu0 %v547_v13 }
 0x930   :  { %556 = vadd.xlane.f32.xlu0 %v555_v15 }
 0x942   :  { %v553_v17 = vpop.xlane.xlu1 %552 }
 0x943   :  { %v554_v19 = vsel %vm546_vm14, %v553_v17, %v540_v9  ;;  %v131_v17 = vadd.s32 24, %v3565_v3 }
 0x944   :  { %v569_v20 = vmul.f32 %v561_v18, %v554_v19 }
 0x945   :  { %vm132_vm5 = vcmp.eq.s32.totalorder %v131_v17, %v3563_v2  ;;  %vm137_vm7 = vcmp.ge.s32.totalorder %v131_v17, %v3563_v2  ;;  %vm301_vm10 = vcmp.eq.s32.totalorder %v3563_v2, %v131_v17 }
 0x946   :  { %570 = vadd.xlane.f32.xlu0 %v569_v20  ;;  %vm138_vm8 = vmand %vm137_vm7, %vm80_vm1  ;;  %v302_v51 = vsel %vm301_vm10, -1.0, %v3549_v53  ;;  %vm918_vm10 = vcmp.eq.s32.totalorder %v3563_v2, 34 }
 0x9b9   :  { %v549_v21 = vpop.xlane.xlu0 %548 }
 0x9ba   :  { %v550_v22 = vsel %vm546_vm14, %v549_v21, %v536_v12 }
 0x9bb   :  { %v565_v23 = vmul.f32 %v561_v18, %v550_v22 }
 0x9bd   :  { %v557_v24 = vpop.xlane.xlu0 %556  ;;  %566 = vadd.xlane.f32.xlu1 %v565_v23 }
 0x9be   :  { %v558_v25 = vsel %vm546_vm14, %v557_v24, %v295_v14  ;;  %vm756_vm14 = vcmp.eq.s32.totalorder %v3563_v2, 27 }
 0x9bf   :  { %v573_v26 = vmul.f32 %v561_v18, %v558_v25 }
 0x9c1   :  { %574 = vadd.xlane.f32.xlu1 %v573_v26 }
 0x9d3   :  { %v571_v28 = vpop.xlane.xlu0 %570 }
 0x9d4   :  { %v572_v30 = vsel %vm564_vm15, %v571_v28, %v554_v19  ;;  %v651_v19 = vxor.u32 2147483648, %v650_v16 }
 0x9d5   :  { %v587_v31 = vmul.f32 %v579_v29, %v572_v30 }
 0x9d7   :  { %588 = vadd.xlane.f32.xlu1 %v587_v31 }
 0xa4a   :  { %v567_v32 = vpop.xlane.xlu1 %566 }
 0xa4b   :  { %v568_v33 = vsel %vm564_vm15, %v567_v32, %v550_v22  ;;  %v57_v22 = vld [vmem:[%s5052_s0 + $0x18] sm:$0xff] }
 0xa4c   :  { %v583_v34 = vmul.f32 %v579_v29, %v568_v33  ;;  %v134_v23 = vsel %vm132_vm5, %v57_v22, 0.0 }
 0xa4e   :  { %584 = vadd.xlane.f32.xlu0 %v583_v34  ;;  %v575_v35 = vpop.xlane.xlu1 %574 }
 0xa4f   :  { %v576_v36 = vsel %vm564_vm15, %v575_v35, %v558_v25  ;;  %vm778_vm15 = vcmp.eq.s32.totalorder %v3563_v2, 28 }
 0xa50   :  { %v591_v37 = vmul.f32 %v579_v29, %v576_v36 }
 0xa52   :  { %592 = vadd.xlane.f32.xlu0 %v591_v37 }
 0xa64   :  { %v589_v39 = vpop.xlane.xlu1 %588 }
 0xa65   :  { %v590_v41 = vsel %vm582_vm0, %v589_v39, %v572_v30  ;;  %v668_v30 = vld [vmem:[#allocation2 + $0x17] ss:$0 sm:$0xff] }
 0xa66   :  { %v605_v42 = vmul.f32 %v597_v40, %v590_v41  ;;  %v669_v32 = vxor.u32 2147483648, %v668_v30 }
 0xa68   :  { %606 = vadd.xlane.f32.xlu0 %v605_v42 }
 0xadb   :  { %v585_v44 = vpop.xlane.xlu0 %584 }
 0xadc   :  { %v586_v46 = vsel %vm582_vm0, %v585_v44, %v568_v33 }
 0xadd   :  { %v601_v47 = vmul.f32 %v597_v40, %v586_v46 }
 0xadf   :  { %602 = vadd.xlane.f32.xlu1 %v601_v47  ;;  %v593_v48 = vpop.xlane.xlu0 %592 }
 0xae0   :  { %v594_v49 = vsel %vm582_vm0, %v593_v48, %v576_v36  ;;  %v139_v36 = vsel %vm138_vm8, %v57_v22, 0.0  ;;  %vm800_vm0 = vcmp.eq.s32.totalorder %v3563_v2, 29  ;;  %vm866_vm8 = vcmp.eq.s32.totalorder %v3563_v2, 32 }
 0xae1   :  { %v609_v50 = vmul.f32 %v597_v40, %v594_v49 }
 0xae3   :  { %610 = vadd.xlane.f32.xlu1 %v609_v50 }
 0xaf5   :  { %v607_v52 = vpop.xlane.xlu0 %606 }
 0xaf6   :  { %v608_v55 = vsel %vm600_vm2, %v607_v52, %v590_v41 }
 0xaf7   :  { %v623_v56 = vmul.f32 %v615_v54, %v608_v55 }
 0xaf9   :  { %624 = vadd.xlane.f32.xlu1 %v623_v56 }
 0xb6c   :  { %v603_v57 = vpop.xlane.xlu1 %602 }
 0xb6d   :  { %v604_v58 = vsel %vm600_vm2, %v603_v57, %v586_v46 }
 0xb6e   :  { %v619_v59 = vmul.f32 %v615_v54, %v604_v58 }
 0xb70   :  { %620 = vadd.xlane.f32.xlu0 %v619_v59  ;;  %v611_v60 = vpop.xlane.xlu1 %610 }
 0xb71   :  { %v612_v61 = vsel %vm600_vm2, %v611_v60, %v594_v49 }
 0xb72   :  { %v627_v63 = vmul.f32 %v615_v54, %v612_v61 }
 0xb74   :  { %628 = vadd.xlane.f32.xlu0 %v627_v63 }
 0xb86   :  { %v625_v4 = vpop.xlane.xlu1 %624 }
 0xb87   :  { %v626_v8 = vsel %vm618_vm3, %v625_v4, %v608_v55 }
 0xb88   :  { %v641_v9 = vmul.f32 %v633_v6, %v626_v8 }
 0xb8a   :  { %642 = vadd.xlane.f32.xlu0 %v641_v9 }
 0xbfd   :  { %v621_v10 = vpop.xlane.xlu0 %620 }
 0xbfe   :  { %v622_v11 = vsel %vm618_vm3, %v621_v10, %v604_v58 }
 0xbff   :  { %v637_v12 = vmul.f32 %v633_v6, %v622_v11 }
 0xc01   :  { %638 = vadd.xlane.f32.xlu1 %v637_v12  ;;  %v629_v13 = vpop.xlane.xlu0 %628 }
 0xc02   :  { %v630_v14 = vsel %vm618_vm3, %v629_v13, %v612_v61  ;;  %vm822_vm3 = vcmp.eq.s32.totalorder %v3563_v2, 30 }
 0xc03   :  { %v645_v15 = vmul.f32 %v633_v6, %v630_v14 }
 0xc05   :  { %646 = vadd.xlane.f32.xlu1 %v645_v15 }
 0xc17   :  { %v643_v18 = vpop.xlane.xlu0 %642 }
 0xc18   :  { %v644_v20 = vsel %vm636_vm4, %v643_v18, %v626_v8 }
 0xc19   :  { %v659_v21 = vmul.f32 %v651_v19, %v644_v20 }
 0xc1b   :  { %660 = vadd.xlane.f32.xlu1 %v659_v21 }
 0xc1f   :  { %135 = vadd.xlane.f32.xlu1 %v134_v23 }
 0xc8e   :  { %v639_v24 = vpop.xlane.xlu1 %638 }
 0xc8f   :  { %v640_v25 = vsel %vm636_vm4, %v639_v24, %v622_v11 }
 0xc90   :  { %v655_v26 = vmul.f32 %v651_v19, %v640_v25 }
 0xc92   :  { %656 = vadd.xlane.f32.xlu0 %v655_v26  ;;  %v647_v27 = vpop.xlane.xlu1 %646 }
 0xc93   :  { %v648_v28 = vsel %vm636_vm4, %v647_v27, %v630_v14 }
 0xc94   :  { %v663_v29 = vmul.f32 %v651_v19, %v648_v28 }
 0xc96   :  { %664 = vadd.xlane.f32.xlu0 %v663_v29 }
 0xca8   :  { %v661_v31 = vpop.xlane.xlu1 %660 }
 0xca9   :  { %v662_v33 = vsel %vm654_vm6, %v661_v31, %v644_v20 }
 0xcaa   :  { %v677_v34 = vmul.f32 %v669_v32, %v662_v33 }
 0xcac   :  { %678 = vadd.xlane.f32.xlu1 %v677_v34  ;;  %v3650_v35 = vpop.xlane.xlu1 %135 }
 0xcad   :  { %3530 = vrcp.f32 %v3650_v35 }
 0xcb7   :  { %v3656_v37 = vpop.eup %3530 }
 0xcb8   :  { %v141_v38 = vmul.f32 %v3656_v37, %v139_v36 }
 0xcba   :  { %142 = vst [vmem:[#allocation2 + $0x18] sm:$0xff] %v141_v38 }
 0xcc1   :  { %v686_v47 = vld [vmem:[#allocation2 + $0x18] ss:$0 sm:$0xff]  ;;  %v708_v61 = vld [vmem:[#allocation2 + $0x19] ss:$0 sm:$0xff]  ;;  %v730_v17 = vld [vmem:[#allocation2 + $0x1a] ss:$0 sm:$0xff] }
 0xcc2   :  { %v687_v48 = vxor.u32 2147483648, %v686_v47  ;;  %v709_v1 = vxor.u32 2147483648, %v708_v61  ;;  %v731_v19 = vxor.u32 2147483648, %v730_v17  ;;  %v752_v31 = vld [vmem:[#allocation2 + $0x1b] ss:$0 sm:$0xff] }
 0xcc4   :  { %v703_v54 = vmul.f32 %v687_v48, %v302_v51 }
 0xd1f   :  { %v657_v39 = vpop.xlane.xlu0 %656 }
 0xd20   :  { %v658_v40 = vsel %vm654_vm6, %v657_v39, %v640_v25 }
 0xd21   :  { %v673_v41 = vmul.f32 %v669_v32, %v658_v40 }
 0xd23   :  { %674 = vadd.xlane.f32.xlu0 %v673_v41  ;;  %v665_v42 = vpop.xlane.xlu0 %664 }
 0xd24   :  { %v666_v44 = vsel %vm654_vm6, %v665_v42, %v648_v28  ;;  %vm844_vm6 = vcmp.eq.s32.totalorder %v3563_v2, 31 }
 0xd25   :  { %v681_v46 = vmul.f32 %v669_v32, %v666_v44 }
 0xd27   :  { %682 = vadd.xlane.f32.xlu0 %v681_v46 }
 0xd39   :  { %v679_v49 = vpop.xlane.xlu1 %678 }
 0xd3a   :  { %v680_v50 = vsel %vm672_vm9, %v679_v49, %v662_v33  ;;  %v753_v33 = vxor.u32 2147483648, %v752_v31  ;;  %v774_v49 = vld [vmem:[#allocation2 + $0x1c] ss:$0 sm:$0xff]  ;;  %v147_v31 = vadd.s32 32, %v3565_v3 }
 0xd3b   :  { %v695_v52 = vmul.f32 %v687_v48, %v680_v50 }
 0xd3c   :  { %vm148_vm2 = vcmp.eq.s32.totalorder %v147_v31, %v3563_v2  ;;  %vm153_vm4 = vcmp.ge.s32.totalorder %v147_v31, %v3563_v2  ;;  %vm308_vm7 = vcmp.eq.s32.totalorder %v3563_v2, %v147_v31 }
 0xd3d   :  { %696 = vadd.xlane.f32.xlu0 %v695_v52  ;;  %vm154_vm5 = vmand %vm153_vm4, %vm80_vm1 }
 0xd41   :  { %704 = vadd.xlane.f32.xlu0 %v703_v54 }
 0xdb0   :  { %v675_v55 = vpop.xlane.xlu0 %674 }
 0xdb1   :  { %v676_v56 = vsel %vm672_vm9, %v675_v55, %v658_v40 }
 0xdb2   :  { %v691_v57 = vmul.f32 %v687_v48, %v676_v56 }
 0xdb4   :  { %v683_v58 = vpop.xlane.xlu0 %682  ;;  %692 = vadd.xlane.f32.xlu1 %v691_v57 }
 0xdb5   :  { %v684_v59 = vsel %vm672_vm9, %v683_v58, %v666_v44  ;;  %vm892_vm9 = vcmp.eq.s32.totalorder %v3563_v2, 33 }
 0xdb6   :  { %v699_v60 = vmul.f32 %v687_v48, %v684_v59 }
 0xdb8   :  { %700 = vadd.xlane.f32.xlu1 %v699_v60 }
 0xdca   :  { %v697_v63 = vpop.xlane.xlu0 %696 }
 0xdcb   :  { %v698_v4 = vsel %vm690_vm11, %v697_v63, %v680_v50 }
 0xdcc   :  { %v717_v6 = vmul.f32 %v709_v1, %v698_v4 }
 0xdce   :  { %718 = vadd.xlane.f32.xlu0 %v717_v6  ;;  %v705_v8 = vpop.xlane.xlu0 %704 }
 0xdcf   :  { %v706_v9 = vsel %vm690_vm11, %v705_v8, %v302_v51  ;;  %v775_v51 = vxor.u32 2147483648, %v774_v49 }
 0xdd0   :  { %v725_v10 = vmul.f32 %v709_v1, %v706_v9 }
 0xdd2   :  { %726 = vadd.xlane.f32.xlu0 %v725_v10 }
 0xe41   :  { %v693_v11 = vpop.xlane.xlu1 %692 }
 0xe42   :  { %v694_v12 = vsel %vm690_vm11, %v693_v11, %v676_v56 }
 0xe43   :  { %v713_v13 = vmul.f32 %v709_v1, %v694_v12 }
 0xe45   :  { %714 = vadd.xlane.f32.xlu1 %v713_v13  ;;  %v701_v14 = vpop.xlane.xlu1 %700 }
 0xe46   :  { %v702_v15 = vsel %vm690_vm11, %v701_v14, %v684_v59  ;;  %vm944_vm11 = vcmp.eq.s32.totalorder %v3563_v2, 35 }
 0xe47   :  { %v721_v16 = vmul.f32 %v709_v1, %v702_v15 }
 0xe49   :  { %722 = vadd.xlane.f32.xlu1 %v721_v16 }
 0xe5b   :  { %v719_v18 = vpop.xlane.xlu0 %718 }
 0xe5c   :  { %v720_v20 = vsel %vm712_vm12, %v719_v18, %v698_v4  ;;  %v796_v4 = vld [vmem:[#allocation2 + $0x1d] ss:$0 sm:$0xff] }
 0xe5d   :  { %v739_v21 = vmul.f32 %v731_v19, %v720_v20  ;;  %v797_v8 = vxor.u32 2147483648, %v796_v4 }
 0xe5f   :  { %740 = vadd.xlane.f32.xlu0 %v739_v21  ;;  %v727_v22 = vpop.xlane.xlu0 %726 }
 0xe60   :  { %v728_v23 = vsel %vm712_vm12, %v727_v22, %v706_v9 }
 0xe61   :  { %v747_v24 = vmul.f32 %v731_v19, %v728_v23 }
 0xe63   :  { %748 = vadd.xlane.f32.xlu0 %v747_v24 }
 0xed2   :  { %v715_v25 = vpop.xlane.xlu1 %714 }
 0xed3   :  { %v716_v26 = vsel %vm712_vm12, %v715_v25, %v694_v12 }
 0xed4   :  { %v735_v27 = vmul.f32 %v731_v19, %v716_v26 }
 0xed6   :  { %736 = vadd.xlane.f32.xlu1 %v735_v27  ;;  %v723_v28 = vpop.xlane.xlu1 %722 }
 0xed7   :  { %v724_v29 = vsel %vm712_vm12, %v723_v28, %v702_v15  ;;  %vm970_vm12 = vcmp.eq.s32.totalorder %v3563_v2, 36 }
 0xed8   :  { %v743_v30 = vmul.f32 %v731_v19, %v724_v29 }
 0xeda   :  { %744 = vadd.xlane.f32.xlu1 %v743_v30 }
 0xeec   :  { %v741_v32 = vpop.xlane.xlu0 %740 }
 0xeed   :  { %v742_v34 = vsel %vm734_vm13, %v741_v32, %v720_v20  ;;  %v818_v20 = vld [vmem:[#allocation2 + $0x1e] ss:$0 sm:$0xff] }
 0xeee   :  { %v761_v36 = vmul.f32 %v753_v33, %v742_v34  ;;  %v819_v22 = vxor.u32 2147483648, %v818_v20 }
 0xef0   :  { %762 = vadd.xlane.f32.xlu0 %v761_v36  ;;  %v749_v38 = vpop.xlane.xlu0 %748  ;;  %v59_v36 = vld [vmem:[%s5052_s0 + $0x20] sm:$0xff] }
 0xef1   :  { %v750_v39 = vsel %vm734_vm13, %v749_v38, %v728_v23  ;;  %v150_v38 = vsel %vm148_vm2, %v59_v36, 0.0 }
 0xef2   :  { %v769_v40 = vmul.f32 %v753_v33, %v750_v39 }
 0xef4   :  { %770 = vadd.xlane.f32.xlu0 %v769_v40 }
 0xf63   :  { %v737_v41 = vpop.xlane.xlu1 %736 }
 0xf64   :  { %v738_v42 = vsel %vm734_vm13, %v737_v41, %v716_v26 }
 0xf65   :  { %v757_v44 = vmul.f32 %v753_v33, %v738_v42 }
 0xf67   :  { %758 = vadd.xlane.f32.xlu1 %v757_v44  ;;  %v745_v46 = vpop.xlane.xlu1 %744 }
 0xf68   :  { %v746_v47 = vsel %vm734_vm13, %v745_v46, %v724_v29  ;;  %vm996_vm13 = vcmp.eq.s32.totalorder %v3563_v2, 37 }
 0xf69   :  { %v765_v48 = vmul.f32 %v753_v33, %v746_v47 }
 0xf6b   :  { %766 = vadd.xlane.f32.xlu1 %v765_v48 }
 0xf7d   :  { %v763_v50 = vpop.xlane.xlu0 %762 }
 0xf7e   :  { %v764_v52 = vsel %vm756_vm14, %v763_v50, %v742_v34 }
 0xf7f   :  { %v783_v54 = vmul.f32 %v775_v51, %v764_v52 }
 0xf81   :  { %784 = vadd.xlane.f32.xlu0 %v783_v54  ;;  %v771_v55 = vpop.xlane.xlu0 %770 }
 0xf82   :  { %v772_v56 = vsel %vm756_vm14, %v771_v55, %v750_v39  ;;  %v840_v39 = vld [vmem:[#allocation2 + $0x1f] ss:$0 sm:$0xff] }
 0xf83   :  { %v791_v57 = vmul.f32 %v775_v51, %v772_v56  ;;  %v841_v41 = vxor.u32 2147483648, %v840_v39 }
 0xf85   :  { %792 = vadd.xlane.f32.xlu0 %v791_v57  ;;  %v155_v57 = vsel %vm154_vm5, %v59_v36, 0.0  ;;  %vm1074_vm5 = vcmp.eq.s32.totalorder %v3563_v2, 40 }
 0xff4   :  { %v759_v58 = vpop.xlane.xlu1 %758 }
 0xff5   :  { %v760_v59 = vsel %vm756_vm14, %v759_v58, %v738_v42 }
 0xff6   :  { %v779_v60 = vmul.f32 %v775_v51, %v760_v59 }
 0xff8   :  { %780 = vadd.xlane.f32.xlu1 %v779_v60  ;;  %v767_v61 = vpop.xlane.xlu1 %766 }
 0xff9   :  { %v768_v63 = vsel %vm756_vm14, %v767_v61, %v746_v47 }
 0xffa   :  { %v787_v1 = vmul.f32 %v775_v51, %v768_v63 }
 0xffc   :  { %788 = vadd.xlane.f32.xlu1 %v787_v1 }
0x100e   :  { %v785_v6 = vpop.xlane.xlu0 %784 }
0x100f   :  { %v786_v9 = vsel %vm778_vm15, %v785_v6, %v764_v52 }
0x1010   :  { %v805_v10 = vmul.f32 %v797_v8, %v786_v9 }
0x1012   :  { %806 = vadd.xlane.f32.xlu0 %v805_v10  ;;  %v793_v11 = vpop.xlane.xlu0 %792 }
0x1013   :  { %v794_v12 = vsel %vm778_vm15, %v793_v11, %v772_v56 }
0x1014   :  { %v813_v13 = vmul.f32 %v797_v8, %v794_v12 }
0x1016   :  { %814 = vadd.xlane.f32.xlu0 %v813_v13 }
0x1085   :  { %v781_v14 = vpop.xlane.xlu1 %780 }
0x1086   :  { %v782_v15 = vsel %vm778_vm15, %v781_v14, %v760_v59 }
0x1087   :  { %v801_v16 = vmul.f32 %v797_v8, %v782_v15 }
0x1089   :  { %802 = vadd.xlane.f32.xlu1 %v801_v16  ;;  %v789_v17 = vpop.xlane.xlu1 %788  ;;  %v309_v16 = vsel %vm308_vm7, -1.0, %v3549_v53  ;;  %vm1134_vm7 = vcmp.eq.s32.totalorder %v3563_v2, 42 }
0x108a   :  { %v790_v18 = vsel %vm778_vm15, %v789_v17, %v768_v63  ;;  %vm1022_vm15 = vcmp.eq.s32.totalorder %v3563_v2, 38 }
0x108b   :  { %v809_v19 = vmul.f32 %v797_v8, %v790_v18 }
0x108d   :  { %810 = vadd.xlane.f32.xlu1 %v809_v19 }
0x109f   :  { %v807_v21 = vpop.xlane.xlu0 %806 }
0x10a0   :  { %v808_v23 = vsel %vm800_vm0, %v807_v21, %v786_v9 }
0x10a1   :  { %v827_v24 = vmul.f32 %v819_v22, %v808_v23 }
0x10a3   :  { %828 = vadd.xlane.f32.xlu0 %v827_v24  ;;  %v815_v25 = vpop.xlane.xlu0 %814 }
0x10a4   :  { %v816_v26 = vsel %vm800_vm0, %v815_v25, %v794_v12 }
0x10a5   :  { %v835_v27 = vmul.f32 %v819_v22, %v816_v26 }
0x10a7   :  { %836 = vadd.xlane.f32.xlu0 %v835_v27 }
0x1116   :  { %v803_v28 = vpop.xlane.xlu1 %802 }
0x1117   :  { %v804_v29 = vsel %vm800_vm0, %v803_v28, %v782_v15 }
0x1118   :  { %v823_v30 = vmul.f32 %v819_v22, %v804_v29 }
0x111a   :  { %824 = vadd.xlane.f32.xlu1 %v823_v30  ;;  %v811_v32 = vpop.xlane.xlu1 %810 }
0x111b   :  { %v812_v33 = vsel %vm800_vm0, %v811_v32, %v790_v18 }
0x111c   :  { %v831_v34 = vmul.f32 %v819_v22, %v812_v33 }
0x111e   :  { %832 = vadd.xlane.f32.xlu1 %v831_v34 }
0x1122   :  { %151 = vadd.xlane.f32.xlu1 %v150_v38 }
0x1130   :  { %v829_v40 = vpop.xlane.xlu0 %828 }
0x1131   :  { %v830_v42 = vsel %vm822_vm3, %v829_v40, %v808_v23 }
0x1132   :  { %v849_v44 = vmul.f32 %v841_v41, %v830_v42 }
0x1134   :  { %v837_v46 = vpop.xlane.xlu0 %836  ;;  %850 = vadd.xlane.f32.xlu1 %v849_v44 }
0x1135   :  { %v838_v47 = vsel %vm822_vm3, %v837_v46, %v816_v26 }
0x1136   :  { %v857_v48 = vmul.f32 %v841_v41, %v838_v47 }
0x1138   :  { %858 = vadd.xlane.f32.xlu1 %v857_v48 }
0x11a7   :  { %v825_v49 = vpop.xlane.xlu1 %824 }
0x11a8   :  { %v826_v50 = vsel %vm822_vm3, %v825_v49, %v804_v29 }
0x11a9   :  { %v845_v51 = vmul.f32 %v841_v41, %v826_v50 }
0x11ab   :  { %846 = vadd.xlane.f32.xlu0 %v845_v51  ;;  %v833_v52 = vpop.xlane.xlu1 %832 }
0x11ac   :  { %v834_v54 = vsel %vm822_vm3, %v833_v52, %v812_v33  ;;  %vm1048_vm3 = vcmp.eq.s32.totalorder %v3563_v2, 39 }
0x11ad   :  { %v853_v55 = vmul.f32 %v841_v41, %v834_v54 }
0x11af   :  { %854 = vadd.xlane.f32.xlu0 %v853_v55  ;;  %v3686_v56 = vpop.xlane.xlu1 %151 }
0x11b0   :  { %3532 = vrcp.f32 %v3686_v56 }
0x11ba   :  { %v3692_v58 = vpop.eup %3532 }
0x11bb   :  { %v157_v59 = vmul.f32 %v3692_v58, %v155_v57 }
0x11bd   :  { %158 = vst [vmem:[#allocation2 + $0x20] sm:$0xff] %v157_v59 }
0x11c1   :  { %v851_v60 = vpop.xlane.xlu1 %850 }
0x11c2   :  { %v852_v4 = vsel %vm844_vm6, %v851_v60, %v830_v42 }
0x11c4   :  { %v862_v61 = vld [vmem:[#allocation2 + $0x20] ss:$0 sm:$0xff]  ;;  %v888_v18 = vld [vmem:[#allocation2 + $0x21] ss:$0 sm:$0xff]  ;;  %v914_v36 = vld [vmem:[#allocation2 + $0x22] ss:$0 sm:$0xff] }
0x11c5   :  { %v859_v63 = vpop.xlane.xlu1 %858  ;;  %v863_v1 = vxor.u32 2147483648, %v862_v61  ;;  %v889_v20 = vxor.u32 2147483648, %v888_v18  ;;  %v915_v39 = vxor.u32 2147483648, %v914_v36  ;;  %v940_v59 = vld [vmem:[#allocation2 + $0x23] ss:$0 sm:$0xff] }
0x11c6   :  { %v860_v8 = vsel %vm844_vm6, %v859_v63, %v838_v47  ;;  %v941_v60 = vxor.u32 2147483648, %v940_v59  ;;  %v966_v18 = vld [vmem:[#allocation2 + $0x24] ss:$0 sm:$0xff]  ;;  %v992_v36 = vld [vmem:[#allocation2 + $0x25] ss:$0 sm:$0xff] }
0x11c7   :  { %v871_v6 = vmul.f32 %v863_v1, %v852_v4  ;;  %v879_v9 = vmul.f32 %v863_v1, %v860_v8  ;;  %v883_v17 = vmul.f32 %v863_v1, %v309_v16  ;;  %v1018_v59 = vld [vmem:[#allocation2 + $0x26] ss:$0 sm:$0xff] }
0x11c9   :  { %872 = vadd.xlane.f32.xlu1 %v871_v6 }
0x11cd   :  { %880 = vadd.xlane.f32.xlu1 %v879_v9 }
0x1238   :  { %v847_v10 = vpop.xlane.xlu0 %846 }
0x1239   :  { %v848_v14 = vsel %vm844_vm6, %v847_v10, %v826_v50 }
0x123a   :  { %v867_v15 = vmul.f32 %v863_v1, %v848_v14 }
0x123c   :  { %v855_v11 = vpop.xlane.xlu0 %854 }
0x123d   :  { %v856_v12 = vsel %vm844_vm6, %v855_v11, %v834_v54  ;;  %vm1104_vm6 = vcmp.eq.s32.totalorder %v3563_v2, 41 }
0x123e   :  { %v875_v13 = vmul.f32 %v863_v1, %v856_v12 }
0x1240   :  { %876 = vadd.xlane.f32.xlu0 %v875_v13 }
0x1244   :  { %868 = vadd.xlane.f32.xlu0 %v867_v15 }
0x1248   :  { %884 = vadd.xlane.f32.xlu0 %v883_v17 }
0x1256   :  { %v873_v19 = vpop.xlane.xlu1 %872 }
0x1257   :  { %v874_v21 = vsel %vm866_vm8, %v873_v19, %v852_v4  ;;  %v967_v19 = vxor.u32 2147483648, %v966_v18 }
0x1258   :  { %v897_v22 = vmul.f32 %v889_v20, %v874_v21 }
0x125a   :  { %898 = vadd.xlane.f32.xlu0 %v897_v22  ;;  %v881_v23 = vpop.xlane.xlu1 %880 }
0x125b   :  { %v882_v24 = vsel %vm866_vm8, %v881_v23, %v860_v8 }
0x125c   :  { %v905_v25 = vmul.f32 %v889_v20, %v882_v24 }
0x125e   :  { %906 = vadd.xlane.f32.xlu0 %v905_v25 }
0x12cd   :  { %v877_v26 = vpop.xlane.xlu0 %876 }
0x12ce   :  { %v878_v27 = vsel %vm866_vm8, %v877_v26, %v856_v12 }
0x12cf   :  { %v901_v28 = vmul.f32 %v889_v20, %v878_v27 }
0x12d1   :  { %v869_v29 = vpop.xlane.xlu0 %868  ;;  %902 = vadd.xlane.f32.xlu1 %v901_v28 }
0x12d2   :  { %v870_v30 = vsel %vm866_vm8, %v869_v29, %v848_v14 }
0x12d3   :  { %v893_v31 = vmul.f32 %v889_v20, %v870_v30 }
0x12d5   :  { %v885_v32 = vpop.xlane.xlu0 %884  ;;  %894 = vadd.xlane.f32.xlu1 %v893_v31 }
0x12d6   :  { %v886_v33 = vsel %vm866_vm8, %v885_v32, %v309_v16  ;;  %vm1164_vm8 = vcmp.eq.s32.totalorder %v3563_v2, 43 }
0x12d7   :  { %v909_v34 = vmul.f32 %v889_v20, %v886_v33 }
0x12d9   :  { %910 = vadd.xlane.f32.xlu1 %v909_v34 }
0x12e7   :  { %v899_v38 = vpop.xlane.xlu0 %898 }
0x12e8   :  { %v900_v40 = vsel %vm892_vm9, %v899_v38, %v874_v21  ;;  %v993_v38 = vxor.u32 2147483648, %v992_v36 }
0x12e9   :  { %v923_v41 = vmul.f32 %v915_v39, %v900_v40 }
0x12eb   :  { %924 = vadd.xlane.f32.xlu1 %v923_v41  ;;  %v907_v42 = vpop.xlane.xlu0 %906 }
0x12ec   :  { %v908_v44 = vsel %vm892_vm9, %v907_v42, %v882_v24 }
0x12ed   :  { %v931_v46 = vmul.f32 %v915_v39, %v908_v44 }
0x12ef   :  { %932 = vadd.xlane.f32.xlu1 %v931_v46 }
0x135e   :  { %v903_v47 = vpop.xlane.xlu1 %902 }
0x135f   :  { %v904_v48 = vsel %vm892_vm9, %v903_v47, %v878_v27 }
0x1360   :  { %v927_v49 = vmul.f32 %v915_v39, %v904_v48 }
0x1362   :  { %928 = vadd.xlane.f32.xlu0 %v927_v49  ;;  %v895_v50 = vpop.xlane.xlu1 %894 }
0x1363   :  { %v896_v51 = vsel %vm892_vm9, %v895_v50, %v870_v30 }
0x1364   :  { %v919_v52 = vmul.f32 %v915_v39, %v896_v51 }
0x1366   :  { %920 = vadd.xlane.f32.xlu0 %v919_v52  ;;  %v911_v54 = vpop.xlane.xlu1 %910 }
0x1367   :  { %v912_v55 = vsel %vm892_vm9, %v911_v54, %v886_v33  ;;  %vm1194_vm9 = vcmp.eq.s32.totalorder %v3563_v2, 44 }
0x1368   :  { %v935_v57 = vmul.f32 %v915_v39, %v912_v55 }
0x136a   :  { %936 = vadd.xlane.f32.xlu0 %v935_v57 }
0x1378   :  { %v925_v61 = vpop.xlane.xlu1 %924 }
0x1379   :  { %v926_v63 = vsel %vm918_vm10, %v925_v61, %v900_v40 }
0x137a   :  { %v949_v1 = vmul.f32 %v941_v60, %v926_v63 }
0x137c   :  { %950 = vadd.xlane.f32.xlu0 %v949_v1  ;;  %v933_v4 = vpop.xlane.xlu1 %932 }
0x137d   :  { %v934_v6 = vsel %vm918_vm10, %v933_v4, %v908_v44  ;;  %v3757_v4 = vadd.s32 40, %v3565_v3 }
0x137e   :  { %v957_v8 = vmul.f32 %v941_v60, %v934_v6 }
0x137f   :  { %vm164_vm14 = vcmp.eq.s32.totalorder %v3757_v4, %v3563_v2  ;;  %vm169_vm0 = vcmp.ge.s32.totalorder %v3757_v4, %v3563_v2  ;;  %vm315_vm4 = vcmp.eq.s32.totalorder %v3563_v2, %v3757_v4 }
0x1380   :  { %958 = vadd.xlane.f32.xlu0 %v957_v8  ;;  %vm170_vm2 = vmand %vm169_vm0, %vm80_vm1 }
0x13ef   :  { %v929_v9 = vpop.xlane.xlu0 %928 }
0x13f0   :  { %v930_v10 = vsel %vm918_vm10, %v929_v9, %v904_v48 }
0x13f1   :  { %v953_v11 = vmul.f32 %v941_v60, %v930_v10 }
0x13f3   :  { %954 = vadd.xlane.f32.xlu1 %v953_v11  ;;  %v921_v12 = vpop.xlane.xlu0 %920 }
0x13f4   :  { %v922_v13 = vsel %vm918_vm10, %v921_v12, %v896_v51 }
0x13f5   :  { %v945_v14 = vmul.f32 %v941_v60, %v922_v13 }
0x13f7   :  { %946 = vadd.xlane.f32.xlu1 %v945_v14  ;;  %v937_v15 = vpop.xlane.xlu0 %936 }
0x13f8   :  { %v938_v16 = vsel %vm918_vm10, %v937_v15, %v912_v55  ;;  %vm1224_vm10 = vcmp.eq.s32.totalorder %v3563_v2, 45 }
0x13f9   :  { %v961_v17 = vmul.f32 %v941_v60, %v938_v16  ;;  %v1019_v60 = vxor.u32 2147483648, %v1018_v59 }
0x13fb   :  { %962 = vadd.xlane.f32.xlu1 %v961_v17 }
0x1409   :  { %v951_v20 = vpop.xlane.xlu0 %950 }
0x140a   :  { %v952_v21 = vsel %vm944_vm11, %v951_v20, %v926_v63 }
0x140b   :  { %v975_v22 = vmul.f32 %v967_v19, %v952_v21 }
0x140d   :  { %976 = vadd.xlane.f32.xlu1 %v975_v22  ;;  %v959_v23 = vpop.xlane.xlu0 %958 }
0x140e   :  { %v960_v24 = vsel %vm944_vm11, %v959_v23, %v934_v6 }
0x140f   :  { %v983_v25 = vmul.f32 %v967_v19, %v960_v24 }
0x1411   :  { %984 = vadd.xlane.f32.xlu1 %v983_v25 }
0x1480   :  { %v955_v26 = vpop.xlane.xlu1 %954 }
0x1481   :  { %v956_v27 = vsel %vm944_vm11, %v955_v26, %v930_v10  ;;  %v61_v10 = vld [vmem:[%s5052_s0 + $0x28] sm:$0xff] }
0x1482   :  { %v979_v28 = vmul.f32 %v967_v19, %v956_v27  ;;  %v166_v11 = vsel %vm164_vm14, %v61_v10, 0.0 }
0x1484   :  { %980 = vadd.xlane.f32.xlu0 %v979_v28  ;;  %v947_v29 = vpop.xlane.xlu1 %946 }
0x1485   :  { %v948_v30 = vsel %vm944_vm11, %v947_v29, %v922_v13 }
0x1486   :  { %v971_v31 = vmul.f32 %v967_v19, %v948_v30 }
0x1488   :  { %972 = vadd.xlane.f32.xlu0 %v971_v31  ;;  %v963_v32 = vpop.xlane.xlu1 %962 }
0x1489   :  { %v964_v33 = vsel %vm944_vm11, %v963_v32, %v938_v16 }
0x148a   :  { %v987_v34 = vmul.f32 %v967_v19, %v964_v33 }
0x148c   :  { %988 = vadd.xlane.f32.xlu0 %v987_v34 }
0x149a   :  { %v977_v39 = vpop.xlane.xlu1 %976 }
0x149b   :  { %v978_v40 = vsel %vm970_vm12, %v977_v39, %v952_v21  ;;  %v1044_v21 = vld [vmem:[#allocation2 + $0x27] ss:$0 sm:$0xff] }
0x149c   :  { %v1001_v41 = vmul.f32 %v993_v38, %v978_v40  ;;  %v1045_v22 = vxor.u32 2147483648, %v1044_v21 }
0x149e   :  { %1002 = vadd.xlane.f32.xlu0 %v1001_v41  ;;  %v985_v42 = vpop.xlane.xlu1 %984 }
0x149f   :  { %v986_v44 = vsel %vm970_vm12, %v985_v42, %v960_v24 }
0x14a0   :  { %v1009_v46 = vmul.f32 %v993_v38, %v986_v44 }
0x14a2   :  { %1010 = vadd.xlane.f32.xlu0 %v1009_v46 }
0x1511   :  { %v981_v47 = vpop.xlane.xlu0 %980 }
0x1512   :  { %v982_v48 = vsel %vm970_vm12, %v981_v47, %v956_v27 }
0x1513   :  { %v1005_v49 = vmul.f32 %v993_v38, %v982_v48 }
0x1515   :  { %1006 = vadd.xlane.f32.xlu1 %v1005_v49  ;;  %v973_v50 = vpop.xlane.xlu0 %972 }
0x1516   :  { %v974_v51 = vsel %vm970_vm12, %v973_v50, %v948_v30  ;;  %v171_v30 = vsel %vm170_vm2, %v61_v10, 0.0  ;;  %vm1314_vm2 = vcmp.eq.s32.totalorder %v3563_v2, 48 }
0x1517   :  { %v997_v52 = vmul.f32 %v993_v38, %v974_v51 }
0x1519   :  { %998 = vadd.xlane.f32.xlu1 %v997_v52  ;;  %v989_v54 = vpop.xlane.xlu0 %988 }
0x151a   :  { %v990_v55 = vsel %vm970_vm12, %v989_v54, %v964_v33  ;;  %v316_v54 = vsel %vm315_vm4, -1.0, %v3549_v53  ;;  %vm1254_vm12 = vcmp.eq.s32.totalorder %v3563_v2, 46  ;;  %vm1382_vm4 = vcmp.eq.s32.totalorder %v3563_v2, 50 }
0x151b   :  { %v1013_v57 = vmul.f32 %v993_v38, %v990_v55 }
0x151d   :  { %1014 = vadd.xlane.f32.xlu1 %v1013_v57 }
0x152b   :  { %v1003_v61 = vpop.xlane.xlu0 %1002 }
0x152c   :  { %v1004_v63 = vsel %vm996_vm13, %v1003_v61, %v978_v40 }
0x152d   :  { %v1027_v1 = vmul.f32 %v1019_v60, %v1004_v63 }
0x152f   :  { %1028 = vadd.xlane.f32.xlu1 %v1027_v1  ;;  %v1011_v6 = vpop.xlane.xlu0 %1010 }
0x1530   :  { %v1012_v8 = vsel %vm996_vm13, %v1011_v6, %v986_v44 }
0x1531   :  { %v1035_v9 = vmul.f32 %v1019_v60, %v1012_v8 }
0x1533   :  { %1036 = vadd.xlane.f32.xlu1 %v1035_v9 }
0x1537   :  { %167 = vadd.xlane.f32.xlu1 %v166_v11 }
0x15a2   :  { %v1007_v12 = vpop.xlane.xlu1 %1006 }
0x15a3   :  { %v1008_v13 = vsel %vm996_vm13, %v1007_v12, %v982_v48 }
0x15a4   :  { %v1031_v14 = vmul.f32 %v1019_v60, %v1008_v13 }
0x15a6   :  { %1032 = vadd.xlane.f32.xlu0 %v1031_v14  ;;  %v999_v15 = vpop.xlane.xlu1 %998 }
0x15a7   :  { %v1000_v16 = vsel %vm996_vm13, %v999_v15, %v974_v51 }
0x15a8   :  { %v1023_v17 = vmul.f32 %v1019_v60, %v1000_v16 }
0x15aa   :  { %1024 = vadd.xlane.f32.xlu0 %v1023_v17  ;;  %v1015_v18 = vpop.xlane.xlu1 %1014 }
0x15ab   :  { %v1016_v19 = vsel %vm996_vm13, %v1015_v18, %v990_v55 }
0x15ac   :  { %v1039_v20 = vmul.f32 %v1019_v60, %v1016_v19 }
0x15ae   :  { %1040 = vadd.xlane.f32.xlu0 %v1039_v20 }
0x15bc   :  { %v1029_v23 = vpop.xlane.xlu1 %1028 }
0x15bd   :  { %v1030_v24 = vsel %vm1022_vm15, %v1029_v23, %v1004_v63 }
0x15be   :  { %v1053_v25 = vmul.f32 %v1045_v22, %v1030_v24 }
0x15c0   :  { %1054 = vadd.xlane.f32.xlu1 %v1053_v25  ;;  %v1037_v26 = vpop.xlane.xlu1 %1036 }
0x15c1   :  { %v1038_v27 = vsel %vm1022_vm15, %v1037_v26, %v1012_v8 }
0x15c2   :  { %v1061_v28 = vmul.f32 %v1045_v22, %v1038_v27 }
0x15c4   :  { %1062 = vadd.xlane.f32.xlu1 %v1061_v28  ;;  %v3777_v29 = vpop.xlane.xlu1 %167 }
0x15c5   :  { %3534 = vrcp.f32 %v3777_v29 }
0x15cf   :  { %v3784_v31 = vpop.eup %3534 }
0x15d0   :  { %v173_v32 = vmul.f32 %v3784_v31, %v171_v30 }
0x15d2   :  { %174 = vst [vmem:[#allocation2 + $0x28] sm:$0xff] %v173_v32 }
0x15d9   :  { %v1070_v46 = vld [vmem:[#allocation2 + $0x28] ss:$0 sm:$0xff]  ;;  %v1100_v10 = vld [vmem:[#allocation2 + $0x29] ss:$0 sm:$0xff]  ;;  %v1130_v32 = vld [vmem:[#allocation2 + $0x2a] ss:$0 sm:$0xff] }
0x15da   :  { %v1071_v47 = vxor.u32 2147483648, %v1070_v46  ;;  %v1101_v11 = vxor.u32 2147483648, %v1100_v10 }
0x15dc   :  { %v1095_v57 = vmul.f32 %v1071_v47, %v316_v54 }
0x1633   :  { %v1033_v33 = vpop.xlane.xlu0 %1032 }
0x1634   :  { %v1034_v34 = vsel %vm1022_vm15, %v1033_v33, %v1008_v13  ;;  %v1131_v33 = vxor.u32 2147483648, %v1130_v32 }
0x1635   :  { %v1057_v36 = vmul.f32 %v1045_v22, %v1034_v34 }
0x1637   :  { %v1025_v38 = vpop.xlane.xlu0 %1024  ;;  %1058 = vadd.xlane.f32.xlu0 %v1057_v36 }
0x1638   :  { %v1026_v39 = vsel %vm1022_vm15, %v1025_v38, %v1000_v16 }
0x1639   :  { %v1049_v40 = vmul.f32 %v1045_v22, %v1026_v39 }
0x163b   :  { %1050 = vadd.xlane.f32.xlu0 %v1049_v40  ;;  %v1041_v41 = vpop.xlane.xlu0 %1040 }
0x163c   :  { %v1042_v42 = vsel %vm1022_vm15, %v1041_v41, %v1016_v19  ;;  %vm1284_vm15 = vcmp.eq.s32.totalorder %v3563_v2, 47 }
0x163d   :  { %v1065_v44 = vmul.f32 %v1045_v22, %v1042_v42 }
0x163f   :  { %1066 = vadd.xlane.f32.xlu0 %v1065_v44 }
0x164d   :  { %v1055_v48 = vpop.xlane.xlu1 %1054 }
0x164e   :  { %v1056_v49 = vsel %vm1048_vm3, %v1055_v48, %v1030_v24 }
0x164f   :  { %v1079_v50 = vmul.f32 %v1071_v47, %v1056_v49 }
0x1651   :  { %1080 = vadd.xlane.f32.xlu0 %v1079_v50  ;;  %v1063_v51 = vpop.xlane.xlu1 %1062 }
0x1652   :  { %v1064_v52 = vsel %vm1048_vm3, %v1063_v51, %v1038_v27 }
0x1653   :  { %v1087_v55 = vmul.f32 %v1071_v47, %v1064_v52 }
0x1655   :  { %1088 = vadd.xlane.f32.xlu0 %v1087_v55 }
0x1659   :  { %1096 = vadd.xlane.f32.xlu0 %v1095_v57 }
0x16c4   :  { %v1059_v59 = vpop.xlane.xlu0 %1058 }
0x16c5   :  { %v1060_v60 = vsel %vm1048_vm3, %v1059_v59, %v1034_v34  ;;  %v1160_v59 = vld [vmem:[#allocation2 + $0x2b] ss:$0 sm:$0xff] }
0x16c6   :  { %v1083_v61 = vmul.f32 %v1071_v47, %v1060_v60 }
0x16c8   :  { %v1051_v63 = vpop.xlane.xlu0 %1050  ;;  %1084 = vadd.xlane.f32.xlu1 %v1083_v61 }
0x16c9   :  { %v1052_v1 = vsel %vm1048_vm3, %v1051_v63, %v1026_v39 }
0x16ca   :  { %v1075_v4 = vmul.f32 %v1071_v47, %v1052_v1 }
0x16cc   :  { %v1067_v6 = vpop.xlane.xlu0 %1066  ;;  %1076 = vadd.xlane.f32.xlu1 %v1075_v4 }
0x16cd   :  { %v1068_v8 = vsel %vm1048_vm3, %v1067_v6, %v1042_v42  ;;  %vm1348_vm3 = vcmp.eq.s32.totalorder %v3563_v2, 49 }
0x16ce   :  { %v1091_v9 = vmul.f32 %v1071_v47, %v1068_v8 }
0x16d0   :  { %1092 = vadd.xlane.f32.xlu1 %v1091_v9 }
0x16de   :  { %v1081_v12 = vpop.xlane.xlu0 %1080 }
0x16df   :  { %v1082_v13 = vsel %vm1074_vm5, %v1081_v12, %v1056_v49 }
0x16e0   :  { %v1109_v14 = vmul.f32 %v1101_v11, %v1082_v13 }
0x16e2   :  { %1110 = vadd.xlane.f32.xlu0 %v1109_v14  ;;  %v1089_v15 = vpop.xlane.xlu0 %1088 }
0x16e3   :  { %v1090_v16 = vsel %vm1074_vm5, %v1089_v15, %v1064_v52 }
0x16e4   :  { %v1117_v17 = vmul.f32 %v1101_v11, %v1090_v16 }
0x16e6   :  { %1118 = vadd.xlane.f32.xlu0 %v1117_v17  ;;  %v1097_v18 = vpop.xlane.xlu0 %1096 }
0x16e7   :  { %v1098_v19 = vsel %vm1074_vm5, %v1097_v18, %v316_v54 }
0x16e8   :  { %v1125_v20 = vmul.f32 %v1101_v11, %v1098_v19 }
0x16ea   :  { %1126 = vadd.xlane.f32.xlu0 %v1125_v20 }
0x1755   :  { %v1085_v21 = vpop.xlane.xlu1 %1084 }
0x1756   :  { %v1086_v22 = vsel %vm1074_vm5, %v1085_v21, %v1060_v60  ;;  %v1161_v60 = vxor.u32 2147483648, %v1160_v59  ;;  %v1190_v21 = vld [vmem:[#allocation2 + $0x2c] ss:$0 sm:$0xff] }
0x1757   :  { %v1113_v23 = vmul.f32 %v1101_v11, %v1086_v22 }
0x1759   :  { %1114 = vadd.xlane.f32.xlu1 %v1113_v23  ;;  %v1077_v24 = vpop.xlane.xlu1 %1076 }
0x175a   :  { %v1078_v25 = vsel %vm1074_vm5, %v1077_v24, %v1052_v1 }
0x175b   :  { %v1105_v26 = vmul.f32 %v1101_v11, %v1078_v25 }
0x175d   :  { %1106 = vadd.xlane.f32.xlu1 %v1105_v26  ;;  %v1093_v27 = vpop.xlane.xlu1 %1092 }
0x175e   :  { %v1094_v28 = vsel %vm1074_vm5, %v1093_v27, %v1068_v8  ;;  %vm1416_vm5 = vcmp.eq.s32.totalorder %v3563_v2, 51 }
0x175f   :  { %v1121_v30 = vmul.f32 %v1101_v11, %v1094_v28 }
0x1761   :  { %1122 = vadd.xlane.f32.xlu1 %v1121_v30 }
0x176f   :  { %v1111_v34 = vpop.xlane.xlu0 %1110 }
0x1770   :  { %v1112_v36 = vsel %vm1104_vm6, %v1111_v34, %v1082_v13 }
0x1771   :  { %v1139_v38 = vmul.f32 %v1131_v33, %v1112_v36 }
0x1773   :  { %1140 = vadd.xlane.f32.xlu0 %v1139_v38  ;;  %v1119_v39 = vpop.xlane.xlu0 %1118 }
0x1774   :  { %v1120_v40 = vsel %vm1104_vm6, %v1119_v39, %v1090_v16 }
0x1775   :  { %v1147_v41 = vmul.f32 %v1131_v33, %v1120_v40 }
0x1777   :  { %1148 = vadd.xlane.f32.xlu0 %v1147_v41  ;;  %v1127_v42 = vpop.xlane.xlu0 %1126 }
0x1778   :  { %v1128_v44 = vsel %vm1104_vm6, %v1127_v42, %v1098_v19 }
0x1779   :  { %v1155_v46 = vmul.f32 %v1131_v33, %v1128_v44 }
0x177b   :  { %1156 = vadd.xlane.f32.xlu0 %v1155_v46 }
0x17e6   :  { %v1115_v47 = vpop.xlane.xlu1 %1114 }
0x17e7   :  { %v1116_v48 = vsel %vm1104_vm6, %v1115_v47, %v1086_v22  ;;  %v1191_v22 = vxor.u32 2147483648, %v1190_v21  ;;  %v1220_v47 = vld [vmem:[#allocation2 + $0x2d] ss:$0 sm:$0xff] }
0x17e8   :  { %v1143_v49 = vmul.f32 %v1131_v33, %v1116_v48 }
0x17ea   :  { %1144 = vadd.xlane.f32.xlu1 %v1143_v49  ;;  %v1107_v50 = vpop.xlane.xlu1 %1106 }
0x17eb   :  { %v1108_v51 = vsel %vm1104_vm6, %v1107_v50, %v1078_v25 }
0x17ec   :  { %v1135_v52 = vmul.f32 %v1131_v33, %v1108_v51 }
0x17ee   :  { %1136 = vadd.xlane.f32.xlu1 %v1135_v52  ;;  %v1123_v54 = vpop.xlane.xlu1 %1122 }
0x17ef   :  { %v1124_v55 = vsel %vm1104_vm6, %v1123_v54, %v1094_v28  ;;  %vm1450_vm6 = vcmp.eq.s32.totalorder %v3563_v2, 52 }
0x17f0   :  { %v1151_v57 = vmul.f32 %v1131_v33, %v1124_v55 }
0x17f2   :  { %1152 = vadd.xlane.f32.xlu1 %v1151_v57 }
0x1800   :  { %v1141_v61 = vpop.xlane.xlu0 %1140 }
0x1801   :  { %v1142_v63 = vsel %vm1134_vm7, %v1141_v61, %v1112_v36 }
0x1802   :  { %v1169_v1 = vmul.f32 %v1161_v60, %v1142_v63 }
0x1804   :  { %1170 = vadd.xlane.f32.xlu0 %v1169_v1  ;;  %v1149_v4 = vpop.xlane.xlu0 %1148 }
0x1805   :  { %v1150_v6 = vsel %vm1134_vm7, %v1149_v4, %v1120_v40 }
0x1806   :  { %v1177_v8 = vmul.f32 %v1161_v60, %v1150_v6 }
0x1808   :  { %1178 = vadd.xlane.f32.xlu0 %v1177_v8  ;;  %v1157_v9 = vpop.xlane.xlu0 %1156 }
0x1809   :  { %v1158_v10 = vsel %vm1134_vm7, %v1157_v9, %v1128_v44 }
0x180a   :  { %v1185_v11 = vmul.f32 %v1161_v60, %v1158_v10 }
0x180c   :  { %1186 = vadd.xlane.f32.xlu0 %v1185_v11 }
0x1877   :  { %v1145_v12 = vpop.xlane.xlu1 %1144 }
0x1878   :  { %v1146_v13 = vsel %vm1134_vm7, %v1145_v12, %v1116_v48  ;;  %v1221_v48 = vxor.u32 2147483648, %v1220_v47  ;;  %v1250_v12 = vld [vmem:[#allocation2 + $0x2e] ss:$0 sm:$0xff] }
0x1879   :  { %v1173_v14 = vmul.f32 %v1161_v60, %v1146_v13 }
0x187b   :  { %1174 = vadd.xlane.f32.xlu1 %v1173_v14  ;;  %v1137_v15 = vpop.xlane.xlu1 %1136 }
0x187c   :  { %v1138_v16 = vsel %vm1134_vm7, %v1137_v15, %v1108_v51 }
0x187d   :  { %v1165_v17 = vmul.f32 %v1161_v60, %v1138_v16 }
0x187f   :  { %1166 = vadd.xlane.f32.xlu1 %v1165_v17  ;;  %v1153_v18 = vpop.xlane.xlu1 %1152 }
0x1880   :  { %v1154_v19 = vsel %vm1134_vm7, %v1153_v18, %v1124_v55  ;;  %vm1484_vm7 = vcmp.eq.s32.totalorder %v3563_v2, 53 }
0x1881   :  { %v1181_v20 = vmul.f32 %v1161_v60, %v1154_v19 }
0x1883   :  { %1182 = vadd.xlane.f32.xlu1 %v1181_v20 }
0x1891   :  { %v1171_v23 = vpop.xlane.xlu0 %1170 }
0x1892   :  { %v1172_v24 = vsel %vm1164_vm8, %v1171_v23, %v1142_v63 }
0x1893   :  { %v1199_v25 = vmul.f32 %v1191_v22, %v1172_v24 }
0x1895   :  { %1200 = vadd.xlane.f32.xlu0 %v1199_v25  ;;  %v1179_v26 = vpop.xlane.xlu0 %1178 }
0x1896   :  { %v1180_v27 = vsel %vm1164_vm8, %v1179_v26, %v1150_v6 }
0x1897   :  { %v1207_v28 = vmul.f32 %v1191_v22, %v1180_v27 }
0x1899   :  { %1208 = vadd.xlane.f32.xlu0 %v1207_v28  ;;  %v1187_v30 = vpop.xlane.xlu0 %1186 }
0x189a   :  { %v1188_v32 = vsel %vm1164_vm8, %v1187_v30, %v1158_v10  ;;  %v3884_v30 = vadd.s32 48, %v3565_v3 }
0x189b   :  { %v1215_v33 = vmul.f32 %v1191_v22, %v1188_v32 }
0x189c   :  { %vm180_vm11 = vcmp.eq.s32.totalorder %v3884_v30, %v3563_v2  ;;  %vm185_vm13 = vcmp.ge.s32.totalorder %v3884_v30, %v3563_v2  ;;  %vm322_vm0 = vcmp.eq.s32.totalorder %v3563_v2, %v3884_v30 }
0x189d   :  { %1216 = vadd.xlane.f32.xlu0 %v1215_v33  ;;  %vm186_vm14 = vmand %vm185_vm13, %vm80_vm1 }
0x1908   :  { %v1175_v34 = vpop.xlane.xlu1 %1174 }
0x1909   :  { %v1176_v36 = vsel %vm1164_vm8, %v1175_v34, %v1146_v13  ;;  %v1251_v13 = vxor.u32 2147483648, %v1250_v12 }
0x190a   :  { %v1203_v38 = vmul.f32 %v1191_v22, %v1176_v36 }
0x190c   :  { %1204 = vadd.xlane.f32.xlu1 %v1203_v38  ;;  %v1167_v39 = vpop.xlane.xlu1 %1166 }
0x190d   :  { %v1168_v40 = vsel %vm1164_vm8, %v1167_v39, %v1138_v16  ;;  %v1280_v39 = vld [vmem:[#allocation2 + $0x2f] ss:$0 sm:$0xff] }
0x190e   :  { %v1195_v41 = vmul.f32 %v1191_v22, %v1168_v40 }
0x1910   :  { %1196 = vadd.xlane.f32.xlu1 %v1195_v41  ;;  %v1183_v42 = vpop.xlane.xlu1 %1182 }
0x1911   :  { %v1184_v44 = vsel %vm1164_vm8, %v1183_v42, %v1154_v19 }
0x1912   :  { %v1211_v46 = vmul.f32 %v1191_v22, %v1184_v44 }
0x1914   :  { %1212 = vadd.xlane.f32.xlu1 %v1211_v46 }
0x1922   :  { %v1201_v49 = vpop.xlane.xlu0 %1200 }
0x1923   :  { %v1202_v50 = vsel %vm1194_vm9, %v1201_v49, %v1172_v24 }
0x1924   :  { %v1229_v51 = vmul.f32 %v1221_v48, %v1202_v50 }
0x1926   :  { %1230 = vadd.xlane.f32.xlu0 %v1229_v51  ;;  %v1209_v52 = vpop.xlane.xlu0 %1208 }
0x1927   :  { %v1210_v54 = vsel %vm1194_vm9, %v1209_v52, %v1180_v27 }
0x1928   :  { %v1237_v55 = vmul.f32 %v1221_v48, %v1210_v54 }
0x192a   :  { %1238 = vadd.xlane.f32.xlu0 %v1237_v55  ;;  %v1217_v57 = vpop.xlane.xlu0 %1216 }
0x192b   :  { %v1218_v59 = vsel %vm1194_vm9, %v1217_v57, %v1188_v32 }
0x192c   :  { %v1245_v60 = vmul.f32 %v1221_v48, %v1218_v59 }
0x192e   :  { %1246 = vadd.xlane.f32.xlu0 %v1245_v60 }
0x1999   :  { %v1205_v61 = vpop.xlane.xlu1 %1204 }
0x199a   :  { %v1206_v63 = vsel %vm1194_vm9, %v1205_v61, %v1176_v36  ;;  %v63_v36 = vld [vmem:[%s5052_s0 + $0x30] sm:$0xff] }
0x199b   :  { %v1233_v1 = vmul.f32 %v1221_v48, %v1206_v63  ;;  %v182_v38 = vsel %vm180_vm11, %v63_v36, 0.0 }
0x199d   :  { %1234 = vadd.xlane.f32.xlu1 %v1233_v1  ;;  %v1197_v4 = vpop.xlane.xlu1 %1196 }
0x199e   :  { %v1198_v6 = vsel %vm1194_vm9, %v1197_v4, %v1168_v40  ;;  %v1281_v40 = vxor.u32 2147483648, %v1280_v39 }
0x199f   :  { %v1225_v8 = vmul.f32 %v1221_v48, %v1198_v6 }
0x19a1   :  { %1226 = vadd.xlane.f32.xlu1 %v1225_v8  ;;  %v1213_v9 = vpop.xlane.xlu1 %1212 }
0x19a2   :  { %v1214_v10 = vsel %vm1194_vm9, %v1213_v9, %v1184_v44  ;;  %vm1518_vm9 = vcmp.eq.s32.totalorder %v3563_v2, 54 }
0x19a3   :  { %v1241_v11 = vmul.f32 %v1221_v48, %v1214_v10 }
0x19a5   :  { %1242 = vadd.xlane.f32.xlu1 %v1241_v11 }
0x19b3   :  { %v1231_v14 = vpop.xlane.xlu0 %1230 }
0x19b4   :  { %v1232_v15 = vsel %vm1224_vm10, %v1231_v14, %v1202_v50 }
0x19b5   :  { %v1259_v16 = vmul.f32 %v1251_v13, %v1232_v15 }
0x19b7   :  { %1260 = vadd.xlane.f32.xlu0 %v1259_v16  ;;  %v1239_v17 = vpop.xlane.xlu0 %1238 }
0x19b8   :  { %v1240_v18 = vsel %vm1224_vm10, %v1239_v17, %v1210_v54 }
0x19b9   :  { %v1267_v19 = vmul.f32 %v1251_v13, %v1240_v18 }
0x19bb   :  { %1268 = vadd.xlane.f32.xlu0 %v1267_v19  ;;  %v1247_v20 = vpop.xlane.xlu0 %1246 }
0x19bc   :  { %v1248_v21 = vsel %vm1224_vm10, %v1247_v20, %v1218_v59 }
0x19bd   :  { %v1275_v22 = vmul.f32 %v1251_v13, %v1248_v21 }
0x19bf   :  { %1276 = vadd.xlane.f32.xlu0 %v1275_v22 }
0x1a2a   :  { %v1235_v23 = vpop.xlane.xlu1 %1234 }
0x1a2b   :  { %v1236_v24 = vsel %vm1224_vm10, %v1235_v23, %v1206_v63 }
0x1a2c   :  { %v1263_v25 = vmul.f32 %v1251_v13, %v1236_v24 }
0x1a2e   :  { %1264 = vadd.xlane.f32.xlu1 %v1263_v25  ;;  %v1227_v26 = vpop.xlane.xlu1 %1226 }
0x1a2f   :  { %v1228_v27 = vsel %vm1224_vm10, %v1227_v26, %v1198_v6  ;;  %v187_v6 = vsel %vm186_vm14, %v63_v36, 0.0  ;;  %vm1586_vm14 = vcmp.eq.s32.totalorder %v3563_v2, 56 }
0x1a30   :  { %v1255_v28 = vmul.f32 %v1251_v13, %v1228_v27 }
0x1a32   :  { %1256 = vadd.xlane.f32.xlu1 %v1255_v28  ;;  %v1243_v32 = vpop.xlane.xlu1 %1242 }
0x1a33   :  { %v1244_v33 = vsel %vm1224_vm10, %v1243_v32, %v1214_v10 }
0x1a34   :  { %v1271_v34 = vmul.f32 %v1251_v13, %v1244_v33 }
0x1a36   :  { %1272 = vadd.xlane.f32.xlu1 %v1271_v34 }
0x1a3a   :  { %183 = vadd.xlane.f32.xlu1 %v182_v38 }
0x1a44   :  { %v1261_v41 = vpop.xlane.xlu0 %1260 }
0x1a45   :  { %v1262_v42 = vsel %vm1254_vm12, %v1261_v41, %v1232_v15 }
0x1a46   :  { %v1289_v44 = vmul.f32 %v1281_v40, %v1262_v42 }
0x1a48   :  { %v1269_v46 = vpop.xlane.xlu0 %1268  ;;  %1290 = vadd.xlane.f32.xlu1 %v1289_v44 }
0x1a49   :  { %v1270_v47 = vsel %vm1254_vm12, %v1269_v46, %v1240_v18 }
0x1a4a   :  { %v1297_v48 = vmul.f32 %v1281_v40, %v1270_v47 }
0x1a4c   :  { %v1277_v49 = vpop.xlane.xlu0 %1276  ;;  %1298 = vadd.xlane.f32.xlu1 %v1297_v48 }
0x1a4d   :  { %v1278_v50 = vsel %vm1254_vm12, %v1277_v49, %v1248_v21 }
0x1a4e   :  { %v1305_v51 = vmul.f32 %v1281_v40, %v1278_v50 }
0x1a50   :  { %1306 = vadd.xlane.f32.xlu1 %v1305_v51 }
0x1abb   :  { %v1265_v52 = vpop.xlane.xlu1 %1264 }
0x1abc   :  { %v1266_v54 = vsel %vm1254_vm12, %v1265_v52, %v1236_v24 }
0x1abd   :  { %v1293_v55 = vmul.f32 %v1281_v40, %v1266_v54 }
0x1abf   :  { %1294 = vadd.xlane.f32.xlu0 %v1293_v55  ;;  %v1257_v57 = vpop.xlane.xlu1 %1256 }
0x1ac0   :  { %v1258_v59 = vsel %vm1254_vm12, %v1257_v57, %v1228_v27 }
0x1ac1   :  { %v1285_v60 = vmul.f32 %v1281_v40, %v1258_v59 }
0x1ac3   :  { %1286 = vadd.xlane.f32.xlu0 %v1285_v60  ;;  %v1273_v61 = vpop.xlane.xlu1 %1272 }
0x1ac4   :  { %v1274_v63 = vsel %vm1254_vm12, %v1273_v61, %v1244_v33  ;;  %v323_v33 = vsel %vm322_vm0, -1.0, %v3549_v53  ;;  %vm1552_vm12 = vcmp.eq.s32.totalorder %v3563_v2, 55  ;;  %vm1662_vm0 = vcmp.eq.s32.totalorder %v3563_v2, 58 }
0x1ac5   :  { %v1301_v1 = vmul.f32 %v1281_v40, %v1274_v63 }
0x1ac7   :  { %1302 = vadd.xlane.f32.xlu0 %v1301_v1  ;;  %v3906_v4 = vpop.xlane.xlu1 %183 }
0x1ac8   :  { %3536 = vrcp.f32 %v3906_v4 }
0x1ad2   :  { %v3913_v8 = vpop.eup %3536 }
0x1ad3   :  { %v189_v9 = vmul.f32 %v3913_v8, %v187_v6 }
0x1ad5   :  { %190 = vst [vmem:[#allocation2 + $0x30] sm:$0xff] %v189_v9  ;;  %v1291_v10 = vpop.xlane.xlu1 %1290 }
0x1ad6   :  { %v1292_v14 = vsel %vm1284_vm15, %v1291_v10, %v1262_v42 }
0x1ad9   :  { %v1299_v11 = vpop.xlane.xlu1 %1298 }
0x1ada   :  { %v1300_v17 = vsel %vm1284_vm15, %v1299_v11, %v1270_v47 }
0x1adc   :  { %v1310_v12 = vld [vmem:[#allocation2 + $0x30] ss:$0 sm:$0xff]  ;;  %v1344_v36 = vld [vmem:[#allocation2 + $0x31] ss:$0 sm:$0xff]  ;;  %v1378_v6 = vld [vmem:[#allocation2 + $0x32] ss:$0 sm:$0xff] }
0x1add   :  { %v1311_v13 = vxor.u32 2147483648, %v1310_v12  ;;  %v1307_v16 = vpop.xlane.xlu1 %1306  ;;  %v1345_v38 = vxor.u32 2147483648, %v1344_v36  ;;  %v1379_v9 = vxor.u32 2147483648, %v1378_v6 }
0x1ade   :  { %v1308_v19 = vsel %vm1284_vm15, %v1307_v16, %v1278_v50 }
0x1adf   :  { %v1319_v15 = vmul.f32 %v1311_v13, %v1292_v14  ;;  %v1327_v18 = vmul.f32 %v1311_v13, %v1300_v17  ;;  %v1335_v20 = vmul.f32 %v1311_v13, %v1308_v19  ;;  %v1339_v34 = vmul.f32 %v1311_v13, %v323_v33 }
0x1ae1   :  { %1320 = vadd.xlane.f32.xlu1 %v1319_v15 }
0x1ae5   :  { %1328 = vadd.xlane.f32.xlu1 %v1327_v18 }
0x1ae9   :  { %1336 = vadd.xlane.f32.xlu1 %v1335_v20 }
0x1b4c   :  { %v1295_v21 = vpop.xlane.xlu0 %1294 }
0x1b4d   :  { %v1296_v22 = vsel %vm1284_vm15, %v1295_v21, %v1266_v54 }
0x1b4e   :  { %v1323_v23 = vmul.f32 %v1311_v13, %v1296_v22 }
0x1b50   :  { %v1287_v24 = vpop.xlane.xlu0 %1286  ;;  %1324 = vadd.xlane.f32.xlu0 %v1323_v23 }
0x1b51   :  { %v1288_v28 = vsel %vm1284_vm15, %v1287_v24, %v1258_v59 }
0x1b52   :  { %v1315_v32 = vmul.f32 %v1311_v13, %v1288_v28 }
0x1b54   :  { %v1303_v25 = vpop.xlane.xlu0 %1302 }
0x1b55   :  { %v1304_v26 = vsel %vm1284_vm15, %v1303_v25, %v1274_v63  ;;  %vm1624_vm15 = vcmp.eq.s32.totalorder %v3563_v2, 57 }
0x1b56   :  { %v1331_v27 = vmul.f32 %v1311_v13, %v1304_v26 }
0x1b58   :  { %1332 = vadd.xlane.f32.xlu0 %v1331_v27 }
0x1b5c   :  { %1316 = vadd.xlane.f32.xlu0 %v1315_v32 }
0x1b60   :  { %1340 = vadd.xlane.f32.xlu0 %v1339_v34  ;;  %v1412_v34 = vld [vmem:[#allocation2 + $0x33] ss:$0 sm:$0xff] }
0x1b61   :  { %v1413_v36 = vxor.u32 2147483648, %v1412_v34 }
0x1b6e   :  { %v1321_v39 = vpop.xlane.xlu1 %1320 }
0x1b6f   :  { %v1322_v40 = vsel %vm1314_vm2, %v1321_v39, %v1292_v14 }
0x1b70   :  { %v1353_v41 = vmul.f32 %v1345_v38, %v1322_v40 }
0x1b72   :  { %1354 = vadd.xlane.f32.xlu0 %v1353_v41  ;;  %v1329_v42 = vpop.xlane.xlu1 %1328 }
0x1b73   :  { %v1330_v30 = vsel %vm1314_vm2, %v1329_v42, %v1300_v17 }
0x1b74   :  { %v1361_v44 = vmul.f32 %v1345_v38, %v1330_v30 }
0x1b76   :  { %1362 = vadd.xlane.f32.xlu0 %v1361_v44  ;;  %v1337_v46 = vpop.xlane.xlu1 %1336 }
0x1b77   :  { %v1338_v47 = vsel %vm1314_vm2, %v1337_v46, %v1308_v19 }
0x1b78   :  { %v1369_v48 = vmul.f32 %v1345_v38, %v1338_v47 }
0x1b7a   :  { %1370 = vadd.xlane.f32.xlu0 %v1369_v48 }
0x1bdd   :  { %v1325_v49 = vpop.xlane.xlu0 %1324 }
0x1bde   :  { %v1326_v50 = vsel %vm1314_vm2, %v1325_v49, %v1296_v22 }
0x1bdf   :  { %v1357_v51 = vmul.f32 %v1345_v38, %v1326_v50 }
0x1be1   :  { %1358 = vadd.xlane.f32.xlu1 %v1357_v51 }
0x1be5   :  { %v1333_v52 = vpop.xlane.xlu0 %1332 }
0x1be6   :  { %v1334_v54 = vsel %vm1314_vm2, %v1333_v52, %v1304_v26 }
0x1be7   :  { %v1365_v55 = vmul.f32 %v1345_v38, %v1334_v54 }
0x1be9   :  { %v1317_v57 = vpop.xlane.xlu0 %1316  ;;  %1366 = vadd.xlane.f32.xlu1 %v1365_v55 }
0x1bea   :  { %v1318_v59 = vsel %vm1314_vm2, %v1317_v57, %v1288_v28 }
0x1beb   :  { %v1349_v60 = vmul.f32 %v1345_v38, %v1318_v59 }
0x1bed   :  { %v1341_v61 = vpop.xlane.xlu0 %1340  ;;  %1350 = vadd.xlane.f32.xlu1 %v1349_v60 }
0x1bee   :  { %v1342_v63 = vsel %vm1314_vm2, %v1341_v61, %v323_v33  ;;  %vm1700_vm2 = vcmp.eq.s32.totalorder %v3563_v2, 59 }
0x1bef   :  { %v1373_v1 = vmul.f32 %v1345_v38, %v1342_v63 }
0x1bf1   :  { %1374 = vadd.xlane.f32.xlu1 %v1373_v1  ;;  %v1446_v1 = vld [vmem:[#allocation2 + $0x34] ss:$0 sm:$0xff] }
0x1bf2   :  { %v1447_v6 = vxor.u32 2147483648, %v1446_v1 }
0x1bff   :  { %v1355_v10 = vpop.xlane.xlu0 %1354 }
0x1c00   :  { %v1356_v11 = vsel %vm1348_vm3, %v1355_v10, %v1322_v40 }
0x1c01   :  { %v1387_v12 = vmul.f32 %v1379_v9, %v1356_v11 }
0x1c03   :  { %1388 = vadd.xlane.f32.xlu1 %v1387_v12  ;;  %v1363_v13 = vpop.xlane.xlu0 %1362 }
0x1c04   :  { %v1364_v14 = vsel %vm1348_vm3, %v1363_v13, %v1330_v30 }
0x1c05   :  { %v1395_v15 = vmul.f32 %v1379_v9, %v1364_v14 }
0x1c07   :  { %1396 = vadd.xlane.f32.xlu1 %v1395_v15  ;;  %v1371_v16 = vpop.xlane.xlu0 %1370 }
0x1c08   :  { %v1372_v17 = vsel %vm1348_vm3, %v1371_v16, %v1338_v47 }
0x1c09   :  { %v1403_v18 = vmul.f32 %v1379_v9, %v1372_v17 }
0x1c0b   :  { %1404 = vadd.xlane.f32.xlu1 %v1403_v18 }
0x1c6e   :  { %v1359_v19 = vpop.xlane.xlu1 %1358 }
0x1c6f   :  { %v1360_v20 = vsel %vm1348_vm3, %v1359_v19, %v1326_v50 }
0x1c70   :  { %v1391_v21 = vmul.f32 %v1379_v9, %v1360_v20 }
0x1c72   :  { %1392 = vadd.xlane.f32.xlu0 %v1391_v21 }
0x1c76   :  { %v1367_v22 = vpop.xlane.xlu1 %1366 }
0x1c77   :  { %v1368_v23 = vsel %vm1348_vm3, %v1367_v22, %v1334_v54 }
0x1c78   :  { %v1399_v24 = vmul.f32 %v1379_v9, %v1368_v23 }
0x1c7a   :  { %1400 = vadd.xlane.f32.xlu0 %v1399_v24  ;;  %v1351_v25 = vpop.xlane.xlu1 %1350 }
0x1c7b   :  { %v1352_v26 = vsel %vm1348_vm3, %v1351_v25, %v1318_v59 }
0x1c7c   :  { %v1383_v27 = vmul.f32 %v1379_v9, %v1352_v26 }
0x1c7e   :  { %1384 = vadd.xlane.f32.xlu0 %v1383_v27  ;;  %v1375_v28 = vpop.xlane.xlu1 %1374 }
0x1c7f   :  { %v1376_v32 = vsel %vm1348_vm3, %v1375_v28, %v1342_v63  ;;  %vm1738_vm3 = vcmp.eq.s32.totalorder %v3563_v2, 60 }
0x1c80   :  { %v1407_v33 = vmul.f32 %v1379_v9, %v1376_v32 }
0x1c82   :  { %1408 = vadd.xlane.f32.xlu0 %v1407_v33  ;;  %v1480_v33 = vld [vmem:[#allocation2 + $0x35] ss:$0 sm:$0xff] }
0x1c83   :  { %v1481_v34 = vxor.u32 2147483648, %v1480_v33 }
0x1c90   :  { %v1389_v38 = vpop.xlane.xlu1 %1388 }
0x1c91   :  { %v1390_v39 = vsel %vm1382_vm4, %v1389_v38, %v1356_v11 }
0x1c92   :  { %v1421_v40 = vmul.f32 %v1413_v36, %v1390_v39 }
0x1c94   :  { %1422 = vadd.xlane.f32.xlu0 %v1421_v40  ;;  %v1397_v41 = vpop.xlane.xlu1 %1396 }
0x1c95   :  { %v1398_v42 = vsel %vm1382_vm4, %v1397_v41, %v1364_v14 }
0x1c96   :  { %v1429_v30 = vmul.f32 %v1413_v36, %v1398_v42 }
0x1c98   :  { %1430 = vadd.xlane.f32.xlu0 %v1429_v30  ;;  %v1405_v44 = vpop.xlane.xlu1 %1404 }
0x1c99   :  { %v1406_v46 = vsel %vm1382_vm4, %v1405_v44, %v1372_v17 }
0x1c9a   :  { %v1437_v47 = vmul.f32 %v1413_v36, %v1406_v46 }
0x1c9c   :  { %1438 = vadd.xlane.f32.xlu0 %v1437_v47 }
0x1cff   :  { %v1393_v48 = vpop.xlane.xlu0 %1392 }
0x1d00   :  { %v1394_v49 = vsel %vm1382_vm4, %v1393_v48, %v1360_v20 }
0x1d01   :  { %v1425_v50 = vmul.f32 %v1413_v36, %v1394_v49 }
0x1d03   :  { %1426 = vadd.xlane.f32.xlu1 %v1425_v50 }
0x1d07   :  { %v1401_v51 = vpop.xlane.xlu0 %1400 }
0x1d08   :  { %v1402_v52 = vsel %vm1382_vm4, %v1401_v51, %v1368_v23 }
0x1d09   :  { %v1433_v54 = vmul.f32 %v1413_v36, %v1402_v52 }
0x1d0b   :  { %1434 = vadd.xlane.f32.xlu1 %v1433_v54  ;;  %v1385_v55 = vpop.xlane.xlu0 %1384 }
0x1d0c   :  { %v1386_v57 = vsel %vm1382_vm4, %v1385_v55, %v1352_v26 }
0x1d0d   :  { %v1417_v59 = vmul.f32 %v1413_v36, %v1386_v57 }
0x1d0f   :  { %1418 = vadd.xlane.f32.xlu1 %v1417_v59  ;;  %v1409_v60 = vpop.xlane.xlu0 %1408 }
0x1d10   :  { %v1410_v61 = vsel %vm1382_vm4, %v1409_v60, %v1376_v32  ;;  %vm1776_vm4 = vcmp.eq.s32.totalorder %v3563_v2, 61 }
0x1d11   :  { %v1441_v63 = vmul.f32 %v1413_v36, %v1410_v61 }
0x1d13   :  { %1442 = vadd.xlane.f32.xlu1 %v1441_v63  ;;  %v1514_v63 = vld [vmem:[#allocation2 + $0x36] ss:$0 sm:$0xff] }
0x1d14   :  { %v1515_v1 = vxor.u32 2147483648, %v1514_v63 }
0x1d21   :  { %v1423_v9 = vpop.xlane.xlu0 %1422 }
0x1d22   :  { %v1424_v10 = vsel %vm1416_vm5, %v1423_v9, %v1390_v39 }
0x1d23   :  { %v1455_v11 = vmul.f32 %v1447_v6, %v1424_v10 }
0x1d25   :  { %1456 = vadd.xlane.f32.xlu1 %v1455_v11  ;;  %v1431_v12 = vpop.xlane.xlu0 %1430 }
0x1d26   :  { %v1432_v13 = vsel %vm1416_vm5, %v1431_v12, %v1398_v42 }
0x1d27   :  { %v1463_v14 = vmul.f32 %v1447_v6, %v1432_v13 }
0x1d29   :  { %1464 = vadd.xlane.f32.xlu1 %v1463_v14  ;;  %v1439_v15 = vpop.xlane.xlu0 %1438  ;;  %v4013_v14 = vadd.s32 56, %v3565_v3 }
0x1d2a   :  { %v1440_v16 = vsel %vm1416_vm5, %v1439_v15, %v1406_v46 }
0x1d2b   :  { %v1471_v17 = vmul.f32 %v1447_v6, %v1440_v16  ;;  %vm196_vm8 = vcmp.eq.s32.totalorder %v4013_v14, %v3563_v2  ;;  %vm201_vm10 = vcmp.ge.s32.totalorder %v4013_v14, %v3563_v2  ;;  %vm329_vm13 = vcmp.eq.s32.totalorder %v3563_v2, %v4013_v14 }
0x1d2c   :  { %vm202_vm11 = vmand %vm201_vm10, %vm80_vm1 }
0x1d2d   :  { %1472 = vadd.xlane.f32.xlu1 %v1471_v17 }
0x1d90   :  { %v1427_v18 = vpop.xlane.xlu1 %1426 }
0x1d91   :  { %v1428_v19 = vsel %vm1416_vm5, %v1427_v18, %v1394_v49  ;;  %v65_v18 = vld [vmem:[%s5052_s0 + $0x38] sm:$0xff] }
0x1d92   :  { %v1459_v20 = vmul.f32 %v1447_v6, %v1428_v19 }
0x1d94   :  { %1460 = vadd.xlane.f32.xlu0 %v1459_v20 }
0x1d98   :  { %v1435_v21 = vpop.xlane.xlu1 %1434 }
0x1d99   :  { %v1436_v22 = vsel %vm1416_vm5, %v1435_v21, %v1402_v52 }
0x1d9a   :  { %v1467_v23 = vmul.f32 %v1447_v6, %v1436_v22 }
0x1d9c   :  { %1468 = vadd.xlane.f32.xlu0 %v1467_v23  ;;  %v1419_v24 = vpop.xlane.xlu1 %1418 }
0x1d9d   :  { %v1420_v25 = vsel %vm1416_vm5, %v1419_v24, %v1386_v57 }
0x1d9e   :  { %v1451_v26 = vmul.f32 %v1447_v6, %v1420_v25 }
0x1da0   :  { %1452 = vadd.xlane.f32.xlu0 %v1451_v26  ;;  %v1443_v27 = vpop.xlane.xlu1 %1442 }
0x1da1   :  { %v1444_v28 = vsel %vm1416_vm5, %v1443_v27, %v1410_v61 }
0x1da2   :  { %v1475_v32 = vmul.f32 %v1447_v6, %v1444_v28 }
0x1da4   :  { %1476 = vadd.xlane.f32.xlu0 %v1475_v32 }
0x1db2   :  { %v1457_v36 = vpop.xlane.xlu1 %1456 }
0x1db3   :  { %v1458_v38 = vsel %vm1450_vm6, %v1457_v36, %v1424_v10  ;;  %v1548_v36 = vld [vmem:[#allocation2 + $0x37] ss:$0 sm:$0xff] }
0x1db4   :  { %v1489_v39 = vmul.f32 %v1481_v34, %v1458_v38 }
0x1db6   :  { %1490 = vadd.xlane.f32.xlu0 %v1489_v39  ;;  %v1465_v40 = vpop.xlane.xlu1 %1464 }
0x1db7   :  { %v1466_v41 = vsel %vm1450_vm6, %v1465_v40, %v1432_v13 }
0x1db8   :  { %v1497_v42 = vmul.f32 %v1481_v34, %v1466_v41 }
0x1dba   :  { %1498 = vadd.xlane.f32.xlu0 %v1497_v42  ;;  %v1473_v30 = vpop.xlane.xlu1 %1472 }
0x1dbb   :  { %v1474_v44 = vsel %vm1450_vm6, %v1473_v30, %v1440_v16 }
0x1dbc   :  { %v1505_v46 = vmul.f32 %v1481_v34, %v1474_v44 }
0x1dbe   :  { %1506 = vadd.xlane.f32.xlu0 %v1505_v46 }
0x1e21   :  { %v1461_v47 = vpop.xlane.xlu0 %1460 }
0x1e22   :  { %v1462_v48 = vsel %vm1450_vm6, %v1461_v47, %v1428_v19  ;;  %v198_v19 = vsel %vm196_vm8, %v65_v18, 0.0 }
0x1e23   :  { %v1493_v49 = vmul.f32 %v1481_v34, %v1462_v48 }
0x1e25   :  { %1494 = vadd.xlane.f32.xlu1 %v1493_v49 }
0x1e29   :  { %v1469_v50 = vpop.xlane.xlu0 %1468 }
0x1e2a   :  { %v1470_v51 = vsel %vm1450_vm6, %v1469_v50, %v1436_v22  ;;  %v203_v50 = vsel %vm202_vm11, %v65_v18, 0.0  ;;  %vm1890_vm11 = vcmp.eq.s32.totalorder %v3563_v2, 64 }
0x1e2b   :  { %v1501_v52 = vmul.f32 %v1481_v34, %v1470_v51 }
0x1e2d   :  { %1502 = vadd.xlane.f32.xlu1 %v1501_v52  ;;  %v1453_v54 = vpop.xlane.xlu0 %1452 }
0x1e2e   :  { %v1454_v55 = vsel %vm1450_vm6, %v1453_v54, %v1420_v25 }
0x1e2f   :  { %v1485_v57 = vmul.f32 %v1481_v34, %v1454_v55 }
0x1e31   :  { %1486 = vadd.xlane.f32.xlu1 %v1485_v57  ;;  %v1477_v59 = vpop.xlane.xlu0 %1476 }
0x1e32   :  { %v1478_v60 = vsel %vm1450_vm6, %v1477_v59, %v1444_v28  ;;  %vm1814_vm6 = vcmp.eq.s32.totalorder %v3563_v2, 62 }
0x1e33   :  { %v1509_v61 = vmul.f32 %v1481_v34, %v1478_v60 }
0x1e35   :  { %1510 = vadd.xlane.f32.xlu1 %v1509_v61 }
0x1e43   :  { %v1491_v6 = vpop.xlane.xlu0 %1490 }
0x1e44   :  { %v1492_v9 = vsel %vm1484_vm7, %v1491_v6, %v1458_v38  ;;  %v1549_v38 = vxor.u32 2147483648, %v1548_v36 }
0x1e45   :  { %v1523_v10 = vmul.f32 %v1515_v1, %v1492_v9 }
0x1e47   :  { %1524 = vadd.xlane.f32.xlu1 %v1523_v10  ;;  %v1499_v11 = vpop.xlane.xlu0 %1498 }
0x1e48   :  { %v1500_v12 = vsel %vm1484_vm7, %v1499_v11, %v1466_v41 }
0x1e49   :  { %v1531_v13 = vmul.f32 %v1515_v1, %v1500_v12 }
0x1e4b   :  { %1532 = vadd.xlane.f32.xlu1 %v1531_v13  ;;  %v1507_v15 = vpop.xlane.xlu0 %1506 }
0x1e4c   :  { %v1508_v16 = vsel %vm1484_vm7, %v1507_v15, %v1474_v44 }
0x1e4d   :  { %v1539_v17 = vmul.f32 %v1515_v1, %v1508_v16 }
0x1e4f   :  { %1540 = vadd.xlane.f32.xlu1 %v1539_v17 }
0x1e53   :  { %199 = vadd.xlane.f32.xlu1 %v198_v19 }
0x1eb2   :  { %v1495_v20 = vpop.xlane.xlu1 %1494 }
0x1eb3   :  { %v1496_v21 = vsel %vm1484_vm7, %v1495_v20, %v1462_v48 }
0x1eb4   :  { %v1527_v22 = vmul.f32 %v1515_v1, %v1496_v21 }
0x1eb6   :  { %1528 = vadd.xlane.f32.xlu0 %v1527_v22 }
0x1eba   :  { %v1503_v23 = vpop.xlane.xlu1 %1502 }
0x1ebb   :  { %v1504_v24 = vsel %vm1484_vm7, %v1503_v23, %v1470_v51  ;;  %v330_v23 = vsel %vm329_vm13, -1.0, %v3549_v53  ;;  %vm1974_vm13 = vcmp.eq.s32.totalorder %v3563_v2, 66 }
0x1ebc   :  { %v1535_v25 = vmul.f32 %v1515_v1, %v1504_v24 }
0x1ebe   :  { %1536 = vadd.xlane.f32.xlu0 %v1535_v25  ;;  %v1487_v26 = vpop.xlane.xlu1 %1486 }
0x1ebf   :  { %v1488_v27 = vsel %vm1484_vm7, %v1487_v26, %v1454_v55 }
0x1ec0   :  { %v1519_v28 = vmul.f32 %v1515_v1, %v1488_v27 }
0x1ec2   :  { %1520 = vadd.xlane.f32.xlu0 %v1519_v28  ;;  %v1511_v32 = vpop.xlane.xlu1 %1510 }
0x1ec3   :  { %v1512_v33 = vsel %vm1484_vm7, %v1511_v32, %v1478_v60 }
0x1ec4   :  { %v1543_v34 = vmul.f32 %v1515_v1, %v1512_v33 }
0x1ec6   :  { %1544 = vadd.xlane.f32.xlu0 %v1543_v34 }
0x1ed4   :  { %v1525_v39 = vpop.xlane.xlu1 %1524 }
0x1ed5   :  { %v1526_v40 = vsel %vm1518_vm9, %v1525_v39, %v1492_v9 }
0x1ed6   :  { %v1557_v41 = vmul.f32 %v1549_v38, %v1526_v40 }
0x1ed8   :  { %1558 = vadd.xlane.f32.xlu1 %v1557_v41  ;;  %v1533_v42 = vpop.xlane.xlu1 %1532 }
0x1ed9   :  { %v1534_v30 = vsel %vm1518_vm9, %v1533_v42, %v1500_v12 }
0x1eda   :  { %v1565_v44 = vmul.f32 %v1549_v38, %v1534_v30 }
0x1edc   :  { %1566 = vadd.xlane.f32.xlu1 %v1565_v44  ;;  %v1541_v46 = vpop.xlane.xlu1 %1540 }
0x1edd   :  { %v1542_v47 = vsel %vm1518_vm9, %v1541_v46, %v1508_v16 }
0x1ede   :  { %v1573_v48 = vmul.f32 %v1549_v38, %v1542_v47 }
0x1ee0   :  { %1574 = vadd.xlane.f32.xlu1 %v1573_v48  ;;  %v4037_v49 = vpop.xlane.xlu1 %199 }
0x1ee1   :  { %3538 = vrcp.f32 %v4037_v49 }
0x1eeb   :  { %v4044_v51 = vpop.eup %3538 }
0x1eec   :  { %v205_v52 = vmul.f32 %v4044_v51, %v203_v50 }
0x1eee   :  { %206 = vst [vmem:[#allocation2 + $0x38] sm:$0xff] %v205_v52 }
0x1ef5   :  { %v1582_v12 = vld [vmem:[#allocation2 + $0x38] ss:$0 sm:$0xff]  ;;  %v1620_v42 = vld [vmem:[#allocation2 + $0x39] ss:$0 sm:$0xff] }
0x1ef6   :  { %v1583_v13 = vxor.u32 2147483648, %v1582_v12 }
0x1ef8   :  { %v1615_v25 = vmul.f32 %v1583_v13, %v330_v23 }
0x1f43   :  { %v1529_v54 = vpop.xlane.xlu0 %1528 }
0x1f44   :  { %v1530_v55 = vsel %vm1518_vm9, %v1529_v54, %v1496_v21 }
0x1f45   :  { %v1561_v57 = vmul.f32 %v1549_v38, %v1530_v55 }
0x1f47   :  { %1562 = vadd.xlane.f32.xlu0 %v1561_v57 }
0x1f4b   :  { %v1537_v59 = vpop.xlane.xlu0 %1536 }
0x1f4c   :  { %v1538_v60 = vsel %vm1518_vm9, %v1537_v59, %v1504_v24 }
0x1f4d   :  { %v1569_v61 = vmul.f32 %v1549_v38, %v1538_v60 }
0x1f4f   :  { %v1521_v63 = vpop.xlane.xlu0 %1520  ;;  %1570 = vadd.xlane.f32.xlu0 %v1569_v61 }
0x1f50   :  { %v1522_v1 = vsel %vm1518_vm9, %v1521_v63, %v1488_v27 }
0x1f51   :  { %v1553_v6 = vmul.f32 %v1549_v38, %v1522_v1 }
0x1f53   :  { %1554 = vadd.xlane.f32.xlu0 %v1553_v6  ;;  %v1545_v9 = vpop.xlane.xlu0 %1544 }
0x1f54   :  { %v1546_v10 = vsel %vm1518_vm9, %v1545_v9, %v1512_v33  ;;  %vm1852_vm9 = vcmp.eq.s32.totalorder %v3563_v2, 63 }
0x1f55   :  { %v1577_v11 = vmul.f32 %v1549_v38, %v1546_v10 }
0x1f57   :  { %1578 = vadd.xlane.f32.xlu0 %v1577_v11 }
0x1f65   :  { %v1559_v15 = vpop.xlane.xlu1 %1558 }
0x1f66   :  { %v1560_v16 = vsel %vm1552_vm12, %v1559_v15, %v1526_v40 }
0x1f67   :  { %v1591_v17 = vmul.f32 %v1583_v13, %v1560_v16 }
0x1f69   :  { %1592 = vadd.xlane.f32.xlu0 %v1591_v17  ;;  %v1567_v18 = vpop.xlane.xlu1 %1566 }
0x1f6a   :  { %v1568_v19 = vsel %vm1552_vm12, %v1567_v18, %v1534_v30  ;;  %v1621_v30 = vxor.u32 2147483648, %v1620_v42 }
0x1f6b   :  { %v1599_v20 = vmul.f32 %v1583_v13, %v1568_v19 }
0x1f6d   :  { %1600 = vadd.xlane.f32.xlu0 %v1599_v20  ;;  %v1575_v21 = vpop.xlane.xlu1 %1574 }
0x1f6e   :  { %v1576_v22 = vsel %vm1552_vm12, %v1575_v21, %v1542_v47 }
0x1f6f   :  { %v1607_v24 = vmul.f32 %v1583_v13, %v1576_v22 }
0x1f71   :  { %1608 = vadd.xlane.f32.xlu0 %v1607_v24 }
0x1f75   :  { %1616 = vadd.xlane.f32.xlu0 %v1615_v25 }
0x1fd4   :  { %v1563_v26 = vpop.xlane.xlu0 %1562 }
0x1fd5   :  { %v1564_v27 = vsel %vm1552_vm12, %v1563_v26, %v1530_v55 }
0x1fd6   :  { %v1595_v28 = vmul.f32 %v1583_v13, %v1564_v27 }
0x1fd8   :  { %1596 = vadd.xlane.f32.xlu1 %v1595_v28 }
0x1fdc   :  { %v1571_v32 = vpop.xlane.xlu0 %1570 }
0x1fdd   :  { %v1572_v14 = vsel %vm1552_vm12, %v1571_v32, %v1538_v60 }
0x1fde   :  { %v1603_v33 = vmul.f32 %v1583_v13, %v1572_v14 }
0x1fe0   :  { %v1555_v34 = vpop.xlane.xlu0 %1554  ;;  %1604 = vadd.xlane.f32.xlu1 %v1603_v33 }
0x1fe1   :  { %v1556_v36 = vsel %vm1552_vm12, %v1555_v34, %v1522_v1 }
0x1fe2   :  { %v1587_v38 = vmul.f32 %v1583_v13, %v1556_v36 }
0x1fe4   :  { %v1579_v39 = vpop.xlane.xlu0 %1578  ;;  %1588 = vadd.xlane.f32.xlu1 %v1587_v38 }
0x1fe5   :  { %v1580_v40 = vsel %vm1552_vm12, %v1579_v39, %v1546_v10  ;;  %vm1932_vm12 = vcmp.eq.s32.totalorder %v3563_v2, 65 }
0x1fe6   :  { %v1611_v41 = vmul.f32 %v1583_v13, %v1580_v40 }
0x1fe8   :  { %1612 = vadd.xlane.f32.xlu1 %v1611_v41 }
0x1ff6   :  { %v1593_v44 = vpop.xlane.xlu0 %1592 }
0x1ff7   :  { %v1594_v46 = vsel %vm1586_vm14, %v1593_v44, %v1560_v16 }
0x1ff8   :  { %v1629_v47 = vmul.f32 %v1621_v30, %v1594_v46 }
0x1ffa   :  { %v1601_v48 = vpop.xlane.xlu0 %1600  ;;  %1630 = vadd.xlane.f32.xlu0 %v1629_v47 }
0x1ffb   :  { %v1602_v50 = vsel %vm1586_vm14, %v1601_v48, %v1568_v19  ;;  %v1658_v19 = vld [vmem:[#allocation2 + $0x3a] ss:$0 sm:$0xff] }
0x1ffc   :  { %v1637_v52 = vmul.f32 %v1621_v30, %v1602_v50  ;;  %v1659_v20 = vxor.u32 2147483648, %v1658_v19 }
0x1ffe   :  { %1638 = vadd.xlane.f32.xlu0 %v1637_v52  ;;  %v1609_v54 = vpop.xlane.xlu0 %1608  ;;  %v1696_v52 = vld [vmem:[#allocation2 + $0x3b] ss:$0 sm:$0xff] }
0x1fff   :  { %v1610_v55 = vsel %vm1586_vm14, %v1609_v54, %v1576_v22  ;;  %v1697_v54 = vxor.u32 2147483648, %v1696_v52 }
0x2000   :  { %v1645_v57 = vmul.f32 %v1621_v30, %v1610_v55 }
0x2002   :  { %1646 = vadd.xlane.f32.xlu0 %v1645_v57  ;;  %v1617_v59 = vpop.xlane.xlu0 %1616 }
0x2003   :  { %v1618_v60 = vsel %vm1586_vm14, %v1617_v59, %v330_v23 }
0x2004   :  { %v1653_v61 = vmul.f32 %v1621_v30, %v1618_v60 }
0x2006   :  { %1654 = vadd.xlane.f32.xlu0 %v1653_v61 }
0x2065   :  { %v1597_v63 = vpop.xlane.xlu1 %1596 }
0x2066   :  { %v1598_v1 = vsel %vm1586_vm14, %v1597_v63, %v1564_v27 }
0x2067   :  { %v1633_v6 = vmul.f32 %v1621_v30, %v1598_v1 }
0x2069   :  { %1634 = vadd.xlane.f32.xlu1 %v1633_v6 }
0x206d   :  { %v1605_v9 = vpop.xlane.xlu1 %1604 }
0x206e   :  { %v1606_v10 = vsel %vm1586_vm14, %v1605_v9, %v1572_v14 }
0x206f   :  { %v1641_v11 = vmul.f32 %v1621_v30, %v1606_v10 }
0x2071   :  { %1642 = vadd.xlane.f32.xlu1 %v1641_v11  ;;  %v1589_v12 = vpop.xlane.xlu1 %1588 }
0x2072   :  { %v1590_v13 = vsel %vm1586_vm14, %v1589_v12, %v1556_v36 }
0x2073   :  { %v1625_v15 = vmul.f32 %v1621_v30, %v1590_v13 }
0x2075   :  { %1626 = vadd.xlane.f32.xlu1 %v1625_v15  ;;  %v1613_v16 = vpop.xlane.xlu1 %1612 }
0x2076   :  { %v1614_v17 = vsel %vm1586_vm14, %v1613_v16, %v1580_v40  ;;  %vm2016_vm14 = vcmp.eq.s32.totalorder %v3563_v2, 67 }
0x2077   :  { %v1649_v18 = vmul.f32 %v1621_v30, %v1614_v17 }
0x2079   :  { %1650 = vadd.xlane.f32.xlu1 %v1649_v18 }
0x2087   :  { %v1631_v21 = vpop.xlane.xlu0 %1630 }
0x2088   :  { %v1632_v22 = vsel %vm1624_vm15, %v1631_v21, %v1594_v46 }
0x2089   :  { %v1667_v23 = vmul.f32 %v1659_v20, %v1632_v22 }
0x208b   :  { %1668 = vadd.xlane.f32.xlu0 %v1667_v23  ;;  %v1639_v24 = vpop.xlane.xlu0 %1638 }
0x208c   :  { %v1640_v25 = vsel %vm1624_vm15, %v1639_v24, %v1602_v50 }
0x208d   :  { %v1675_v26 = vmul.f32 %v1659_v20, %v1640_v25 }
0x208f   :  { %1676 = vadd.xlane.f32.xlu0 %v1675_v26  ;;  %v1647_v27 = vpop.xlane.xlu0 %1646  ;;  %v1734_v26 = vld [vmem:[#allocation2 + $0x3c] ss:$0 sm:$0xff] }
0x2090   :  { %v1648_v28 = vsel %vm1624_vm15, %v1647_v27, %v1610_v55  ;;  %v1735_v27 = vxor.u32 2147483648, %v1734_v26 }
0x2091   :  { %v1683_v32 = vmul.f32 %v1659_v20, %v1648_v28 }
0x2093   :  { %1684 = vadd.xlane.f32.xlu0 %v1683_v32  ;;  %v1655_v14 = vpop.xlane.xlu0 %1654 }
0x2094   :  { %v1656_v33 = vsel %vm1624_vm15, %v1655_v14, %v1618_v60 }
0x2095   :  { %v1691_v34 = vmul.f32 %v1659_v20, %v1656_v33 }
0x2097   :  { %1692 = vadd.xlane.f32.xlu0 %v1691_v34 }
0x20f6   :  { %v1635_v36 = vpop.xlane.xlu1 %1634 }
0x20f7   :  { %v1636_v38 = vsel %vm1624_vm15, %v1635_v36, %v1598_v1 }
0x20f8   :  { %v1671_v39 = vmul.f32 %v1659_v20, %v1636_v38 }
0x20fa   :  { %1672 = vadd.xlane.f32.xlu1 %v1671_v39 }
0x20fe   :  { %v1643_v40 = vpop.xlane.xlu1 %1642 }
0x20ff   :  { %v1644_v41 = vsel %vm1624_vm15, %v1643_v40, %v1606_v10 }
0x2100   :  { %v1679_v42 = vmul.f32 %v1659_v20, %v1644_v41 }
0x2102   :  { %1680 = vadd.xlane.f32.xlu1 %v1679_v42  ;;  %v1627_v30 = vpop.xlane.xlu1 %1626 }
0x2103   :  { %v1628_v44 = vsel %vm1624_vm15, %v1627_v30, %v1590_v13 }
0x2104   :  { %v1663_v46 = vmul.f32 %v1659_v20, %v1628_v44 }
0x2106   :  { %1664 = vadd.xlane.f32.xlu1 %v1663_v46  ;;  %v1651_v47 = vpop.xlane.xlu1 %1650 }
0x2107   :  { %v1652_v48 = vsel %vm1624_vm15, %v1651_v47, %v1614_v17  ;;  %vm2058_vm15 = vcmp.eq.s32.totalorder %v3563_v2, 68 }
0x2108   :  { %v1687_v50 = vmul.f32 %v1659_v20, %v1652_v48 }
0x210a   :  { %1688 = vadd.xlane.f32.xlu1 %v1687_v50 }
0x2118   :  { %v1669_v55 = vpop.xlane.xlu0 %1668 }
0x2119   :  { %v1670_v57 = vsel %vm1662_vm0, %v1669_v55, %v1632_v22 }
0x211a   :  { %v1705_v59 = vmul.f32 %v1697_v54, %v1670_v57 }
0x211c   :  { %1706 = vadd.xlane.f32.xlu0 %v1705_v59  ;;  %v1677_v60 = vpop.xlane.xlu0 %1676 }
0x211d   :  { %v1678_v61 = vsel %vm1662_vm0, %v1677_v60, %v1640_v25 }
0x211e   :  { %v1713_v63 = vmul.f32 %v1697_v54, %v1678_v61 }
0x2120   :  { %1714 = vadd.xlane.f32.xlu0 %v1713_v63  ;;  %v1685_v1 = vpop.xlane.xlu0 %1684  ;;  %v1772_v63 = vld [vmem:[#allocation2 + $0x3d] ss:$0 sm:$0xff] }
0x2121   :  { %v1686_v6 = vsel %vm1662_vm0, %v1685_v1, %v1648_v28  ;;  %v1773_v1 = vxor.u32 2147483648, %v1772_v63 }
0x2122   :  { %v1721_v9 = vmul.f32 %v1697_v54, %v1686_v6 }
0x2124   :  { %1722 = vadd.xlane.f32.xlu0 %v1721_v9  ;;  %v1693_v10 = vpop.xlane.xlu0 %1692 }
0x2125   :  { %v1694_v11 = vsel %vm1662_vm0, %v1693_v10, %v1656_v33 }
0x2126   :  { %v1729_v12 = vmul.f32 %v1697_v54, %v1694_v11 }
0x2128   :  { %1730 = vadd.xlane.f32.xlu0 %v1729_v12 }
0x2187   :  { %v1673_v13 = vpop.xlane.xlu1 %1672 }
0x2188   :  { %v1674_v15 = vsel %vm1662_vm0, %v1673_v13, %v1636_v38 }
0x2189   :  { %v1709_v16 = vmul.f32 %v1697_v54, %v1674_v15 }
0x218b   :  { %1710 = vadd.xlane.f32.xlu1 %v1709_v16 }
0x218f   :  { %v1681_v17 = vpop.xlane.xlu1 %1680 }
0x2190   :  { %v1682_v18 = vsel %vm1662_vm0, %v1681_v17, %v1644_v41 }
0x2191   :  { %v1717_v19 = vmul.f32 %v1697_v54, %v1682_v18 }
0x2193   :  { %1718 = vadd.xlane.f32.xlu1 %v1717_v19  ;;  %v1665_v20 = vpop.xlane.xlu1 %1664 }
0x2194   :  { %v1666_v21 = vsel %vm1662_vm0, %v1665_v20, %v1628_v44 }
0x2195   :  { %v1701_v22 = vmul.f32 %v1697_v54, %v1666_v21 }
0x2197   :  { %1702 = vadd.xlane.f32.xlu1 %v1701_v22  ;;  %v1689_v23 = vpop.xlane.xlu1 %1688 }
0x2198   :  { %v1690_v24 = vsel %vm1662_vm0, %v1689_v23, %v1652_v48  ;;  %vm2100_vm0 = vcmp.eq.s32.totalorder %v3563_v2, 69 }
0x2199   :  { %v1725_v25 = vmul.f32 %v1697_v54, %v1690_v24 }
0x219b   :  { %1726 = vadd.xlane.f32.xlu1 %v1725_v25 }
0x21a9   :  { %v1707_v28 = vpop.xlane.xlu0 %1706 }
0x21aa   :  { %v1708_v32 = vsel %vm1700_vm2, %v1707_v28, %v1670_v57 }
0x21ab   :  { %v1743_v14 = vmul.f32 %v1735_v27, %v1708_v32 }
0x21ad   :  { %1744 = vadd.xlane.f32.xlu0 %v1743_v14  ;;  %v1715_v33 = vpop.xlane.xlu0 %1714 }
0x21ae   :  { %v1716_v34 = vsel %vm1700_vm2, %v1715_v33, %v1678_v61 }
0x21af   :  { %v1751_v36 = vmul.f32 %v1735_v27, %v1716_v34 }
0x21b1   :  { %1752 = vadd.xlane.f32.xlu0 %v1751_v36  ;;  %v1723_v38 = vpop.xlane.xlu0 %1722  ;;  %v1810_v36 = vld [vmem:[#allocation2 + $0x3e] ss:$0 sm:$0xff] }
0x21b2   :  { %v1724_v39 = vsel %vm1700_vm2, %v1723_v38, %v1686_v6  ;;  %v1811_v38 = vxor.u32 2147483648, %v1810_v36 }
0x21b3   :  { %v1759_v40 = vmul.f32 %v1735_v27, %v1724_v39 }
0x21b5   :  { %1760 = vadd.xlane.f32.xlu0 %v1759_v40  ;;  %v1731_v41 = vpop.xlane.xlu0 %1730 }
0x21b6   :  { %v1732_v42 = vsel %vm1700_vm2, %v1731_v41, %v1694_v11 }
0x21b7   :  { %v1767_v30 = vmul.f32 %v1735_v27, %v1732_v42 }
0x21b9   :  { %1768 = vadd.xlane.f32.xlu0 %v1767_v30 }
0x2218   :  { %v1711_v44 = vpop.xlane.xlu1 %1710 }
0x2219   :  { %v1712_v46 = vsel %vm1700_vm2, %v1711_v44, %v1674_v15 }
0x221a   :  { %v1747_v47 = vmul.f32 %v1735_v27, %v1712_v46 }
0x221c   :  { %1748 = vadd.xlane.f32.xlu1 %v1747_v47 }
0x2220   :  { %v1719_v48 = vpop.xlane.xlu1 %1718 }
0x2221   :  { %v1720_v50 = vsel %vm1700_vm2, %v1719_v48, %v1682_v18 }
0x2222   :  { %v1755_v52 = vmul.f32 %v1735_v27, %v1720_v50 }
0x2224   :  { %1756 = vadd.xlane.f32.xlu1 %v1755_v52  ;;  %v1703_v54 = vpop.xlane.xlu1 %1702 }
0x2225   :  { %v1704_v55 = vsel %vm1700_vm2, %v1703_v54, %v1666_v21 }
0x2226   :  { %v1739_v57 = vmul.f32 %v1735_v27, %v1704_v55 }
0x2228   :  { %1740 = vadd.xlane.f32.xlu1 %v1739_v57  ;;  %v1727_v59 = vpop.xlane.xlu1 %1726 }
0x2229   :  { %v1728_v60 = vsel %vm1700_vm2, %v1727_v59, %v1690_v24 }
0x222a   :  { %v1763_v61 = vmul.f32 %v1735_v27, %v1728_v60 }
0x222c   :  { %1764 = vadd.xlane.f32.xlu1 %v1763_v61 }
0x223a   :  { %v1745_v6 = vpop.xlane.xlu0 %1744 }
0x223b   :  { %v1746_v9 = vsel %vm1738_vm3, %v1745_v6, %v1708_v32 }
0x223c   :  { %v1781_v10 = vmul.f32 %v1773_v1, %v1746_v9 }
0x223e   :  { %1782 = vadd.xlane.f32.xlu0 %v1781_v10  ;;  %v1753_v11 = vpop.xlane.xlu0 %1752  ;;  %v4174_v10 = vadd.s32 64, %v3565_v3 }
0x223f   :  { %v1754_v12 = vsel %vm1738_vm3, %v1753_v11, %v1716_v34 }
0x2240   :  { %v1789_v13 = vmul.f32 %v1773_v1, %v1754_v12  ;;  %vm212_vm5 = vcmp.eq.s32.totalorder %v4174_v10, %v3563_v2  ;;  %vm217_vm7 = vcmp.ge.s32.totalorder %v4174_v10, %v3563_v2  ;;  %vm336_vm10 = vcmp.eq.s32.totalorder %v3563_v2, %v4174_v10 }
0x2241   :  { %vm218_vm8 = vmand %vm217_vm7, %vm80_vm1 }
0x2242   :  { %1790 = vadd.xlane.f32.xlu0 %v1789_v13  ;;  %v1761_v15 = vpop.xlane.xlu0 %1760 }
0x2243   :  { %v1762_v16 = vsel %vm1738_vm3, %v1761_v15, %v1724_v39  ;;  %v67_v15 = vld [vmem:[%s5052_s0 + $0x40] sm:$0xff] }
0x2244   :  { %v1797_v17 = vmul.f32 %v1773_v1, %v1762_v16 }
0x2246   :  { %1798 = vadd.xlane.f32.xlu0 %v1797_v17  ;;  %v1769_v18 = vpop.xlane.xlu0 %1768  ;;  %v1848_v17 = vld [vmem:[#allocation2 + $0x3f] ss:$0 sm:$0xff] }
0x2247   :  { %v1770_v19 = vsel %vm1738_vm3, %v1769_v18, %v1732_v42  ;;  %v1849_v18 = vxor.u32 2147483648, %v1848_v17 }
0x2248   :  { %v1805_v20 = vmul.f32 %v1773_v1, %v1770_v19 }
0x224a   :  { %1806 = vadd.xlane.f32.xlu0 %v1805_v20 }
0x22a9   :  { %v1749_v21 = vpop.xlane.xlu1 %1748 }
0x22aa   :  { %v1750_v22 = vsel %vm1738_vm3, %v1749_v21, %v1712_v46 }
0x22ab   :  { %v1785_v23 = vmul.f32 %v1773_v1, %v1750_v22 }
0x22ad   :  { %1786 = vadd.xlane.f32.xlu1 %v1785_v23 }
0x22b1   :  { %v1757_v24 = vpop.xlane.xlu1 %1756 }
0x22b2   :  { %v1758_v25 = vsel %vm1738_vm3, %v1757_v24, %v1720_v50 }
0x22b3   :  { %v1793_v26 = vmul.f32 %v1773_v1, %v1758_v25 }
0x22b5   :  { %1794 = vadd.xlane.f32.xlu1 %v1793_v26  ;;  %v1741_v27 = vpop.xlane.xlu1 %1740 }
0x22b6   :  { %v1742_v28 = vsel %vm1738_vm3, %v1741_v27, %v1704_v55 }
0x22b7   :  { %v1777_v32 = vmul.f32 %v1773_v1, %v1742_v28 }
0x22b9   :  { %1778 = vadd.xlane.f32.xlu1 %v1777_v32  ;;  %v1765_v14 = vpop.xlane.xlu1 %1764 }
0x22ba   :  { %v1766_v33 = vsel %vm1738_vm3, %v1765_v14, %v1728_v60  ;;  %vm2142_vm3 = vcmp.eq.s32.totalorder %v3563_v2, 70 }
0x22bb   :  { %v1801_v34 = vmul.f32 %v1773_v1, %v1766_v33 }
0x22bd   :  { %1802 = vadd.xlane.f32.xlu1 %v1801_v34 }
0x22cb   :  { %v1783_v39 = vpop.xlane.xlu0 %1782 }
0x22cc   :  { %v1784_v40 = vsel %vm1776_vm4, %v1783_v39, %v1746_v9 }
0x22cd   :  { %v1819_v41 = vmul.f32 %v1811_v38, %v1784_v40 }
0x22cf   :  { %1820 = vadd.xlane.f32.xlu0 %v1819_v41  ;;  %v1791_v42 = vpop.xlane.xlu0 %1790 }
0x22d0   :  { %v1792_v30 = vsel %vm1776_vm4, %v1791_v42, %v1754_v12 }
0x22d1   :  { %v1827_v44 = vmul.f32 %v1811_v38, %v1792_v30 }
0x22d3   :  { %1828 = vadd.xlane.f32.xlu0 %v1827_v44  ;;  %v1799_v46 = vpop.xlane.xlu0 %1798 }
0x22d4   :  { %v1800_v47 = vsel %vm1776_vm4, %v1799_v46, %v1762_v16  ;;  %v214_v16 = vsel %vm212_vm5, %v67_v15, 0.0 }
0x22d5   :  { %v1835_v48 = vmul.f32 %v1811_v38, %v1800_v47 }
0x22d7   :  { %1836 = vadd.xlane.f32.xlu0 %v1835_v48  ;;  %v1807_v50 = vpop.xlane.xlu0 %1806 }
0x22d8   :  { %v1808_v52 = vsel %vm1776_vm4, %v1807_v50, %v1770_v19  ;;  %v219_v50 = vsel %vm218_vm8, %v67_v15, 0.0  ;;  %vm2226_vm8 = vcmp.eq.s32.totalorder %v3563_v2, 72 }
0x22d9   :  { %v1843_v54 = vmul.f32 %v1811_v38, %v1808_v52 }
0x22db   :  { %1844 = vadd.xlane.f32.xlu0 %v1843_v54 }
0x233a   :  { %v1787_v55 = vpop.xlane.xlu1 %1786 }
0x233b   :  { %v1788_v57 = vsel %vm1776_vm4, %v1787_v55, %v1750_v22 }
0x233c   :  { %v1823_v59 = vmul.f32 %v1811_v38, %v1788_v57 }
0x233e   :  { %1824 = vadd.xlane.f32.xlu1 %v1823_v59 }
0x2342   :  { %v1795_v60 = vpop.xlane.xlu1 %1794 }
0x2343   :  { %v1796_v61 = vsel %vm1776_vm4, %v1795_v60, %v1758_v25 }
0x2344   :  { %v1831_v63 = vmul.f32 %v1811_v38, %v1796_v61 }
0x2346   :  { %1832 = vadd.xlane.f32.xlu1 %v1831_v63  ;;  %v1779_v1 = vpop.xlane.xlu1 %1778 }
0x2347   :  { %v1780_v6 = vsel %vm1776_vm4, %v1779_v1, %v1742_v28 }
0x2348   :  { %v1815_v9 = vmul.f32 %v1811_v38, %v1780_v6 }
0x234a   :  { %1816 = vadd.xlane.f32.xlu1 %v1815_v9  ;;  %v1803_v11 = vpop.xlane.xlu1 %1802 }
0x234b   :  { %v1804_v12 = vsel %vm1776_vm4, %v1803_v11, %v1766_v33 }
0x234c   :  { %v1839_v13 = vmul.f32 %v1811_v38, %v1804_v12 }
0x234e   :  { %1840 = vadd.xlane.f32.xlu1 %v1839_v13 }
0x2352   :  { %215 = vadd.xlane.f32.xlu1 %v214_v16 }
0x235c   :  { %v1821_v19 = vpop.xlane.xlu0 %1820 }
0x235d   :  { %v1822_v20 = vsel %vm1814_vm6, %v1821_v19, %v1784_v40 }
0x235e   :  { %v1857_v21 = vmul.f32 %v1849_v18, %v1822_v20 }
0x2360   :  { %v1829_v22 = vpop.xlane.xlu0 %1828  ;;  %1858 = vadd.xlane.f32.xlu1 %v1857_v21 }
0x2361   :  { %v1830_v23 = vsel %vm1814_vm6, %v1829_v22, %v1792_v30 }
0x2362   :  { %v1865_v24 = vmul.f32 %v1849_v18, %v1830_v23 }
0x2364   :  { %v1837_v25 = vpop.xlane.xlu0 %1836  ;;  %1866 = vadd.xlane.f32.xlu1 %v1865_v24 }
0x2365   :  { %v1838_v26 = vsel %vm1814_vm6, %v1837_v25, %v1800_v47 }
0x2366   :  { %v1873_v27 = vmul.f32 %v1849_v18, %v1838_v26 }
0x2368   :  { %v1845_v28 = vpop.xlane.xlu0 %1844  ;;  %1874 = vadd.xlane.f32.xlu1 %v1873_v27 }
0x2369   :  { %v1846_v32 = vsel %vm1814_vm6, %v1845_v28, %v1808_v52 }
0x236a   :  { %v1881_v14 = vmul.f32 %v1849_v18, %v1846_v32 }
0x236c   :  { %1882 = vadd.xlane.f32.xlu1 %v1881_v14 }
0x23cb   :  { %v1825_v33 = vpop.xlane.xlu1 %1824 }
0x23cc   :  { %v1826_v34 = vsel %vm1814_vm6, %v1825_v33, %v1788_v57 }
0x23cd   :  { %v1861_v36 = vmul.f32 %v1849_v18, %v1826_v34 }
0x23cf   :  { %1862 = vadd.xlane.f32.xlu0 %v1861_v36 }
0x23d3   :  { %v1833_v38 = vpop.xlane.xlu1 %1832 }
0x23d4   :  { %v1834_v39 = vsel %vm1814_vm6, %v1833_v38, %v1796_v61 }
0x23d5   :  { %v1869_v40 = vmul.f32 %v1849_v18, %v1834_v39 }
0x23d7   :  { %1870 = vadd.xlane.f32.xlu0 %v1869_v40  ;;  %v1817_v41 = vpop.xlane.xlu1 %1816 }
0x23d8   :  { %v1818_v42 = vsel %vm1814_vm6, %v1817_v41, %v1780_v6 }
0x23d9   :  { %v1853_v30 = vmul.f32 %v1849_v18, %v1818_v42 }
0x23db   :  { %1854 = vadd.xlane.f32.xlu0 %v1853_v30  ;;  %v1841_v44 = vpop.xlane.xlu1 %1840 }
0x23dc   :  { %v1842_v46 = vsel %vm1814_vm6, %v1841_v44, %v1804_v12  ;;  %vm2184_vm6 = vcmp.eq.s32.totalorder %v3563_v2, 71 }
0x23dd   :  { %v1877_v47 = vmul.f32 %v1849_v18, %v1842_v46 }
0x23df   :  { %1878 = vadd.xlane.f32.xlu0 %v1877_v47  ;;  %v4200_v48 = vpop.xlane.xlu1 %215 }
0x23e0   :  { %3540 = vrcp.f32 %v4200_v48 }
0x23ea   :  { %v4207_v52 = vpop.eup %3540 }
0x23eb   :  { %v221_v54 = vmul.f32 %v4207_v52, %v219_v50 }
0x23ed   :  { %222 = vst [vmem:[#allocation2 + $0x40] sm:$0xff] %v221_v54  ;;  %v1859_v55 = vpop.xlane.xlu1 %1858 }
0x23ee   :  { %v1860_v61 = vsel %vm1852_vm9, %v1859_v55, %v1822_v20 }
0x23f1   :  { %v1867_v57 = vpop.xlane.xlu1 %1866 }
0x23f2   :  { %v1868_v6 = vsel %vm1852_vm9, %v1867_v57, %v1830_v23 }
0x23f4   :  { %v1886_v59 = vld [vmem:[#allocation2 + $0x40] ss:$0 sm:$0xff]  ;;  %v1928_v33 = vld [vmem:[#allocation2 + $0x41] ss:$0 sm:$0xff] }
0x23f5   :  { %v1887_v60 = vxor.u32 2147483648, %v1886_v59  ;;  %v1875_v1 = vpop.xlane.xlu1 %1874 }
0x23f6   :  { %v1876_v11 = vsel %vm1852_vm9, %v1875_v1, %v1838_v26 }
0x23f7   :  { %v1895_v63 = vmul.f32 %v1887_v60, %v1860_v61  ;;  %v1903_v9 = vmul.f32 %v1887_v60, %v1868_v6  ;;  %v1911_v13 = vmul.f32 %v1887_v60, %v1876_v11 }
0x23f9   :  { %1896 = vadd.xlane.f32.xlu1 %v1895_v63  ;;  %v1883_v12 = vpop.xlane.xlu1 %1882 }
0x23fa   :  { %v1884_v15 = vsel %vm1852_vm9, %v1883_v12, %v1846_v32  ;;  %v337_v32 = vsel %vm336_vm10, -1.0, %v3549_v53  ;;  %vm2318_vm10 = vcmp.eq.s32.totalorder %v3563_v2, 74 }
0x23fb   :  { %v1919_v16 = vmul.f32 %v1887_v60, %v1884_v15  ;;  %v1923_v14 = vmul.f32 %v1887_v60, %v337_v32 }
0x23fd   :  { %1904 = vadd.xlane.f32.xlu1 %v1903_v9 }
0x2401   :  { %1912 = vadd.xlane.f32.xlu1 %v1911_v13 }
0x2405   :  { %1920 = vadd.xlane.f32.xlu1 %v1919_v16 }
0x245c   :  { %v1863_v17 = vpop.xlane.xlu0 %1862 }
0x245d   :  { %v1864_v18 = vsel %vm1852_vm9, %v1863_v17, %v1826_v34  ;;  %v1929_v34 = vxor.u32 2147483648, %v1928_v33  ;;  %v1970_v17 = vld [vmem:[#allocation2 + $0x42] ss:$0 sm:$0xff] }
0x245e   :  { %v1899_v19 = vmul.f32 %v1887_v60, %v1864_v18 }
0x2460   :  { %1900 = vadd.xlane.f32.xlu0 %v1899_v19 }
0x2464   :  { %v1871_v20 = vpop.xlane.xlu0 %1870 }
0x2465   :  { %v1872_v21 = vsel %vm1852_vm9, %v1871_v20, %v1834_v39 }
0x2466   :  { %v1907_v22 = vmul.f32 %v1887_v60, %v1872_v21 }
0x2468   :  { %v1855_v23 = vpop.xlane.xlu0 %1854  ;;  %1908 = vadd.xlane.f32.xlu0 %v1907_v22 }
0x2469   :  { %v1856_v27 = vsel %vm1852_vm9, %v1855_v23, %v1818_v42 }
0x246a   :  { %v1891_v28 = vmul.f32 %v1887_v60, %v1856_v27 }
0x246c   :  { %v1879_v24 = vpop.xlane.xlu0 %1878 }
0x246d   :  { %v1880_v25 = vsel %vm1852_vm9, %v1879_v24, %v1842_v46  ;;  %vm2272_vm9 = vcmp.eq.s32.totalorder %v3563_v2, 73 }
0x246e   :  { %v1915_v26 = vmul.f32 %v1887_v60, %v1880_v25 }
0x2470   :  { %1916 = vadd.xlane.f32.xlu0 %v1915_v26 }
0x2474   :  { %1892 = vadd.xlane.f32.xlu0 %v1891_v28 }
0x2478   :  { %1924 = vadd.xlane.f32.xlu0 %v1923_v14 }
0x2486   :  { %v1897_v36 = vpop.xlane.xlu1 %1896 }
0x2487   :  { %v1898_v38 = vsel %vm1890_vm11, %v1897_v36, %v1860_v61 }
0x2488   :  { %v1937_v39 = vmul.f32 %v1929_v34, %v1898_v38 }
0x248a   :  { %1938 = vadd.xlane.f32.xlu0 %v1937_v39  ;;  %v1905_v40 = vpop.xlane.xlu1 %1904 }
0x248b   :  { %v1906_v10 = vsel %vm1890_vm11, %v1905_v40, %v1868_v6 }
0x248c   :  { %v1945_v41 = vmul.f32 %v1929_v34, %v1906_v10 }
0x248e   :  { %1946 = vadd.xlane.f32.xlu0 %v1945_v41  ;;  %v1913_v42 = vpop.xlane.xlu1 %1912 }
0x248f   :  { %v1914_v30 = vsel %vm1890_vm11, %v1913_v42, %v1876_v11 }
0x2490   :  { %v1953_v44 = vmul.f32 %v1929_v34, %v1914_v30 }
0x2492   :  { %1954 = vadd.xlane.f32.xlu0 %v1953_v44  ;;  %v1921_v46 = vpop.xlane.xlu1 %1920 }
0x2493   :  { %v1922_v47 = vsel %vm1890_vm11, %v1921_v46, %v1884_v15 }
0x2494   :  { %v1961_v50 = vmul.f32 %v1929_v34, %v1922_v47 }
0x2496   :  { %1962 = vadd.xlane.f32.xlu0 %v1961_v50 }
0x24ed   :  { %v1901_v54 = vpop.xlane.xlu0 %1900 }
0x24ee   :  { %v1902_v55 = vsel %vm1890_vm11, %v1901_v54, %v1864_v18  ;;  %v1971_v18 = vxor.u32 2147483648, %v1970_v17 }
0x24ef   :  { %v1941_v57 = vmul.f32 %v1929_v34, %v1902_v55 }
0x24f1   :  { %1942 = vadd.xlane.f32.xlu1 %v1941_v57 }
0x24f5   :  { %v1909_v59 = vpop.xlane.xlu0 %1908 }
0x24f6   :  { %v1910_v60 = vsel %vm1890_vm11, %v1909_v59, %v1872_v21 }
0x24f7   :  { %v1949_v61 = vmul.f32 %v1929_v34, %v1910_v60 }
0x24f9   :  { %1950 = vadd.xlane.f32.xlu1 %v1949_v61 }
0x24fd   :  { %v1917_v63 = vpop.xlane.xlu0 %1916 }
0x24fe   :  { %v1918_v1 = vsel %vm1890_vm11, %v1917_v63, %v1880_v25 }
0x24ff   :  { %v1957_v6 = vmul.f32 %v1929_v34, %v1918_v1 }
0x2501   :  { %v1893_v9 = vpop.xlane.xlu0 %1892  ;;  %1958 = vadd.xlane.f32.xlu1 %v1957_v6 }
0x2502   :  { %v1894_v11 = vsel %vm1890_vm11, %v1893_v9, %v1856_v27 }
0x2503   :  { %v1933_v12 = vmul.f32 %v1929_v34, %v1894_v11 }
0x2505   :  { %v1925_v13 = vpop.xlane.xlu0 %1924  ;;  %1934 = vadd.xlane.f32.xlu1 %v1933_v12 }
0x2506   :  { %v1926_v15 = vsel %vm1890_vm11, %v1925_v13, %v337_v32  ;;  %vm2364_vm11 = vcmp.eq.s32.totalorder %v3563_v2, 75 }
0x2507   :  { %v1965_v16 = vmul.f32 %v1929_v34, %v1926_v15 }
0x2509   :  { %1966 = vadd.xlane.f32.xlu1 %v1965_v16 }
0x2517   :  { %v1939_v19 = vpop.xlane.xlu0 %1938 }
0x2518   :  { %v1940_v20 = vsel %vm1932_vm12, %v1939_v19, %v1898_v38 }
0x2519   :  { %v1979_v21 = vmul.f32 %v1971_v18, %v1940_v20 }
0x251b   :  { %1980 = vadd.xlane.f32.xlu1 %v1979_v21  ;;  %v1947_v22 = vpop.xlane.xlu0 %1946 }
0x251c   :  { %v1948_v23 = vsel %vm1932_vm12, %v1947_v22, %v1906_v10 }
0x251d   :  { %v1987_v24 = vmul.f32 %v1971_v18, %v1948_v23 }
0x251f   :  { %1988 = vadd.xlane.f32.xlu1 %v1987_v24  ;;  %v1955_v25 = vpop.xlane.xlu0 %1954 }
0x2520   :  { %v1956_v26 = vsel %vm1932_vm12, %v1955_v25, %v1914_v30 }
0x2521   :  { %v1995_v27 = vmul.f32 %v1971_v18, %v1956_v26 }
0x2523   :  { %1996 = vadd.xlane.f32.xlu1 %v1995_v27  ;;  %v1963_v28 = vpop.xlane.xlu0 %1962 }
0x2524   :  { %v1964_v32 = vsel %vm1932_vm12, %v1963_v28, %v1922_v47 }
0x2525   :  { %v2003_v14 = vmul.f32 %v1971_v18, %v1964_v32 }
0x2527   :  { %2004 = vadd.xlane.f32.xlu1 %v2003_v14 }
0x257e   :  { %v1943_v33 = vpop.xlane.xlu1 %1942 }
0x257f   :  { %v1944_v34 = vsel %vm1932_vm12, %v1943_v33, %v1902_v55  ;;  %v2012_v55 = vld [vmem:[#allocation2 + $0x43] ss:$0 sm:$0xff] }
0x2580   :  { %v1983_v36 = vmul.f32 %v1971_v18, %v1944_v34  ;;  %v2013_v57 = vxor.u32 2147483648, %v2012_v55 }
0x2582   :  { %1984 = vadd.xlane.f32.xlu0 %v1983_v36 }
0x2586   :  { %v1951_v38 = vpop.xlane.xlu1 %1950 }
0x2587   :  { %v1952_v39 = vsel %vm1932_vm12, %v1951_v38, %v1910_v60 }
0x2588   :  { %v1991_v40 = vmul.f32 %v1971_v18, %v1952_v39 }
0x258a   :  { %1992 = vadd.xlane.f32.xlu0 %v1991_v40 }
0x258e   :  { %v1959_v10 = vpop.xlane.xlu1 %1958 }
0x258f   :  { %v1960_v41 = vsel %vm1932_vm12, %v1959_v10, %v1918_v1 }
0x2590   :  { %v1999_v42 = vmul.f32 %v1971_v18, %v1960_v41 }
0x2592   :  { %2000 = vadd.xlane.f32.xlu0 %v1999_v42  ;;  %v1935_v30 = vpop.xlane.xlu1 %1934 }
0x2593   :  { %v1936_v44 = vsel %vm1932_vm12, %v1935_v30, %v1894_v11 }
0x2594   :  { %v1975_v46 = vmul.f32 %v1971_v18, %v1936_v44 }
0x2596   :  { %1976 = vadd.xlane.f32.xlu0 %v1975_v46  ;;  %v1967_v47 = vpop.xlane.xlu1 %1966 }
0x2597   :  { %v1968_v50 = vsel %vm1932_vm12, %v1967_v47, %v1926_v15  ;;  %vm2410_vm12 = vcmp.eq.s32.totalorder %v3563_v2, 76 }
0x2598   :  { %v2007_v54 = vmul.f32 %v1971_v18, %v1968_v50 }
0x259a   :  { %2008 = vadd.xlane.f32.xlu0 %v2007_v54 }
0x25a8   :  { %v1981_v59 = vpop.xlane.xlu1 %1980 }
0x25a9   :  { %v1982_v60 = vsel %vm1974_vm13, %v1981_v59, %v1940_v20 }
0x25aa   :  { %v2021_v61 = vmul.f32 %v2013_v57, %v1982_v60 }
0x25ac   :  { %2022 = vadd.xlane.f32.xlu0 %v2021_v61  ;;  %v1989_v63 = vpop.xlane.xlu1 %1988 }
0x25ad   :  { %v1990_v1 = vsel %vm1974_vm13, %v1989_v63, %v1948_v23 }
0x25ae   :  { %v2029_v6 = vmul.f32 %v2013_v57, %v1990_v1 }
0x25b0   :  { %2030 = vadd.xlane.f32.xlu0 %v2029_v6  ;;  %v1997_v9 = vpop.xlane.xlu1 %1996 }
0x25b1   :  { %v1998_v11 = vsel %vm1974_vm13, %v1997_v9, %v1956_v26 }
0x25b2   :  { %v2037_v12 = vmul.f32 %v2013_v57, %v1998_v11 }
0x25b4   :  { %2038 = vadd.xlane.f32.xlu0 %v2037_v12  ;;  %v2005_v13 = vpop.xlane.xlu1 %2004 }
0x25b5   :  { %v2006_v15 = vsel %vm1974_vm13, %v2005_v13, %v1964_v32 }
0x25b6   :  { %v2045_v16 = vmul.f32 %v2013_v57, %v2006_v15 }
0x25b8   :  { %2046 = vadd.xlane.f32.xlu0 %v2045_v16 }
0x260f   :  { %v1985_v17 = vpop.xlane.xlu0 %1984 }
0x2610   :  { %v1986_v18 = vsel %vm1974_vm13, %v1985_v17, %v1944_v34  ;;  %v2054_v34 = vld [vmem:[#allocation2 + $0x44] ss:$0 sm:$0xff] }
0x2611   :  { %v2025_v19 = vmul.f32 %v2013_v57, %v1986_v18  ;;  %v2055_v36 = vxor.u32 2147483648, %v2054_v34 }
0x2613   :  { %2026 = vadd.xlane.f32.xlu1 %v2025_v19 }
0x2617   :  { %v1993_v20 = vpop.xlane.xlu0 %1992 }
0x2618   :  { %v1994_v21 = vsel %vm1974_vm13, %v1993_v20, %v1952_v39 }
0x2619   :  { %v2033_v22 = vmul.f32 %v2013_v57, %v1994_v21 }
0x261b   :  { %2034 = vadd.xlane.f32.xlu1 %v2033_v22 }
0x261f   :  { %v2001_v23 = vpop.xlane.xlu0 %2000 }
0x2620   :  { %v2002_v24 = vsel %vm1974_vm13, %v2001_v23, %v1960_v41 }
0x2621   :  { %v2041_v25 = vmul.f32 %v2013_v57, %v2002_v24 }
0x2623   :  { %2042 = vadd.xlane.f32.xlu1 %v2041_v25  ;;  %v1977_v26 = vpop.xlane.xlu0 %1976 }
0x2624   :  { %v1978_v27 = vsel %vm1974_vm13, %v1977_v26, %v1936_v44 }
0x2625   :  { %v2017_v28 = vmul.f32 %v2013_v57, %v1978_v27 }
0x2627   :  { %2018 = vadd.xlane.f32.xlu1 %v2017_v28  ;;  %v2009_v32 = vpop.xlane.xlu0 %2008 }
0x2628   :  { %v2010_v14 = vsel %vm1974_vm13, %v2009_v32, %v1968_v50  ;;  %vm2456_vm13 = vcmp.eq.s32.totalorder %v3563_v2, 77 }
0x2629   :  { %v2049_v33 = vmul.f32 %v2013_v57, %v2010_v14 }
0x262b   :  { %2050 = vadd.xlane.f32.xlu1 %v2049_v33 }
0x2639   :  { %v2023_v38 = vpop.xlane.xlu0 %2022 }
0x263a   :  { %v2024_v39 = vsel %vm2016_vm14, %v2023_v38, %v1982_v60 }
0x263b   :  { %v2063_v40 = vmul.f32 %v2055_v36, %v2024_v39 }
0x263d   :  { %2064 = vadd.xlane.f32.xlu1 %v2063_v40  ;;  %v2031_v10 = vpop.xlane.xlu0 %2030 }
0x263e   :  { %v2032_v41 = vsel %vm2016_vm14, %v2031_v10, %v1990_v1 }
0x263f   :  { %v2071_v42 = vmul.f32 %v2055_v36, %v2032_v41 }
0x2641   :  { %2072 = vadd.xlane.f32.xlu1 %v2071_v42  ;;  %v2039_v30 = vpop.xlane.xlu0 %2038 }
0x2642   :  { %v2040_v44 = vsel %vm2016_vm14, %v2039_v30, %v1998_v11 }
0x2643   :  { %v2079_v46 = vmul.f32 %v2055_v36, %v2040_v44 }
0x2645   :  { %2080 = vadd.xlane.f32.xlu1 %v2079_v46  ;;  %v2047_v47 = vpop.xlane.xlu0 %2046 }
0x2646   :  { %v2048_v50 = vsel %vm2016_vm14, %v2047_v47, %v2006_v15 }
0x2647   :  { %v2087_v54 = vmul.f32 %v2055_v36, %v2048_v50 }
0x2649   :  { %2088 = vadd.xlane.f32.xlu1 %v2087_v54 }
0x26a0   :  { %v2027_v55 = vpop.xlane.xlu1 %2026 }
0x26a1   :  { %v2028_v57 = vsel %vm2016_vm14, %v2027_v55, %v1986_v18  ;;  %v2096_v18 = vld [vmem:[#allocation2 + $0x45] ss:$0 sm:$0xff] }
0x26a2   :  { %v2067_v59 = vmul.f32 %v2055_v36, %v2028_v57  ;;  %v2097_v19 = vxor.u32 2147483648, %v2096_v18 }
0x26a4   :  { %2068 = vadd.xlane.f32.xlu0 %v2067_v59 }
0x26a8   :  { %v2035_v60 = vpop.xlane.xlu1 %2034 }
0x26a9   :  { %v2036_v61 = vsel %vm2016_vm14, %v2035_v60, %v1994_v21 }
0x26aa   :  { %v2075_v63 = vmul.f32 %v2055_v36, %v2036_v61 }
0x26ac   :  { %2076 = vadd.xlane.f32.xlu0 %v2075_v63 }
0x26b0   :  { %v2043_v1 = vpop.xlane.xlu1 %2042 }
0x26b1   :  { %v2044_v6 = vsel %vm2016_vm14, %v2043_v1, %v2002_v24 }
0x26b2   :  { %v2083_v9 = vmul.f32 %v2055_v36, %v2044_v6 }
0x26b4   :  { %2084 = vadd.xlane.f32.xlu0 %v2083_v9  ;;  %v2019_v11 = vpop.xlane.xlu1 %2018 }
0x26b5   :  { %v2020_v12 = vsel %vm2016_vm14, %v2019_v11, %v1978_v27 }
0x26b6   :  { %v2059_v13 = vmul.f32 %v2055_v36, %v2020_v12 }
0x26b8   :  { %2060 = vadd.xlane.f32.xlu0 %v2059_v13  ;;  %v2051_v15 = vpop.xlane.xlu1 %2050 }
0x26b9   :  { %v2052_v16 = vsel %vm2016_vm14, %v2051_v15, %v2010_v14  ;;  %v4333_v15 = vadd.s32 72, %v3565_v3 }
0x26ba   :  { %v2091_v17 = vmul.f32 %v2055_v36, %v2052_v16 }
0x26bb   :  { %vm228_vm2 = vcmp.eq.s32.totalorder %v4333_v15, %v3563_v2  ;;  %vm233_vm4 = vcmp.ge.s32.totalorder %v4333_v15, %v3563_v2  ;;  %vm343_vm7 = vcmp.eq.s32.totalorder %v3563_v2, %v4333_v15 }
0x26bc   :  { %2092 = vadd.xlane.f32.xlu0 %v2091_v17  ;;  %vm234_vm5 = vmand %vm233_vm4, %vm80_vm1 }
0x26ca   :  { %v2065_v20 = vpop.xlane.xlu1 %2064 }
0x26cb   :  { %v2066_v21 = vsel %vm2058_vm15, %v2065_v20, %v2024_v39 }
0x26cc   :  { %v2105_v22 = vmul.f32 %v2097_v19, %v2066_v21 }
0x26ce   :  { %2106 = vadd.xlane.f32.xlu0 %v2105_v22  ;;  %v2073_v23 = vpop.xlane.xlu1 %2072 }
0x26cf   :  { %v2074_v24 = vsel %vm2058_vm15, %v2073_v23, %v2032_v41 }
0x26d0   :  { %v2113_v25 = vmul.f32 %v2097_v19, %v2074_v24 }
0x26d2   :  { %2114 = vadd.xlane.f32.xlu0 %v2113_v25  ;;  %v2081_v26 = vpop.xlane.xlu1 %2080 }
0x26d3   :  { %v2082_v27 = vsel %vm2058_vm15, %v2081_v26, %v2040_v44 }
0x26d4   :  { %v2121_v28 = vmul.f32 %v2097_v19, %v2082_v27 }
0x26d6   :  { %2122 = vadd.xlane.f32.xlu0 %v2121_v28  ;;  %v2089_v32 = vpop.xlane.xlu1 %2088 }
0x26d7   :  { %v2090_v14 = vsel %vm2058_vm15, %v2089_v32, %v2048_v50 }
0x26d8   :  { %v2129_v33 = vmul.f32 %v2097_v19, %v2090_v14 }
0x26da   :  { %2130 = vadd.xlane.f32.xlu0 %v2129_v33 }
0x2731   :  { %v2069_v34 = vpop.xlane.xlu0 %2068 }
0x2732   :  { %v2070_v36 = vsel %vm2058_vm15, %v2069_v34, %v2028_v57  ;;  %v2138_v57 = vld [vmem:[#allocation2 + $0x46] ss:$0 sm:$0xff] }
0x2733   :  { %v2109_v38 = vmul.f32 %v2097_v19, %v2070_v36  ;;  %v2139_v59 = vxor.u32 2147483648, %v2138_v57 }
0x2735   :  { %2110 = vadd.xlane.f32.xlu1 %v2109_v38 }
0x2739   :  { %v2077_v39 = vpop.xlane.xlu0 %2076 }
0x273a   :  { %v2078_v40 = vsel %vm2058_vm15, %v2077_v39, %v2036_v61 }
0x273b   :  { %v2117_v10 = vmul.f32 %v2097_v19, %v2078_v40 }
0x273d   :  { %2118 = vadd.xlane.f32.xlu1 %v2117_v10 }
0x2741   :  { %v2085_v41 = vpop.xlane.xlu0 %2084 }
0x2742   :  { %v2086_v42 = vsel %vm2058_vm15, %v2085_v41, %v2044_v6 }
0x2743   :  { %v2125_v30 = vmul.f32 %v2097_v19, %v2086_v42 }
0x2745   :  { %2126 = vadd.xlane.f32.xlu1 %v2125_v30  ;;  %v2061_v44 = vpop.xlane.xlu0 %2060 }
0x2746   :  { %v2062_v46 = vsel %vm2058_vm15, %v2061_v44, %v2020_v12 }
0x2747   :  { %v2101_v47 = vmul.f32 %v2097_v19, %v2062_v46 }
0x2749   :  { %2102 = vadd.xlane.f32.xlu1 %v2101_v47  ;;  %v2093_v50 = vpop.xlane.xlu0 %2092 }
0x274a   :  { %v2094_v54 = vsel %vm2058_vm15, %v2093_v50, %v2052_v16  ;;  %vm2502_vm15 = vcmp.eq.s32.totalorder %v3563_v2, 78 }
0x274b   :  { %v2133_v55 = vmul.f32 %v2097_v19, %v2094_v54  ;;  %v69_v19 = vld [vmem:[%s5052_s0 + $0x48] sm:$0xff] }
0x274c   :  { %v230_v20 = vsel %vm228_vm2, %v69_v19, 0.0 }
0x274d   :  { %2134 = vadd.xlane.f32.xlu1 %v2133_v55 }
0x275b   :  { %v2107_v60 = vpop.xlane.xlu0 %2106 }
0x275c   :  { %v2108_v61 = vsel %vm2100_vm0, %v2107_v60, %v2066_v21 }
0x275d   :  { %v2147_v63 = vmul.f32 %v2139_v59, %v2108_v61 }
0x275f   :  { %2148 = vadd.xlane.f32.xlu1 %v2147_v63  ;;  %v2115_v1 = vpop.xlane.xlu0 %2114  ;;  %v235_v63 = vsel %vm234_vm5, %v69_v19, 0.0  ;;  %vm2594_vm5 = vcmp.eq.s32.totalorder %v3563_v2, 80 }
0x2760   :  { %v2116_v6 = vsel %vm2100_vm0, %v2115_v1, %v2074_v24 }
0x2761   :  { %v2155_v9 = vmul.f32 %v2139_v59, %v2116_v6 }
0x2763   :  { %2156 = vadd.xlane.f32.xlu1 %v2155_v9  ;;  %v2123_v11 = vpop.xlane.xlu0 %2122 }
0x2764   :  { %v2124_v12 = vsel %vm2100_vm0, %v2123_v11, %v2082_v27 }
0x2765   :  { %v2163_v13 = vmul.f32 %v2139_v59, %v2124_v12 }
0x2767   :  { %2164 = vadd.xlane.f32.xlu1 %v2163_v13  ;;  %v2131_v16 = vpop.xlane.xlu0 %2130 }
0x2768   :  { %v2132_v17 = vsel %vm2100_vm0, %v2131_v16, %v2090_v14 }
0x2769   :  { %v2171_v18 = vmul.f32 %v2139_v59, %v2132_v17 }
0x276b   :  { %2172 = vadd.xlane.f32.xlu1 %v2171_v18 }
0x276f   :  { %231 = vadd.xlane.f32.xlu1 %v230_v20 }
0x27c2   :  { %v2111_v21 = vpop.xlane.xlu1 %2110 }
0x27c3   :  { %v2112_v22 = vsel %vm2100_vm0, %v2111_v21, %v2070_v36 }
0x27c4   :  { %v2151_v23 = vmul.f32 %v2139_v59, %v2112_v22 }
0x27c6   :  { %2152 = vadd.xlane.f32.xlu0 %v2151_v23 }
0x27ca   :  { %v2119_v24 = vpop.xlane.xlu1 %2118 }
0x27cb   :  { %v2120_v25 = vsel %vm2100_vm0, %v2119_v24, %v2078_v40  ;;  %v2180_v40 = vld [vmem:[#allocation2 + $0x47] ss:$0 sm:$0xff] }
0x27cc   :  { %v2159_v26 = vmul.f32 %v2139_v59, %v2120_v25  ;;  %v2181_v10 = vxor.u32 2147483648, %v2180_v40 }
0x27ce   :  { %2160 = vadd.xlane.f32.xlu0 %v2159_v26 }
0x27d2   :  { %v2127_v27 = vpop.xlane.xlu1 %2126 }
0x27d3   :  { %v2128_v28 = vsel %vm2100_vm0, %v2127_v27, %v2086_v42 }
0x27d4   :  { %v2167_v32 = vmul.f32 %v2139_v59, %v2128_v28 }
0x27d6   :  { %2168 = vadd.xlane.f32.xlu0 %v2167_v32  ;;  %v2103_v14 = vpop.xlane.xlu1 %2102 }
0x27d7   :  { %v2104_v33 = vsel %vm2100_vm0, %v2103_v14, %v2062_v46 }
0x27d8   :  { %v2143_v34 = vmul.f32 %v2139_v59, %v2104_v33 }
0x27da   :  { %2144 = vadd.xlane.f32.xlu0 %v2143_v34  ;;  %v2135_v36 = vpop.xlane.xlu1 %2134 }
0x27db   :  { %v2136_v38 = vsel %vm2100_vm0, %v2135_v36, %v2094_v54 }
0x27dc   :  { %v2175_v39 = vmul.f32 %v2139_v59, %v2136_v38 }
0x27de   :  { %2176 = vadd.xlane.f32.xlu0 %v2175_v39 }
0x27ec   :  { %v2149_v41 = vpop.xlane.xlu1 %2148 }
0x27ed   :  { %v2150_v42 = vsel %vm2142_vm3, %v2149_v41, %v2108_v61 }
0x27ee   :  { %v2189_v30 = vmul.f32 %v2181_v10, %v2150_v42 }
0x27f0   :  { %2190 = vadd.xlane.f32.xlu1 %v2189_v30  ;;  %v2157_v44 = vpop.xlane.xlu1 %2156  ;;  %v344_v30 = vsel %vm343_vm7, -1.0, %v3549_v53  ;;  %vm2694_vm7 = vcmp.eq.s32.totalorder %v3563_v2, 82 }
0x27f1   :  { %v2158_v46 = vsel %vm2142_vm3, %v2157_v44, %v2116_v6 }
0x27f2   :  { %v2197_v47 = vmul.f32 %v2181_v10, %v2158_v46 }
0x27f4   :  { %2198 = vadd.xlane.f32.xlu1 %v2197_v47  ;;  %v2165_v50 = vpop.xlane.xlu1 %2164 }
0x27f5   :  { %v2166_v54 = vsel %vm2142_vm3, %v2165_v50, %v2124_v12 }
0x27f6   :  { %v2205_v55 = vmul.f32 %v2181_v10, %v2166_v54 }
0x27f8   :  { %2206 = vadd.xlane.f32.xlu1 %v2205_v55  ;;  %v2173_v57 = vpop.xlane.xlu1 %2172 }
0x27f9   :  { %v2174_v59 = vsel %vm2142_vm3, %v2173_v57, %v2132_v17 }
0x27fa   :  { %v2213_v60 = vmul.f32 %v2181_v10, %v2174_v59 }
0x27fc   :  { %2214 = vadd.xlane.f32.xlu1 %v2213_v60  ;;  %v4361_v61 = vpop.xlane.xlu1 %231 }
0x27fd   :  { %3542 = vrcp.f32 %v4361_v61 }
0x2807   :  { %v4368_v1 = vpop.eup %3542 }
0x2808   :  { %v237_v6 = vmul.f32 %v4368_v1, %v235_v63 }
0x280a   :  { %238 = vst [vmem:[#allocation2 + $0x48] sm:$0xff] %v237_v6 }
0x2853   :  { %v2153_v9 = vpop.xlane.xlu0 %2152 }
0x2854   :  { %v2154_v11 = vsel %vm2142_vm3, %v2153_v9, %v2112_v22 }
0x2855   :  { %v2193_v12 = vmul.f32 %v2181_v10, %v2154_v11 }
0x2857   :  { %2194 = vadd.xlane.f32.xlu0 %v2193_v12 }
0x285b   :  { %v2161_v13 = vpop.xlane.xlu0 %2160 }
0x285c   :  { %v2162_v16 = vsel %vm2142_vm3, %v2161_v13, %v2120_v25  ;;  %v2222_v25 = vld [vmem:[#allocation2 + $0x48] ss:$0 sm:$0xff] }
0x285d   :  { %v2201_v17 = vmul.f32 %v2181_v10, %v2162_v16  ;;  %v2223_v32 = vxor.u32 2147483648, %v2222_v25 }
0x285f   :  { %2202 = vadd.xlane.f32.xlu0 %v2201_v17 }
0x2863   :  { %v2169_v18 = vpop.xlane.xlu0 %2168 }
0x2864   :  { %v2170_v19 = vsel %vm2142_vm3, %v2169_v18, %v2128_v28 }
0x2865   :  { %v2209_v20 = vmul.f32 %v2181_v10, %v2170_v19 }
0x2867   :  { %v2145_v21 = vpop.xlane.xlu0 %2144  ;;  %2210 = vadd.xlane.f32.xlu0 %v2209_v20 }
0x2868   :  { %v2146_v23 = vsel %vm2142_vm3, %v2145_v21, %v2104_v33 }
0x2869   :  { %v2185_v24 = vmul.f32 %v2181_v10, %v2146_v23 }
0x286b   :  { %2186 = vadd.xlane.f32.xlu0 %v2185_v24  ;;  %v2177_v22 = vpop.xlane.xlu0 %2176 }
0x286c   :  { %v2178_v26 = vsel %vm2142_vm3, %v2177_v22, %v2136_v38  ;;  %vm2548_vm3 = vcmp.eq.s32.totalorder %v3563_v2, 79 }
0x286d   :  { %v2217_v27 = vmul.f32 %v2181_v10, %v2178_v26 }
0x286f   :  { %2218 = vadd.xlane.f32.xlu0 %v2217_v27 }
0x287d   :  { %v2191_v14 = vpop.xlane.xlu1 %2190 }
0x287e   :  { %v2192_v28 = vsel %vm2184_vm6, %v2191_v14, %v2150_v42 }
0x287f   :  { %v2231_v34 = vmul.f32 %v2223_v32, %v2192_v28 }
0x2881   :  { %2232 = vadd.xlane.f32.xlu0 %v2231_v34  ;;  %v2199_v36 = vpop.xlane.xlu1 %2198 }
0x2882   :  { %v2200_v33 = vsel %vm2184_vm6, %v2199_v36, %v2158_v46  ;;  %v2263_v46 = vmul.f32 %v2223_v32, %v344_v30 }
0x2883   :  { %v2239_v39 = vmul.f32 %v2223_v32, %v2200_v33 }
0x2885   :  { %2240 = vadd.xlane.f32.xlu0 %v2239_v39  ;;  %v2207_v40 = vpop.xlane.xlu1 %2206 }
0x2886   :  { %v2208_v38 = vsel %vm2184_vm6, %v2207_v40, %v2166_v54 }
0x2887   :  { %v2247_v10 = vmul.f32 %v2223_v32, %v2208_v38 }
0x2889   :  { %2248 = vadd.xlane.f32.xlu0 %v2247_v10  ;;  %v2215_v41 = vpop.xlane.xlu1 %2214 }
0x288a   :  { %v2216_v42 = vsel %vm2184_vm6, %v2215_v41, %v2174_v59 }
0x288b   :  { %v2255_v44 = vmul.f32 %v2223_v32, %v2216_v42 }
0x288d   :  { %2256 = vadd.xlane.f32.xlu0 %v2255_v44 }
0x2891   :  { %2264 = vadd.xlane.f32.xlu0 %v2263_v46 }
0x28e4   :  { %v2195_v47 = vpop.xlane.xlu0 %2194 }
0x28e5   :  { %v2196_v50 = vsel %vm2184_vm6, %v2195_v47, %v2154_v11 }
0x28e6   :  { %v2235_v54 = vmul.f32 %v2223_v32, %v2196_v50 }
0x28e8   :  { %2236 = vadd.xlane.f32.xlu1 %v2235_v54 }
0x28ec   :  { %v2203_v55 = vpop.xlane.xlu0 %2202 }
0x28ed   :  { %v2204_v15 = vsel %vm2184_vm6, %v2203_v55, %v2162_v16  ;;  %v2268_v16 = vld [vmem:[#allocation2 + $0x49] ss:$0 sm:$0xff] }
0x28ee   :  { %v2243_v57 = vmul.f32 %v2223_v32, %v2204_v15  ;;  %v2269_v18 = vxor.u32 2147483648, %v2268_v16 }
0x28f0   :  { %2244 = vadd.xlane.f32.xlu1 %v2243_v57 }
0x28f4   :  { %v2211_v60 = vpop.xlane.xlu0 %2210 }
0x28f5   :  { %v2212_v59 = vsel %vm2184_vm6, %v2211_v60, %v2170_v19 }
0x28f6   :  { %v2251_v63 = vmul.f32 %v2223_v32, %v2212_v59 }
0x28f8   :  { %v2187_v6 = vpop.xlane.xlu0 %2186  ;;  %2252 = vadd.xlane.f32.xlu1 %v2251_v63 }
0x28f9   :  { %v2188_v9 = vsel %vm2184_vm6, %v2187_v6, %v2146_v23 }
0x28fa   :  { %v2227_v12 = vmul.f32 %v2223_v32, %v2188_v9 }
0x28fc   :  { %v2219_v11 = vpop.xlane.xlu0 %2218  ;;  %2228 = vadd.xlane.f32.xlu1 %v2227_v12 }
0x28fd   :  { %v2220_v13 = vsel %vm2184_vm6, %v2219_v11, %v2178_v26  ;;  %vm2644_vm6 = vcmp.eq.s32.totalorder %v3563_v2, 81 }
0x28fe   :  { %v2259_v17 = vmul.f32 %v2223_v32, %v2220_v13 }
0x2900   :  { %2260 = vadd.xlane.f32.xlu1 %v2259_v17 }
0x290e   :  { %v2233_v20 = vpop.xlane.xlu0 %2232 }
0x290f   :  { %v2234_v19 = vsel %vm2226_vm8, %v2233_v20, %v2192_v28 }
0x2910   :  { %v2277_v21 = vmul.f32 %v2269_v18, %v2234_v19 }
0x2912   :  { %v2241_v24 = vpop.xlane.xlu0 %2240  ;;  %2278 = vadd.xlane.f32.xlu0 %v2277_v21 }
0x2913   :  { %v2242_v23 = vsel %vm2226_vm8, %v2241_v24, %v2200_v33 }
0x2914   :  { %v2285_v22 = vmul.f32 %v2269_v18, %v2242_v23 }
0x2916   :  { %v2249_v27 = vpop.xlane.xlu0 %2248  ;;  %2286 = vadd.xlane.f32.xlu0 %v2285_v22 }
0x2917   :  { %v2250_v26 = vsel %vm2226_vm8, %v2249_v27, %v2208_v38 }
0x2918   :  { %v2293_v25 = vmul.f32 %v2269_v18, %v2250_v26 }
0x291a   :  { %2294 = vadd.xlane.f32.xlu0 %v2293_v25  ;;  %v2257_v32 = vpop.xlane.xlu0 %2256 }
0x291b   :  { %v2258_v14 = vsel %vm2226_vm8, %v2257_v32, %v2216_v42 }
0x291c   :  { %v2301_v34 = vmul.f32 %v2269_v18, %v2258_v14 }
0x291e   :  { %2302 = vadd.xlane.f32.xlu0 %v2301_v34  ;;  %v2265_v28 = vpop.xlane.xlu0 %2264 }
0x291f   :  { %v2266_v36 = vsel %vm2226_vm8, %v2265_v28, %v344_v30 }
0x2920   :  { %v2309_v39 = vmul.f32 %v2269_v18, %v2266_v36 }
0x2922   :  { %2310 = vadd.xlane.f32.xlu0 %v2309_v39 }
0x2975   :  { %v2237_v33 = vpop.xlane.xlu1 %2236 }
0x2976   :  { %v2238_v40 = vsel %vm2226_vm8, %v2237_v33, %v2196_v50 }
0x2977   :  { %v2281_v10 = vmul.f32 %v2269_v18, %v2238_v40 }
0x2979   :  { %2282 = vadd.xlane.f32.xlu1 %v2281_v10 }
0x297d   :  { %v2245_v38 = vpop.xlane.xlu1 %2244 }
0x297e   :  { %v2246_v41 = vsel %vm2226_vm8, %v2245_v38, %v2204_v15  ;;  %v2314_v15 = vld [vmem:[#allocation2 + $0x4a] ss:$0 sm:$0xff] }
0x297f   :  { %v2289_v44 = vmul.f32 %v2269_v18, %v2246_v41  ;;  %v2315_v63 = vxor.u32 2147483648, %v2314_v15 }
0x2981   :  { %2290 = vadd.xlane.f32.xlu1 %v2289_v44 }
0x2985   :  { %v2253_v42 = vpop.xlane.xlu1 %2252 }
0x2986   :  { %v2254_v46 = vsel %vm2226_vm8, %v2253_v42, %v2212_v59 }
0x2987   :  { %v2297_v47 = vmul.f32 %v2269_v18, %v2254_v46 }
0x2989   :  { %2298 = vadd.xlane.f32.xlu1 %v2297_v47  ;;  %v2229_v30 = vpop.xlane.xlu1 %2228 }
0x298a   :  { %v2230_v54 = vsel %vm2226_vm8, %v2229_v30, %v2188_v9 }
0x298b   :  { %v2273_v55 = vmul.f32 %v2269_v18, %v2230_v54 }
0x298d   :  { %2274 = vadd.xlane.f32.xlu1 %v2273_v55  ;;  %v2261_v50 = vpop.xlane.xlu1 %2260 }
0x298e   :  { %v2262_v57 = vsel %vm2226_vm8, %v2261_v50, %v2220_v13  ;;  %vm2744_vm8 = vcmp.eq.s32.totalorder %v3563_v2, 83 }
0x298f   :  { %v2305_v60 = vmul.f32 %v2269_v18, %v2262_v57 }
0x2991   :  { %2306 = vadd.xlane.f32.xlu1 %v2305_v60 }
0x299f   :  { %v2279_v6 = vpop.xlane.xlu0 %2278 }
0x29a0   :  { %v2280_v59 = vsel %vm2272_vm9, %v2279_v6, %v2234_v19 }
0x29a1   :  { %v2323_v12 = vmul.f32 %v2315_v63, %v2280_v59 }
0x29a3   :  { %2324 = vadd.xlane.f32.xlu0 %v2323_v12  ;;  %v2287_v11 = vpop.xlane.xlu0 %2286 }
0x29a4   :  { %v2288_v9 = vsel %vm2272_vm9, %v2287_v11, %v2242_v23 }
0x29a5   :  { %v2331_v17 = vmul.f32 %v2315_v63, %v2288_v9 }
0x29a7   :  { %2332 = vadd.xlane.f32.xlu0 %v2331_v17  ;;  %v2295_v16 = vpop.xlane.xlu0 %2294 }
0x29a8   :  { %v2296_v13 = vsel %vm2272_vm9, %v2295_v16, %v2250_v26 }
0x29a9   :  { %v2339_v18 = vmul.f32 %v2315_v63, %v2296_v13 }
0x29ab   :  { %2340 = vadd.xlane.f32.xlu0 %v2339_v18  ;;  %v2303_v20 = vpop.xlane.xlu0 %2302 }
0x29ac   :  { %v2304_v21 = vsel %vm2272_vm9, %v2303_v20, %v2258_v14 }
0x29ad   :  { %v2347_v24 = vmul.f32 %v2315_v63, %v2304_v21 }
0x29af   :  { %2348 = vadd.xlane.f32.xlu0 %v2347_v24  ;;  %v2311_v19 = vpop.xlane.xlu0 %2310 }
0x29b0   :  { %v2312_v22 = vsel %vm2272_vm9, %v2311_v19, %v2266_v36 }
0x29b1   :  { %v2355_v27 = vmul.f32 %v2315_v63, %v2312_v22 }
0x29b3   :  { %2356 = vadd.xlane.f32.xlu0 %v2355_v27 }
0x2a06   :  { %v2283_v23 = vpop.xlane.xlu1 %2282 }
0x2a07   :  { %v2284_v25 = vsel %vm2272_vm9, %v2283_v23, %v2238_v40 }
0x2a08   :  { %v2327_v32 = vmul.f32 %v2315_v63, %v2284_v25 }
0x2a0a   :  { %2328 = vadd.xlane.f32.xlu1 %v2327_v32 }
0x2a0e   :  { %v2291_v26 = vpop.xlane.xlu1 %2290 }
0x2a0f   :  { %v2292_v34 = vsel %vm2272_vm9, %v2291_v26, %v2246_v41  ;;  %v2360_v41 = vld [vmem:[#allocation2 + $0x4b] ss:$0 sm:$0xff] }
0x2a10   :  { %v2335_v28 = vmul.f32 %v2315_v63, %v2292_v34  ;;  %v2361_v47 = vxor.u32 2147483648, %v2360_v41 }
0x2a12   :  { %2336 = vadd.xlane.f32.xlu1 %v2335_v28 }
0x2a16   :  { %v2299_v14 = vpop.xlane.xlu1 %2298 }
0x2a17   :  { %v2300_v39 = vsel %vm2272_vm9, %v2299_v14, %v2254_v46 }
0x2a18   :  { %v2343_v33 = vmul.f32 %v2315_v63, %v2300_v39 }
0x2a1a   :  { %2344 = vadd.xlane.f32.xlu1 %v2343_v33  ;;  %v2275_v36 = vpop.xlane.xlu1 %2274 }
0x2a1b   :  { %v2276_v10 = vsel %vm2272_vm9, %v2275_v36, %v2230_v54 }
0x2a1c   :  { %v2319_v38 = vmul.f32 %v2315_v63, %v2276_v10 }
0x2a1e   :  { %2320 = vadd.xlane.f32.xlu1 %v2319_v38  ;;  %v2307_v40 = vpop.xlane.xlu1 %2306 }
0x2a1f   :  { %v2308_v44 = vsel %vm2272_vm9, %v2307_v40, %v2262_v57  ;;  %vm2794_vm9 = vcmp.eq.s32.totalorder %v3563_v2, 84 }
0x2a20   :  { %v2351_v42 = vmul.f32 %v2315_v63, %v2308_v44 }
0x2a22   :  { %2352 = vadd.xlane.f32.xlu1 %v2351_v42 }
0x2a30   :  { %v2325_v30 = vpop.xlane.xlu0 %2324 }
0x2a31   :  { %v2326_v46 = vsel %vm2318_vm10, %v2325_v30, %v2280_v59 }
0x2a32   :  { %v2369_v55 = vmul.f32 %v2361_v47, %v2326_v46 }
0x2a34   :  { %2370 = vadd.xlane.f32.xlu0 %v2369_v55  ;;  %v2333_v50 = vpop.xlane.xlu0 %2332 }
0x2a35   :  { %v2334_v54 = vsel %vm2318_vm10, %v2333_v50, %v2288_v9 }
0x2a36   :  { %v2377_v60 = vmul.f32 %v2361_v47, %v2334_v54 }
0x2a38   :  { %2378 = vadd.xlane.f32.xlu0 %v2377_v60  ;;  %v2341_v15 = vpop.xlane.xlu0 %2340 }
0x2a39   :  { %v2342_v57 = vsel %vm2318_vm10, %v2341_v15, %v2296_v13 }
0x2a3a   :  { %v2385_v63 = vmul.f32 %v2361_v47, %v2342_v57 }
0x2a3c   :  { %2386 = vadd.xlane.f32.xlu0 %v2385_v63  ;;  %v2349_v6 = vpop.xlane.xlu0 %2348 }
0x2a3d   :  { %v2350_v12 = vsel %vm2318_vm10, %v2349_v6, %v2304_v21 }
0x2a3e   :  { %v2393_v11 = vmul.f32 %v2361_v47, %v2350_v12 }
0x2a40   :  { %2394 = vadd.xlane.f32.xlu0 %v2393_v11  ;;  %v2357_v59 = vpop.xlane.xlu0 %2356 }
0x2a41   :  { %v2358_v17 = vsel %vm2318_vm10, %v2357_v59, %v2312_v22 }
0x2a42   :  { %v2401_v16 = vmul.f32 %v2361_v47, %v2358_v17 }
0x2a44   :  { %2402 = vadd.xlane.f32.xlu0 %v2401_v16 }
0x2a97   :  { %v2329_v9 = vpop.xlane.xlu1 %2328 }
0x2a98   :  { %v2330_v18 = vsel %vm2318_vm10, %v2329_v9, %v2284_v25 }
0x2a99   :  { %v2373_v20 = vmul.f32 %v2361_v47, %v2330_v18 }
0x2a9b   :  { %2374 = vadd.xlane.f32.xlu1 %v2373_v20 }
0x2a9f   :  { %v2337_v13 = vpop.xlane.xlu1 %2336 }
0x2aa0   :  { %v2338_v24 = vsel %vm2318_vm10, %v2337_v13, %v2292_v34  ;;  %v2406_v34 = vld [vmem:[#allocation2 + $0x4c] ss:$0 sm:$0xff] }
0x2aa1   :  { %v2381_v19 = vmul.f32 %v2361_v47, %v2338_v24  ;;  %v2407_v33 = vxor.u32 2147483648, %v2406_v34 }
0x2aa3   :  { %2382 = vadd.xlane.f32.xlu1 %v2381_v19 }
0x2aa7   :  { %v2345_v21 = vpop.xlane.xlu1 %2344 }
0x2aa8   :  { %v2346_v27 = vsel %vm2318_vm10, %v2345_v21, %v2300_v39 }
0x2aa9   :  { %v2389_v23 = vmul.f32 %v2361_v47, %v2346_v27 }
0x2aab   :  { %2390 = vadd.xlane.f32.xlu1 %v2389_v23  ;;  %v2321_v22 = vpop.xlane.xlu1 %2320 }
0x2aac   :  { %v2322_v32 = vsel %vm2318_vm10, %v2321_v22, %v2276_v10 }
0x2aad   :  { %v2365_v26 = vmul.f32 %v2361_v47, %v2322_v32 }
0x2aaf   :  { %2366 = vadd.xlane.f32.xlu1 %v2365_v26  ;;  %v2353_v25 = vpop.xlane.xlu1 %2352 }
0x2ab0   :  { %v2354_v28 = vsel %vm2318_vm10, %v2353_v25, %v2308_v44  ;;  %vm2844_vm10 = vcmp.eq.s32.totalorder %v3563_v2, 85 }
0x2ab1   :  { %v2397_v14 = vmul.f32 %v2361_v47, %v2354_v28 }
0x2ab3   :  { %2398 = vadd.xlane.f32.xlu1 %v2397_v14 }
0x2ac1   :  { %v2371_v36 = vpop.xlane.xlu0 %2370 }
0x2ac2   :  { %v2372_v39 = vsel %vm2364_vm11, %v2371_v36, %v2326_v46 }
0x2ac3   :  { %v2415_v38 = vmul.f32 %v2407_v33, %v2372_v39 }
0x2ac5   :  { %2416 = vadd.xlane.f32.xlu0 %v2415_v38  ;;  %v2379_v40 = vpop.xlane.xlu0 %2378 }
0x2ac6   :  { %v2380_v10 = vsel %vm2364_vm11, %v2379_v40, %v2334_v54 }
0x2ac7   :  { %v2423_v42 = vmul.f32 %v2407_v33, %v2380_v10 }
0x2ac9   :  { %2424 = vadd.xlane.f32.xlu0 %v2423_v42  ;;  %v2387_v41 = vpop.xlane.xlu0 %2386 }
0x2aca   :  { %v2388_v44 = vsel %vm2364_vm11, %v2387_v41, %v2342_v57 }
0x2acb   :  { %v2431_v47 = vmul.f32 %v2407_v33, %v2388_v44 }
0x2acd   :  { %2432 = vadd.xlane.f32.xlu0 %v2431_v47  ;;  %v2395_v30 = vpop.xlane.xlu0 %2394 }
0x2ace   :  { %v2396_v55 = vsel %vm2364_vm11, %v2395_v30, %v2350_v12 }
0x2acf   :  { %v2439_v50 = vmul.f32 %v2407_v33, %v2396_v55 }
0x2ad1   :  { %2440 = vadd.xlane.f32.xlu0 %v2439_v50  ;;  %v2403_v46 = vpop.xlane.xlu0 %2402 }
0x2ad2   :  { %v2404_v60 = vsel %vm2364_vm11, %v2403_v46, %v2358_v17 }
0x2ad3   :  { %v2447_v15 = vmul.f32 %v2407_v33, %v2404_v60 }
0x2ad5   :  { %2448 = vadd.xlane.f32.xlu0 %v2447_v15 }
0x2b28   :  { %v2375_v54 = vpop.xlane.xlu1 %2374 }
0x2b29   :  { %v2376_v63 = vsel %vm2364_vm11, %v2375_v54, %v2330_v18 }
0x2b2a   :  { %v2419_v6 = vmul.f32 %v2407_v33, %v2376_v63 }
0x2b2c   :  { %2420 = vadd.xlane.f32.xlu1 %v2419_v6 }
0x2b30   :  { %v2383_v57 = vpop.xlane.xlu1 %2382 }
0x2b31   :  { %v2384_v11 = vsel %vm2364_vm11, %v2383_v57, %v2338_v24  ;;  %v2452_v24 = vld [vmem:[#allocation2 + $0x4d] ss:$0 sm:$0xff] }
0x2b32   :  { %v2427_v59 = vmul.f32 %v2407_v33, %v2384_v11  ;;  %v2453_v23 = vxor.u32 2147483648, %v2452_v24 }
0x2b34   :  { %2428 = vadd.xlane.f32.xlu1 %v2427_v59 }
0x2b38   :  { %v2391_v12 = vpop.xlane.xlu1 %2390 }
0x2b39   :  { %v2392_v16 = vsel %vm2364_vm11, %v2391_v12, %v2346_v27 }
0x2b3a   :  { %v2435_v9 = vmul.f32 %v2407_v33, %v2392_v16 }
0x2b3c   :  { %2436 = vadd.xlane.f32.xlu1 %v2435_v9  ;;  %v2367_v17 = vpop.xlane.xlu1 %2366 }
0x2b3d   :  { %v2368_v20 = vsel %vm2364_vm11, %v2367_v17, %v2322_v32 }
0x2b3e   :  { %v2411_v13 = vmul.f32 %v2407_v33, %v2368_v20 }
0x2b40   :  { %2412 = vadd.xlane.f32.xlu1 %v2411_v13  ;;  %v2399_v18 = vpop.xlane.xlu1 %2398 }
0x2b41   :  { %v2400_v19 = vsel %vm2364_vm11, %v2399_v18, %v2354_v28 }
0x2b42   :  { %v2443_v21 = vmul.f32 %v2407_v33, %v2400_v19 }
0x2b44   :  { %2444 = vadd.xlane.f32.xlu1 %v2443_v21 }
0x2b52   :  { %v2417_v22 = vpop.xlane.xlu0 %2416 }
0x2b53   :  { %v2418_v27 = vsel %vm2410_vm12, %v2417_v22, %v2372_v39 }
0x2b54   :  { %v2461_v26 = vmul.f32 %v2453_v23, %v2418_v27 }
0x2b56   :  { %2462 = vadd.xlane.f32.xlu0 %v2461_v26  ;;  %v2425_v25 = vpop.xlane.xlu0 %2424 }
0x2b57   :  { %v2426_v32 = vsel %vm2410_vm12, %v2425_v25, %v2380_v10 }
0x2b58   :  { %v2469_v14 = vmul.f32 %v2453_v23, %v2426_v32 }
0x2b5a   :  { %2470 = vadd.xlane.f32.xlu0 %v2469_v14  ;;  %v2433_v34 = vpop.xlane.xlu0 %2432 }
0x2b5b   :  { %v2434_v28 = vsel %vm2410_vm12, %v2433_v34, %v2388_v44 }
0x2b5c   :  { %v2477_v33 = vmul.f32 %v2453_v23, %v2434_v28 }
0x2b5e   :  { %2478 = vadd.xlane.f32.xlu0 %v2477_v33  ;;  %v2441_v36 = vpop.xlane.xlu0 %2440 }
0x2b5f   :  { %v2442_v38 = vsel %vm2410_vm12, %v2441_v36, %v2396_v55 }
0x2b60   :  { %v2485_v40 = vmul.f32 %v2453_v23, %v2442_v38 }
0x2b62   :  { %2486 = vadd.xlane.f32.xlu0 %v2485_v40  ;;  %v2449_v39 = vpop.xlane.xlu0 %2448 }
0x2b63   :  { %v2450_v42 = vsel %vm2410_vm12, %v2449_v39, %v2404_v60 }
0x2b64   :  { %v2493_v41 = vmul.f32 %v2453_v23, %v2450_v42 }
0x2b66   :  { %2494 = vadd.xlane.f32.xlu0 %v2493_v41 }
0x2bb9   :  { %v2421_v10 = vpop.xlane.xlu1 %2420 }
0x2bba   :  { %v2422_v47 = vsel %vm2410_vm12, %v2421_v10, %v2376_v63 }
0x2bbb   :  { %v2465_v30 = vmul.f32 %v2453_v23, %v2422_v47 }
0x2bbd   :  { %2466 = vadd.xlane.f32.xlu1 %v2465_v30 }
0x2bc1   :  { %v2429_v44 = vpop.xlane.xlu1 %2428 }
0x2bc2   :  { %v2430_v50 = vsel %vm2410_vm12, %v2429_v44, %v2384_v11  ;;  %v2498_v11 = vld [vmem:[#allocation2 + $0x4e] ss:$0 sm:$0xff] }
0x2bc3   :  { %v2473_v46 = vmul.f32 %v2453_v23, %v2430_v50  ;;  %v2499_v9 = vxor.u32 2147483648, %v2498_v11 }
0x2bc5   :  { %2474 = vadd.xlane.f32.xlu1 %v2473_v46 }
0x2bc9   :  { %v2437_v55 = vpop.xlane.xlu1 %2436 }
0x2bca   :  { %v2438_v15 = vsel %vm2410_vm12, %v2437_v55, %v2392_v16 }
0x2bcb   :  { %v2481_v54 = vmul.f32 %v2453_v23, %v2438_v15 }
0x2bcd   :  { %2482 = vadd.xlane.f32.xlu1 %v2481_v54  ;;  %v2413_v60 = vpop.xlane.xlu1 %2412 }
0x2bce   :  { %v2414_v6 = vsel %vm2410_vm12, %v2413_v60, %v2368_v20  ;;  %v2544_v60 = vld [vmem:[#allocation2 + $0x4f] ss:$0 sm:$0xff] }
0x2bcf   :  { %v2457_v57 = vmul.f32 %v2453_v23, %v2414_v6 }
0x2bd1   :  { %2458 = vadd.xlane.f32.xlu1 %v2457_v57  ;;  %v2445_v63 = vpop.xlane.xlu1 %2444 }
0x2bd2   :  { %v2446_v59 = vsel %vm2410_vm12, %v2445_v63, %v2400_v19  ;;  %vm2894_vm12 = vcmp.eq.s32.totalorder %v3563_v2, 86 }
0x2bd3   :  { %v2489_v12 = vmul.f32 %v2453_v23, %v2446_v59 }
0x2bd5   :  { %2490 = vadd.xlane.f32.xlu1 %v2489_v12 }
0x2be3   :  { %v2463_v17 = vpop.xlane.xlu0 %2462 }
0x2be4   :  { %v2464_v16 = vsel %vm2456_vm13, %v2463_v17, %v2418_v27 }
0x2be5   :  { %v2507_v13 = vmul.f32 %v2499_v9, %v2464_v16 }
0x2be7   :  { %2508 = vadd.xlane.f32.xlu0 %v2507_v13  ;;  %v2471_v18 = vpop.xlane.xlu0 %2470 }
0x2be8   :  { %v2472_v20 = vsel %vm2456_vm13, %v2471_v18, %v2426_v32 }
0x2be9   :  { %v2515_v21 = vmul.f32 %v2499_v9, %v2472_v20 }
0x2beb   :  { %2516 = vadd.xlane.f32.xlu0 %v2515_v21  ;;  %v2479_v24 = vpop.xlane.xlu0 %2478 }
0x2bec   :  { %v2480_v19 = vsel %vm2456_vm13, %v2479_v24, %v2434_v28 }
0x2bed   :  { %v2523_v23 = vmul.f32 %v2499_v9, %v2480_v19 }
0x2bef   :  { %2524 = vadd.xlane.f32.xlu0 %v2523_v23  ;;  %v2487_v22 = vpop.xlane.xlu0 %2486 }
0x2bf0   :  { %v2488_v26 = vsel %vm2456_vm13, %v2487_v22, %v2442_v38 }
0x2bf1   :  { %v2531_v25 = vmul.f32 %v2499_v9, %v2488_v26 }
0x2bf3   :  { %2532 = vadd.xlane.f32.xlu0 %v2531_v25  ;;  %v2495_v27 = vpop.xlane.xlu0 %2494 }
0x2bf4   :  { %v2496_v14 = vsel %vm2456_vm13, %v2495_v27, %v2450_v42 }
0x2bf5   :  { %v2539_v34 = vmul.f32 %v2499_v9, %v2496_v14 }
0x2bf7   :  { %2540 = vadd.xlane.f32.xlu0 %v2539_v34 }
0x2c4a   :  { %v2467_v32 = vpop.xlane.xlu1 %2466 }
0x2c4b   :  { %v2468_v33 = vsel %vm2456_vm13, %v2467_v32, %v2422_v47  ;;  %v4528_v47 = vadd.s32 80, %v3565_v3 }
0x2c4c   :  { %v2511_v36 = vmul.f32 %v2499_v9, %v2468_v33 }
0x2c4d   :  { %vm244_vm14 = vcmp.eq.s32.totalorder %v4528_v47, %v3563_v2  ;;  %vm249_vm0 = vcmp.ge.s32.totalorder %v4528_v47, %v3563_v2  ;;  %vm350_vm4 = vcmp.eq.s32.totalorder %v3563_v2, %v4528_v47 }
0x2c4e   :  { %2512 = vadd.xlane.f32.xlu1 %v2511_v36  ;;  %vm250_vm2 = vmand %vm249_vm0, %vm80_vm1  ;;  %vm2994_vm0 = vcmp.eq.s32.totalorder %v3563_v2, 88 }
0x2c52   :  { %v2475_v28 = vpop.xlane.xlu1 %2474 }
0x2c53   :  { %v2476_v40 = vsel %vm2456_vm13, %v2475_v28, %v2430_v50 }
0x2c54   :  { %v2519_v39 = vmul.f32 %v2499_v9, %v2476_v40 }
0x2c56   :  { %2520 = vadd.xlane.f32.xlu1 %v2519_v39 }
0x2c5a   :  { %v2483_v38 = vpop.xlane.xlu1 %2482 }
0x2c5b   :  { %v2484_v41 = vsel %vm2456_vm13, %v2483_v38, %v2438_v15  ;;  %v71_v15 = vld [vmem:[%s5052_s0 + $0x50] sm:$0xff] }
0x2c5c   :  { %v2527_v10 = vmul.f32 %v2499_v9, %v2484_v41  ;;  %v246_v54 = vsel %vm244_vm14, %v71_v15, 0.0 }
0x2c5e   :  { %2528 = vadd.xlane.f32.xlu1 %v2527_v10  ;;  %v2459_v42 = vpop.xlane.xlu1 %2458 }
0x2c5f   :  { %v2460_v30 = vsel %vm2456_vm13, %v2459_v42, %v2414_v6  ;;  %v2545_v6 = vxor.u32 2147483648, %v2544_v60 }
0x2c60   :  { %v2503_v44 = vmul.f32 %v2499_v9, %v2460_v30 }
0x2c62   :  { %2504 = vadd.xlane.f32.xlu1 %v2503_v44  ;;  %v2491_v46 = vpop.xlane.xlu1 %2490 }
0x2c63   :  { %v2492_v50 = vsel %vm2456_vm13, %v2491_v46, %v2446_v59 }
0x2c64   :  { %v2535_v55 = vmul.f32 %v2499_v9, %v2492_v50 }
0x2c66   :  { %2536 = vadd.xlane.f32.xlu1 %v2535_v55 }
0x2c6a   :  { %247 = vadd.xlane.f32.xlu1 %v246_v54 }
0x2c74   :  { %v2509_v57 = vpop.xlane.xlu0 %2508 }
0x2c75   :  { %v2510_v63 = vsel %vm2502_vm15, %v2509_v57, %v2464_v16 }
0x2c76   :  { %v2553_v59 = vmul.f32 %v2545_v6, %v2510_v63 }
0x2c78   :  { %v2517_v12 = vpop.xlane.xlu0 %2516  ;;  %2554 = vadd.xlane.f32.xlu1 %v2553_v59 }
0x2c79   :  { %v2518_v11 = vsel %vm2502_vm15, %v2517_v12, %v2472_v20 }
0x2c7a   :  { %v2561_v9 = vmul.f32 %v2545_v6, %v2518_v11 }
0x2c7c   :  { %v2525_v17 = vpop.xlane.xlu0 %2524  ;;  %2562 = vadd.xlane.f32.xlu1 %v2561_v9 }
0x2c7d   :  { %v2526_v13 = vsel %vm2502_vm15, %v2525_v17, %v2480_v19 }
0x2c7e   :  { %v2569_v18 = vmul.f32 %v2545_v6, %v2526_v13 }
0x2c80   :  { %v2533_v21 = vpop.xlane.xlu0 %2532  ;;  %2570 = vadd.xlane.f32.xlu1 %v2569_v18 }
0x2c81   :  { %v2534_v24 = vsel %vm2502_vm15, %v2533_v21, %v2488_v26 }
0x2c82   :  { %v2577_v23 = vmul.f32 %v2545_v6, %v2534_v24 }
0x2c84   :  { %v2541_v16 = vpop.xlane.xlu0 %2540  ;;  %2578 = vadd.xlane.f32.xlu1 %v2577_v23 }
0x2c85   :  { %v2542_v22 = vsel %vm2502_vm15, %v2541_v16, %v2496_v14 }
0x2c86   :  { %v2585_v25 = vmul.f32 %v2545_v6, %v2542_v22 }
0x2c88   :  { %2586 = vadd.xlane.f32.xlu1 %v2585_v25 }
0x2cdb   :  { %v2513_v20 = vpop.xlane.xlu1 %2512 }
0x2cdc   :  { %v2514_v27 = vsel %vm2502_vm15, %v2513_v20, %v2468_v33 }
0x2cdd   :  { %v2557_v34 = vmul.f32 %v2545_v6, %v2514_v27 }
0x2cdf   :  { %2558 = vadd.xlane.f32.xlu0 %v2557_v34 }
0x2ce3   :  { %v2521_v19 = vpop.xlane.xlu1 %2520 }
0x2ce4   :  { %v2522_v32 = vsel %vm2502_vm15, %v2521_v19, %v2476_v40 }
0x2ce5   :  { %v2565_v36 = vmul.f32 %v2545_v6, %v2522_v32 }
0x2ce7   :  { %2566 = vadd.xlane.f32.xlu0 %v2565_v36 }
0x2ceb   :  { %v2529_v26 = vpop.xlane.xlu1 %2528 }
0x2cec   :  { %v2530_v28 = vsel %vm2502_vm15, %v2529_v26, %v2484_v41  ;;  %v251_v41 = vsel %vm250_vm2, %v71_v15, 0.0  ;;  %vm3048_vm2 = vcmp.eq.s32.totalorder %v3563_v2, 89 }
0x2ced   :  { %v2573_v39 = vmul.f32 %v2545_v6, %v2530_v28 }
0x2cef   :  { %2574 = vadd.xlane.f32.xlu0 %v2573_v39  ;;  %v2505_v14 = vpop.xlane.xlu1 %2504 }
0x2cf0   :  { %v2506_v38 = vsel %vm2502_vm15, %v2505_v14, %v2460_v30 }
0x2cf1   :  { %v2549_v10 = vmul.f32 %v2545_v6, %v2506_v38 }
0x2cf3   :  { %2550 = vadd.xlane.f32.xlu0 %v2549_v10  ;;  %v2537_v33 = vpop.xlane.xlu1 %2536 }
0x2cf4   :  { %v2538_v42 = vsel %vm2502_vm15, %v2537_v33, %v2492_v50 }
0x2cf5   :  { %v2581_v44 = vmul.f32 %v2545_v6, %v2538_v42 }
0x2cf7   :  { %2582 = vadd.xlane.f32.xlu0 %v2581_v44  ;;  %v4558_v40 = vpop.xlane.xlu1 %247  ;;  %v351_v44 = vsel %vm350_vm4, -1.0, %v3549_v53  ;;  %vm3156_vm4 = vcmp.eq.s32.totalorder %v3563_v2, 91 }
0x2cf8   :  { %3544 = vrcp.f32 %v4558_v40 }
0x2d02   :  { %v4565_v30 = vpop.eup %3544 }
0x2d03   :  { %v253_v46 = vmul.f32 %v4565_v30, %v251_v41 }
0x2d05   :  { %254 = vst [vmem:[#allocation2 + $0x50] sm:$0xff] %v253_v46  ;;  %v2555_v55 = vpop.xlane.xlu1 %2554 }
0x2d06   :  { %v2556_v57 = vsel %vm2548_vm3, %v2555_v55, %v2510_v63 }
0x2d09   :  { %v2563_v50 = vpop.xlane.xlu1 %2562 }
0x2d0a   :  { %v2564_v15 = vsel %vm2548_vm3, %v2563_v50, %v2518_v11 }
0x2d0c   :  { %v2590_v54 = vld [vmem:[#allocation2 + $0x50] ss:$0 sm:$0xff]  ;;  %v2640_v41 = vld [vmem:[#allocation2 + $0x51] ss:$0 sm:$0xff] }
0x2d0d   :  { %v2591_v60 = vxor.u32 2147483648, %v2590_v54  ;;  %v2571_v6 = vpop.xlane.xlu1 %2570  ;;  %v2641_v46 = vxor.u32 2147483648, %v2640_v41 }
0x2d0e   :  { %v2572_v17 = vsel %vm2548_vm3, %v2571_v6, %v2526_v13 }
0x2d0f   :  { %v2599_v59 = vmul.f32 %v2591_v60, %v2556_v57  ;;  %v2607_v12 = vmul.f32 %v2591_v60, %v2564_v15  ;;  %v2615_v18 = vmul.f32 %v2591_v60, %v2572_v17 }
0x2d11   :  { %2600 = vadd.xlane.f32.xlu1 %v2599_v59  ;;  %v2579_v9 = vpop.xlane.xlu1 %2578 }
0x2d12   :  { %v2580_v21 = vsel %vm2548_vm3, %v2579_v9, %v2534_v24 }
0x2d13   :  { %v2623_v16 = vmul.f32 %v2591_v60, %v2580_v21 }
0x2d15   :  { %2608 = vadd.xlane.f32.xlu1 %v2607_v12  ;;  %v2587_v23 = vpop.xlane.xlu1 %2586 }
0x2d16   :  { %v2588_v63 = vsel %vm2548_vm3, %v2587_v23, %v2542_v22 }
0x2d17   :  { %v2631_v25 = vmul.f32 %v2591_v60, %v2588_v63 }
0x2d19   :  { %2616 = vadd.xlane.f32.xlu1 %v2615_v18 }
0x2d1d   :  { %2624 = vadd.xlane.f32.xlu1 %v2623_v16 }
0x2d21   :  { %2632 = vadd.xlane.f32.xlu1 %v2631_v25 }
0x2d6c   :  { %v2559_v11 = vpop.xlane.xlu0 %2558 }
0x2d6d   :  { %v2560_v20 = vsel %vm2548_vm3, %v2559_v11, %v2514_v27 }
0x2d6e   :  { %v2603_v34 = vmul.f32 %v2591_v60, %v2560_v20 }
0x2d70   :  { %2604 = vadd.xlane.f32.xlu0 %v2603_v34 }
0x2d74   :  { %v2567_v13 = vpop.xlane.xlu0 %2566 }
0x2d75   :  { %v2568_v19 = vsel %vm2548_vm3, %v2567_v13, %v2522_v32 }
0x2d76   :  { %v2611_v24 = vmul.f32 %v2591_v60, %v2568_v19 }
0x2d78   :  { %2612 = vadd.xlane.f32.xlu0 %v2611_v24 }
0x2d7c   :  { %v2575_v36 = vpop.xlane.xlu0 %2574 }
0x2d7d   :  { %v2576_v26 = vsel %vm2548_vm3, %v2575_v36, %v2530_v28  ;;  %v2635_v28 = vmul.f32 %v2591_v60, %v351_v44 }
0x2d7e   :  { %v2619_v22 = vmul.f32 %v2591_v60, %v2576_v26 }
0x2d80   :  { %v2551_v39 = vpop.xlane.xlu0 %2550  ;;  %2620 = vadd.xlane.f32.xlu0 %v2619_v22 }
0x2d81   :  { %v2552_v33 = vsel %vm2548_vm3, %v2551_v39, %v2506_v38 }
0x2d82   :  { %v2595_v32 = vmul.f32 %v2591_v60, %v2552_v33 }
0x2d84   :  { %v2583_v14 = vpop.xlane.xlu0 %2582 }
0x2d85   :  { %v2584_v10 = vsel %vm2548_vm3, %v2583_v14, %v2538_v42  ;;  %vm3102_vm3 = vcmp.eq.s32.totalorder %v3563_v2, 90 }
0x2d86   :  { %v2627_v27 = vmul.f32 %v2591_v60, %v2584_v10 }
0x2d88   :  { %2628 = vadd.xlane.f32.xlu0 %v2627_v27 }
0x2d8c   :  { %2596 = vadd.xlane.f32.xlu0 %v2595_v32 }
0x2d90   :  { %2636 = vadd.xlane.f32.xlu0 %v2635_v28 }
0x2d9e   :  { %v2601_v55 = vpop.xlane.xlu1 %2600 }
0x2d9f   :  { %v2602_v42 = vsel %vm2594_vm5, %v2601_v55, %v2556_v57 }
0x2da0   :  { %v2649_v50 = vmul.f32 %v2641_v46, %v2602_v42 }
0x2da2   :  { %2650 = vadd.xlane.f32.xlu0 %v2649_v50  ;;  %v2609_v38 = vpop.xlane.xlu1 %2608 }
0x2da3   :  { %v2610_v47 = vsel %vm2594_vm5, %v2609_v38, %v2564_v15 }
0x2da4   :  { %v2657_v54 = vmul.f32 %v2641_v46, %v2610_v47 }
0x2da6   :  { %2658 = vadd.xlane.f32.xlu0 %v2657_v54  ;;  %v2617_v6 = vpop.xlane.xlu1 %2616 }
0x2da7   :  { %v2618_v60 = vsel %vm2594_vm5, %v2617_v6, %v2572_v17 }
0x2da8   :  { %v2665_v59 = vmul.f32 %v2641_v46, %v2618_v60 }
0x2daa   :  { %2666 = vadd.xlane.f32.xlu0 %v2665_v59  ;;  %v2625_v12 = vpop.xlane.xlu1 %2624 }
0x2dab   :  { %v2626_v9 = vsel %vm2594_vm5, %v2625_v12, %v2580_v21 }
0x2dac   :  { %v2673_v18 = vmul.f32 %v2641_v46, %v2626_v9 }
0x2dae   :  { %2674 = vadd.xlane.f32.xlu0 %v2673_v18  ;;  %v2633_v57 = vpop.xlane.xlu1 %2632 }
0x2daf   :  { %v2634_v23 = vsel %vm2594_vm5, %v2633_v57, %v2588_v63 }
0x2db0   :  { %v2681_v16 = vmul.f32 %v2641_v46, %v2634_v23 }
0x2db2   :  { %2682 = vadd.xlane.f32.xlu0 %v2681_v16 }
0x2dfd   :  { %v2605_v15 = vpop.xlane.xlu0 %2604 }
0x2dfe   :  { %v2606_v25 = vsel %vm2594_vm5, %v2605_v15, %v2560_v20 }
0x2dff   :  { %v2653_v11 = vmul.f32 %v2641_v46, %v2606_v25 }
0x2e01   :  { %2654 = vadd.xlane.f32.xlu1 %v2653_v11 }
0x2e05   :  { %v2613_v17 = vpop.xlane.xlu0 %2612 }
0x2e06   :  { %v2614_v34 = vsel %vm2594_vm5, %v2613_v17, %v2568_v19 }
0x2e07   :  { %v2661_v13 = vmul.f32 %v2641_v46, %v2614_v34 }
0x2e09   :  { %2662 = vadd.xlane.f32.xlu1 %v2661_v13 }
0x2e0d   :  { %v2621_v21 = vpop.xlane.xlu0 %2620 }
0x2e0e   :  { %v2622_v24 = vsel %vm2594_vm5, %v2621_v21, %v2576_v26  ;;  %v2690_v26 = vld [vmem:[#allocation2 + $0x52] ss:$0 sm:$0xff] }
0x2e0f   :  { %v2669_v36 = vmul.f32 %v2641_v46, %v2622_v24  ;;  %v2691_v41 = vxor.u32 2147483648, %v2690_v26 }
0x2e11   :  { %2670 = vadd.xlane.f32.xlu1 %v2669_v36 }
0x2e15   :  { %v2629_v63 = vpop.xlane.xlu0 %2628 }
0x2e16   :  { %v2630_v22 = vsel %vm2594_vm5, %v2629_v63, %v2584_v10 }
0x2e17   :  { %v2677_v39 = vmul.f32 %v2641_v46, %v2630_v22 }
0x2e19   :  { %v2597_v20 = vpop.xlane.xlu0 %2596  ;;  %2678 = vadd.xlane.f32.xlu1 %v2677_v39 }
0x2e1a   :  { %v2598_v14 = vsel %vm2594_vm5, %v2597_v20, %v2552_v33 }
0x2e1b   :  { %v2645_v27 = vmul.f32 %v2641_v46, %v2598_v14 }
0x2e1d   :  { %v2637_v19 = vpop.xlane.xlu0 %2636  ;;  %2646 = vadd.xlane.f32.xlu1 %v2645_v27 }
0x2e1e   :  { %v2638_v32 = vsel %vm2594_vm5, %v2637_v19, %v351_v44  ;;  %vm3210_vm5 = vcmp.eq.s32.totalorder %v3563_v2, 92 }
0x2e1f   :  { %v2685_v28 = vmul.f32 %v2641_v46, %v2638_v32 }
0x2e21   :  { %2686 = vadd.xlane.f32.xlu1 %v2685_v28 }
0x2e2f   :  { %v2651_v55 = vpop.xlane.xlu0 %2650 }
0x2e30   :  { %v2652_v10 = vsel %vm2644_vm6, %v2651_v55, %v2602_v42 }
0x2e31   :  { %v2699_v50 = vmul.f32 %v2691_v41, %v2652_v10 }
0x2e33   :  { %2700 = vadd.xlane.f32.xlu1 %v2699_v50  ;;  %v2659_v38 = vpop.xlane.xlu0 %2658 }
0x2e34   :  { %v2660_v33 = vsel %vm2644_vm6, %v2659_v38, %v2610_v47 }
0x2e35   :  { %v2707_v54 = vmul.f32 %v2691_v41, %v2660_v33 }
0x2e37   :  { %2708 = vadd.xlane.f32.xlu1 %v2707_v54  ;;  %v2667_v6 = vpop.xlane.xlu0 %2666 }
0x2e38   :  { %v2668_v44 = vsel %vm2644_vm6, %v2667_v6, %v2618_v60 }
0x2e39   :  { %v2715_v46 = vmul.f32 %v2691_v41, %v2668_v44 }
0x2e3b   :  { %2716 = vadd.xlane.f32.xlu1 %v2715_v46  ;;  %v2675_v59 = vpop.xlane.xlu0 %2674 }
0x2e3c   :  { %v2676_v12 = vsel %vm2644_vm6, %v2675_v59, %v2626_v9 }
0x2e3d   :  { %v2723_v18 = vmul.f32 %v2691_v41, %v2676_v12 }
0x2e3f   :  { %2724 = vadd.xlane.f32.xlu1 %v2723_v18  ;;  %v2683_v42 = vpop.xlane.xlu0 %2682 }
0x2e40   :  { %v2684_v57 = vsel %vm2644_vm6, %v2683_v42, %v2634_v23 }
0x2e41   :  { %v2731_v16 = vmul.f32 %v2691_v41, %v2684_v57 }
0x2e43   :  { %2732 = vadd.xlane.f32.xlu1 %v2731_v16 }
0x2e8e   :  { %v2655_v47 = vpop.xlane.xlu1 %2654 }
0x2e8f   :  { %v2656_v15 = vsel %vm2644_vm6, %v2655_v47, %v2606_v25 }
0x2e90   :  { %v2703_v11 = vmul.f32 %v2691_v41, %v2656_v15 }
0x2e92   :  { %2704 = vadd.xlane.f32.xlu0 %v2703_v11 }
0x2e96   :  { %v2663_v60 = vpop.xlane.xlu1 %2662 }
0x2e97   :  { %v2664_v17 = vsel %vm2644_vm6, %v2663_v60, %v2614_v34 }
0x2e98   :  { %v2711_v13 = vmul.f32 %v2691_v41, %v2664_v17 }
0x2e9a   :  { %2712 = vadd.xlane.f32.xlu0 %v2711_v13 }
0x2e9e   :  { %v2671_v9 = vpop.xlane.xlu1 %2670 }
0x2e9f   :  { %v2672_v21 = vsel %vm2644_vm6, %v2671_v9, %v2622_v24  ;;  %v2740_v24 = vld [vmem:[#allocation2 + $0x53] ss:$0 sm:$0xff] }
0x2ea0   :  { %v2719_v36 = vmul.f32 %v2691_v41, %v2672_v21  ;;  %v2741_v26 = vxor.u32 2147483648, %v2740_v24 }
0x2ea2   :  { %2720 = vadd.xlane.f32.xlu0 %v2719_v36 }
0x2ea6   :  { %v2679_v23 = vpop.xlane.xlu1 %2678 }
0x2ea7   :  { %v2680_v63 = vsel %vm2644_vm6, %v2679_v23, %v2630_v22 }
0x2ea8   :  { %v2727_v39 = vmul.f32 %v2691_v41, %v2680_v63 }
0x2eaa   :  { %2728 = vadd.xlane.f32.xlu0 %v2727_v39  ;;  %v2647_v25 = vpop.xlane.xlu1 %2646 }
0x2eab   :  { %v2648_v20 = vsel %vm2644_vm6, %v2647_v25, %v2598_v14 }
0x2eac   :  { %v2695_v27 = vmul.f32 %v2691_v41, %v2648_v20 }
0x2eae   :  { %2696 = vadd.xlane.f32.xlu0 %v2695_v27  ;;  %v2687_v34 = vpop.xlane.xlu1 %2686 }
0x2eaf   :  { %v2688_v19 = vsel %vm2644_vm6, %v2687_v34, %v2638_v32  ;;  %vm3264_vm6 = vcmp.eq.s32.totalorder %v3563_v2, 93 }
0x2eb0   :  { %v2735_v28 = vmul.f32 %v2691_v41, %v2688_v19 }
0x2eb2   :  { %2736 = vadd.xlane.f32.xlu0 %v2735_v28 }
0x2ec0   :  { %v2701_v55 = vpop.xlane.xlu1 %2700 }
0x2ec1   :  { %v2702_v22 = vsel %vm2694_vm7, %v2701_v55, %v2652_v10 }
0x2ec2   :  { %v2749_v50 = vmul.f32 %v2741_v26, %v2702_v22 }
0x2ec4   :  { %2750 = vadd.xlane.f32.xlu0 %v2749_v50  ;;  %v2709_v38 = vpop.xlane.xlu1 %2708 }
0x2ec5   :  { %v2710_v14 = vsel %vm2694_vm7, %v2709_v38, %v2660_v33 }
0x2ec6   :  { %v2757_v54 = vmul.f32 %v2741_v26, %v2710_v14 }
0x2ec8   :  { %2758 = vadd.xlane.f32.xlu0 %v2757_v54  ;;  %v2717_v6 = vpop.xlane.xlu1 %2716 }
0x2ec9   :  { %v2718_v32 = vsel %vm2694_vm7, %v2717_v6, %v2668_v44 }
0x2eca   :  { %v2765_v41 = vmul.f32 %v2741_v26, %v2718_v32 }
0x2ecc   :  { %2766 = vadd.xlane.f32.xlu0 %v2765_v41  ;;  %v2725_v46 = vpop.xlane.xlu1 %2724 }
0x2ecd   :  { %v2726_v59 = vsel %vm2694_vm7, %v2725_v46, %v2676_v12 }
0x2ece   :  { %v2773_v18 = vmul.f32 %v2741_v26, %v2726_v59 }
0x2ed0   :  { %2774 = vadd.xlane.f32.xlu0 %v2773_v18  ;;  %v2733_v10 = vpop.xlane.xlu1 %2732 }
0x2ed1   :  { %v2734_v42 = vsel %vm2694_vm7, %v2733_v10, %v2684_v57 }
0x2ed2   :  { %v2781_v16 = vmul.f32 %v2741_v26, %v2734_v42 }
0x2ed4   :  { %2782 = vadd.xlane.f32.xlu0 %v2781_v16 }
0x2f1f   :  { %v2705_v33 = vpop.xlane.xlu0 %2704 }
0x2f20   :  { %v2706_v47 = vsel %vm2694_vm7, %v2705_v33, %v2656_v15 }
0x2f21   :  { %v2753_v11 = vmul.f32 %v2741_v26, %v2706_v47 }
0x2f23   :  { %2754 = vadd.xlane.f32.xlu1 %v2753_v11 }
0x2f27   :  { %v2713_v44 = vpop.xlane.xlu0 %2712 }
0x2f28   :  { %v2714_v60 = vsel %vm2694_vm7, %v2713_v44, %v2664_v17 }
0x2f29   :  { %v2761_v13 = vmul.f32 %v2741_v26, %v2714_v60 }
0x2f2b   :  { %2762 = vadd.xlane.f32.xlu1 %v2761_v13 }
0x2f2f   :  { %v2721_v12 = vpop.xlane.xlu0 %2720 }
0x2f30   :  { %v2722_v9 = vsel %vm2694_vm7, %v2721_v12, %v2672_v21  ;;  %v2790_v21 = vld [vmem:[#allocation2 + $0x54] ss:$0 sm:$0xff] }
0x2f31   :  { %v2769_v36 = vmul.f32 %v2741_v26, %v2722_v9  ;;  %v2791_v24 = vxor.u32 2147483648, %v2790_v21 }
0x2f33   :  { %2770 = vadd.xlane.f32.xlu1 %v2769_v36 }
0x2f37   :  { %v2729_v57 = vpop.xlane.xlu0 %2728 }
0x2f38   :  { %v2730_v23 = vsel %vm2694_vm7, %v2729_v57, %v2680_v63 }
0x2f39   :  { %v2777_v39 = vmul.f32 %v2741_v26, %v2730_v23 }
0x2f3b   :  { %2778 = vadd.xlane.f32.xlu1 %v2777_v39  ;;  %v2697_v15 = vpop.xlane.xlu0 %2696 }
0x2f3c   :  { %v2698_v25 = vsel %vm2694_vm7, %v2697_v15, %v2648_v20 }
0x2f3d   :  { %v2745_v27 = vmul.f32 %v2741_v26, %v2698_v25 }
0x2f3f   :  { %2746 = vadd.xlane.f32.xlu1 %v2745_v27  ;;  %v2737_v17 = vpop.xlane.xlu0 %2736 }
0x2f40   :  { %v2738_v34 = vsel %vm2694_vm7, %v2737_v17, %v2688_v19  ;;  %vm3318_vm7 = vcmp.eq.s32.totalorder %v3563_v2, 94 }
0x2f41   :  { %v2785_v28 = vmul.f32 %v2741_v26, %v2738_v34 }
0x2f43   :  { %2786 = vadd.xlane.f32.xlu1 %v2785_v28 }
0x2f51   :  { %v2751_v55 = vpop.xlane.xlu0 %2750 }
0x2f52   :  { %v2752_v63 = vsel %vm2744_vm8, %v2751_v55, %v2702_v22 }
0x2f53   :  { %v2799_v50 = vmul.f32 %v2791_v24, %v2752_v63 }
0x2f55   :  { %2800 = vadd.xlane.f32.xlu1 %v2799_v50  ;;  %v2759_v38 = vpop.xlane.xlu0 %2758 }
0x2f56   :  { %v2760_v20 = vsel %vm2744_vm8, %v2759_v38, %v2710_v14 }
0x2f57   :  { %v2807_v54 = vmul.f32 %v2791_v24, %v2760_v20 }
0x2f59   :  { %2808 = vadd.xlane.f32.xlu1 %v2807_v54  ;;  %v2767_v6 = vpop.xlane.xlu0 %2766 }
0x2f5a   :  { %v2768_v19 = vsel %vm2744_vm8, %v2767_v6, %v2718_v32 }
0x2f5b   :  { %v2815_v26 = vmul.f32 %v2791_v24, %v2768_v19 }
0x2f5d   :  { %2816 = vadd.xlane.f32.xlu1 %v2815_v26  ;;  %v2775_v41 = vpop.xlane.xlu0 %2774 }
0x2f5e   :  { %v2776_v46 = vsel %vm2744_vm8, %v2775_v41, %v2726_v59 }
0x2f5f   :  { %v2823_v18 = vmul.f32 %v2791_v24, %v2776_v46 }
0x2f61   :  { %2824 = vadd.xlane.f32.xlu1 %v2823_v18  ;;  %v2783_v22 = vpop.xlane.xlu0 %2782 }
0x2f62   :  { %v2784_v10 = vsel %vm2744_vm8, %v2783_v22, %v2734_v42 }
0x2f63   :  { %v2831_v16 = vmul.f32 %v2791_v24, %v2784_v10 }
0x2f65   :  { %2832 = vadd.xlane.f32.xlu1 %v2831_v16 }
0x2fb0   :  { %v2755_v14 = vpop.xlane.xlu1 %2754 }
0x2fb1   :  { %v2756_v33 = vsel %vm2744_vm8, %v2755_v14, %v2706_v47 }
0x2fb2   :  { %v2803_v11 = vmul.f32 %v2791_v24, %v2756_v33 }
0x2fb4   :  { %2804 = vadd.xlane.f32.xlu0 %v2803_v11 }
0x2fb8   :  { %v2763_v32 = vpop.xlane.xlu1 %2762 }
0x2fb9   :  { %v2764_v44 = vsel %vm2744_vm8, %v2763_v32, %v2714_v60 }
0x2fba   :  { %v2811_v13 = vmul.f32 %v2791_v24, %v2764_v44 }
0x2fbc   :  { %2812 = vadd.xlane.f32.xlu0 %v2811_v13 }
0x2fc0   :  { %v2771_v59 = vpop.xlane.xlu1 %2770 }
0x2fc1   :  { %v2772_v12 = vsel %vm2744_vm8, %v2771_v59, %v2722_v9  ;;  %v2840_v9 = vld [vmem:[#allocation2 + $0x55] ss:$0 sm:$0xff] }
0x2fc2   :  { %v2819_v36 = vmul.f32 %v2791_v24, %v2772_v12  ;;  %v2841_v21 = vxor.u32 2147483648, %v2840_v9 }
0x2fc4   :  { %2820 = vadd.xlane.f32.xlu0 %v2819_v36 }
0x2fc8   :  { %v2779_v42 = vpop.xlane.xlu1 %2778 }
0x2fc9   :  { %v2780_v57 = vsel %vm2744_vm8, %v2779_v42, %v2730_v23 }
0x2fca   :  { %v2827_v39 = vmul.f32 %v2791_v24, %v2780_v57 }
0x2fcc   :  { %2828 = vadd.xlane.f32.xlu0 %v2827_v39  ;;  %v2747_v47 = vpop.xlane.xlu1 %2746 }
0x2fcd   :  { %v2748_v15 = vsel %vm2744_vm8, %v2747_v47, %v2698_v25 }
0x2fce   :  { %v2795_v27 = vmul.f32 %v2791_v24, %v2748_v15 }
0x2fd0   :  { %2796 = vadd.xlane.f32.xlu0 %v2795_v27  ;;  %v2787_v60 = vpop.xlane.xlu1 %2786 }
0x2fd1   :  { %v2788_v17 = vsel %vm2744_vm8, %v2787_v60, %v2738_v34  ;;  %vm3374_vm8 = vweird.f32 %v3593_v43 }
0x2fd2   :  { %v2835_v28 = vmul.f32 %v2791_v24, %v2788_v17 }
0x2fd4   :  { %2836 = vadd.xlane.f32.xlu0 %v2835_v28 }
0x2fe2   :  { %v2801_v55 = vpop.xlane.xlu1 %2800 }
0x2fe3   :  { %v2802_v23 = vsel %vm2794_vm9, %v2801_v55, %v2752_v63 }
0x2fe4   :  { %v2849_v50 = vmul.f32 %v2841_v21, %v2802_v23 }
0x2fe6   :  { %2850 = vadd.xlane.f32.xlu0 %v2849_v50  ;;  %v2809_v38 = vpop.xlane.xlu1 %2808 }
0x2fe7   :  { %v2810_v25 = vsel %vm2794_vm9, %v2809_v38, %v2760_v20 }
0x2fe8   :  { %v2857_v54 = vmul.f32 %v2841_v21, %v2810_v25 }
0x2fea   :  { %2858 = vadd.xlane.f32.xlu0 %v2857_v54  ;;  %v2817_v6 = vpop.xlane.xlu1 %2816 }
0x2feb   :  { %v2818_v34 = vsel %vm2794_vm9, %v2817_v6, %v2768_v19 }
0x2fec   :  { %v2865_v24 = vmul.f32 %v2841_v21, %v2818_v34 }
0x2fee   :  { %2866 = vadd.xlane.f32.xlu0 %v2865_v24  ;;  %v2825_v26 = vpop.xlane.xlu1 %2824 }
0x2fef   :  { %v2826_v41 = vsel %vm2794_vm9, %v2825_v26, %v2776_v46 }
0x2ff0   :  { %v2873_v18 = vmul.f32 %v2841_v21, %v2826_v41 }
0x2ff2   :  { %2874 = vadd.xlane.f32.xlu0 %v2873_v18  ;;  %v2833_v63 = vpop.xlane.xlu1 %2832 }
0x2ff3   :  { %v2834_v22 = vsel %vm2794_vm9, %v2833_v63, %v2784_v10 }
0x2ff4   :  { %v2881_v16 = vmul.f32 %v2841_v21, %v2834_v22 }
0x2ff6   :  { %2882 = vadd.xlane.f32.xlu0 %v2881_v16 }
0x3041   :  { %v2805_v20 = vpop.xlane.xlu0 %2804 }
0x3042   :  { %v2806_v14 = vsel %vm2794_vm9, %v2805_v20, %v2756_v33 }
0x3043   :  { %v2853_v11 = vmul.f32 %v2841_v21, %v2806_v14 }
0x3045   :  { %2854 = vadd.xlane.f32.xlu1 %v2853_v11 }
0x3049   :  { %v2813_v19 = vpop.xlane.xlu0 %2812 }
0x304a   :  { %v2814_v32 = vsel %vm2794_vm9, %v2813_v19, %v2764_v44 }
0x304b   :  { %v2861_v13 = vmul.f32 %v2841_v21, %v2814_v32 }
0x304d   :  { %2862 = vadd.xlane.f32.xlu1 %v2861_v13 }
0x3051   :  { %v2821_v46 = vpop.xlane.xlu0 %2820 }
0x3052   :  { %v2822_v59 = vsel %vm2794_vm9, %v2821_v46, %v2772_v12  ;;  %v2890_v12 = vld [vmem:[#allocation2 + $0x56] ss:$0 sm:$0xff] }
0x3053   :  { %v2869_v36 = vmul.f32 %v2841_v21, %v2822_v59  ;;  %v2891_v9 = vxor.u32 2147483648, %v2890_v12 }
0x3055   :  { %2870 = vadd.xlane.f32.xlu1 %v2869_v36 }
0x3059   :  { %v2829_v10 = vpop.xlane.xlu0 %2828 }
0x305a   :  { %v2830_v42 = vsel %vm2794_vm9, %v2829_v10, %v2780_v57 }
0x305b   :  { %v2877_v39 = vmul.f32 %v2841_v21, %v2830_v42 }
0x305d   :  { %2878 = vadd.xlane.f32.xlu1 %v2877_v39  ;;  %v2797_v33 = vpop.xlane.xlu0 %2796 }
0x305e   :  { %v2798_v47 = vsel %vm2794_vm9, %v2797_v33, %v2748_v15 }
0x305f   :  { %v2845_v27 = vmul.f32 %v2841_v21, %v2798_v47 }
0x3061   :  { %2846 = vadd.xlane.f32.xlu1 %v2845_v27  ;;  %v2837_v44 = vpop.xlane.xlu0 %2836 }
0x3062   :  { %v2838_v60 = vsel %vm2794_vm9, %v2837_v44, %v2788_v17  ;;  %vm3386_vm9 = vweird.f32 %v3650_v35 }
0x3063   :  { %v2885_v28 = vmul.f32 %v2841_v21, %v2838_v60 }
0x3065   :  { %2886 = vadd.xlane.f32.xlu1 %v2885_v28 }
0x3073   :  { %v2851_v55 = vpop.xlane.xlu0 %2850 }
0x3074   :  { %v2852_v57 = vsel %vm2844_vm10, %v2851_v55, %v2802_v23  ;;  %v4717_v23 = vadd.s32 88, %v3565_v3 }
0x3075   :  { %v2899_v50 = vmul.f32 %v2891_v9, %v2852_v57 }
0x3076   :  { %vm260_vm11 = vcmp.eq.s32.totalorder %v4717_v23, %v3563_v2  ;;  %vm265_vm13 = vcmp.ge.s32.totalorder %v4717_v23, %v3563_v2  ;;  %vm357_vm15 = vcmp.eq.s32.totalorder %v3563_v2, %v4717_v23 }
0x3077   :  { %2900 = vadd.xlane.f32.xlu1 %v2899_v50  ;;  %v2859_v38 = vpop.xlane.xlu0 %2858  ;;  %vm266_vm14 = vmand %vm265_vm13, %vm80_vm1  ;;  %vm2944_vm1 = vcmp.eq.s32.totalorder %v3563_v2, 87 }
0x3078   :  { %v2860_v15 = vsel %vm2844_vm10, %v2859_v38, %v2810_v25 }
0x3079   :  { %v2907_v54 = vmul.f32 %v2891_v9, %v2860_v15 }
0x307b   :  { %2908 = vadd.xlane.f32.xlu1 %v2907_v54  ;;  %v2867_v6 = vpop.xlane.xlu0 %2866 }
0x307c   :  { %v2868_v17 = vsel %vm2844_vm10, %v2867_v6, %v2818_v34  ;;  %v73_v34 = vld [vmem:[%s5052_s0 + $0x58] sm:$0xff] }
0x307d   :  { %v2915_v21 = vmul.f32 %v2891_v9, %v2868_v17  ;;  %v262_v20 = vsel %vm260_vm11, %v73_v34, 0.0  ;;  %vm3410_vm11 = vweird.f32 %v4037_v49 }
0x307f   :  { %2916 = vadd.xlane.f32.xlu1 %v2915_v21  ;;  %v2875_v24 = vpop.xlane.xlu0 %2874 }
0x3080   :  { %v2876_v26 = vsel %vm2844_vm10, %v2875_v24, %v2826_v41 }
0x3081   :  { %v2923_v18 = vmul.f32 %v2891_v9, %v2876_v26 }
0x3083   :  { %2924 = vadd.xlane.f32.xlu1 %v2923_v18  ;;  %v2883_v63 = vpop.xlane.xlu0 %2882 }
0x3084   :  { %v2884_v25 = vsel %vm2844_vm10, %v2883_v63, %v2834_v22 }
0x3085   :  { %v2931_v16 = vmul.f32 %v2891_v9, %v2884_v25 }
0x3087   :  { %2932 = vadd.xlane.f32.xlu1 %v2931_v16 }
0x308b   :  { %263 = vadd.xlane.f32.xlu1 %v262_v20 }
0x30d2   :  { %v2855_v41 = vpop.xlane.xlu1 %2854 }
0x30d3   :  { %v2856_v3 = vsel %vm2844_vm10, %v2855_v41, %v2806_v14 }
0x30d4   :  { %v2903_v11 = vmul.f32 %v2891_v9, %v2856_v3 }
0x30d6   :  { %2904 = vadd.xlane.f32.xlu0 %v2903_v11 }
0x30da   :  { %v2863_v19 = vpop.xlane.xlu1 %2862 }
0x30db   :  { %v2864_v22 = vsel %vm2844_vm10, %v2863_v19, %v2814_v32 }
0x30dc   :  { %v2911_v13 = vmul.f32 %v2891_v9, %v2864_v22 }
0x30de   :  { %2912 = vadd.xlane.f32.xlu0 %v2911_v13 }
0x30e2   :  { %v2871_v46 = vpop.xlane.xlu1 %2870 }
0x30e3   :  { %v2872_v36 = vsel %vm2844_vm10, %v2871_v46, %v2822_v59  ;;  %v2940_v59 = vld [vmem:[#allocation2 + $0x57] ss:$0 sm:$0xff] }
0x30e4   :  { %v2919_v10 = vmul.f32 %v2891_v9, %v2872_v36  ;;  %v2941_v50 = vxor.u32 2147483648, %v2940_v59 }
0x30e6   :  { %2920 = vadd.xlane.f32.xlu0 %v2919_v10 }
0x30ea   :  { %v2879_v39 = vpop.xlane.xlu1 %2878 }
0x30eb   :  { %v2880_v33 = vsel %vm2844_vm10, %v2879_v39, %v2830_v42 }
0x30ec   :  { %v2927_v27 = vmul.f32 %v2891_v9, %v2880_v33 }
0x30ee   :  { %2928 = vadd.xlane.f32.xlu0 %v2927_v27  ;;  %v2847_v14 = vpop.xlane.xlu1 %2846 }
0x30ef   :  { %v2848_v44 = vsel %vm2844_vm10, %v2847_v14, %v2798_v47 }
0x30f0   :  { %v2895_v28 = vmul.f32 %v2891_v9, %v2848_v44 }
0x30f2   :  { %2896 = vadd.xlane.f32.xlu0 %v2895_v28  ;;  %v2887_v32 = vpop.xlane.xlu1 %2886 }
0x30f3   :  { %v2888_v12 = vsel %vm2844_vm10, %v2887_v32, %v2838_v60  ;;  %vm3398_vm10 = vweird.f32 %v3777_v29 }
0x30f4   :  { %v2935_v55 = vmul.f32 %v2891_v9, %v2888_v12 }
0x30f6   :  { %2936 = vadd.xlane.f32.xlu0 %v2935_v55 }
0x3104   :  { %v2901_v38 = vpop.xlane.xlu1 %2900 }
0x3105   :  { %v2902_v42 = vsel %vm2894_vm12, %v2901_v38, %v2852_v57 }
0x3106   :  { %v2949_v54 = vmul.f32 %v2941_v50, %v2902_v42 }
0x3108   :  { %2950 = vadd.xlane.f32.xlu1 %v2949_v54  ;;  %v2909_v6 = vpop.xlane.xlu1 %2908 }
0x3109   :  { %v2910_v47 = vsel %vm2894_vm12, %v2909_v6, %v2860_v15 }
0x310a   :  { %v2957_v21 = vmul.f32 %v2941_v50, %v2910_v47 }
0x310c   :  { %2958 = vadd.xlane.f32.xlu1 %v2957_v21  ;;  %v2917_v24 = vpop.xlane.xlu1 %2916 }
0x310d   :  { %v2918_v60 = vsel %vm2894_vm12, %v2917_v24, %v2868_v17  ;;  %v267_v17 = vsel %vm266_vm14, %v73_v34, 0.0  ;;  %vm3380_vm14 = vweird.f32 %v3618_v62 }
0x310e   :  { %v2965_v9 = vmul.f32 %v2941_v50, %v2918_v60 }
0x3110   :  { %2966 = vadd.xlane.f32.xlu1 %v2965_v9  ;;  %v2925_v18 = vpop.xlane.xlu1 %2924 }
0x3111   :  { %v2926_v63 = vsel %vm2894_vm12, %v2925_v18, %v2876_v26 }
0x3112   :  { %v2973_v16 = vmul.f32 %v2941_v50, %v2926_v63 }
0x3114   :  { %2974 = vadd.xlane.f32.xlu1 %v2973_v16  ;;  %v2933_v57 = vpop.xlane.xlu1 %2932 }
0x3115   :  { %v2934_v20 = vsel %vm2894_vm12, %v2933_v57, %v2884_v25 }
0x3116   :  { %v2981_v41 = vmul.f32 %v2941_v50, %v2934_v20 }
0x3118   :  { %2982 = vadd.xlane.f32.xlu1 %v2981_v41  ;;  %v4749_v15 = vpop.xlane.xlu1 %263 }
0x3119   :  { %3546 = vrcp.f32 %v4749_v15  ;;  %vm3434_vm13 = vweird.f32 %v4749_v15 }
0x3123   :  { %v4756_v26 = vpop.eup %3546 }
0x3124   :  { %v269_v11 = vmul.f32 %v4756_v26, %v267_v17 }
0x3126   :  { %270 = vst [vmem:[#allocation2 + $0x58] sm:$0xff] %v269_v11 }
0x3163   :  { %v2905_v19 = vpop.xlane.xlu0 %2904 }
0x3164   :  { %v2906_v25 = vsel %vm2894_vm12, %v2905_v19, %v2856_v3  ;;  %v358_v19 = vsel %vm357_vm15, -1.0, %v3549_v53  ;;  %vm3404_vm15 = vweird.f32 %v3906_v4 }
0x3165   :  { %v2953_v13 = vmul.f32 %v2941_v50, %v2906_v25 }
0x3167   :  { %2954 = vadd.xlane.f32.xlu0 %v2953_v13 }
0x316b   :  { %v2913_v46 = vpop.xlane.xlu0 %2912 }
0x316c   :  { %v2914_v10 = vsel %vm2894_vm12, %v2913_v46, %v2864_v22 }
0x316d   :  { %v2961_v39 = vmul.f32 %v2941_v50, %v2914_v10 }
0x316f   :  { %2962 = vadd.xlane.f32.xlu0 %v2961_v39 }
0x3173   :  { %v2921_v27 = vpop.xlane.xlu0 %2920 }
0x3174   :  { %v2922_v34 = vsel %vm2894_vm12, %v2921_v27, %v2872_v36  ;;  %v2990_v36 = vld [vmem:[#allocation2 + $0x58] ss:$0 sm:$0xff] }
0x3175   :  { %v2969_v14 = vmul.f32 %v2941_v50, %v2922_v34  ;;  %v2991_v21 = vxor.u32 2147483648, %v2990_v36 }
0x3177   :  { %2970 = vadd.xlane.f32.xlu0 %v2969_v14 }
0x317b   :  { %v2929_v28 = vpop.xlane.xlu0 %2928 }
0x317c   :  { %v2930_v32 = vsel %vm2894_vm12, %v2929_v28, %v2880_v33 }
0x317d   :  { %v2977_v55 = vmul.f32 %v2941_v50, %v2930_v32 }
0x317f   :  { %v2897_v3 = vpop.xlane.xlu0 %2896  ;;  %2978 = vadd.xlane.f32.xlu0 %v2977_v55 }
0x3180   :  { %v2898_v59 = vsel %vm2894_vm12, %v2897_v3, %v2848_v44 }
0x3181   :  { %v2945_v38 = vmul.f32 %v2941_v50, %v2898_v59 }
0x3183   :  { %2946 = vadd.xlane.f32.xlu0 %v2945_v38  ;;  %v2937_v22 = vpop.xlane.xlu0 %2936 }
0x3184   :  { %v2938_v54 = vsel %vm2894_vm12, %v2937_v22, %v2888_v12  ;;  %vm3422_vm12 = vweird.f32 %v4361_v61 }
0x3185   :  { %v2985_v6 = vmul.f32 %v2941_v50, %v2938_v54 }
0x3187   :  { %2986 = vadd.xlane.f32.xlu0 %v2985_v6 }
0x3195   :  { %v2951_v24 = vpop.xlane.xlu1 %2950 }
0x3196   :  { %v2952_v33 = vsel %vm2944_vm1, %v2951_v24, %v2902_v42 }
0x3197   :  { %v2999_v9 = vmul.f32 %v2991_v21, %v2952_v33 }
0x3199   :  { %3000 = vadd.xlane.f32.xlu0 %v2999_v9  ;;  %v2959_v18 = vpop.xlane.xlu1 %2958 }
0x319a   :  { %v2960_v44 = vsel %vm2944_vm1, %v2959_v18, %v2910_v47 }
0x319b   :  { %v3007_v16 = vmul.f32 %v2991_v21, %v2960_v44 }
0x319d   :  { %3008 = vadd.xlane.f32.xlu0 %v3007_v16  ;;  %v2967_v57 = vpop.xlane.xlu1 %2966 }
0x319e   :  { %v2968_v12 = vsel %vm2944_vm1, %v2967_v57, %v2918_v60  ;;  %v3039_v60 = vmul.f32 %v2991_v21, %v358_v19 }
0x319f   :  { %v3015_v50 = vmul.f32 %v2991_v21, %v2968_v12 }
0x31a1   :  { %3016 = vadd.xlane.f32.xlu0 %v3015_v50  ;;  %v2975_v41 = vpop.xlane.xlu1 %2974 }
0x31a2   :  { %v2976_v17 = vsel %vm2944_vm1, %v2975_v41, %v2926_v63 }
0x31a3   :  { %v3023_v11 = vmul.f32 %v2991_v21, %v2976_v17 }
0x31a5   :  { %3024 = vadd.xlane.f32.xlu0 %v3023_v11  ;;  %v2983_v42 = vpop.xlane.xlu1 %2982 }
0x31a6   :  { %v2984_v47 = vsel %vm2944_vm1, %v2983_v42, %v2934_v20 }
0x31a7   :  { %v3031_v13 = vmul.f32 %v2991_v21, %v2984_v47 }
0x31a9   :  { %3032 = vadd.xlane.f32.xlu0 %v3031_v13 }
0x31ad   :  { %3040 = vadd.xlane.f32.xlu0 %v3039_v60 }
0x31f4   :  { %v2955_v46 = vpop.xlane.xlu0 %2954 }
0x31f5   :  { %v2956_v39 = vsel %vm2944_vm1, %v2955_v46, %v2906_v25 }
0x31f6   :  { %v3003_v63 = vmul.f32 %v2991_v21, %v2956_v39 }
0x31f8   :  { %3004 = vadd.xlane.f32.xlu1 %v3003_v63 }
0x31fc   :  { %v2963_v27 = vpop.xlane.xlu0 %2962 }
0x31fd   :  { %v2964_v23 = vsel %vm2944_vm1, %v2963_v27, %v2914_v10 }
0x31fe   :  { %v3011_v14 = vmul.f32 %v2991_v21, %v2964_v23 }
0x3200   :  { %3012 = vadd.xlane.f32.xlu1 %v3011_v14 }
0x3204   :  { %v2971_v28 = vpop.xlane.xlu0 %2970 }
0x3205   :  { %v2972_v53 = vsel %vm2944_vm1, %v2971_v28, %v2922_v34  ;;  %v3044_v34 = vld [vmem:[#allocation2 + $0x59] ss:$0 sm:$0xff] }
0x3206   :  { %v3019_v20 = vmul.f32 %v2991_v21, %v2972_v53  ;;  %v3045_v9 = vxor.u32 2147483648, %v3044_v34 }
0x3208   :  { %3020 = vadd.xlane.f32.xlu1 %v3019_v20 }
0x320c   :  { %v2979_v55 = vpop.xlane.xlu0 %2978 }
0x320d   :  { %v2980_v3 = vsel %vm2944_vm1, %v2979_v55, %v2930_v32 }
0x320e   :  { %v3027_v38 = vmul.f32 %v2991_v21, %v2980_v3 }
0x3210   :  { %v2947_v25 = vpop.xlane.xlu0 %2946  ;;  %3028 = vadd.xlane.f32.xlu1 %v3027_v38 }
0x3211   :  { %v2948_v22 = vsel %vm2944_vm1, %v2947_v25, %v2898_v59 }
0x3212   :  { %v2995_v6 = vmul.f32 %v2991_v21, %v2948_v22 }
0x3214   :  { %v2987_v10 = vpop.xlane.xlu0 %2986  ;;  %2996 = vadd.xlane.f32.xlu1 %v2995_v6 }
0x3215   :  { %v2988_v36 = vsel %vm2944_vm1, %v2987_v10, %v2938_v54  ;;  %vm3392_vm1 = vweird.f32 %v3686_v56 }
0x3216   :  { %v3035_v24 = vmul.f32 %v2991_v21, %v2988_v36 }
0x3218   :  { %3036 = vadd.xlane.f32.xlu1 %v3035_v24 }
0x3226   :  { %v3001_v18 = vpop.xlane.xlu0 %3000 }
0x3227   :  { %v3002_v32 = vsel %vm2994_vm0, %v3001_v18, %v2952_v33 }
0x3228   :  { %v3053_v16 = vmul.f32 %v3045_v9, %v3002_v32 }
0x322a   :  { %v3009_v57 = vpop.xlane.xlu0 %3008  ;;  %3054 = vadd.xlane.f32.xlu0 %v3053_v16 }
0x322b   :  { %v3010_v59 = vsel %vm2994_vm0, %v3009_v57, %v2960_v44 }
0x322c   :  { %v3061_v50 = vmul.f32 %v3045_v9, %v3010_v59 }
0x322e   :  { %v3017_v41 = vpop.xlane.xlu0 %3016  ;;  %3062 = vadd.xlane.f32.xlu0 %v3061_v50 }
0x322f   :  { %v3018_v54 = vsel %vm2994_vm0, %v3017_v41, %v2968_v12 }
0x3230   :  { %v3069_v21 = vmul.f32 %v3045_v9, %v3018_v54 }
0x3232   :  { %v3025_v11 = vpop.xlane.xlu0 %3024  ;;  %3070 = vadd.xlane.f32.xlu0 %v3069_v21 }
0x3233   :  { %v3026_v42 = vsel %vm2994_vm0, %v3025_v11, %v2976_v17 }
0x3234   :  { %v3077_v13 = vmul.f32 %v3045_v9, %v3026_v42 }
0x3236   :  { %3078 = vadd.xlane.f32.xlu0 %v3077_v13  ;;  %v3033_v33 = vpop.xlane.xlu0 %3032 }
0x3237   :  { %v3034_v60 = vsel %vm2994_vm0, %v3033_v33, %v2984_v47 }
0x3238   :  { %v3085_v46 = vmul.f32 %v3045_v9, %v3034_v60 }
0x323a   :  { %3086 = vadd.xlane.f32.xlu0 %v3085_v46  ;;  %v3041_v44 = vpop.xlane.xlu0 %3040 }
0x323b   :  { %v3042_v63 = vsel %vm2994_vm0, %v3041_v44, %v358_v19 }
0x323c   :  { %v3093_v27 = vmul.f32 %v3045_v9, %v3042_v63 }
0x323e   :  { %3094 = vadd.xlane.f32.xlu0 %v3093_v27 }
0x3285   :  { %v3005_v12 = vpop.xlane.xlu1 %3004 }
0x3286   :  { %v3006_v14 = vsel %vm2994_vm0, %v3005_v12, %v2956_v39 }
0x3287   :  { %v3057_v28 = vmul.f32 %v3045_v9, %v3006_v14 }
0x3289   :  { %3058 = vadd.xlane.f32.xlu1 %v3057_v28 }
0x328d   :  { %v3013_v17 = vpop.xlane.xlu1 %3012 }
0x328e   :  { %v3014_v20 = vsel %vm2994_vm0, %v3013_v17, %v2964_v23 }
0x328f   :  { %v3065_v55 = vmul.f32 %v3045_v9, %v3014_v20 }
0x3291   :  { %3066 = vadd.xlane.f32.xlu1 %v3065_v55 }
0x3295   :  { %v3021_v47 = vpop.xlane.xlu1 %3020 }
0x3296   :  { %v3022_v38 = vsel %vm2994_vm0, %v3021_v47, %v2972_v53  ;;  %v3098_v53 = vld [vmem:[#allocation2 + $0x5a] ss:$0 sm:$0xff] }
0x3297   :  { %v3073_v25 = vmul.f32 %v3045_v9, %v3022_v38  ;;  %v3099_v57 = vxor.u32 2147483648, %v3098_v53 }
0x3299   :  { %3074 = vadd.xlane.f32.xlu1 %v3073_v25 }
0x329d   :  { %v3029_v19 = vpop.xlane.xlu1 %3028 }
0x329e   :  { %v3030_v6 = vsel %vm2994_vm0, %v3029_v19, %v2980_v3 }
0x329f   :  { %v3081_v10 = vmul.f32 %v3045_v9, %v3030_v6 }
0x32a1   :  { %3082 = vadd.xlane.f32.xlu1 %v3081_v10  ;;  %v2997_v39 = vpop.xlane.xlu1 %2996 }
0x32a2   :  { %v2998_v24 = vsel %vm2994_vm0, %v2997_v39, %v2948_v22 }
0x32a3   :  { %v3049_v34 = vmul.f32 %v3045_v9, %v2998_v24 }
0x32a5   :  { %3050 = vadd.xlane.f32.xlu1 %v3049_v34  ;;  %v3037_v23 = vpop.xlane.xlu1 %3036 }
0x32a6   :  { %v3038_v18 = vsel %vm2994_vm0, %v3037_v23, %v2988_v36  ;;  %vm3416_vm0 = vweird.f32 %v4200_v48 }
0x32a7   :  { %v3089_v16 = vmul.f32 %v3045_v9, %v3038_v18 }
0x32a9   :  { %3090 = vadd.xlane.f32.xlu1 %v3089_v16 }
0x32b7   :  { %v3055_v50 = vpop.xlane.xlu0 %3054 }
0x32b8   :  { %v3056_v3 = vsel %vm3048_vm2, %v3055_v50, %v3002_v32 }
0x32b9   :  { %v3107_v41 = vmul.f32 %v3099_v57, %v3056_v3 }
0x32bb   :  { %3108 = vadd.xlane.f32.xlu0 %v3107_v41  ;;  %v3063_v21 = vpop.xlane.xlu0 %3062 }
0x32bc   :  { %v3064_v22 = vsel %vm3048_vm2, %v3063_v21, %v3010_v59 }
0x32bd   :  { %v3115_v11 = vmul.f32 %v3099_v57, %v3064_v22 }
0x32bf   :  { %3116 = vadd.xlane.f32.xlu0 %v3115_v11  ;;  %v3071_v13 = vpop.xlane.xlu0 %3070 }
0x32c0   :  { %v3072_v36 = vsel %vm3048_vm2, %v3071_v13, %v3018_v54 }
0x32c1   :  { %v3123_v9 = vmul.f32 %v3099_v57, %v3072_v36 }
0x32c3   :  { %3124 = vadd.xlane.f32.xlu0 %v3123_v9  ;;  %v3079_v33 = vpop.xlane.xlu0 %3078 }
0x32c4   :  { %v3080_v46 = vsel %vm3048_vm2, %v3079_v33, %v3026_v42 }
0x32c5   :  { %v3131_v44 = vmul.f32 %v3099_v57, %v3080_v46 }
0x32c7   :  { %3132 = vadd.xlane.f32.xlu0 %v3131_v44  ;;  %v3087_v32 = vpop.xlane.xlu0 %3086 }
0x32c8   :  { %v3088_v27 = vsel %vm3048_vm2, %v3087_v32, %v3034_v60 }
0x32c9   :  { %v3139_v12 = vmul.f32 %v3099_v57, %v3088_v27 }
0x32cb   :  { %3140 = vadd.xlane.f32.xlu0 %v3139_v12  ;;  %v3095_v59 = vpop.xlane.xlu0 %3094 }
0x32cc   :  { %v3096_v28 = vsel %vm3048_vm2, %v3095_v59, %v3042_v63 }
0x32cd   :  { %v3147_v17 = vmul.f32 %v3099_v57, %v3096_v28 }
0x32cf   :  { %3148 = vadd.xlane.f32.xlu0 %v3147_v17 }
0x3316   :  { %v3059_v54 = vpop.xlane.xlu1 %3058 }
0x3317   :  { %v3060_v55 = vsel %vm3048_vm2, %v3059_v54, %v3006_v14 }
0x3318   :  { %v3111_v47 = vmul.f32 %v3099_v57, %v3060_v55 }
0x331a   :  { %3112 = vadd.xlane.f32.xlu1 %v3111_v47 }
0x331e   :  { %v3067_v42 = vpop.xlane.xlu1 %3066 }
0x331f   :  { %v3068_v25 = vsel %vm3048_vm2, %v3067_v42, %v3014_v20 }
0x3320   :  { %v3119_v19 = vmul.f32 %v3099_v57, %v3068_v25 }
0x3322   :  { %3120 = vadd.xlane.f32.xlu1 %v3119_v19 }
0x3326   :  { %v3075_v60 = vpop.xlane.xlu1 %3074 }
0x3327   :  { %v3076_v10 = vsel %vm3048_vm2, %v3075_v60, %v3022_v38  ;;  %v3152_v38 = vld [vmem:[#allocation2 + $0x5b] ss:$0 sm:$0xff] }
0x3328   :  { %v3127_v39 = vmul.f32 %v3099_v57, %v3076_v10  ;;  %v3153_v21 = vxor.u32 2147483648, %v3152_v38 }
0x332a   :  { %3128 = vadd.xlane.f32.xlu1 %v3127_v39 }
0x332e   :  { %v3083_v63 = vpop.xlane.xlu1 %3082 }
0x332f   :  { %v3084_v34 = vsel %vm3048_vm2, %v3083_v63, %v3030_v6 }
0x3330   :  { %v3135_v23 = vmul.f32 %v3099_v57, %v3084_v34 }
0x3332   :  { %3136 = vadd.xlane.f32.xlu1 %v3135_v23  ;;  %v3051_v14 = vpop.xlane.xlu1 %3050 }
0x3333   :  { %v3052_v16 = vsel %vm3048_vm2, %v3051_v14, %v2998_v24 }
0x3334   :  { %v3103_v53 = vmul.f32 %v3099_v57, %v3052_v16 }
0x3336   :  { %3104 = vadd.xlane.f32.xlu1 %v3103_v53  ;;  %v3091_v20 = vpop.xlane.xlu1 %3090 }
0x3337   :  { %v3092_v50 = vsel %vm3048_vm2, %v3091_v20, %v3038_v18  ;;  %vm3369_vm2 = vweird.f32 %v3569_v5 }
0x3338   :  { %v3143_v41 = vmul.f32 %v3099_v57, %v3092_v50 }
0x333a   :  { %3144 = vadd.xlane.f32.xlu1 %v3143_v41 }
0x3348   :  { %v3109_v11 = vpop.xlane.xlu0 %3108 }
0x3349   :  { %v3110_v6 = vsel %vm3102_vm3, %v3109_v11, %v3056_v3 }
0x334a   :  { %v3161_v13 = vmul.f32 %v3153_v21, %v3110_v6 }
0x334c   :  { %3162 = vadd.xlane.f32.xlu0 %v3161_v13  ;;  %v3117_v9 = vpop.xlane.xlu0 %3116 }
0x334d   :  { %v3118_v24 = vsel %vm3102_vm3, %v3117_v9, %v3064_v22 }
0x334e   :  { %v3169_v33 = vmul.f32 %v3153_v21, %v3118_v24 }
0x3350   :  { %3170 = vadd.xlane.f32.xlu0 %v3169_v33  ;;  %v3125_v44 = vpop.xlane.xlu0 %3124 }
0x3351   :  { %v3126_v18 = vsel %vm3102_vm3, %v3125_v44, %v3072_v36 }
0x3352   :  { %v3177_v57 = vmul.f32 %v3153_v21, %v3126_v18 }
0x3354   :  { %3178 = vadd.xlane.f32.xlu0 %v3177_v57  ;;  %v3133_v32 = vpop.xlane.xlu0 %3132 }
0x3355   :  { %v3134_v12 = vsel %vm3102_vm3, %v3133_v32, %v3080_v46 }
0x3356   :  { %v3185_v59 = vmul.f32 %v3153_v21, %v3134_v12 }
0x3358   :  { %3186 = vadd.xlane.f32.xlu0 %v3185_v59  ;;  %v3141_v3 = vpop.xlane.xlu0 %3140 }
0x3359   :  { %v3142_v17 = vsel %vm3102_vm3, %v3141_v3, %v3088_v27 }
0x335a   :  { %v3193_v54 = vmul.f32 %v3153_v21, %v3142_v17 }
0x335c   :  { %3194 = vadd.xlane.f32.xlu0 %v3193_v54  ;;  %v3149_v22 = vpop.xlane.xlu0 %3148 }
0x335d   :  { %v3150_v47 = vsel %vm3102_vm3, %v3149_v22, %v3096_v28 }
0x335e   :  { %v3201_v42 = vmul.f32 %v3153_v21, %v3150_v47 }
0x3360   :  { %3202 = vadd.xlane.f32.xlu0 %v3201_v42 }
0x33a7   :  { %v3113_v36 = vpop.xlane.xlu1 %3112 }
0x33a8   :  { %v3114_v19 = vsel %vm3102_vm3, %v3113_v36, %v3060_v55 }
0x33a9   :  { %v3165_v60 = vmul.f32 %v3153_v21, %v3114_v19 }
0x33ab   :  { %3166 = vadd.xlane.f32.xlu1 %v3165_v60 }
0x33af   :  { %v3121_v46 = vpop.xlane.xlu1 %3120 }
0x33b0   :  { %v3122_v39 = vsel %vm3102_vm3, %v3121_v46, %v3068_v25 }
0x33b1   :  { %v3173_v63 = vmul.f32 %v3153_v21, %v3122_v39 }
0x33b3   :  { %3174 = vadd.xlane.f32.xlu1 %v3173_v63 }
0x33b7   :  { %v3129_v27 = vpop.xlane.xlu1 %3128 }
0x33b8   :  { %v3130_v23 = vsel %vm3102_vm3, %v3129_v27, %v3076_v10  ;;  %v3206_v10 = vld [vmem:[#allocation2 + $0x5c] ss:$0 sm:$0xff] }
0x33b9   :  { %v3181_v14 = vmul.f32 %v3153_v21, %v3130_v23  ;;  %v3207_v9 = vxor.u32 2147483648, %v3206_v10 }
0x33bb   :  { %3182 = vadd.xlane.f32.xlu1 %v3181_v14 }
0x33bf   :  { %v3137_v28 = vpop.xlane.xlu1 %3136 }
0x33c0   :  { %v3138_v53 = vsel %vm3102_vm3, %v3137_v28, %v3084_v34 }
0x33c1   :  { %v3189_v20 = vmul.f32 %v3153_v21, %v3138_v53 }
0x33c3   :  { %3190 = vadd.xlane.f32.xlu1 %v3189_v20  ;;  %v3105_v55 = vpop.xlane.xlu1 %3104 }
0x33c4   :  { %v3106_v41 = vsel %vm3102_vm3, %v3105_v55, %v3052_v16 }
0x33c5   :  { %v3157_v38 = vmul.f32 %v3153_v21, %v3106_v41 }
0x33c7   :  { %3158 = vadd.xlane.f32.xlu1 %v3157_v38  ;;  %v3145_v25 = vpop.xlane.xlu1 %3144 }
0x33c8   :  { %v3146_v11 = vsel %vm3102_vm3, %v3145_v25, %v3092_v50  ;;  %vm3428_vm3 = vweird.f32 %v4558_v40 }
0x33c9   :  { %v3197_v13 = vmul.f32 %v3153_v21, %v3146_v11 }
0x33cb   :  { %3198 = vadd.xlane.f32.xlu1 %v3197_v13 }
0x33d9   :  { %v3163_v33 = vpop.xlane.xlu0 %3162 }
0x33da   :  { %v3164_v34 = vsel %vm3156_vm4, %v3163_v33, %v3110_v6 }
0x33db   :  { %v3215_v44 = vmul.f32 %v3207_v9, %v3164_v34 }
0x33dd   :  { %3216 = vadd.xlane.f32.xlu0 %v3215_v44  ;;  %v3171_v57 = vpop.xlane.xlu0 %3170 }
0x33de   :  { %v3172_v16 = vsel %vm3156_vm4, %v3171_v57, %v3118_v24 }
0x33df   :  { %v3223_v32 = vmul.f32 %v3207_v9, %v3172_v16 }
0x33e1   :  { %3224 = vadd.xlane.f32.xlu0 %v3223_v32  ;;  %v3179_v59 = vpop.xlane.xlu0 %3178 }
0x33e2   :  { %v3180_v50 = vsel %vm3156_vm4, %v3179_v59, %v3126_v18 }
0x33e3   :  { %v3231_v21 = vmul.f32 %v3207_v9, %v3180_v50 }
0x33e5   :  { %3232 = vadd.xlane.f32.xlu0 %v3231_v21  ;;  %v3187_v3 = vpop.xlane.xlu0 %3186 }
0x33e6   :  { %v3188_v54 = vsel %vm3156_vm4, %v3187_v3, %v3134_v12 }
0x33e7   :  { %v3239_v22 = vmul.f32 %v3207_v9, %v3188_v54 }
0x33e9   :  { %3240 = vadd.xlane.f32.xlu0 %v3239_v22  ;;  %v3195_v6 = vpop.xlane.xlu0 %3194 }
0x33ea   :  { %v3196_v42 = vsel %vm3156_vm4, %v3195_v6, %v3142_v17 }
0x33eb   :  { %v3247_v36 = vmul.f32 %v3207_v9, %v3196_v42 }
0x33ed   :  { %3248 = vadd.xlane.f32.xlu0 %v3247_v36  ;;  %v3203_v24 = vpop.xlane.xlu0 %3202 }
0x33ee   :  { %v3204_v60 = vsel %vm3156_vm4, %v3203_v24, %v3150_v47 }
0x33ef   :  { %v3255_v46 = vmul.f32 %v3207_v9, %v3204_v60 }
0x33f1   :  { %3256 = vadd.xlane.f32.xlu0 %v3255_v46 }
0x3438   :  { %v3167_v18 = vpop.xlane.xlu1 %3166 }
0x3439   :  { %v3168_v63 = vsel %vm3156_vm4, %v3167_v18, %v3114_v19 }
0x343a   :  { %v3219_v27 = vmul.f32 %v3207_v9, %v3168_v63 }
0x343c   :  { %3220 = vadd.xlane.f32.xlu1 %v3219_v27 }
0x3440   :  { %v3175_v12 = vpop.xlane.xlu1 %3174 }
0x3441   :  { %v3176_v14 = vsel %vm3156_vm4, %v3175_v12, %v3122_v39 }
0x3442   :  { %v3227_v28 = vmul.f32 %v3207_v9, %v3176_v14 }
0x3444   :  { %3228 = vadd.xlane.f32.xlu1 %v3227_v28 }
0x3448   :  { %v3183_v17 = vpop.xlane.xlu1 %3182 }
0x3449   :  { %v3184_v20 = vsel %vm3156_vm4, %v3183_v17, %v3130_v23  ;;  %v3260_v23 = vld [vmem:[#allocation2 + $0x5d] ss:$0 sm:$0xff] }
0x344a   :  { %v3235_v55 = vmul.f32 %v3207_v9, %v3184_v20  ;;  %v3261_v57 = vxor.u32 2147483648, %v3260_v23 }
0x344c   :  { %3236 = vadd.xlane.f32.xlu1 %v3235_v55 }
0x3450   :  { %v3191_v47 = vpop.xlane.xlu1 %3190 }
0x3451   :  { %v3192_v38 = vsel %vm3156_vm4, %v3191_v47, %v3138_v53 }
0x3452   :  { %v3243_v25 = vmul.f32 %v3207_v9, %v3192_v38 }
0x3454   :  { %3244 = vadd.xlane.f32.xlu1 %v3243_v25  ;;  %v3159_v19 = vpop.xlane.xlu1 %3158 }
0x3455   :  { %v3160_v13 = vsel %vm3156_vm4, %v3159_v19, %v3106_v41 }
0x3456   :  { %v3211_v10 = vmul.f32 %v3207_v9, %v3160_v13 }
0x3458   :  { %3212 = vadd.xlane.f32.xlu1 %v3211_v10  ;;  %v3199_v39 = vpop.xlane.xlu1 %3198 }
0x3459   :  { %v3200_v33 = vsel %vm3156_vm4, %v3199_v39, %v3146_v11 }
0x345a   :  { %v3251_v44 = vmul.f32 %v3207_v9, %v3200_v33 }
0x345c   :  { %3252 = vadd.xlane.f32.xlu1 %v3251_v44 }
0x346a   :  { %v3217_v32 = vpop.xlane.xlu0 %3216 }
0x346b   :  { %v3218_v53 = vsel %vm3210_vm5, %v3217_v32, %v3164_v34 }
0x346c   :  { %v3269_v59 = vmul.f32 %v3261_v57, %v3218_v53 }
0x346e   :  { %3270 = vadd.xlane.f32.xlu0 %v3269_v59  ;;  %v3225_v21 = vpop.xlane.xlu0 %3224 }
0x346f   :  { %v3226_v41 = vsel %vm3210_vm5, %v3225_v21, %v3172_v16 }
0x3470   :  { %v3277_v3 = vmul.f32 %v3261_v57, %v3226_v41 }
0x3472   :  { %3278 = vadd.xlane.f32.xlu0 %v3277_v3  ;;  %v3233_v22 = vpop.xlane.xlu0 %3232 }
0x3473   :  { %v3234_v11 = vsel %vm3210_vm5, %v3233_v22, %v3180_v50 }
0x3474   :  { %v3285_v9 = vmul.f32 %v3261_v57, %v3234_v11 }
0x3476   :  { %3286 = vadd.xlane.f32.xlu0 %v3285_v9  ;;  %v3241_v6 = vpop.xlane.xlu0 %3240 }
0x3477   :  { %v3242_v36 = vsel %vm3210_vm5, %v3241_v6, %v3188_v54 }
0x3478   :  { %v3293_v24 = vmul.f32 %v3261_v57, %v3242_v36 }
0x347a   :  { %3294 = vadd.xlane.f32.xlu0 %v3293_v24  ;;  %v3249_v34 = vpop.xlane.xlu0 %3248 }
0x347b   :  { %v3250_v46 = vsel %vm3210_vm5, %v3249_v34, %v3196_v42 }
0x347c   :  { %v3301_v18 = vmul.f32 %v3261_v57, %v3250_v46 }
0x347e   :  { %3302 = vadd.xlane.f32.xlu0 %v3301_v18  ;;  %v3257_v16 = vpop.xlane.xlu0 %3256 }
0x347f   :  { %v3258_v27 = vsel %vm3210_vm5, %v3257_v16, %v3204_v60 }
0x3480   :  { %v3309_v12 = vmul.f32 %v3261_v57, %v3258_v27 }
0x3482   :  { %3310 = vadd.xlane.f32.xlu0 %v3309_v12 }
0x34c9   :  { %v3221_v50 = vpop.xlane.xlu1 %3220 }
0x34ca   :  { %v3222_v28 = vsel %vm3210_vm5, %v3221_v50, %v3168_v63 }
0x34cb   :  { %v3273_v17 = vmul.f32 %v3261_v57, %v3222_v28 }
0x34cd   :  { %3274 = vadd.xlane.f32.xlu1 %v3273_v17 }
0x34d1   :  { %v3229_v54 = vpop.xlane.xlu1 %3228 }
0x34d2   :  { %v3230_v55 = vsel %vm3210_vm5, %v3229_v54, %v3176_v14 }
0x34d3   :  { %v3281_v47 = vmul.f32 %v3261_v57, %v3230_v55 }
0x34d5   :  { %3282 = vadd.xlane.f32.xlu1 %v3281_v47 }
0x34d9   :  { %v3237_v42 = vpop.xlane.xlu1 %3236 }
0x34da   :  { %v3238_v25 = vsel %vm3210_vm5, %v3237_v42, %v3184_v20  ;;  %v3314_v20 = vld [vmem:[#allocation2 + $0x5e] ss:$0 sm:$0xff] }
0x34db   :  { %v3289_v19 = vmul.f32 %v3261_v57, %v3238_v25  ;;  %v3315_v21 = vxor.u32 2147483648, %v3314_v20 }
0x34dd   :  { %3290 = vadd.xlane.f32.xlu1 %v3289_v19 }
0x34e1   :  { %v3245_v60 = vpop.xlane.xlu1 %3244 }
0x34e2   :  { %v3246_v10 = vsel %vm3210_vm5, %v3245_v60, %v3192_v38 }
0x34e3   :  { %v3297_v39 = vmul.f32 %v3261_v57, %v3246_v10 }
0x34e5   :  { %3298 = vadd.xlane.f32.xlu1 %v3297_v39  ;;  %v3213_v63 = vpop.xlane.xlu1 %3212 }
0x34e6   :  { %v3214_v44 = vsel %vm3210_vm5, %v3213_v63, %v3160_v13 }
0x34e7   :  { %v3265_v23 = vmul.f32 %v3261_v57, %v3214_v44 }
0x34e9   :  { %3266 = vadd.xlane.f32.xlu1 %v3265_v23  ;;  %v3253_v14 = vpop.xlane.xlu1 %3252 }
0x34ea   :  { %v3254_v32 = vsel %vm3210_vm5, %v3253_v14, %v3200_v33 }
0x34eb   :  { %v3305_v59 = vmul.f32 %v3261_v57, %v3254_v32 }
0x34ed   :  { %3306 = vadd.xlane.f32.xlu1 %v3305_v59 }
0x34fb   :  { %v3271_v3 = vpop.xlane.xlu0 %3270 }
0x34fc   :  { %v3272_v38 = vsel %vm3264_vm6, %v3271_v3, %v3218_v53 }
0x34fd   :  { %v3323_v22 = vmul.f32 %v3315_v21, %v3272_v38 }
0x34ff   :  { %3324 = vadd.xlane.f32.xlu0 %v3323_v22  ;;  %v3279_v9 = vpop.xlane.xlu0 %3278 }
0x3500   :  { %v3280_v13 = vsel %vm3264_vm6, %v3279_v9, %v3226_v41 }
0x3501   :  { %v3331_v6 = vmul.f32 %v3315_v21, %v3280_v13 }
0x3503   :  { %3332 = vadd.xlane.f32.xlu0 %v3331_v6  ;;  %v3287_v24 = vpop.xlane.xlu0 %3286 }
0x3504   :  { %v3288_v33 = vsel %vm3264_vm6, %v3287_v24, %v3234_v11 }
0x3505   :  { %v3339_v57 = vmul.f32 %v3315_v21, %v3288_v33 }
0x3507   :  { %3340 = vadd.xlane.f32.xlu0 %v3339_v57  ;;  %v3295_v34 = vpop.xlane.xlu0 %3294 }
0x3508   :  { %v3296_v18 = vsel %vm3264_vm6, %v3295_v34, %v3242_v36 }
0x3509   :  { %v3347_v16 = vmul.f32 %v3315_v21, %v3296_v18 }
0x350b   :  { %3348 = vadd.xlane.f32.xlu0 %v3347_v16  ;;  %v3303_v53 = vpop.xlane.xlu0 %3302 }
0x350c   :  { %v3304_v12 = vsel %vm3264_vm6, %v3303_v53, %v3250_v46 }
0x350d   :  { %v3355_v50 = vmul.f32 %v3315_v21, %v3304_v12 }
0x350f   :  { %3356 = vadd.xlane.f32.xlu0 %v3355_v50  ;;  %v3311_v41 = vpop.xlane.xlu0 %3310 }
0x3510   :  { %v3312_v17 = vsel %vm3264_vm6, %v3311_v41, %v3258_v27 }
0x3511   :  { %v3363_v54 = vmul.f32 %v3315_v21, %v3312_v17 }
0x3513   :  { %3364 = vadd.xlane.f32.xlu0 %v3363_v54 }
0x355a   :  { %v3275_v11 = vpop.xlane.xlu1 %3274 }
0x355b   :  { %v3276_v47 = vsel %vm3264_vm6, %v3275_v11, %v3222_v28 }
0x355c   :  { %v3327_v42 = vmul.f32 %v3315_v21, %v3276_v47 }
0x355e   :  { %3328 = vadd.xlane.f32.xlu1 %v3327_v42 }
0x3562   :  { %v3283_v36 = vpop.xlane.xlu1 %3282 }
0x3563   :  { %v4939_v19 = vsel %vm3264_vm6, %v3283_v36, %v3230_v55 }
0x3564   :  { %v3335_v46 = vmul.f32 %v3315_v21, %v4939_v19 }
0x3566   :  { %3336 = vadd.xlane.f32.xlu1 %v3335_v46 }
0x356a   :  { %v3291_v60 = vpop.xlane.xlu1 %3290 }
0x356b   :  { %v4944_v27 = vsel %vm3264_vm6, %v3291_v60, %v3238_v25 }
0x356c   :  { %v3343_v39 = vmul.f32 %v3315_v21, %v4944_v27 }
0x356e   :  { %3344 = vadd.xlane.f32.xlu1 %v3343_v39 }
0x3572   :  { %v3299_v63 = vpop.xlane.xlu1 %3298 }
0x3573   :  { %v4949_v28 = vsel %vm3264_vm6, %v3299_v63, %v3246_v10 }
0x3574   :  { %v3351_v23 = vmul.f32 %v3315_v21, %v4949_v28 }
0x3576   :  { %3352 = vadd.xlane.f32.xlu1 %v3351_v23  ;;  %v3267_v55 = vpop.xlane.xlu1 %3266 }
0x3577   :  { %v4954_v14 = vsel %vm3264_vm6, %v3267_v55, %v3214_v44 }
0x3578   :  { %v3319_v59 = vmul.f32 %v3315_v21, %v4954_v14 }
0x357a   :  { %3320 = vadd.xlane.f32.xlu1 %v3319_v59  ;;  %v3307_v25 = vpop.xlane.xlu1 %3306 }
0x357b   :  { %v4959_v20 = vsel %vm3264_vm6, %v3307_v25, %v3254_v32 }
0x357c   :  { %v3359_v3 = vmul.f32 %v3315_v21, %v4959_v20 }
0x357e   :  { %3360 = vadd.xlane.f32.xlu1 %v3359_v3 }
0x358c   :  { %v3325_v10 = vpop.xlane.xlu0 %3324 }
0x358d   :  { %v3326_v22 = vsel %vm3318_vm7, %v3325_v10, %v3272_v38 }
0x358e   :  { %v3373_v44 = vmul.f32 %v3599_v45, %v3326_v22 }
0x3590   :  { %v3375_v9 = vsel %vm3374_vm8, %v3326_v22, %v3373_v44  ;;  %v3333_v6 = vpop.xlane.xlu0 %3332 }
0x3591   :  { %3490 = vst [vmem:[%s5053_s1 + $0x8] sm:$0xff] %v3375_v9  ;;  %v3334_v32 = vsel %vm3318_vm7, %v3333_v6, %v3280_v13 }
0x3592   :  { %v3385_v21 = vmul.f32 %v3656_v37, %v3334_v32 }
0x3594   :  { %v3387_v24 = vsel %vm3386_vm9, %v3334_v32, %v3385_v21  ;;  %v3341_v57 = vpop.xlane.xlu0 %3340 }
0x3595   :  { %3494 = vst [vmem:[%s5053_s1 + $0x18] sm:$0xff] %v3387_v24  ;;  %v3342_v43 = vsel %vm3318_vm7, %v3341_v57, %v3288_v33 }
0x3596   :  { %v3397_v45 = vmul.f32 %v3784_v31, %v3342_v43 }
0x3598   :  { %v3399_v38 = vsel %vm3398_vm10, %v3342_v43, %v3397_v45  ;;  %v3349_v34 = vpop.xlane.xlu0 %3348 }
0x3599   :  { %3498 = vst [vmem:[%s5053_s1 + $0x28] sm:$0xff] %v3399_v38  ;;  %v3350_v35 = vsel %vm3318_vm7, %v3349_v34, %v3296_v18 }
0x359a   :  { %v3409_v37 = vmul.f32 %v4044_v51, %v3350_v35 }
0x359c   :  { %v3411_v13 = vsel %vm3410_vm11, %v3350_v35, %v3409_v37  ;;  %v3357_v16 = vpop.xlane.xlu0 %3356 }
0x359d   :  { %3502 = vst [vmem:[%s5053_s1 + $0x38] sm:$0xff] %v3411_v13  ;;  %v3358_v29 = vsel %vm3318_vm7, %v3357_v16, %v3304_v12 }
0x359e   :  { %v3421_v31 = vmul.f32 %v4368_v1, %v3358_v29 }
0x35a0   :  { %v3423_v33 = vsel %vm3422_vm12, %v3358_v29, %v3421_v31  ;;  %v3365_v53 = vpop.xlane.xlu0 %3364 }
0x35a1   :  { %3506 = vst [vmem:[%s5053_s1 + $0x48] sm:$0xff] %v3423_v33  ;;  %v3366_v49 = vsel %vm3318_vm7, %v3365_v53, %v3312_v17 }
0x35a2   :  { %v3433_v51 = vmul.f32 %v4756_v26, %v3366_v49 }
0x35a4   :  { %v3435_v18 = vsel %vm3434_vm13, %v3366_v49, %v3433_v51 }
0x35a5   :  { %3510 = vst [vmem:[%s5053_s1 + $0x58] sm:$0xff] %v3435_v18 }
0x35eb   :  { %v3329_v1 = vpop.xlane.xlu1 %3328 }
0x35ec   :  { %v3330_v61 = vsel %vm3318_vm7, %v3329_v1, %v3276_v47 }
0x35ed   :  { %v3379_v12 = vmul.f32 %v3624_v0, %v3330_v61 }
0x35ef   :  { %v3381_v50 = vsel %vm3380_vm14, %v3330_v61, %v3379_v12 }
0x35f0   :  { %3492 = vst [vmem:[%s5053_s1 + $0x10] sm:$0xff] %v3381_v50 }
0x35f3   :  { %v3337_v26 = vpop.xlane.xlu1 %3336 }
0x35f4   :  { %v3338_v15 = vsel %vm3318_vm7, %v3337_v26, %v4939_v19 }
0x35f5   :  { %v3391_v41 = vmul.f32 %v3692_v58, %v3338_v15 }
0x35f7   :  { %v3393_v17 = vsel %vm3392_vm1, %v3338_v15, %v3391_v41 }
0x35f8   :  { %3496 = vst [vmem:[%s5053_s1 + $0x20] sm:$0xff] %v3393_v17 }
0x35fb   :  { %v3345_v62 = vpop.xlane.xlu1 %3344 }
0x35fc   :  { %v3346_v0 = vsel %vm3318_vm7, %v3345_v62, %v4944_v27 }
0x35fd   :  { %v3403_v54 = vmul.f32 %v3913_v8, %v3346_v0 }
0x35ff   :  { %v3405_v11 = vsel %vm3404_vm15, %v3346_v0, %v3403_v54 }
0x3600   :  { %3500 = vst [vmem:[%s5053_s1 + $0x30] sm:$0xff] %v3405_v11 }
0x3603   :  { %v3353_v56 = vpop.xlane.xlu1 %3352 }
0x3604   :  { %v3354_v58 = vsel %vm3318_vm7, %v3353_v56, %v4949_v28 }
0x3605   :  { %v3415_v47 = vmul.f32 %v4207_v52, %v3354_v58 }
0x3607   :  { %v3417_v42 = vsel %vm3416_vm0, %v3354_v58, %v3415_v47  ;;  %v3321_v36 = vpop.xlane.xlu1 %3320 }
0x3608   :  { %3504 = vst [vmem:[%s5053_s1 + $0x40] sm:$0xff] %v3417_v42  ;;  %v3322_v4 = vsel %vm3318_vm7, %v3321_v36, %v4954_v14 }
0x3609   :  { %v3368_v8 = vmul.f32 %v3577_v7, %v3322_v4 }
0x360b   :  { %v3370_v19 = vsel %vm3369_vm2, %v3322_v4, %v3368_v8  ;;  %v3361_v46 = vpop.xlane.xlu1 %3360 }
0x360c   :  { %3488 = vst [vmem:[%s5053_s1] sm:$0xff] %v3370_v19  ;;  %v3362_v48 = vsel %vm3318_vm7, %v3361_v46, %v4959_v20 }
0x360d   :  { %v3427_v52 = vmul.f32 %v4565_v30, %v3362_v48 }
0x360f   :  { %v3429_v60 = vsel %vm3428_vm3, %v3362_v48, %v3427_v52 }
0x3610   :  { %3508 = vst [vmem:[%s5053_s1 + $0x50] sm:$0xff] %v3429_v60 }

// kernel: gkx_forward.3
= control target key start
LH: loop header
LB: loop body
LE: loop exit
PB: predicated region body
PF: predicated region fallthrough
CT: control target
= control target key end

     0   :  { %s921_s15 = smov 0   ;;  %s923_s16 = smov 0   ;;  %s1148_s0 = inlined_call_operand.vmem [shape: f32[95,256], index: 0, kind: input, shape index: {}]   ;;  %s1149_s1 = inlined_call_operand.vmem [shape: f32[256,95], index: 1, kind: input, shape index: {}]   ;;  %s1150_s2 = inlined_call_operand.vmem [shape: f32[1,256], index: 2, kind: input, shape index: {}]   ;;  %s1151_s3 = inlined_call_operand.vmem [shape: f32[95,95], index: 3, kind: output, shape index: {0}]   ;;  %s1152_s4 = inlined_call_operand.vmem [shape: f32[1,95], index: 4, kind: output, shape index: {1}]  }
   0x1   :  { %s925_s17 = smov 0  }
   0x2 LB: > { %s937_s18 = sadd.s32 4294967295, %s890_s17   ;;  %s940_s19 = sadd.s32 1, %s890_s17   ;;  %s890_s17 = sphi %s925_s17, %s1155_s17   ;;  %s886_s16 = sphi %s923_s16, %s1154_s16   ;;  %s882_s15 = sphi %s921_s15, %s1153_s15  }
   0x3   : > { %s19_s20 = ssub.s32 %s890_s17, %s940_s19  ;;  %s22_s21 = sadd.s32 1, %s886_s16 }
   0x4   : > { %p20_p0 = scmp.eq.s32.totalorder %s19_s20, 0  ;;  %p29_p1 = scmp.ne.s32.totalorder %s886_s16, %s882_s15 }
   0x5   : > { %p30_p2 = scmp.eq.s32.totalorder %s890_s17, 0  ;;  %p644_p4 = scmp.ge.s32.totalorder %s890_s17, 2 }
   0x6   : > { %s949_s22 = scalar_select %p20_p0, %s886_s16, %s22_s21  }
   0x7   : > { %p31_p3 = por %p30_p2, %p29_p1  ;;  %149 = sbr.rel (%p644_p4) target bundleno = 24 (0x18), region = 16 }
   0xe   : > { %152 = sbr.rel (!%p31_p3) target bundleno = 24 (0x18), region = 20  ;;  %s154_s23 = sand.u32 (%p31_p3), 1, %s886_s16  }
   0xf   : > { %s645_s24 = sshll.u32 (%p31_p3), %s890_s17, 3  ;;  %s838_s25 = smul.u32 (%p31_p3), 96, %s154_s23 }
  0x10   : > { %s158_s28 = scalar_lea.vmem (%p31_p3), %s1148_s0, %s645_s24 }
  0x11   : > { %v208_v0 = vld [vmem:[%s158_s28] sm:$0xff] (%p31_p3)  ;;  %v210_v1 = vld [vmem:[%s158_s28 + $0x10] sm:$0xff] (%p31_p3)  ;;  %s156_s29 = scalar_lea.vmem (%p31_p3), [#allocation2], %s838_s25 }
  0x12   : > { %v212_v2 = vld [vmem:[%s158_s28 + $0x20] sm:$0xff] (%p31_p3)  ;;  %v214_v3 = vld [vmem:[%s158_s28 + $0x30] sm:$0xff] (%p31_p3)  ;;  %209 = vst [vmem:[%s156_s29] sm:$0xff] (%p31_p3), %v208_v0  ;;  %211 = vst [vmem:[%s156_s29 + $0x8] sm:$0xff] (%p31_p3), %v210_v1 }
  0x13   : > { %v216_v4 = vld [vmem:[%s158_s28 + $0x40] sm:$0xff] (%p31_p3)  ;;  %v218_v5 = vld [vmem:[%s158_s28 + $0x50] sm:$0xff] (%p31_p3)  ;;  %213 = vst [vmem:[%s156_s29 + $0x10] sm:$0xff] (%p31_p3), %v212_v2  ;;  %215 = vst [vmem:[%s156_s29 + $0x18] sm:$0xff] (%p31_p3), %v214_v3 }
  0x14   : > { %217 = vst [vmem:[%s156_s29 + $0x20] sm:$0xff] (%p31_p3), %v216_v4  ;;  %219 = vst [vmem:[%s156_s29 + $0x28] sm:$0xff] (%p31_p3), %v218_v5  ;;  %v220_v6 = vld [vmem:[%s158_s28 + $0x60] sm:$0xff] (%p31_p3)  ;;  %v222_v7 = vld [vmem:[%s158_s28 + $0x70] sm:$0xff] (%p31_p3) }
  0x15   : > { %v224_v8 = vld [vmem:[%s158_s28 + $0x80] sm:$0xff]  ;;  %221 = vst [vmem:[%s156_s29 + $0x30] sm:$0xff] %v220_v6  ;;  %223 = vst [vmem:[%s156_s29 + $0x38] sm:$0xff] %v222_v7  ;;  %v226_v9 = vld [vmem:[%s158_s28 + $0x90] sm:$0xff] }
  0x16   : > { %225 = vst [vmem:[%s156_s29 + $0x40] sm:$0xff] %v224_v8  ;;  %v228_v10 = vld [vmem:[%s158_s28 + $0xa0] sm:$0xff]  ;;  %v230_v11 = vld [vmem:[%s158_s28 + $0xb0] sm:$0xff]  ;;  %227 = vst [vmem:[%s156_s29 + $0x48] sm:$0xff] %v226_v9 }
  0x17   : > { %229 = vst [vmem:[%s156_s29 + $0x50] sm:$0xff] %v228_v10  ;;  %231 = vst [vmem:[%s156_s29 + $0x58] sm:$0xff] %v230_v11 }
  0x18 PF: > { %p646_p5 = scmp.ge.s32.totalorder %s890_s17, 1  ;;  %p251_p6 = scmp.lt.s32.totalorder %s890_s17, 3 }
  0x1a   : > { %p252_p7 = pnand %p646_p5, %p251_p6 }
  0x1b   : > { %s258_s30 = sand.u32 (!%p252_p7), 1, %s882_s15   ;;  %s647_s5 = sshll.u32 (!%p252_p7), %s937_s18, 4 }
  0x1c   : > { %255 = sbr.rel (%p252_p7) target bundleno = 317 (0x13d), region = 66  ;;  %p287_p8 = scmp.lt.s32.totalorder (!%p252_p7), %s647_s5, 31 }
  0x1d   : > { %s839_s6 = smul.u32 (!%p252_p7), 96, %s258_s30  ;;  %p292_p9 = scmp.lt.s32.totalorder (!%p252_p7), %s937_s18, 1 }
  0x1e   : > { %p649_p10 = scmp.ne.s32.totalorder (!%p252_p7), %s937_s18, 0 }
  0x1f   : > { %s974_s17 = scalar_lea.vmem (!%p252_p7), [#allocation2], %s839_s6 }
  0x23   : > { %s1157_s5 = smov (!%p287_p8, %s647_s5), 31  ;;  %298 = sbr.rel (%p649_p10) target bundleno = 46 (0x2e), region = 74 }
  0x24   : > { %s963_s7 = scalar_select %p292_p9, %s937_s18, 1 }
  0x25   : > { %s648_s8 = sshll.u32 %s1157_s5, 3  ;;  %vm299_vm0 = vcmask (!%p649_p10), 777216   ;;  %vm311_vm1 = vcmask (!%p649_p10), 776192   ;;  %vm313_vm2 = vcmask (!%p649_p10), 770048   ;;  %v892_v12 = vmov (!%p649_p10), 0.0  }
  0x26   : > { %s968_s11 = scalar_lea.vmem %s1149_s1, %s648_s8  ;;  %s294_s14 = scalar_lea.vmem %s1150_s2, %s963_s7  ;;  %300 = vst.msk [vmem:[%s1151_s3] sm:$0xff] (!%p649_p10), %vm299_vm0, %v892_v12  ;;  %301 = vst.msk [vmem:[%s1151_s3 + $0x8] sm:$0xff] (!%p649_p10), %vm299_vm0, %v892_v12 }
  0x27   : > { %302 = vst.msk [vmem:[%s1151_s3 + $0x10] sm:$0xff] (!%p649_p10), %vm299_vm0, %v892_v12  ;;  %303 = vst.msk [vmem:[%s1151_s3 + $0x18] sm:$0xff] (!%p649_p10), %vm299_vm0, %v892_v12 }
  0x28   : > { %304 = vst.msk [vmem:[%s1151_s3 + $0x20] sm:$0xff] (!%p649_p10), %vm299_vm0, %v892_v12  ;;  %305 = vst.msk [vmem:[%s1151_s3 + $0x28] sm:$0xff] (!%p649_p10), %vm299_vm0, %v892_v12 }
  0x29   : > { %306 = vst.msk [vmem:[%s1151_s3 + $0x30] sm:$0xff] (!%p649_p10), %vm299_vm0, %v892_v12  ;;  %307 = vst.msk [vmem:[%s1151_s3 + $0x38] sm:$0xff] (!%p649_p10), %vm299_vm0, %v892_v12 }
  0x2a   : > { %308 = vst.msk [vmem:[%s1151_s3 + $0x40] sm:$0xff] %vm299_vm0, %v892_v12  ;;  %309 = vst.msk [vmem:[%s1151_s3 + $0x48] sm:$0xff] %vm299_vm0, %v892_v12 }
  0x2b   : > { %310 = vst.msk [vmem:[%s1151_s3 + $0x50] sm:$0xff] %vm299_vm0, %v892_v12 }
  0x2c   : > { %312 = vst.msk [vmem:[%s1151_s3 + $0x58] sm:$0x7f] %vm311_vm1, %v892_v12 }
  0x2d   : > { %314 = vst.msk [vmem:[%s1152_s4] sm:$0x1] %vm313_vm2, %v892_v12 }
  0x2e PF: > { %v315_v13 = vld [vmem:[%s968_s11] sm:$0xff]  ;;  %v316_v14 = vld [vmem:[%s968_s11 + $0x8] sm:$0xff]  ;;  %v317_v15 = vld [vmem:[%s968_s11 + $0x10] sm:$0xff]  ;;  %v893_v18 = vmov 0.0|0.0   ;;  %vm894_vm3 = vmmov 0   ;;  %v895_v19 = vmov 0.0  }
  0x2f   : > { %v782_v16 = vpack.c.bf16 %v316_v14, %v315_v13  ;;  %v318_v17 = vld [vmem:[%s968_s11 + $0x18] sm:$0xff]  ;;  %814 = vmatprep.subr.bf16.mxu1 %v893_v18  ;;  %779 = vmatprep.mubr.msk.f32.mxu1 %vm894_vm3, %v895_v19  ;;  %v319_v21 = vld [vmem:[%s968_s11 + $0x20] sm:$0xff]  ;;  %v320_v22 = vld [vmem:[%s968_s11 + $0x28] sm:$0xff]  ;;  %vm579_vm4 = vcmask 770048   ;;  %vm492_vm5 = vcmask 777216   ;;  %vm504_vm6 = vcmask 776192  }
  0x30   : > { %v786_v20 = vpack.c.bf16 %v318_v17, %v317_v15  ;;  %v790_v23 = vpack.c.bf16 %v320_v22, %v319_v21  ;;  %v343_v24 = vld [vmem:[%s974_s17] sm:$0xff]  ;;  %v321_v25 = vld [vmem:[%s968_s11 + $0x30] sm:$0xff]  ;;  %v322_v26 = vld [vmem:[%s968_s11 + $0x38] sm:$0xff] }
  0x31   : > { %783 = vmatprep.subr.bf16.mxu0 %v782_v16  ;;  %816 = vmatpush3.bf16.msra.mxu1 %v782_v16  ;;  %v794_v27 = vpack.c.bf16 %v322_v26, %v321_v25  ;;  %v323_v28 = vld [vmem:[%s968_s11 + $0x40] sm:$0xff]  ;;  %v324_v29 = vld [vmem:[%s968_s11 + $0x48] sm:$0xff]  ;;  %v325_v31 = vld [vmem:[%s968_s11 + $0x50] sm:$0xff] }
  0x32   : > { %785 = vmatpush3.bf16.msra.mxu0 %v782_v16  ;;  %817 = vmatprep.subr.bf16.mxu1 %v893_v18  ;;  %v798_v30 = vpack.c.bf16 %v324_v29, %v323_v28  ;;  %v326_v32 = vld [vmem:[%s968_s11 + $0x58] sm:$0xff]  ;;  %v327_v34 = vld [vmem:[%s968_s11 + $0x60] sm:$0xff]  ;;  %v328_v35 = vld [vmem:[%s968_s11 + $0x68] sm:$0xff] }
  0x33   : > { %787 = vmatprep.subr.bf16.mxu0 %v786_v20  ;;  %729 = vmatprep.mubr.f32.mxu0 %v343_v24  ;;  %v802_v33 = vpack.c.bf16 %v326_v32, %v325_v31  ;;  %v806_v36 = vpack.c.bf16 %v328_v35, %v327_v34  ;;  %v329_v37 = vld [vmem:[%s968_s11 + $0x70] sm:$0xff]  ;;  %v330_v38 = vld [vmem:[%s968_s11 + $0x78] sm:$0xff]  ;;  %v507_v40 = vld [vmem:[%s294_s14] sm:$0x1] }
  0x34   : > { %v810_v39 = vpack.c.bf16 %v330_v38, %v329_v37  ;;  %v344_v41 = vld [vmem:[%s974_s17 + $0x8] sm:$0xff]  ;;  %v345_v42 = vld [vmem:[%s974_s17 + $0x10] sm:$0xff]  ;;  %v346_v43 = vld [vmem:[%s974_s17 + $0x18] sm:$0xff] }
  0x35   : > { %819 = vmatpush3.bf16.msra.mxu1 %v786_v20  ;;  %v347_v44 = vld [vmem:[%s974_s17 + $0x20] sm:$0xff]  ;;  %v348_v45 = vld [vmem:[%s974_s17 + $0x28] sm:$0xff]  ;;  %v349_v46 = vld [vmem:[%s974_s17 + $0x30] sm:$0xff] }
  0x36   : > { %789 = vmatpush3.bf16.msra.mxu0 %v786_v20  ;;  %820 = vmatprep.subr.bf16.mxu1 %v893_v18  ;;  %v350_v47 = vld [vmem:[%s974_s17 + $0x38] sm:$0xff]  ;;  %v351_v48 = vld [vmem:[%s974_s17 + $0x40] sm:$0xff]  ;;  %v352_v49 = vld [vmem:[%s974_s17 + $0x48] sm:$0xff] }
  0x37   : > { %791 = vmatprep.subr.bf16.mxu0 %v790_v23  ;;  %v353_v50 = vld [vmem:[%s974_s17 + $0x50] sm:$0xff]  ;;  %v354_v51 = vld [vmem:[%s974_s17 + $0x58] sm:$0x7f]  ;;  %v506_v52 = vld [vmem:[%s1152_s4] sm:$0x1] }
  0x38   : > { %v332_v53 = vld [vmem:[%s1151_s3 + $0x8] sm:$0xff]  ;;  %v331_v54 = vld [vmem:[%s1151_s3] sm:$0xff]  ;;  %v334_v62 = vld [vmem:[%s1151_s3 + $0x18] sm:$0xff] }
  0x39   : > { %822 = vmatpush3.bf16.msra.mxu1 %v790_v23  ;;  %v333_v63 = vld [vmem:[%s1151_s3 + $0x10] sm:$0xff]  ;;  %v336_v4 = vld [vmem:[%s1151_s3 + $0x28] sm:$0xff]  ;;  %v335_v5 = vld [vmem:[%s1151_s3 + $0x20] sm:$0xff] }
  0x3a   : > { %793 = vmatpush3.bf16.msra.mxu0 %v790_v23  ;;  %823 = vmatprep.subr.bf16.mxu1 %v893_v18  ;;  %v338_v10 = vld [vmem:[%s1151_s3 + $0x38] sm:$0xff]  ;;  %v337_v11 = vld [vmem:[%s1151_s3 + $0x30] sm:$0xff]  ;;  %v340_v16 = vld [vmem:[%s1151_s3 + $0x48] sm:$0xff] }
  0x3b   : > { %795 = vmatprep.subr.bf16.mxu0 %v794_v27  ;;  %v339_v17 = vld [vmem:[%s1151_s3 + $0x40] sm:$0xff]  ;;  %v342_v22 = vld [vmem:[%s1151_s3 + $0x58] sm:$0x7f]  ;;  %v341_v23 = vld [vmem:[%s1151_s3 + $0x50] sm:$0xff] }
  0x3d   : > { %825 = vmatpush3.bf16.msra.mxu1 %v794_v27 }
  0x3e   : > { %797 = vmatpush3.bf16.msra.mxu0 %v794_v27  ;;  %826 = vmatprep.subr.bf16.mxu1 %v893_v18 }
  0x3f   : > { %799 = vmatprep.subr.bf16.mxu0 %v798_v30 }
  0x41   : > { %828 = vmatpush3.bf16.msra.mxu1 %v798_v30 }
  0x42   : > { %801 = vmatpush3.bf16.msra.mxu0 %v798_v30  ;;  %829 = vmatprep.subr.bf16.mxu1 %v893_v18 }
  0x43   : > { %803 = vmatprep.subr.bf16.mxu0 %v802_v33 }
  0x45   : > { %831 = vmatpush3.bf16.msra.mxu1 %v802_v33 }
  0x46   : > { %805 = vmatpush3.bf16.msra.mxu0 %v802_v33  ;;  %832 = vmatprep.subr.bf16.mxu1 %v893_v18 }
  0x47   : > { %807 = vmatprep.subr.bf16.mxu0 %v806_v36 }
  0x49   : > { %834 = vmatpush3.bf16.msra.mxu1 %v806_v36 }
  0x4a   : > { %809 = vmatpush3.bf16.msra.mxu0 %v806_v36  ;;  %835 = vmatprep.subr.bf16.mxu1 %v893_v18 }
  0x4b   : > { %811 = vmatprep.subr.bf16.mxu0 %v810_v39 }
  0x4d   : > { %837 = vmatpush3.bf16.msra.mxu1 %v810_v39 }
  0x4e   : > { %813 = vmatpush3.bf16.msra.mxu0 %v810_v39 }
  0x50   : > { %780 = vmatmul.mubr.f32.vlgmr.msra.gmra.mrb[0].mxu1 %v507_v40 }
  0x51   : > { %730 = vmatmul.mubr.f32.vlgmr.msra.gmra.mrb[0].mxu0 %v344_v41 }
  0x52   : > { %732 = vmatprep.mubr.f32.mxu0 %v345_v42 }
  0x55   : > { %733 = vmatmul.mubr.f32.gmra.mrb[2].mxu0 %v346_v43 }
  0x56   : > { %735 = vmatprep.mubr.f32.mxu0 %v347_v44 }
  0x59   : > { %736 = vmatmul.mubr.f32.gmra.mrb[4].mxu0 %v348_v45 }
  0x5a   : > { %738 = vmatprep.mubr.f32.mxu0 %v349_v46 }
  0x5d   : > { %739 = vmatmul.mubr.f32.gmra.mrb[6].mxu0 %v350_v47 }
  0x5e   : > { %741 = vmatprep.mubr.f32.mxu0 %v351_v48 }
  0x61   : > { %742 = vmatmul.mubr.f32.gmra.mrb[8].mxu0 %v352_v49 }
  0x62   : > { %744 = vmatprep.mubr.f32.mxu0 %v353_v50 }
  0x65   : > { %745 = vmatmul.mubr.f32.gmra.mrb[10].mxu0 %v354_v51 }
 0x123   : > { %v574_v55 = vpop.f32.mrb[0].mxu1 }
 0x124   : > { %v731_v56 = vpop.f32.mrb[0].mxu0  ;;  %v578_v57 = vadd.f32 %v574_v55, %v506_v52  ;;  %v781_v58 = vpop.f32.mrb[1].mxu1 }
 0x125   : > { %v481_v59 = vadd.f32 %v731_v56, %v332_v53  ;;  %v421_v60 = vpop.f32.mrb[1].mxu0 }
 0x126   : > { %v480_v61 = vadd.f32 %v421_v60, %v331_v54  ;;  %580 = vst.msk [vmem:[%s1152_s4] sm:$0x1] %vm579_vm4, %v578_v57 }
 0x127   : > { %494 = vst.msk [vmem:[%s1151_s3 + $0x8] sm:$0xff] %vm492_vm5, %v481_v59 }
 0x128   : > { %493 = vst.msk [vmem:[%s1151_s3] sm:$0xff] %vm492_vm5, %v480_v61  ;;  %v734_v0 = vpop.f32.mrb[2].mxu0 }
 0x129   : > { %v483_v1 = vadd.f32 %v734_v0, %v334_v62  ;;  %v431_v2 = vpop.f32.mrb[3].mxu0 }
 0x12a   : > { %v482_v3 = vadd.f32 %v431_v2, %v333_v63 }
 0x12b   : > { %496 = vst.msk [vmem:[%s1151_s3 + $0x18] sm:$0xff] %vm492_vm5, %v483_v1 }
 0x12c   : > { %495 = vst.msk [vmem:[%s1151_s3 + $0x10] sm:$0xff] %vm492_vm5, %v482_v3  ;;  %v737_v6 = vpop.f32.mrb[4].mxu0 }
 0x12d   : > { %v485_v7 = vadd.f32 %v737_v6, %v336_v4  ;;  %v441_v8 = vpop.f32.mrb[5].mxu0 }
 0x12e   : > { %v484_v9 = vadd.f32 %v441_v8, %v335_v5 }
 0x12f   : > { %498 = vst.msk [vmem:[%s1151_s3 + $0x28] sm:$0xff] %vm492_vm5, %v485_v7 }
 0x130   : > { %497 = vst.msk [vmem:[%s1151_s3 + $0x20] sm:$0xff] %vm492_vm5, %v484_v9  ;;  %v740_v12 = vpop.f32.mrb[6].mxu0 }
 0x131   : > { %v487_v13 = vadd.f32 %v740_v12, %v338_v10  ;;  %v451_v14 = vpop.f32.mrb[7].mxu0 }
 0x132   : > { %v486_v15 = vadd.f32 %v451_v14, %v337_v11 }
 0x133   : > { %500 = vst.msk [vmem:[%s1151_s3 + $0x38] sm:$0xff] %vm492_vm5, %v487_v13 }
 0x134   : > { %499 = vst.msk [vmem:[%s1151_s3 + $0x30] sm:$0xff] %vm492_vm5, %v486_v15  ;;  %v743_v18 = vpop.f32.mrb[8].mxu0 }
 0x135   : > { %v489_v19 = vadd.f32 %v743_v18, %v340_v16  ;;  %v461_v20 = vpop.f32.mrb[9].mxu0 }
 0x136   : > { %v488_v21 = vadd.f32 %v461_v20, %v339_v17 }
 0x137   : > { %502 = vst.msk [vmem:[%s1151_s3 + $0x48] sm:$0xff] %vm492_vm5, %v489_v19 }
 0x138   : > { %501 = vst.msk [vmem:[%s1151_s3 + $0x40] sm:$0xff] %vm492_vm5, %v488_v21  ;;  %v746_v24 = vpop.f32.mrb[10].mxu0 }
 0x139   : > { %v491_v25 = vadd.f32 %v746_v24, %v342_v22  ;;  %v471_v26 = vpop.f32.mrb[11].mxu0 }
 0x13a   : > { %v490_v27 = vadd.f32 %v471_v26, %v341_v23 }
 0x13b   : > { %505 = vst.msk [vmem:[%s1151_s3 + $0x58] sm:$0x7f] %vm504_vm6, %v491_v25 }
 0x13c   : > { %503 = vst.msk [vmem:[%s1151_s3 + $0x50] sm:$0xff] %vm492_vm5, %v490_v27 }
 0x13d PF: > { %p12_p11 = scmp.ge.s32.totalorder %s940_s19, 4   ;;  %s1153_s15 = smov %s886_s16 }
 0x13e   : > { %s1154_s16 = smov %s949_s22  ;;  %s1155_s17 = smov %s940_s19 }
 0x13f   :  { %14 = sbr.rel (!%p12_p11) target bundleno = 2 (0x2), region = 119 }

// kernel: custom-call.9
= control target key start
LH: loop header
LB: loop body
LE: loop exit
PB: predicated region body
PF: predicated region fallthrough
CT: control target
= control target key end

     0   :  { %v78_v0 = vlaneseq  ;;  %v3591_v10 = vmov -1.0   ;;  %v3592_v43 = vmov 0.0   ;;  %s5229_s0 = inlined_call_operand.vmem [shape: f32[1,95,95], index: 0, kind: input, shape index: {}]   ;;  %s5230_s1 = inlined_call_operand.vmem [shape: f32[1,95,95], index: 1, kind: output, shape index: {}]  }
   0x1   :  { %v73_v3 = vld [vmem:[%s5229_s0 + $0x58] sm:$0xff]  ;;  %v71_v32 = vld [vmem:[%s5229_s0 + $0x50] sm:$0xff] }
   0x2   :  { %v3603_v1 = vand.u32 127, %v78_v0  ;;  %v3605_v2 = vshrl.u32 %v78_v0, 7 }
   0x4   :  { %vm80_vm0 = vcmp.lt.s32.totalorder %v3603_v1, 95  ;;  %v259_v4 = vadd.s32 88, %v3605_v2  ;;  %vm356_vm4 = vcmp.eq.s32.totalorder %v3603_v1, 94  ;;  %vm364_vm6 = vcmp.eq.s32.totalorder %v3603_v1, 93 }
   0x5   :  { %v357_v11 = vsel %vm356_vm4, 1.0, %v3591_v10  ;;  %vm374_vm7 = vcmp.eq.s32.totalorder %v3603_v1, 92  ;;  %vm384_vm8 = vcmp.eq.s32.totalorder %v3603_v1, 91  ;;  %v243_v27 = vadd.s32 80, %v3605_v2 }
   0x6   :  { %vm260_vm1 = vcmp.eq.s32.totalorder %v259_v4, %v3603_v1  ;;  %vm265_vm2 = vcmp.le.s32.totalorder %v259_v4, %v3603_v1  ;;  %vm353_vm5 = vcmp.eq.s32.totalorder %v3603_v1, %v259_v4  ;;  %vm394_vm10 = vcmp.eq.s32.totalorder %v3603_v1, 90 }
   0x7   :  { %v262_v5 = vsel %vm260_vm1, %v73_v3, 0.0  ;;  %vm266_vm3 = vmand %vm265_vm2, %vm80_vm0  ;;  %v358_v12 = vsel %vm353_vm5, %v357_v11, 0.0  ;;  %vm244_vm9 = vcmp.eq.s32.totalorder %v243_v27, %v3603_v1  ;;  %vm249_vm11 = vcmp.le.s32.totalorder %v243_v27, %v3603_v1 }
   0x8   :  { %v267_v6 = vsel %vm266_vm3, %v73_v3, 0.0  ;;  %263 = vadd.xlane.f32.xlu0 %v262_v5  ;;  %v246_v33 = vsel %vm244_vm9, %v71_v32, 0.0  ;;  %vm250_vm12 = vmand %vm249_vm11, %vm80_vm0  ;;  %vm346_vm13 = vcmp.eq.s32.totalorder %v3603_v1, %v243_v27  ;;  %vm404_vm14 = vcmp.eq.s32.totalorder %v3603_v1, 89 }
   0x9   :  { %v251_v40 = vsel %vm250_vm12, %v71_v32, 0.0  ;;  %v347_v44 = vsel %vm346_vm13, -1.0, %v3592_v43  ;;  %vm424_vm15 = vcmp.eq.s32.totalorder %v3603_v1, 87  ;;  %vm414_vm1 = vcmp.eq.s32.totalorder %v3603_v1, 88 }
   0xa   :  { %vm438_vm2 = vcmp.eq.s32.totalorder %v3603_v1, 86  ;;  %vm452_vm3 = vcmp.eq.s32.totalorder %v3603_v1, 85  ;;  %vm466_vm4 = vcmp.eq.s32.totalorder %v3603_v1, 84  ;;  %vm480_vm5 = vcmp.eq.s32.totalorder %v3603_v1, 83 }
   0xb   :  { %vm522_vm12 = vcmp.eq.s32.totalorder %v3603_v1, 80  ;;  %vm536_vm13 = vcmp.eq.s32.totalorder %v3603_v1, 79 }
  0x95   :  { %v3616_v7 = vpop.xlane.xlu0 %263 }
  0x96   :  { %3567 = vrcp.f32 %v3616_v7 }
  0xa0   :  { %v3619_v8 = vpop.eup %3567 }
  0xa1   :  { %v269_v9 = vmul.f32 %v3619_v8, %v267_v6 }
  0xa3   :  { %270 = vst [vmem:[#allocation2 + $0x58] sm:$0xff] %v269_v9 }
  0xaa   :  { %v360_v13 = vld [vmem:[#allocation2 + $0x5d] ss:$0 sm:$0xff]  ;;  %v370_v16 = vld [vmem:[#allocation2 + $0x5c] ss:$0 sm:$0xff]  ;;  %v380_v21 = vld [vmem:[#allocation2 + $0x5b] ss:$0 sm:$0xff] }
  0xab   :  { %v361_v14 = vxor.u32 2147483648, %v360_v13  ;;  %v371_v18 = vxor.u32 2147483648, %v370_v16  ;;  %v381_v23 = vxor.u32 2147483648, %v380_v21  ;;  %v390_v26 = vld [vmem:[#allocation2 + $0x5a] ss:$0 sm:$0xff] }
  0xac   :  { %v391_v29 = vxor.u32 2147483648, %v390_v26  ;;  %v400_v34 = vld [vmem:[#allocation2 + $0x59] ss:$0 sm:$0xff]  ;;  %v410_v48 = vld [vmem:[#allocation2 + $0x58] ss:$0 sm:$0xff] }
  0xad   :  { %v365_v15 = vmul.f32 %v361_v14, %v358_v12  ;;  %v401_v36 = vxor.u32 2147483648, %v400_v34  ;;  %v411_v50 = vxor.u32 2147483648, %v410_v48  ;;  %v227_v34 = vadd.s32 72, %v3605_v2 }
  0xaf   :  { %366 = vadd.xlane.f32.xlu0 %v365_v15  ;;  %vm339_vm11 = vcmp.eq.s32.totalorder %v3603_v1, %v227_v34 }
 0x13c   :  { %v367_v17 = vpop.xlane.xlu0 %366 }
 0x13d   :  { %v368_v19 = vsel %vm364_vm6, %v367_v17, %v358_v12  ;;  %vm494_vm6 = vcmp.eq.s32.totalorder %v3603_v1, 82 }
 0x13e   :  { %v375_v20 = vmul.f32 %v371_v18, %v368_v19 }
 0x140   :  { %376 = vadd.xlane.f32.xlu1 %v375_v20 }
 0x1cd   :  { %v377_v22 = vpop.xlane.xlu1 %376 }
 0x1ce   :  { %v378_v24 = vsel %vm374_vm7, %v377_v22, %v368_v19  ;;  %vm228_vm7 = vcmp.eq.s32.totalorder %v227_v34, %v3603_v1 }
 0x1cf   :  { %v385_v25 = vmul.f32 %v381_v23, %v378_v24 }
 0x1d1   :  { %386 = vadd.xlane.f32.xlu1 %v385_v25 }
 0x25e   :  { %v387_v28 = vpop.xlane.xlu1 %386 }
 0x25f   :  { %v388_v30 = vsel %vm384_vm8, %v387_v28, %v378_v24  ;;  %vm233_vm8 = vcmp.le.s32.totalorder %v227_v34, %v3603_v1 }
 0x260   :  { %v395_v31 = vmul.f32 %v391_v29, %v388_v30  ;;  %vm234_vm9 = vmand %vm233_vm8, %vm80_vm0 }
 0x262   :  { %396 = vadd.xlane.f32.xlu0 %v395_v31 }
 0x266   :  { %247 = vadd.xlane.f32.xlu0 %v246_v33 }
 0x2ef   :  { %v397_v35 = vpop.xlane.xlu0 %396 }
 0x2f0   :  { %v398_v37 = vsel %vm394_vm10, %v397_v35, %v388_v30  ;;  %vm508_vm10 = vcmp.eq.s32.totalorder %v3603_v1, 81 }
 0x2f1   :  { %v405_v38 = vmul.f32 %v401_v36, %v398_v37 }
 0x2f3   :  { %406 = vadd.xlane.f32.xlu1 %v405_v38  ;;  %v3633_v39 = vpop.xlane.xlu0 %247 }
 0x2f4   :  { %3569 = vrcp.f32 %v3633_v39 }
 0x2fe   :  { %v3639_v41 = vpop.eup %3569 }
 0x2ff   :  { %v253_v42 = vmul.f32 %v3639_v41, %v251_v40  ;;  %v69_v40 = vld [vmem:[%s5229_s0 + $0x48] sm:$0xff] }
 0x301   :  { %254 = vst [vmem:[#allocation2 + $0x50] sm:$0xff] %v253_v42  ;;  %v230_v42 = vsel %vm228_vm7, %v69_v40, 0.0 }
 0x308   :  { %v420_v45 = vld [vmem:[#allocation2 + $0x57] ss:$0 sm:$0xff]  ;;  %v434_v53 = vld [vmem:[#allocation2 + $0x56] ss:$0 sm:$0xff]  ;;  %v448_v61 = vld [vmem:[#allocation2 + $0x55] ss:$0 sm:$0xff] }
 0x309   :  { %v421_v46 = vxor.u32 2147483648, %v420_v45  ;;  %v435_v54 = vxor.u32 2147483648, %v434_v53  ;;  %v449_v63 = vxor.u32 2147483648, %v448_v61  ;;  %v462_v9 = vld [vmem:[#allocation2 + $0x54] ss:$0 sm:$0xff] }
 0x30a   :  { %v463_v11 = vxor.u32 2147483648, %v462_v9  ;;  %v476_v17 = vld [vmem:[#allocation2 + $0x53] ss:$0 sm:$0xff]  ;;  %v490_v25 = vld [vmem:[#allocation2 + $0x52] ss:$0 sm:$0xff] }
 0x30b   :  { %v425_v47 = vmul.f32 %v421_v46, %v347_v44  ;;  %v477_v19 = vxor.u32 2147483648, %v476_v17  ;;  %v491_v27 = vxor.u32 2147483648, %v490_v25  ;;  %v504_v33 = vld [vmem:[#allocation2 + $0x51] ss:$0 sm:$0xff] }
 0x30c   :  { %v505_v36 = vxor.u32 2147483648, %v504_v33 }
 0x30d   :  { %426 = vadd.xlane.f32.xlu0 %v425_v47 }
 0x380   :  { %v407_v49 = vpop.xlane.xlu1 %406 }
 0x381   :  { %v408_v51 = vsel %vm404_vm14, %v407_v49, %v398_v37  ;;  %v235_v49 = vsel %vm234_vm9, %v69_v40, 0.0  ;;  %vm554_vm14 = vcmp.eq.s32.totalorder %v3603_v1, 78  ;;  %vm662_vm9 = vcmp.eq.s32.totalorder %v3603_v1, 72 }
 0x382   :  { %v415_v52 = vmul.f32 %v411_v50, %v408_v51 }
 0x384   :  { %416 = vadd.xlane.f32.xlu1 %v415_v52 }
 0x39a   :  { %v427_v55 = vpop.xlane.xlu0 %426 }
 0x39b   :  { %v428_v56 = vsel %vm424_vm15, %v427_v55, %v347_v44 }
 0x39c   :  { %v439_v57 = vmul.f32 %v435_v54, %v428_v56 }
 0x39e   :  { %440 = vadd.xlane.f32.xlu0 %v439_v57 }
 0x411   :  { %v417_v58 = vpop.xlane.xlu1 %416 }
 0x412   :  { %v418_v59 = vsel %vm414_vm1, %v417_v58, %v408_v51  ;;  %vm590_vm1 = vcmp.eq.s32.totalorder %v3603_v1, 76 }
 0x413   :  { %v429_v60 = vmul.f32 %v421_v46, %v418_v59 }
 0x415   :  { %430 = vadd.xlane.f32.xlu1 %v429_v60  ;;  %v340_v60 = vsel %vm339_vm11, -1.0, %v3592_v43  ;;  %vm702_vm11 = vcmp.eq.s32.totalorder %v3603_v1, 70 }
 0x42b   :  { %v441_v62 = vpop.xlane.xlu0 %440 }
 0x42c   :  { %v442_v0 = vsel %vm438_vm2, %v441_v62, %v428_v56 }
 0x42d   :  { %v453_v3 = vmul.f32 %v449_v63, %v442_v0 }
 0x42f   :  { %454 = vadd.xlane.f32.xlu0 %v453_v3 }
 0x4a2   :  { %v431_v4 = vpop.xlane.xlu1 %430 }
 0x4a3   :  { %v432_v5 = vsel %vm424_vm15, %v431_v4, %v418_v59  ;;  %vm572_vm15 = vcmp.eq.s32.totalorder %v3603_v1, 77 }
 0x4a4   :  { %v443_v6 = vmul.f32 %v435_v54, %v432_v5  ;;  %v518_v54 = vld [vmem:[#allocation2 + $0x50] ss:$0 sm:$0xff] }
 0x4a5   :  { %v519_v58 = vxor.u32 2147483648, %v518_v54 }
 0x4a6   :  { %444 = vadd.xlane.f32.xlu1 %v443_v6 }
 0x4bc   :  { %v455_v10 = vpop.xlane.xlu0 %454 }
 0x4bd   :  { %v456_v12 = vsel %vm452_vm3, %v455_v10, %v442_v0 }
 0x4be   :  { %v467_v13 = vmul.f32 %v463_v11, %v456_v12 }
 0x4c0   :  { %468 = vadd.xlane.f32.xlu0 %v467_v13 }
 0x533   :  { %v445_v14 = vpop.xlane.xlu1 %444 }
 0x534   :  { %v446_v15 = vsel %vm438_vm2, %v445_v14, %v432_v5  ;;  %vm608_vm2 = vcmp.eq.s32.totalorder %v3603_v1, 75 }
 0x535   :  { %v457_v16 = vmul.f32 %v449_v63, %v446_v15 }
 0x537   :  { %458 = vadd.xlane.f32.xlu1 %v457_v16 }
 0x54d   :  { %v469_v18 = vpop.xlane.xlu0 %468 }
 0x54e   :  { %v470_v20 = vsel %vm466_vm4, %v469_v18, %v456_v12 }
 0x54f   :  { %v481_v21 = vmul.f32 %v477_v19, %v470_v20 }
 0x551   :  { %482 = vadd.xlane.f32.xlu0 %v481_v21 }
 0x5c4   :  { %v459_v22 = vpop.xlane.xlu1 %458 }
 0x5c5   :  { %v460_v23 = vsel %vm452_vm3, %v459_v22, %v446_v15  ;;  %vm626_vm3 = vcmp.eq.s32.totalorder %v3603_v1, 74 }
 0x5c6   :  { %v471_v24 = vmul.f32 %v463_v11, %v460_v23 }
 0x5c8   :  { %472 = vadd.xlane.f32.xlu1 %v471_v24 }
 0x5de   :  { %v483_v26 = vpop.xlane.xlu0 %482 }
 0x5df   :  { %v484_v28 = vsel %vm480_vm5, %v483_v26, %v470_v20 }
 0x5e0   :  { %v495_v29 = vmul.f32 %v491_v27, %v484_v28 }
 0x5e2   :  { %496 = vadd.xlane.f32.xlu0 %v495_v29 }
 0x655   :  { %v473_v30 = vpop.xlane.xlu1 %472 }
 0x656   :  { %v474_v31 = vsel %vm466_vm4, %v473_v30, %v460_v23 }
 0x657   :  { %v485_v32 = vmul.f32 %v477_v19, %v474_v31 }
 0x659   :  { %486 = vadd.xlane.f32.xlu1 %v485_v32 }
 0x66f   :  { %v497_v35 = vpop.xlane.xlu0 %496 }
 0x670   :  { %v498_v37 = vsel %vm494_vm6, %v497_v35, %v484_v28 }
 0x671   :  { %v509_v38 = vmul.f32 %v505_v36, %v498_v37 }
 0x673   :  { %510 = vadd.xlane.f32.xlu0 %v509_v38 }
 0x677   :  { %231 = vadd.xlane.f32.xlu0 %v230_v42 }
 0x6e6   :  { %v487_v44 = vpop.xlane.xlu1 %486 }
 0x6e7   :  { %v488_v45 = vsel %vm480_vm5, %v487_v44, %v474_v31  ;;  %vm644_vm5 = vcmp.eq.s32.totalorder %v3603_v1, 73 }
 0x6e8   :  { %v499_v46 = vmul.f32 %v491_v27, %v488_v45 }
 0x6ea   :  { %500 = vadd.xlane.f32.xlu1 %v499_v46 }
 0x700   :  { %v511_v47 = vpop.xlane.xlu0 %510 }
 0x701   :  { %v512_v57 = vsel %vm508_vm10, %v511_v47, %v498_v37 }
 0x702   :  { %v523_v61 = vmul.f32 %v519_v58, %v512_v57 }
 0x704   :  { %v3679_v48 = vpop.xlane.xlu0 %231 }
 0x705   :  { %3571 = vrcp.f32 %v3679_v48 }
 0x70f   :  { %v3685_v50 = vpop.eup %3571 }
 0x710   :  { %v237_v51 = vmul.f32 %v3685_v50, %v235_v49 }
 0x712   :  { %238 = vst [vmem:[#allocation2 + $0x48] sm:$0xff] %v237_v51 }
 0x719   :  { %v532_v55 = vld [vmem:[#allocation2 + $0x4f] ss:$0 sm:$0xff]  ;;  %v550_v4 = vld [vmem:[#allocation2 + $0x4e] ss:$0 sm:$0xff]  ;;  %v568_v19 = vld [vmem:[#allocation2 + $0x4d] ss:$0 sm:$0xff] }
 0x71a   :  { %v533_v59 = vxor.u32 2147483648, %v532_v55  ;;  %v551_v10 = vxor.u32 2147483648, %v550_v4  ;;  %v569_v22 = vxor.u32 2147483648, %v568_v19  ;;  %v586_v30 = vld [vmem:[#allocation2 + $0x4c] ss:$0 sm:$0xff] }
 0x71b   :  { %v587_v33 = vxor.u32 2147483648, %v586_v30  ;;  %v604_v44 = vld [vmem:[#allocation2 + $0x4b] ss:$0 sm:$0xff] }
 0x71c   :  { %v537_v62 = vmul.f32 %v533_v59, %v340_v60  ;;  %v605_v47 = vxor.u32 2147483648, %v604_v44 }
 0x777   :  { %v501_v52 = vpop.xlane.xlu1 %500 }
 0x778   :  { %v502_v53 = vsel %vm494_vm6, %v501_v52, %v488_v45 }
 0x779   :  { %v513_v56 = vmul.f32 %v505_v36, %v502_v53 }
 0x77b   :  { %514 = vadd.xlane.f32.xlu1 %v513_v56 }
 0x77f   :  { %524 = vadd.xlane.f32.xlu1 %v523_v61 }
 0x783   :  { %538 = vadd.xlane.f32.xlu1 %v537_v62 }
 0x808   :  { %v515_v63 = vpop.xlane.xlu1 %514 }
 0x809   :  { %v516_v0 = vsel %vm508_vm10, %v515_v63, %v502_v53  ;;  %vm680_vm10 = vcmp.eq.s32.totalorder %v3603_v1, 71 }
 0x80a   :  { %v527_v3 = vmul.f32 %v519_v58, %v516_v0 }
 0x80c   :  { %v525_v5 = vpop.xlane.xlu1 %524  ;;  %528 = vadd.xlane.f32.xlu0 %v527_v3 }
 0x80d   :  { %v526_v6 = vsel %vm522_vm12, %v525_v5, %v512_v57  ;;  %v622_v57 = vld [vmem:[#allocation2 + $0x4a] ss:$0 sm:$0xff] }
 0x80e   :  { %v541_v9 = vmul.f32 %v533_v59, %v526_v6 }
 0x810   :  { %542 = vadd.xlane.f32.xlu0 %v541_v9  ;;  %v539_v11 = vpop.xlane.xlu1 %538 }
 0x811   :  { %v540_v12 = vsel %vm536_vm13, %v539_v11, %v340_v60  ;;  %v623_v60 = vxor.u32 2147483648, %v622_v57 }
 0x812   :  { %v555_v13 = vmul.f32 %v551_v10, %v540_v12 }
 0x814   :  { %556 = vadd.xlane.f32.xlu0 %v555_v13 }
 0x899   :  { %v529_v14 = vpop.xlane.xlu0 %528 }
 0x89a   :  { %v530_v15 = vsel %vm522_vm12, %v529_v14, %v516_v0  ;;  %vm724_vm12 = vcmp.eq.s32.totalorder %v3603_v1, 69 }
 0x89b   :  { %v545_v16 = vmul.f32 %v533_v59, %v530_v15 }
 0x89d   :  { %546 = vadd.xlane.f32.xlu1 %v545_v16  ;;  %v543_v17 = vpop.xlane.xlu0 %542 }
 0x89e   :  { %v544_v18 = vsel %vm536_vm13, %v543_v17, %v526_v6  ;;  %v640_v6 = vld [vmem:[#allocation2 + $0x49] ss:$0 sm:$0xff]  ;;  %v211_v17 = vadd.s32 64, %v3605_v2 }
 0x89f   :  { %v559_v20 = vmul.f32 %v551_v10, %v544_v18  ;;  %v641_v11 = vxor.u32 2147483648, %v640_v6 }
 0x8a0   :  { %vm212_vm4 = vcmp.eq.s32.totalorder %v211_v17, %v3603_v1  ;;  %vm217_vm6 = vcmp.le.s32.totalorder %v211_v17, %v3603_v1  ;;  %vm332_vm8 = vcmp.eq.s32.totalorder %v3603_v1, %v211_v17 }
 0x8a1   :  { %560 = vadd.xlane.f32.xlu1 %v559_v20  ;;  %v557_v21 = vpop.xlane.xlu0 %556  ;;  %vm218_vm7 = vmand %vm217_vm6, %vm80_vm0  ;;  %vm834_vm6 = vcmp.eq.s32.totalorder %v3603_v1, 64 }
 0x8a2   :  { %v558_v23 = vsel %vm554_vm14, %v557_v21, %v540_v12  ;;  %v67_v21 = vld [vmem:[%s5229_s0 + $0x40] sm:$0xff] }
 0x8a3   :  { %v573_v24 = vmul.f32 %v569_v22, %v558_v23 }
 0x8a5   :  { %574 = vadd.xlane.f32.xlu1 %v573_v24 }
 0x92a   :  { %v547_v25 = vpop.xlane.xlu1 %546 }
 0x92b   :  { %v548_v26 = vsel %vm536_vm13, %v547_v25, %v530_v15  ;;  %vm746_vm13 = vcmp.eq.s32.totalorder %v3603_v1, 68 }
 0x92c   :  { %v563_v27 = vmul.f32 %v551_v10, %v548_v26 }
 0x92e   :  { %564 = vadd.xlane.f32.xlu0 %v563_v27  ;;  %v561_v28 = vpop.xlane.xlu1 %560 }
 0x92f   :  { %v562_v29 = vsel %vm554_vm14, %v561_v28, %v544_v18 }
 0x930   :  { %v577_v31 = vmul.f32 %v569_v22, %v562_v29 }
 0x932   :  { %578 = vadd.xlane.f32.xlu0 %v577_v31  ;;  %v575_v32 = vpop.xlane.xlu1 %574 }
 0x933   :  { %v576_v34 = vsel %vm572_vm15, %v575_v32, %v558_v23 }
 0x934   :  { %v591_v35 = vmul.f32 %v587_v33, %v576_v34 }
 0x936   :  { %592 = vadd.xlane.f32.xlu0 %v591_v35  ;;  %v219_v35 = vsel %vm218_vm7, %v67_v21, 0.0  ;;  %vm856_vm7 = vcmp.eq.s32.totalorder %v3603_v1, 63 }
 0x9bb   :  { %v565_v36 = vpop.xlane.xlu0 %564 }
 0x9bc   :  { %v566_v37 = vsel %vm554_vm14, %v565_v36, %v548_v26  ;;  %v658_v26 = vld [vmem:[#allocation2 + $0x48] ss:$0 sm:$0xff]  ;;  %vm768_vm14 = vcmp.eq.s32.totalorder %v3603_v1, 67 }
 0x9bd   :  { %v581_v38 = vmul.f32 %v569_v22, %v566_v37  ;;  %v214_v22 = vsel %vm212_vm4, %v67_v21, 0.0  ;;  %v659_v30 = vxor.u32 2147483648, %v658_v26 }
 0x9bf   :  { %582 = vadd.xlane.f32.xlu1 %v581_v38  ;;  %v579_v40 = vpop.xlane.xlu0 %578  ;;  %v333_v38 = vsel %vm332_vm8, -1.0, %v3592_v43  ;;  %vm882_vm8 = vcmp.eq.s32.totalorder %v3603_v1, 62 }
 0x9c0   :  { %v580_v42 = vsel %vm572_vm15, %v579_v40, %v562_v29 }
 0x9c1   :  { %v595_v45 = vmul.f32 %v587_v33, %v580_v42 }
 0x9c3   :  { %596 = vadd.xlane.f32.xlu1 %v595_v45  ;;  %v593_v46 = vpop.xlane.xlu0 %592 }
 0x9c4   :  { %v594_v49 = vsel %vm590_vm1, %v593_v46, %v576_v34 }
 0x9c5   :  { %v609_v51 = vmul.f32 %v605_v47, %v594_v49 }
 0x9c7   :  { %610 = vadd.xlane.f32.xlu1 %v609_v51 }
 0xa4c   :  { %v583_v52 = vpop.xlane.xlu1 %582 }
 0xa4d   :  { %v584_v53 = vsel %vm572_vm15, %v583_v52, %v566_v37  ;;  %vm790_vm15 = vcmp.eq.s32.totalorder %v3603_v1, 66 }
 0xa4e   :  { %v599_v54 = vmul.f32 %v587_v33, %v584_v53 }
 0xa50   :  { %600 = vadd.xlane.f32.xlu0 %v599_v54  ;;  %v597_v55 = vpop.xlane.xlu1 %596 }
 0xa51   :  { %v598_v56 = vsel %vm590_vm1, %v597_v55, %v580_v42 }
 0xa52   :  { %v613_v58 = vmul.f32 %v605_v47, %v598_v56 }
 0xa54   :  { %614 = vadd.xlane.f32.xlu0 %v613_v58  ;;  %v611_v59 = vpop.xlane.xlu1 %610 }
 0xa55   :  { %v612_v61 = vsel %vm608_vm2, %v611_v59, %v594_v49 }
 0xa56   :  { %v627_v62 = vmul.f32 %v623_v60, %v612_v61 }
 0xa58   :  { %628 = vadd.xlane.f32.xlu0 %v627_v62 }
 0xadd   :  { %v601_v63 = vpop.xlane.xlu0 %600 }
 0xade   :  { %v602_v0 = vsel %vm590_vm1, %v601_v63, %v584_v53 }
 0xadf   :  { %v617_v3 = vmul.f32 %v605_v47, %v602_v0 }
 0xae1   :  { %618 = vadd.xlane.f32.xlu1 %v617_v3  ;;  %v615_v4 = vpop.xlane.xlu0 %614 }
 0xae2   :  { %v616_v5 = vsel %vm608_vm2, %v615_v4, %v598_v56 }
 0xae3   :  { %v631_v9 = vmul.f32 %v623_v60, %v616_v5 }
 0xae5   :  { %632 = vadd.xlane.f32.xlu1 %v631_v9  ;;  %v629_v10 = vpop.xlane.xlu0 %628 }
 0xae6   :  { %v630_v12 = vsel %vm626_vm3, %v629_v10, %v612_v61 }
 0xae7   :  { %v645_v13 = vmul.f32 %v641_v11, %v630_v12 }
 0xae9   :  { %646 = vadd.xlane.f32.xlu1 %v645_v13 }
 0xb6e   :  { %v619_v14 = vpop.xlane.xlu1 %618 }
 0xb6f   :  { %v620_v15 = vsel %vm608_vm2, %v619_v14, %v602_v0  ;;  %vm812_vm2 = vcmp.eq.s32.totalorder %v3603_v1, 65 }
 0xb70   :  { %v635_v16 = vmul.f32 %v623_v60, %v620_v15 }
 0xb72   :  { %636 = vadd.xlane.f32.xlu0 %v635_v16  ;;  %v633_v18 = vpop.xlane.xlu1 %632 }
 0xb73   :  { %v634_v19 = vsel %vm626_vm3, %v633_v18, %v616_v5 }
 0xb74   :  { %v649_v20 = vmul.f32 %v641_v11, %v634_v19 }
 0xb76   :  { %650 = vadd.xlane.f32.xlu0 %v649_v20  ;;  %v647_v23 = vpop.xlane.xlu1 %646 }
 0xb77   :  { %v648_v28 = vsel %vm644_vm5, %v647_v23, %v630_v12 }
 0xb78   :  { %v663_v32 = vmul.f32 %v659_v30, %v648_v28 }
 0xb7a   :  { %215 = vadd.xlane.f32.xlu0 %v214_v22 }
 0xbff   :  { %v637_v24 = vpop.xlane.xlu0 %636 }
 0xc00   :  { %v638_v25 = vsel %vm626_vm3, %v637_v24, %v620_v15 }
 0xc01   :  { %v653_v27 = vmul.f32 %v641_v11, %v638_v25 }
 0xc03   :  { %654 = vadd.xlane.f32.xlu1 %v653_v27  ;;  %v651_v29 = vpop.xlane.xlu0 %650 }
 0xc04   :  { %v652_v31 = vsel %vm644_vm5, %v651_v29, %v634_v19 }
 0xc05   :  { %v667_v33 = vmul.f32 %v659_v30, %v652_v31 }
 0xc07   :  { %664 = vadd.xlane.f32.xlu1 %v663_v32  ;;  %668 = vadd.xlane.f32.xlu0 %v667_v33  ;;  %v3750_v34 = vpop.xlane.xlu0 %215 }
 0xc08   :  { %3573 = vrcp.f32 %v3750_v34 }
 0xc12   :  { %v3756_v36 = vpop.eup %3573 }
 0xc13   :  { %v221_v37 = vmul.f32 %v3756_v36, %v219_v35 }
 0xc15   :  { %222 = vst [vmem:[#allocation2 + $0x40] sm:$0xff] %v221_v37 }
 0xc1c   :  { %v676_v40 = vld [vmem:[#allocation2 + $0x47] ss:$0 sm:$0xff]  ;;  %v698_v56 = vld [vmem:[#allocation2 + $0x46] ss:$0 sm:$0xff]  ;;  %v720_v10 = vld [vmem:[#allocation2 + $0x45] ss:$0 sm:$0xff] }
 0xc1d   :  { %v677_v42 = vxor.u32 2147483648, %v676_v40  ;;  %v699_v57 = vxor.u32 2147483648, %v698_v56  ;;  %v721_v12 = vxor.u32 2147483648, %v720_v10  ;;  %v742_v24 = vld [vmem:[#allocation2 + $0x44] ss:$0 sm:$0xff] }
 0xc1e   :  { %v743_v26 = vxor.u32 2147483648, %v742_v24 }
 0xc1f   :  { %v681_v44 = vmul.f32 %v677_v42, %v333_v38 }
 0xc21   :  { %682 = vadd.xlane.f32.xlu0 %v681_v44 }
 0xc90   :  { %v655_v45 = vpop.xlane.xlu1 %654 }
 0xc91   :  { %v656_v46 = vsel %vm644_vm5, %v655_v45, %v638_v25 }
 0xc92   :  { %v671_v47 = vmul.f32 %v659_v30, %v656_v46 }
 0xc94   :  { %672 = vadd.xlane.f32.xlu1 %v671_v47  ;;  %v665_v49 = vpop.xlane.xlu1 %664  ;;  %v669_v51 = vpop.xlane.xlu0 %668 }
 0xc95   :  { %v666_v52 = vsel %vm662_vm9, %v665_v49, %v648_v28  ;;  %v670_v53 = vsel %vm662_vm9, %v669_v51, %v652_v31 }
 0xc96   :  { %v685_v54 = vmul.f32 %v677_v42, %v666_v52  ;;  %v689_v55 = vmul.f32 %v677_v42, %v670_v53 }
 0xc98   :  { %686 = vadd.xlane.f32.xlu1 %v685_v54  ;;  %690 = vadd.xlane.f32.xlu0 %v689_v55 }
 0xcae   :  { %v683_v58 = vpop.xlane.xlu0 %682 }
 0xcaf   :  { %v684_v59 = vsel %vm680_vm10, %v683_v58, %v333_v38 }
 0xcb0   :  { %v703_v60 = vmul.f32 %v699_v57, %v684_v59 }
 0xcb2   :  { %704 = vadd.xlane.f32.xlu0 %v703_v60 }
 0xd21   :  { %v673_v61 = vpop.xlane.xlu1 %672 }
 0xd22   :  { %v674_v62 = vsel %vm662_vm9, %v673_v61, %v656_v46  ;;  %vm908_vm9 = vcmp.eq.s32.totalorder %v3603_v1, 61 }
 0xd23   :  { %v693_v63 = vmul.f32 %v677_v42, %v674_v62  ;;  %v764_v42 = vld [vmem:[#allocation2 + $0x43] ss:$0 sm:$0xff] }
 0xd24   :  { %v765_v45 = vxor.u32 2147483648, %v764_v42 }
 0xd25   :  { %694 = vadd.xlane.f32.xlu1 %v693_v63  ;;  %v687_v0 = vpop.xlane.xlu1 %686  ;;  %v691_v3 = vpop.xlane.xlu0 %690 }
 0xd26   :  { %v688_v4 = vsel %vm680_vm10, %v687_v0, %v666_v52  ;;  %v692_v5 = vsel %vm680_vm10, %v691_v3, %v670_v53 }
 0xd27   :  { %v707_v6 = vmul.f32 %v699_v57, %v688_v4  ;;  %v711_v9 = vmul.f32 %v699_v57, %v692_v5 }
 0xd29   :  { %708 = vadd.xlane.f32.xlu1 %v707_v6  ;;  %712 = vadd.xlane.f32.xlu0 %v711_v9 }
 0xd3f   :  { %v705_v11 = vpop.xlane.xlu0 %704 }
 0xd40   :  { %v706_v13 = vsel %vm702_vm11, %v705_v11, %v684_v59  ;;  %v786_v59 = vld [vmem:[#allocation2 + $0x42] ss:$0 sm:$0xff] }
 0xd41   :  { %v725_v14 = vmul.f32 %v721_v12, %v706_v13  ;;  %v787_v61 = vxor.u32 2147483648, %v786_v59 }
 0xd43   :  { %726 = vadd.xlane.f32.xlu0 %v725_v14 }
 0xdb2   :  { %v695_v15 = vpop.xlane.xlu1 %694 }
 0xdb3   :  { %v696_v16 = vsel %vm680_vm10, %v695_v15, %v674_v62  ;;  %vm934_vm10 = vcmp.eq.s32.totalorder %v3603_v1, 60 }
 0xdb4   :  { %v715_v17 = vmul.f32 %v699_v57, %v696_v16 }
 0xdb6   :  { %716 = vadd.xlane.f32.xlu1 %v715_v17  ;;  %v709_v18 = vpop.xlane.xlu1 %708  ;;  %v713_v19 = vpop.xlane.xlu0 %712 }
 0xdb7   :  { %v710_v20 = vsel %vm702_vm11, %v709_v18, %v688_v4  ;;  %v714_v21 = vsel %vm702_vm11, %v713_v19, %v692_v5 }
 0xdb8   :  { %v729_v22 = vmul.f32 %v721_v12, %v710_v20  ;;  %v733_v23 = vmul.f32 %v721_v12, %v714_v21 }
 0xdba   :  { %730 = vadd.xlane.f32.xlu1 %v729_v22  ;;  %734 = vadd.xlane.f32.xlu0 %v733_v23 }
 0xdd0   :  { %v727_v25 = vpop.xlane.xlu0 %726 }
 0xdd1   :  { %v728_v27 = vsel %vm724_vm12, %v727_v25, %v706_v13  ;;  %v808_v13 = vld [vmem:[#allocation2 + $0x41] ss:$0 sm:$0xff] }
 0xdd2   :  { %v747_v28 = vmul.f32 %v743_v26, %v728_v27  ;;  %v809_v15 = vxor.u32 2147483648, %v808_v13 }
 0xdd4   :  { %748 = vadd.xlane.f32.xlu0 %v747_v28  ;;  %v65_v28 = vld [vmem:[%s5229_s0 + $0x38] sm:$0xff] }
 0xe43   :  { %v717_v29 = vpop.xlane.xlu1 %716 }
 0xe44   :  { %v718_v30 = vsel %vm702_vm11, %v717_v29, %v696_v16  ;;  %vm960_vm11 = vcmp.eq.s32.totalorder %v3603_v1, 59 }
 0xe45   :  { %v737_v31 = vmul.f32 %v721_v12, %v718_v30 }
 0xe47   :  { %738 = vadd.xlane.f32.xlu1 %v737_v31  ;;  %v731_v32 = vpop.xlane.xlu1 %730  ;;  %v735_v33 = vpop.xlane.xlu0 %734 }
 0xe48   :  { %v732_v35 = vsel %vm724_vm12, %v731_v32, %v710_v20  ;;  %v736_v37 = vsel %vm724_vm12, %v735_v33, %v714_v21  ;;  %v195_v21 = vadd.s32 56, %v3605_v2  ;;  %v830_v33 = vld [vmem:[#allocation2 + $0x40] ss:$0 sm:$0xff] }
 0xe49   :  { %v751_v38 = vmul.f32 %v743_v26, %v732_v35  ;;  %v755_v40 = vmul.f32 %v743_v26, %v736_v37  ;;  %v831_v42 = vxor.u32 2147483648, %v830_v33 }
 0xe4a   :  { %vm196_vm1 = vcmp.eq.s32.totalorder %v195_v21, %v3603_v1  ;;  %vm201_vm3 = vcmp.le.s32.totalorder %v195_v21, %v3603_v1  ;;  %vm325_vm5 = vcmp.eq.s32.totalorder %v3603_v1, %v195_v21 }
 0xe4b   :  { %752 = vadd.xlane.f32.xlu1 %v751_v38  ;;  %756 = vadd.xlane.f32.xlu0 %v755_v40  ;;  %v198_v29 = vsel %vm196_vm1, %v65_v28, 0.0  ;;  %vm202_vm4 = vmand %vm201_vm3, %vm80_vm0  ;;  %vm1038_vm3 = vcmp.eq.s32.totalorder %v3603_v1, 56 }
 0xe61   :  { %v749_v44 = vpop.xlane.xlu0 %748 }
 0xe62   :  { %v750_v46 = vsel %vm746_vm13, %v749_v44, %v728_v27 }
 0xe63   :  { %v769_v47 = vmul.f32 %v765_v45, %v750_v46 }
 0xe65   :  { %770 = vadd.xlane.f32.xlu0 %v769_v47 }
 0xed4   :  { %v739_v49 = vpop.xlane.xlu1 %738 }
 0xed5   :  { %v740_v51 = vsel %vm724_vm12, %v739_v49, %v718_v30  ;;  %vm986_vm12 = vcmp.eq.s32.totalorder %v3603_v1, 58 }
 0xed6   :  { %v759_v52 = vmul.f32 %v743_v26, %v740_v51 }
 0xed8   :  { %760 = vadd.xlane.f32.xlu1 %v759_v52  ;;  %v753_v53 = vpop.xlane.xlu1 %752  ;;  %v757_v54 = vpop.xlane.xlu0 %756  ;;  %v203_v52 = vsel %vm202_vm4, %v65_v28, 0.0  ;;  %vm1064_vm4 = vcmp.eq.s32.totalorder %v3603_v1, 55 }
 0xed9   :  { %v754_v55 = vsel %vm746_vm13, %v753_v53, %v732_v35  ;;  %v758_v56 = vsel %vm746_vm13, %v757_v54, %v736_v37 }
 0xeda   :  { %v773_v57 = vmul.f32 %v765_v45, %v754_v55  ;;  %v777_v58 = vmul.f32 %v765_v45, %v758_v56 }
 0xedc   :  { %774 = vadd.xlane.f32.xlu1 %v773_v57  ;;  %778 = vadd.xlane.f32.xlu0 %v777_v58 }
 0xef2   :  { %v771_v60 = vpop.xlane.xlu0 %770 }
 0xef3   :  { %v772_v62 = vsel %vm768_vm14, %v771_v60, %v750_v46 }
 0xef4   :  { %v791_v63 = vmul.f32 %v787_v61, %v772_v62 }
 0xef6   :  { %792 = vadd.xlane.f32.xlu0 %v791_v63 }
 0xf65   :  { %v761_v0 = vpop.xlane.xlu1 %760 }
 0xf66   :  { %v762_v3 = vsel %vm746_vm13, %v761_v0, %v740_v51 }
 0xf67   :  { %v781_v4 = vmul.f32 %v765_v45, %v762_v3 }
 0xf69   :  { %782 = vadd.xlane.f32.xlu1 %v781_v4  ;;  %v775_v5 = vpop.xlane.xlu1 %774  ;;  %v779_v6 = vpop.xlane.xlu0 %778 }
 0xf6a   :  { %v776_v9 = vsel %vm768_vm14, %v775_v5, %v754_v55  ;;  %v780_v10 = vsel %vm768_vm14, %v779_v6, %v758_v56  ;;  %v326_v55 = vsel %vm325_vm5, -1.0, %v3592_v43  ;;  %vm1094_vm5 = vcmp.eq.s32.totalorder %v3603_v1, 54 }
 0xf6b   :  { %v795_v11 = vmul.f32 %v787_v61, %v776_v9  ;;  %v799_v12 = vmul.f32 %v787_v61, %v780_v10 }
 0xf6d   :  { %796 = vadd.xlane.f32.xlu1 %v795_v11  ;;  %800 = vadd.xlane.f32.xlu0 %v799_v12 }
 0xf83   :  { %v793_v14 = vpop.xlane.xlu0 %792 }
 0xf84   :  { %v794_v16 = vsel %vm790_vm15, %v793_v14, %v772_v62 }
 0xf85   :  { %v813_v17 = vmul.f32 %v809_v15, %v794_v16 }
 0xf87   :  { %814 = vadd.xlane.f32.xlu0 %v813_v17 }
 0xff6   :  { %v783_v18 = vpop.xlane.xlu1 %782 }
 0xff7   :  { %v784_v19 = vsel %vm768_vm14, %v783_v18, %v762_v3  ;;  %vm1012_vm14 = vcmp.eq.s32.totalorder %v3603_v1, 57 }
 0xff8   :  { %v803_v20 = vmul.f32 %v787_v61, %v784_v19 }
 0xffa   :  { %804 = vadd.xlane.f32.xlu1 %v803_v20  ;;  %v797_v22 = vpop.xlane.xlu1 %796  ;;  %v801_v23 = vpop.xlane.xlu0 %800 }
 0xffb   :  { %v798_v24 = vsel %vm790_vm15, %v797_v22, %v776_v9  ;;  %v802_v25 = vsel %vm790_vm15, %v801_v23, %v780_v10 }
 0xffc   :  { %v817_v26 = vmul.f32 %v809_v15, %v798_v24  ;;  %v821_v27 = vmul.f32 %v809_v15, %v802_v25 }
 0xffe   :  { %818 = vadd.xlane.f32.xlu1 %v817_v26  ;;  %822 = vadd.xlane.f32.xlu0 %v821_v27 }
0x1002   :  { %199 = vadd.xlane.f32.xlu0 %v198_v29 }
0x1014   :  { %v815_v30 = vpop.xlane.xlu0 %814 }
0x1015   :  { %v816_v37 = vsel %vm812_vm2, %v815_v30, %v794_v16 }
0x1016   :  { %v835_v45 = vmul.f32 %v831_v42, %v816_v37 }
0x1087   :  { %v805_v31 = vpop.xlane.xlu1 %804 }
0x1088   :  { %v806_v32 = vsel %vm790_vm15, %v805_v31, %v784_v19 }
0x1089   :  { %v825_v35 = vmul.f32 %v809_v15, %v806_v32 }
0x108b   :  { %826 = vadd.xlane.f32.xlu1 %v825_v35  ;;  %v819_v38 = vpop.xlane.xlu1 %818  ;;  %v823_v40 = vpop.xlane.xlu0 %822 }
0x108c   :  { %v820_v44 = vsel %vm812_vm2, %v819_v38, %v798_v24  ;;  %v824_v47 = vsel %vm812_vm2, %v823_v40, %v802_v25 }
0x108d   :  { %v839_v46 = vmul.f32 %v831_v42, %v820_v44  ;;  %v843_v51 = vmul.f32 %v831_v42, %v824_v47 }
0x108f   :  { %836 = vadd.xlane.f32.xlu1 %v835_v45  ;;  %840 = vadd.xlane.f32.xlu0 %v839_v46  ;;  %v3836_v49 = vpop.xlane.xlu0 %199 }
0x1090   :  { %3575 = vrcp.f32 %v3836_v49 }
0x1093   :  { %844 = vadd.xlane.f32.xlu1 %v843_v51 }
0x109a   :  { %v3842_v53 = vpop.eup %3575 }
0x109b   :  { %v205_v54 = vmul.f32 %v3842_v53, %v203_v52 }
0x109d   :  { %206 = vst [vmem:[#allocation2 + $0x38] sm:$0xff] %v205_v54 }
0x10a4   :  { %v852_v56 = vld [vmem:[#allocation2 + $0x3f] ss:$0 sm:$0xff]  ;;  %v878_v11 = vld [vmem:[#allocation2 + $0x3e] ss:$0 sm:$0xff]  ;;  %v904_v28 = vld [vmem:[#allocation2 + $0x3d] ss:$0 sm:$0xff] }
0x10a5   :  { %v853_v57 = vxor.u32 2147483648, %v852_v56  ;;  %v879_v12 = vxor.u32 2147483648, %v878_v11  ;;  %v905_v30 = vxor.u32 2147483648, %v904_v28  ;;  %v930_v54 = vld [vmem:[#allocation2 + $0x3c] ss:$0 sm:$0xff] }
0x10a6   :  { %v956_v11 = vld [vmem:[#allocation2 + $0x3b] ss:$0 sm:$0xff]  ;;  %v982_v28 = vld [vmem:[#allocation2 + $0x3a] ss:$0 sm:$0xff] }
0x10a7   :  { %v857_v58 = vmul.f32 %v853_v57, %v326_v55 }
0x10a9   :  { %858 = vadd.xlane.f32.xlu1 %v857_v58 }
0x1118   :  { %v827_v59 = vpop.xlane.xlu1 %826 }
0x1119   :  { %v828_v60 = vsel %vm812_vm2, %v827_v59, %v806_v32 }
0x111a   :  { %v847_v61 = vmul.f32 %v831_v42, %v828_v60 }
0x111c   :  { %v837_v62 = vpop.xlane.xlu1 %836  ;;  %848 = vadd.xlane.f32.xlu0 %v847_v61  ;;  %v841_v63 = vpop.xlane.xlu0 %840 }
0x111d   :  { %v838_v0 = vsel %vm834_vm6, %v837_v62, %v816_v37  ;;  %v842_v3 = vsel %vm834_vm6, %v841_v63, %v820_v44 }
0x111e   :  { %v861_v4 = vmul.f32 %v853_v57, %v838_v0  ;;  %v865_v5 = vmul.f32 %v853_v57, %v842_v3 }
0x1120   :  { %v845_v6 = vpop.xlane.xlu1 %844  ;;  %862 = vadd.xlane.f32.xlu0 %v861_v4  ;;  %866 = vadd.xlane.f32.xlu1 %v865_v5 }
0x1121   :  { %v846_v9 = vsel %vm834_vm6, %v845_v6, %v824_v47 }
0x1122   :  { %v869_v10 = vmul.f32 %v853_v57, %v846_v9 }
0x1124   :  { %870 = vadd.xlane.f32.xlu0 %v869_v10 }
0x1136   :  { %v859_v13 = vpop.xlane.xlu1 %858 }
0x1137   :  { %v860_v14 = vsel %vm856_vm7, %v859_v13, %v326_v55  ;;  %v931_v55 = vxor.u32 2147483648, %v930_v54  ;;  %v1008_v54 = vld [vmem:[#allocation2 + $0x39] ss:$0 sm:$0xff] }
0x1138   :  { %v883_v15 = vmul.f32 %v879_v12, %v860_v14 }
0x113a   :  { %884 = vadd.xlane.f32.xlu0 %v883_v15 }
0x11a9   :  { %v849_v16 = vpop.xlane.xlu0 %848 }
0x11aa   :  { %v850_v17 = vsel %vm834_vm6, %v849_v16, %v828_v60  ;;  %vm1124_vm6 = vcmp.eq.s32.totalorder %v3603_v1, 53 }
0x11ab   :  { %v873_v18 = vmul.f32 %v853_v57, %v850_v17 }
0x11ad   :  { %v867_v19 = vpop.xlane.xlu1 %866  ;;  %874 = vadd.xlane.f32.xlu1 %v873_v18  ;;  %v863_v20 = vpop.xlane.xlu0 %862 }
0x11ae   :  { %v868_v21 = vsel %vm856_vm7, %v867_v19, %v842_v3  ;;  %v864_v22 = vsel %vm856_vm7, %v863_v20, %v838_v0 }
0x11af   :  { %v891_v23 = vmul.f32 %v879_v12, %v868_v21  ;;  %v887_v24 = vmul.f32 %v879_v12, %v864_v22 }
0x11b1   :  { %892 = vadd.xlane.f32.xlu0 %v891_v23  ;;  %888 = vadd.xlane.f32.xlu1 %v887_v24  ;;  %v871_v25 = vpop.xlane.xlu0 %870 }
0x11b2   :  { %v872_v26 = vsel %vm856_vm7, %v871_v25, %v846_v9 }
0x11b3   :  { %v895_v27 = vmul.f32 %v879_v12, %v872_v26 }
0x11b5   :  { %896 = vadd.xlane.f32.xlu1 %v895_v27 }
0x11c7   :  { %v885_v29 = vpop.xlane.xlu0 %884 }
0x11c8   :  { %v886_v31 = vsel %vm882_vm8, %v885_v29, %v860_v14  ;;  %v983_v29 = vxor.u32 2147483648, %v982_v28 }
0x11c9   :  { %v909_v32 = vmul.f32 %v905_v30, %v886_v31 }
0x11cb   :  { %910 = vadd.xlane.f32.xlu1 %v909_v32 }
0x123a   :  { %v875_v33 = vpop.xlane.xlu1 %874 }
0x123b   :  { %v876_v35 = vsel %vm856_vm7, %v875_v33, %v850_v17  ;;  %vm1154_vm7 = vcmp.eq.s32.totalorder %v3603_v1, 52 }
0x123c   :  { %v899_v37 = vmul.f32 %v879_v12, %v876_v35  ;;  %v957_v12 = vxor.u32 2147483648, %v956_v11 }
0x123e   :  { %900 = vadd.xlane.f32.xlu0 %v899_v37  ;;  %v889_v38 = vpop.xlane.xlu1 %888  ;;  %v893_v40 = vpop.xlane.xlu0 %892 }
0x123f   :  { %v890_v42 = vsel %vm882_vm8, %v889_v38, %v864_v22  ;;  %v894_v44 = vsel %vm882_vm8, %v893_v40, %v868_v21 }
0x1240   :  { %v913_v45 = vmul.f32 %v905_v30, %v890_v42  ;;  %v917_v46 = vmul.f32 %v905_v30, %v894_v44 }
0x1242   :  { %914 = vadd.xlane.f32.xlu0 %v913_v45  ;;  %v897_v47 = vpop.xlane.xlu1 %896  ;;  %918 = vadd.xlane.f32.xlu1 %v917_v46 }
0x1243   :  { %v898_v51 = vsel %vm882_vm8, %v897_v47, %v872_v26 }
0x1244   :  { %v921_v52 = vmul.f32 %v905_v30, %v898_v51 }
0x1246   :  { %922 = vadd.xlane.f32.xlu0 %v921_v52 }
0x1258   :  { %v911_v56 = vpop.xlane.xlu1 %910 }
0x1259   :  { %v912_v57 = vsel %vm908_vm9, %v911_v56, %v886_v31 }
0x125a   :  { %v935_v58 = vmul.f32 %v931_v55, %v912_v57 }
0x125c   :  { %936 = vadd.xlane.f32.xlu0 %v935_v58 }
0x12cb   :  { %v901_v59 = vpop.xlane.xlu0 %900 }
0x12cc   :  { %v902_v60 = vsel %vm882_vm8, %v901_v59, %v876_v35  ;;  %vm1184_vm8 = vcmp.eq.s32.totalorder %v3603_v1, 51 }
0x12cd   :  { %v925_v61 = vmul.f32 %v905_v30, %v902_v60 }
0x12cf   :  { %v919_v62 = vpop.xlane.xlu1 %918  ;;  %926 = vadd.xlane.f32.xlu1 %v925_v61  ;;  %v915_v63 = vpop.xlane.xlu0 %914 }
0x12d0   :  { %v920_v0 = vsel %vm908_vm9, %v919_v62, %v894_v44  ;;  %v916_v3 = vsel %vm908_vm9, %v915_v63, %v890_v42 }
0x12d1   :  { %v943_v4 = vmul.f32 %v931_v55, %v920_v0  ;;  %v939_v5 = vmul.f32 %v931_v55, %v916_v3 }
0x12d3   :  { %944 = vadd.xlane.f32.xlu0 %v943_v4  ;;  %940 = vadd.xlane.f32.xlu1 %v939_v5  ;;  %v923_v6 = vpop.xlane.xlu0 %922 }
0x12d4   :  { %v924_v9 = vsel %vm908_vm9, %v923_v6, %v898_v51  ;;  %v179_v6 = vadd.s32 48, %v3605_v2 }
0x12d5   :  { %v947_v10 = vmul.f32 %v931_v55, %v924_v9 }
0x12d6   :  { %vm180_vm13 = vcmp.eq.s32.totalorder %v179_v6, %v3603_v1  ;;  %vm185_vm15 = vcmp.le.s32.totalorder %v179_v6, %v3603_v1  ;;  %vm318_vm2 = vcmp.eq.s32.totalorder %v3603_v1, %v179_v6 }
0x12d7   :  { %948 = vadd.xlane.f32.xlu1 %v947_v10  ;;  %vm186_vm1 = vmand %vm185_vm15, %vm80_vm0  ;;  %vm1274_vm15 = vcmp.eq.s32.totalorder %v3603_v1, 48 }
0x12e9   :  { %v937_v13 = vpop.xlane.xlu0 %936 }
0x12ea   :  { %v938_v14 = vsel %vm934_vm10, %v937_v13, %v912_v57 }
0x12eb   :  { %v961_v15 = vmul.f32 %v957_v12, %v938_v14 }
0x12ed   :  { %962 = vadd.xlane.f32.xlu1 %v961_v15 }
0x135c   :  { %v927_v16 = vpop.xlane.xlu1 %926 }
0x135d   :  { %v928_v17 = vsel %vm908_vm9, %v927_v16, %v902_v60  ;;  %v1034_v16 = vld [vmem:[#allocation2 + $0x38] ss:$0 sm:$0xff]  ;;  %vm1214_vm9 = vcmp.eq.s32.totalorder %v3603_v1, 50 }
0x135e   :  { %v951_v18 = vmul.f32 %v931_v55, %v928_v17  ;;  %v1009_v55 = vxor.u32 2147483648, %v1008_v54 }
0x1360   :  { %952 = vadd.xlane.f32.xlu0 %v951_v18  ;;  %v941_v19 = vpop.xlane.xlu1 %940  ;;  %v945_v20 = vpop.xlane.xlu0 %944 }
0x1361   :  { %v942_v21 = vsel %vm934_vm10, %v941_v19, %v916_v3  ;;  %v946_v22 = vsel %vm934_vm10, %v945_v20, %v920_v0  ;;  %v1035_v20 = vxor.u32 2147483648, %v1034_v16 }
0x1362   :  { %v965_v23 = vmul.f32 %v957_v12, %v942_v21  ;;  %v969_v24 = vmul.f32 %v957_v12, %v946_v22 }
0x1364   :  { %966 = vadd.xlane.f32.xlu0 %v965_v23  ;;  %v949_v25 = vpop.xlane.xlu1 %948  ;;  %970 = vadd.xlane.f32.xlu1 %v969_v24 }
0x1365   :  { %v950_v26 = vsel %vm934_vm10, %v949_v25, %v924_v9 }
0x1366   :  { %v973_v27 = vmul.f32 %v957_v12, %v950_v26 }
0x1368   :  { %974 = vadd.xlane.f32.xlu0 %v973_v27 }
0x137a   :  { %v963_v30 = vpop.xlane.xlu1 %962 }
0x137b   :  { %v964_v31 = vsel %vm960_vm11, %v963_v30, %v938_v14 }
0x137c   :  { %v987_v32 = vmul.f32 %v983_v29, %v964_v31 }
0x137e   :  { %988 = vadd.xlane.f32.xlu0 %v987_v32 }
0x13ed   :  { %v953_v33 = vpop.xlane.xlu0 %952 }
0x13ee   :  { %v954_v35 = vsel %vm934_vm10, %v953_v33, %v928_v17 }
0x13ef   :  { %v977_v37 = vmul.f32 %v957_v12, %v954_v35  ;;  %v63_v12 = vld [vmem:[%s5229_s0 + $0x30] sm:$0xff] }
0x13f0   :  { %v182_v13 = vsel %vm180_vm13, %v63_v12, 0.0  ;;  %v187_v32 = vsel %vm186_vm1, %v63_v12, 0.0  ;;  %vm1304_vm1 = vcmp.eq.s32.totalorder %v3603_v1, 47 }
0x13f1   :  { %v971_v38 = vpop.xlane.xlu1 %970  ;;  %978 = vadd.xlane.f32.xlu1 %v977_v37  ;;  %v967_v40 = vpop.xlane.xlu0 %966  ;;  %v319_v37 = vsel %vm318_vm2, -1.0, %v3592_v43  ;;  %vm1338_vm2 = vcmp.eq.s32.totalorder %v3603_v1, 46 }
0x13f2   :  { %v972_v42 = vsel %vm960_vm11, %v971_v38, %v946_v22  ;;  %v968_v44 = vsel %vm960_vm11, %v967_v40, %v942_v21 }
0x13f3   :  { %v995_v45 = vmul.f32 %v983_v29, %v972_v42  ;;  %v991_v46 = vmul.f32 %v983_v29, %v968_v44 }
0x13f5   :  { %996 = vadd.xlane.f32.xlu0 %v995_v45  ;;  %992 = vadd.xlane.f32.xlu1 %v991_v46  ;;  %v975_v47 = vpop.xlane.xlu0 %974 }
0x13f6   :  { %v976_v51 = vsel %vm960_vm11, %v975_v47, %v950_v26 }
0x13f7   :  { %v999_v52 = vmul.f32 %v983_v29, %v976_v51 }
0x13f9   :  { %1000 = vadd.xlane.f32.xlu1 %v999_v52 }
0x140b   :  { %v989_v56 = vpop.xlane.xlu0 %988 }
0x140c   :  { %v990_v57 = vsel %vm986_vm12, %v989_v56, %v964_v31 }
0x140d   :  { %v1013_v58 = vmul.f32 %v1009_v55, %v990_v57 }
0x140f   :  { %1014 = vadd.xlane.f32.xlu1 %v1013_v58 }
0x147e   :  { %v979_v59 = vpop.xlane.xlu1 %978 }
0x147f   :  { %v980_v60 = vsel %vm960_vm11, %v979_v59, %v954_v35  ;;  %vm1244_vm11 = vcmp.eq.s32.totalorder %v3603_v1, 49 }
0x1480   :  { %v1003_v61 = vmul.f32 %v983_v29, %v980_v60 }
0x1482   :  { %1004 = vadd.xlane.f32.xlu0 %v1003_v61  ;;  %v993_v62 = vpop.xlane.xlu1 %992  ;;  %v997_v63 = vpop.xlane.xlu0 %996 }
0x1483   :  { %v994_v0 = vsel %vm986_vm12, %v993_v62, %v968_v44  ;;  %v998_v3 = vsel %vm986_vm12, %v997_v63, %v972_v42 }
0x1484   :  { %v1017_v4 = vmul.f32 %v1009_v55, %v994_v0  ;;  %v1021_v5 = vmul.f32 %v1009_v55, %v998_v3 }
0x1486   :  { %1018 = vadd.xlane.f32.xlu0 %v1017_v4  ;;  %v1001_v9 = vpop.xlane.xlu1 %1000  ;;  %1022 = vadd.xlane.f32.xlu1 %v1021_v5 }
0x1487   :  { %v1002_v10 = vsel %vm986_vm12, %v1001_v9, %v976_v51 }
0x1488   :  { %v1025_v11 = vmul.f32 %v1009_v55, %v1002_v10 }
0x148a   :  { %1026 = vadd.xlane.f32.xlu0 %v1025_v11 }
0x148e   :  { %183 = vadd.xlane.f32.xlu0 %v182_v13 }
0x149c   :  { %v1015_v14 = vpop.xlane.xlu1 %1014 }
0x149d   :  { %v1016_v19 = vsel %vm1012_vm14, %v1015_v14, %v990_v57 }
0x149e   :  { %v1039_v24 = vmul.f32 %v1035_v20, %v1016_v19 }
0x150f   :  { %v1005_v15 = vpop.xlane.xlu0 %1004 }
0x1510   :  { %v1006_v17 = vsel %vm986_vm12, %v1005_v15, %v980_v60 }
0x1511   :  { %v1029_v18 = vmul.f32 %v1009_v55, %v1006_v17 }
0x1513   :  { %v1023_v21 = vpop.xlane.xlu1 %1022  ;;  %1030 = vadd.xlane.f32.xlu1 %v1029_v18  ;;  %v1019_v22 = vpop.xlane.xlu0 %1018 }
0x1514   :  { %v1020_v23 = vsel %vm1012_vm14, %v1019_v22, %v994_v0  ;;  %v1024_v26 = vsel %vm1012_vm14, %v1023_v21, %v998_v3 }
0x1515   :  { %v1043_v25 = vmul.f32 %v1035_v20, %v1020_v23  ;;  %v1047_v29 = vmul.f32 %v1035_v20, %v1024_v26 }
0x1517   :  { %1040 = vadd.xlane.f32.xlu1 %v1039_v24  ;;  %v1027_v27 = vpop.xlane.xlu0 %1026  ;;  %1044 = vadd.xlane.f32.xlu0 %v1043_v25 }
0x1518   :  { %v1028_v28 = vsel %vm1012_vm14, %v1027_v27, %v1002_v10 }
0x1519   :  { %v1051_v30 = vmul.f32 %v1035_v20, %v1028_v28 }
0x151b   :  { %1048 = vadd.xlane.f32.xlu1 %v1047_v29  ;;  %1052 = vadd.xlane.f32.xlu0 %v1051_v30  ;;  %v3938_v31 = vpop.xlane.xlu0 %183 }
0x151c   :  { %3577 = vrcp.f32 %v3938_v31 }
0x1526   :  { %v3944_v33 = vpop.eup %3577 }
0x1527   :  { %v189_v35 = vmul.f32 %v3944_v33, %v187_v32 }
0x1529   :  { %190 = vst [vmem:[#allocation2 + $0x30] sm:$0xff] %v189_v35 }
0x1530   :  { %v1060_v38 = vld [vmem:[#allocation2 + $0x37] ss:$0 sm:$0xff]  ;;  %v1090_v63 = vld [vmem:[#allocation2 + $0x36] ss:$0 sm:$0xff] }
0x1531   :  { %v1061_v40 = vxor.u32 2147483648, %v1060_v38  ;;  %v1091_v0 = vxor.u32 2147483648, %v1090_v63 }
0x1533   :  { %v1065_v42 = vmul.f32 %v1061_v40, %v319_v37 }
0x1535   :  { %1066 = vadd.xlane.f32.xlu0 %v1065_v42 }
0x15a0   :  { %v1031_v44 = vpop.xlane.xlu1 %1030 }
0x15a1   :  { %v1032_v45 = vsel %vm1012_vm14, %v1031_v44, %v1006_v17 }
0x15a2   :  { %v1055_v46 = vmul.f32 %v1035_v20, %v1032_v45 }
0x15a4   :  { %1056 = vadd.xlane.f32.xlu1 %v1055_v46  ;;  %v1041_v47 = vpop.xlane.xlu1 %1040  ;;  %v1045_v51 = vpop.xlane.xlu0 %1044 }
0x15a5   :  { %v1042_v52 = vsel %vm1038_vm3, %v1041_v47, %v1016_v19  ;;  %v1046_v54 = vsel %vm1038_vm3, %v1045_v51, %v1020_v23  ;;  %v1120_v23 = vld [vmem:[#allocation2 + $0x35] ss:$0 sm:$0xff] }
0x15a6   :  { %v1069_v55 = vmul.f32 %v1061_v40, %v1042_v52  ;;  %v1073_v56 = vmul.f32 %v1061_v40, %v1046_v54  ;;  %v1121_v24 = vxor.u32 2147483648, %v1120_v23 }
0x15a8   :  { %v1049_v57 = vpop.xlane.xlu1 %1048  ;;  %1070 = vadd.xlane.f32.xlu1 %v1069_v55  ;;  %1074 = vadd.xlane.f32.xlu0 %v1073_v56  ;;  %v1053_v58 = vpop.xlane.xlu0 %1052 }
0x15a9   :  { %v1050_v59 = vsel %vm1038_vm3, %v1049_v57, %v1024_v26  ;;  %v1054_v60 = vsel %vm1038_vm3, %v1053_v58, %v1028_v28 }
0x15aa   :  { %v1077_v61 = vmul.f32 %v1061_v40, %v1050_v59  ;;  %v1081_v62 = vmul.f32 %v1061_v40, %v1054_v60 }
0x15ac   :  { %1078 = vadd.xlane.f32.xlu1 %v1077_v61  ;;  %1082 = vadd.xlane.f32.xlu0 %v1081_v62 }
0x15c2   :  { %v1067_v3 = vpop.xlane.xlu0 %1066 }
0x15c3   :  { %v1068_v4 = vsel %vm1064_vm4, %v1067_v3, %v319_v37 }
0x15c4   :  { %v1095_v5 = vmul.f32 %v1091_v0, %v1068_v4 }
0x15c6   :  { %1096 = vadd.xlane.f32.xlu0 %v1095_v5 }
0x1631   :  { %v1057_v6 = vpop.xlane.xlu1 %1056 }
0x1632   :  { %v1058_v9 = vsel %vm1038_vm3, %v1057_v6, %v1032_v45  ;;  %vm1372_vm3 = vcmp.eq.s32.totalorder %v3603_v1, 45 }
0x1633   :  { %v1085_v10 = vmul.f32 %v1061_v40, %v1058_v9 }
0x1635   :  { %1086 = vadd.xlane.f32.xlu1 %v1085_v10  ;;  %v1071_v11 = vpop.xlane.xlu1 %1070  ;;  %v1075_v12 = vpop.xlane.xlu0 %1074 }
0x1636   :  { %v1072_v13 = vsel %vm1064_vm4, %v1071_v11, %v1042_v52  ;;  %v1076_v14 = vsel %vm1064_vm4, %v1075_v12, %v1046_v54  ;;  %v1150_v54 = vld [vmem:[#allocation2 + $0x34] ss:$0 sm:$0xff] }
0x1637   :  { %v1099_v15 = vmul.f32 %v1091_v0, %v1072_v13  ;;  %v1103_v16 = vmul.f32 %v1091_v0, %v1076_v14  ;;  %v1151_v55 = vxor.u32 2147483648, %v1150_v54 }
0x1639   :  { %1100 = vadd.xlane.f32.xlu1 %v1099_v15  ;;  %v1079_v17 = vpop.xlane.xlu1 %1078  ;;  %1104 = vadd.xlane.f32.xlu0 %v1103_v16  ;;  %v1083_v18 = vpop.xlane.xlu0 %1082 }
0x163a   :  { %v1080_v19 = vsel %vm1064_vm4, %v1079_v17, %v1050_v59  ;;  %v1084_v20 = vsel %vm1064_vm4, %v1083_v18, %v1054_v60 }
0x163b   :  { %v1107_v21 = vmul.f32 %v1091_v0, %v1080_v19  ;;  %v1111_v22 = vmul.f32 %v1091_v0, %v1084_v20 }
0x163d   :  { %1108 = vadd.xlane.f32.xlu1 %v1107_v21  ;;  %1112 = vadd.xlane.f32.xlu0 %v1111_v22 }
0x1653   :  { %v1097_v25 = vpop.xlane.xlu0 %1096 }
0x1654   :  { %v1098_v26 = vsel %vm1094_vm5, %v1097_v25, %v1068_v4 }
0x1655   :  { %v1125_v27 = vmul.f32 %v1121_v24, %v1098_v26 }
0x1657   :  { %1126 = vadd.xlane.f32.xlu0 %v1125_v27 }
0x16c2   :  { %v1087_v28 = vpop.xlane.xlu1 %1086 }
0x16c3   :  { %v1088_v29 = vsel %vm1064_vm4, %v1087_v28, %v1058_v9  ;;  %vm1406_vm4 = vcmp.eq.s32.totalorder %v3603_v1, 44 }
0x16c4   :  { %v1115_v30 = vmul.f32 %v1091_v0, %v1088_v29 }
0x16c6   :  { %1116 = vadd.xlane.f32.xlu1 %v1115_v30  ;;  %v1101_v32 = vpop.xlane.xlu1 %1100  ;;  %v1105_v35 = vpop.xlane.xlu0 %1104 }
0x16c7   :  { %v1102_v37 = vsel %vm1094_vm5, %v1101_v32, %v1072_v13  ;;  %v1106_v38 = vsel %vm1094_vm5, %v1105_v35, %v1076_v14  ;;  %v1180_v14 = vld [vmem:[#allocation2 + $0x33] ss:$0 sm:$0xff] }
0x16c8   :  { %v1129_v40 = vmul.f32 %v1121_v24, %v1102_v37  ;;  %v1133_v42 = vmul.f32 %v1121_v24, %v1106_v38  ;;  %v1181_v15 = vxor.u32 2147483648, %v1180_v14 }
0x16ca   :  { %1130 = vadd.xlane.f32.xlu1 %v1129_v40  ;;  %v1109_v44 = vpop.xlane.xlu1 %1108  ;;  %1134 = vadd.xlane.f32.xlu0 %v1133_v42  ;;  %v1113_v45 = vpop.xlane.xlu0 %1112 }
0x16cb   :  { %v1110_v46 = vsel %vm1094_vm5, %v1109_v44, %v1080_v19  ;;  %v1114_v47 = vsel %vm1094_vm5, %v1113_v45, %v1084_v20 }
0x16cc   :  { %v1137_v51 = vmul.f32 %v1121_v24, %v1110_v46  ;;  %v1141_v52 = vmul.f32 %v1121_v24, %v1114_v47 }
0x16ce   :  { %1138 = vadd.xlane.f32.xlu1 %v1137_v51  ;;  %1142 = vadd.xlane.f32.xlu0 %v1141_v52 }
0x16e4   :  { %v1127_v56 = vpop.xlane.xlu0 %1126 }
0x16e5   :  { %v1128_v57 = vsel %vm1124_vm6, %v1127_v56, %v1098_v26 }
0x16e6   :  { %v1155_v58 = vmul.f32 %v1151_v55, %v1128_v57 }
0x16e8   :  { %1156 = vadd.xlane.f32.xlu0 %v1155_v58 }
0x1753   :  { %v1117_v59 = vpop.xlane.xlu1 %1116 }
0x1754   :  { %v1118_v60 = vsel %vm1094_vm5, %v1117_v59, %v1088_v29  ;;  %vm1440_vm5 = vcmp.eq.s32.totalorder %v3603_v1, 43 }
0x1755   :  { %v1145_v61 = vmul.f32 %v1121_v24, %v1118_v60 }
0x1757   :  { %1146 = vadd.xlane.f32.xlu1 %v1145_v61  ;;  %v1131_v62 = vpop.xlane.xlu1 %1130  ;;  %v1135_v63 = vpop.xlane.xlu0 %1134 }
0x1758   :  { %v1132_v0 = vsel %vm1124_vm6, %v1131_v62, %v1102_v37  ;;  %v1136_v3 = vsel %vm1124_vm6, %v1135_v63, %v1106_v38  ;;  %v1210_v38 = vld [vmem:[#allocation2 + $0x32] ss:$0 sm:$0xff] }
0x1759   :  { %v1159_v4 = vmul.f32 %v1151_v55, %v1132_v0  ;;  %v1163_v5 = vmul.f32 %v1151_v55, %v1136_v3  ;;  %v1211_v40 = vxor.u32 2147483648, %v1210_v38 }
0x175b   :  { %1160 = vadd.xlane.f32.xlu1 %v1159_v4  ;;  %v1139_v6 = vpop.xlane.xlu1 %1138  ;;  %1164 = vadd.xlane.f32.xlu0 %v1163_v5  ;;  %v1143_v9 = vpop.xlane.xlu0 %1142 }
0x175c   :  { %v1140_v10 = vsel %vm1124_vm6, %v1139_v6, %v1110_v46  ;;  %v1144_v11 = vsel %vm1124_vm6, %v1143_v9, %v1114_v47 }
0x175d   :  { %v1167_v12 = vmul.f32 %v1151_v55, %v1140_v10  ;;  %v1171_v13 = vmul.f32 %v1151_v55, %v1144_v11 }
0x175f   :  { %1168 = vadd.xlane.f32.xlu1 %v1167_v12  ;;  %1172 = vadd.xlane.f32.xlu0 %v1171_v13 }
0x1775   :  { %v1157_v16 = vpop.xlane.xlu0 %1156 }
0x1776   :  { %v1158_v17 = vsel %vm1154_vm7, %v1157_v16, %v1128_v57 }
0x1777   :  { %v1185_v18 = vmul.f32 %v1181_v15, %v1158_v17 }
0x1779   :  { %1186 = vadd.xlane.f32.xlu0 %v1185_v18 }
0x17e4   :  { %v1147_v19 = vpop.xlane.xlu1 %1146 }
0x17e5   :  { %v1148_v20 = vsel %vm1124_vm6, %v1147_v19, %v1118_v60  ;;  %v163_v19 = vadd.s32 40, %v3605_v2  ;;  %vm1474_vm6 = vcmp.eq.s32.totalorder %v3603_v1, 42 }
0x17e6   :  { %v1175_v21 = vmul.f32 %v1151_v55, %v1148_v20 }
0x17e7   :  { %vm164_vm10 = vcmp.eq.s32.totalorder %v163_v19, %v3603_v1  ;;  %vm169_vm12 = vcmp.le.s32.totalorder %v163_v19, %v3603_v1  ;;  %vm311_vm14 = vcmp.eq.s32.totalorder %v3603_v1, %v163_v19 }
0x17e8   :  { %1176 = vadd.xlane.f32.xlu1 %v1175_v21  ;;  %v1161_v22 = vpop.xlane.xlu1 %1160  ;;  %v1165_v23 = vpop.xlane.xlu0 %1164  ;;  %vm170_vm13 = vmand %vm169_vm12, %vm80_vm0  ;;  %vm1542_vm12 = vcmp.eq.s32.totalorder %v3603_v1, 40 }
0x17e9   :  { %v1162_v24 = vsel %vm1154_vm7, %v1161_v22, %v1132_v0  ;;  %v1166_v25 = vsel %vm1154_vm7, %v1165_v23, %v1136_v3  ;;  %v1240_v3 = vld [vmem:[#allocation2 + $0x31] ss:$0 sm:$0xff] }
0x17ea   :  { %v1189_v26 = vmul.f32 %v1181_v15, %v1162_v24  ;;  %v1193_v27 = vmul.f32 %v1181_v15, %v1166_v25  ;;  %v1241_v4 = vxor.u32 2147483648, %v1240_v3 }
0x17ec   :  { %1190 = vadd.xlane.f32.xlu1 %v1189_v26  ;;  %v1169_v28 = vpop.xlane.xlu1 %1168  ;;  %1194 = vadd.xlane.f32.xlu0 %v1193_v27  ;;  %v1173_v29 = vpop.xlane.xlu0 %1172  ;;  %v61_v26 = vld [vmem:[%s5229_s0 + $0x28] sm:$0xff] }
0x17ed   :  { %v1170_v30 = vsel %vm1154_vm7, %v1169_v28, %v1140_v10  ;;  %v1174_v32 = vsel %vm1154_vm7, %v1173_v29, %v1144_v11  ;;  %v166_v27 = vsel %vm164_vm10, %v61_v26, 0.0 }
0x17ee   :  { %v1197_v35 = vmul.f32 %v1181_v15, %v1170_v30  ;;  %v1201_v37 = vmul.f32 %v1181_v15, %v1174_v32 }
0x17f0   :  { %1198 = vadd.xlane.f32.xlu1 %v1197_v35  ;;  %1202 = vadd.xlane.f32.xlu0 %v1201_v37 }
0x1806   :  { %v1187_v42 = vpop.xlane.xlu0 %1186 }
0x1807   :  { %v1188_v44 = vsel %vm1184_vm8, %v1187_v42, %v1158_v17 }
0x1808   :  { %v1215_v45 = vmul.f32 %v1211_v40, %v1188_v44 }
0x180a   :  { %1216 = vadd.xlane.f32.xlu0 %v1215_v45 }
0x1875   :  { %v1177_v46 = vpop.xlane.xlu1 %1176 }
0x1876   :  { %v1178_v47 = vsel %vm1154_vm7, %v1177_v46, %v1148_v20 }
0x1877   :  { %v1205_v51 = vmul.f32 %v1181_v15, %v1178_v47 }
0x1879   :  { %1206 = vadd.xlane.f32.xlu1 %v1205_v51  ;;  %v1191_v52 = vpop.xlane.xlu1 %1190  ;;  %v1195_v54 = vpop.xlane.xlu0 %1194 }
0x187a   :  { %v1192_v55 = vsel %vm1184_vm8, %v1191_v52, %v1162_v24  ;;  %v1196_v56 = vsel %vm1184_vm8, %v1195_v54, %v1166_v25 }
0x187b   :  { %v1219_v57 = vmul.f32 %v1211_v40, %v1192_v55  ;;  %v1223_v58 = vmul.f32 %v1211_v40, %v1196_v56 }
0x187d   :  { %1220 = vadd.xlane.f32.xlu1 %v1219_v57  ;;  %v1199_v59 = vpop.xlane.xlu1 %1198  ;;  %1224 = vadd.xlane.f32.xlu0 %v1223_v58  ;;  %v1203_v60 = vpop.xlane.xlu0 %1202 }
0x187e   :  { %v1200_v61 = vsel %vm1184_vm8, %v1199_v59, %v1170_v30  ;;  %v1204_v62 = vsel %vm1184_vm8, %v1203_v60, %v1174_v32  ;;  %v1270_v30 = vld [vmem:[#allocation2 + $0x30] ss:$0 sm:$0xff]  ;;  %v171_v60 = vsel %vm170_vm13, %v61_v26, 0.0  ;;  %vm1576_vm13 = vcmp.eq.s32.totalorder %v3603_v1, 39 }
0x187f   :  { %v1227_v63 = vmul.f32 %v1211_v40, %v1200_v61  ;;  %v1231_v0 = vmul.f32 %v1211_v40, %v1204_v62  ;;  %v1271_v38 = vxor.u32 2147483648, %v1270_v30 }
0x1881   :  { %1228 = vadd.xlane.f32.xlu1 %v1227_v63  ;;  %1232 = vadd.xlane.f32.xlu0 %v1231_v0  ;;  %v312_v63 = vsel %vm311_vm14, -1.0, %v3592_v43  ;;  %vm1614_vm14 = vcmp.eq.s32.totalorder %v3603_v1, 38 }
0x1897   :  { %v1217_v5 = vpop.xlane.xlu0 %1216 }
0x1898   :  { %v1218_v6 = vsel %vm1214_vm9, %v1217_v5, %v1188_v44 }
0x1899   :  { %v1245_v9 = vmul.f32 %v1241_v4, %v1218_v6 }
0x189b   :  { %1246 = vadd.xlane.f32.xlu0 %v1245_v9 }
0x1906   :  { %v1207_v10 = vpop.xlane.xlu1 %1206 }
0x1907   :  { %v1208_v11 = vsel %vm1184_vm8, %v1207_v10, %v1178_v47  ;;  %vm1508_vm8 = vcmp.eq.s32.totalorder %v3603_v1, 41 }
0x1908   :  { %v1235_v12 = vmul.f32 %v1211_v40, %v1208_v11 }
0x190a   :  { %1236 = vadd.xlane.f32.xlu1 %v1235_v12  ;;  %v1221_v13 = vpop.xlane.xlu1 %1220  ;;  %v1225_v14 = vpop.xlane.xlu0 %1224 }
0x190b   :  { %v1222_v15 = vsel %vm1214_vm9, %v1221_v13, %v1192_v55  ;;  %v1226_v16 = vsel %vm1214_vm9, %v1225_v14, %v1196_v56 }
0x190c   :  { %v1249_v17 = vmul.f32 %v1241_v4, %v1222_v15  ;;  %v1253_v18 = vmul.f32 %v1241_v4, %v1226_v16 }
0x190e   :  { %1250 = vadd.xlane.f32.xlu1 %v1249_v17  ;;  %v1229_v20 = vpop.xlane.xlu1 %1228  ;;  %1254 = vadd.xlane.f32.xlu0 %v1253_v18  ;;  %v1233_v21 = vpop.xlane.xlu0 %1232 }
0x190f   :  { %v1230_v22 = vsel %vm1214_vm9, %v1229_v20, %v1200_v61  ;;  %v1234_v23 = vsel %vm1214_vm9, %v1233_v21, %v1204_v62 }
0x1910   :  { %v1257_v24 = vmul.f32 %v1241_v4, %v1230_v22  ;;  %v1261_v25 = vmul.f32 %v1241_v4, %v1234_v23 }
0x1912   :  { %1258 = vadd.xlane.f32.xlu1 %v1257_v24  ;;  %1262 = vadd.xlane.f32.xlu0 %v1261_v25 }
0x1916   :  { %167 = vadd.xlane.f32.xlu0 %v166_v27 }
0x1928   :  { %v1247_v28 = vpop.xlane.xlu0 %1246 }
0x1929   :  { %v1248_v37 = vsel %vm1244_vm11, %v1247_v28, %v1218_v6 }
0x192a   :  { %v1275_v45 = vmul.f32 %v1271_v38, %v1248_v37 }
0x1997   :  { %v1237_v29 = vpop.xlane.xlu1 %1236 }
0x1998   :  { %v1238_v32 = vsel %vm1214_vm9, %v1237_v29, %v1208_v11 }
0x1999   :  { %v1265_v35 = vmul.f32 %v1241_v4, %v1238_v32 }
0x199b   :  { %1266 = vadd.xlane.f32.xlu1 %v1265_v35  ;;  %v1251_v40 = vpop.xlane.xlu1 %1250  ;;  %v1255_v42 = vpop.xlane.xlu0 %1254 }
0x199c   :  { %v1252_v44 = vsel %vm1244_vm11, %v1251_v40, %v1222_v15  ;;  %v1256_v47 = vsel %vm1244_vm11, %v1255_v42, %v1226_v16 }
0x199d   :  { %v1279_v46 = vmul.f32 %v1271_v38, %v1252_v44  ;;  %v1283_v55 = vmul.f32 %v1271_v38, %v1256_v47 }
0x199f   :  { %v1259_v51 = vpop.xlane.xlu1 %1258  ;;  %1276 = vadd.xlane.f32.xlu1 %v1275_v45  ;;  %v1263_v52 = vpop.xlane.xlu0 %1262  ;;  %1280 = vadd.xlane.f32.xlu0 %v1279_v46 }
0x19a0   :  { %v1260_v54 = vsel %vm1244_vm11, %v1259_v51, %v1230_v22  ;;  %v1264_v57 = vsel %vm1244_vm11, %v1263_v52, %v1234_v23 }
0x19a1   :  { %v1287_v56 = vmul.f32 %v1271_v38, %v1260_v54  ;;  %v1291_v59 = vmul.f32 %v1271_v38, %v1264_v57 }
0x19a3   :  { %1284 = vadd.xlane.f32.xlu1 %v1283_v55  ;;  %1288 = vadd.xlane.f32.xlu0 %v1287_v56  ;;  %v4056_v58 = vpop.xlane.xlu0 %167 }
0x19a4   :  { %3579 = vrcp.f32 %v4056_v58 }
0x19a7   :  { %1292 = vadd.xlane.f32.xlu1 %v1291_v59 }
0x19ae   :  { %v4062_v61 = vpop.eup %3579 }
0x19af   :  { %v173_v62 = vmul.f32 %v4062_v61, %v171_v60 }
0x19b1   :  { %174 = vst [vmem:[#allocation2 + $0x28] sm:$0xff] %v173_v62 }
0x19b8   :  { %v1300_v0 = vld [vmem:[#allocation2 + $0x2f] ss:$0 sm:$0xff]  ;;  %v1334_v25 = vld [vmem:[#allocation2 + $0x2e] ss:$0 sm:$0xff]  ;;  %v1368_v60 = vld [vmem:[#allocation2 + $0x2d] ss:$0 sm:$0xff] }
0x19b9   :  { %v1301_v3 = vxor.u32 2147483648, %v1300_v0  ;;  %v1335_v26 = vxor.u32 2147483648, %v1334_v25  ;;  %v1369_v62 = vxor.u32 2147483648, %v1368_v60 }
0x19bb   :  { %v1305_v4 = vmul.f32 %v1301_v3, %v312_v63 }
0x19bd   :  { %1306 = vadd.xlane.f32.xlu1 %v1305_v4 }
0x1a28   :  { %v1267_v5 = vpop.xlane.xlu1 %1266 }
0x1a29   :  { %v1268_v6 = vsel %vm1244_vm11, %v1267_v5, %v1238_v32 }
0x1a2a   :  { %v1295_v9 = vmul.f32 %v1271_v38, %v1268_v6 }
0x1a2c   :  { %v1277_v10 = vpop.xlane.xlu1 %1276  ;;  %1296 = vadd.xlane.f32.xlu0 %v1295_v9  ;;  %v1281_v11 = vpop.xlane.xlu0 %1280 }
0x1a2d   :  { %v1278_v12 = vsel %vm1274_vm15, %v1277_v10, %v1248_v37  ;;  %v1282_v13 = vsel %vm1274_vm15, %v1281_v11, %v1252_v44 }
0x1a2e   :  { %v1309_v14 = vmul.f32 %v1301_v3, %v1278_v12  ;;  %v1313_v15 = vmul.f32 %v1301_v3, %v1282_v13 }
0x1a30   :  { %v1285_v16 = vpop.xlane.xlu1 %1284  ;;  %1310 = vadd.xlane.f32.xlu0 %v1309_v14  ;;  %1314 = vadd.xlane.f32.xlu1 %v1313_v15  ;;  %v1289_v17 = vpop.xlane.xlu0 %1288 }
0x1a31   :  { %v1286_v18 = vsel %vm1274_vm15, %v1285_v16, %v1256_v47  ;;  %v1290_v19 = vsel %vm1274_vm15, %v1289_v17, %v1260_v54 }
0x1a32   :  { %v1317_v20 = vmul.f32 %v1301_v3, %v1286_v18  ;;  %v1321_v21 = vmul.f32 %v1301_v3, %v1290_v19 }
0x1a34   :  { %v1293_v22 = vpop.xlane.xlu1 %1292  ;;  %1318 = vadd.xlane.f32.xlu0 %v1317_v20  ;;  %1322 = vadd.xlane.f32.xlu1 %v1321_v21 }
0x1a35   :  { %v1294_v23 = vsel %vm1274_vm15, %v1293_v22, %v1264_v57 }
0x1a36   :  { %v1325_v24 = vmul.f32 %v1301_v3, %v1294_v23 }
0x1a38   :  { %1326 = vadd.xlane.f32.xlu0 %v1325_v24  ;;  %v1402_v24 = vld [vmem:[#allocation2 + $0x2c] ss:$0 sm:$0xff] }
0x1a39   :  { %v1403_v25 = vxor.u32 2147483648, %v1402_v24 }
0x1a4a   :  { %v1307_v27 = vpop.xlane.xlu1 %1306 }
0x1a4b   :  { %v1308_v28 = vsel %vm1304_vm1, %v1307_v27, %v312_v63 }
0x1a4c   :  { %v1339_v29 = vmul.f32 %v1335_v26, %v1308_v28 }
0x1a4e   :  { %1340 = vadd.xlane.f32.xlu0 %v1339_v29 }
0x1ab9   :  { %v1297_v30 = vpop.xlane.xlu0 %1296 }
0x1aba   :  { %v1298_v32 = vsel %vm1274_vm15, %v1297_v30, %v1268_v6  ;;  %vm1652_vm15 = vcmp.eq.s32.totalorder %v3603_v1, 37 }
0x1abb   :  { %v1329_v35 = vmul.f32 %v1301_v3, %v1298_v32 }
0x1abd   :  { %v1315_v37 = vpop.xlane.xlu1 %1314  ;;  %1330 = vadd.xlane.f32.xlu1 %v1329_v35  ;;  %v1311_v38 = vpop.xlane.xlu0 %1310 }
0x1abe   :  { %v1316_v40 = vsel %vm1304_vm1, %v1315_v37, %v1282_v13  ;;  %v1312_v42 = vsel %vm1304_vm1, %v1311_v38, %v1278_v12 }
0x1abf   :  { %v1347_v44 = vmul.f32 %v1335_v26, %v1316_v40  ;;  %v1343_v45 = vmul.f32 %v1335_v26, %v1312_v42 }
0x1ac1   :  { %1348 = vadd.xlane.f32.xlu0 %v1347_v44  ;;  %v1323_v46 = vpop.xlane.xlu1 %1322  ;;  %1344 = vadd.xlane.f32.xlu1 %v1343_v45  ;;  %v1319_v47 = vpop.xlane.xlu0 %1318 }
0x1ac2   :  { %v1324_v51 = vsel %vm1304_vm1, %v1323_v46, %v1290_v19  ;;  %v1320_v52 = vsel %vm1304_vm1, %v1319_v47, %v1286_v18 }
0x1ac3   :  { %v1355_v54 = vmul.f32 %v1335_v26, %v1324_v51  ;;  %v1351_v55 = vmul.f32 %v1335_v26, %v1320_v52 }
0x1ac5   :  { %1356 = vadd.xlane.f32.xlu0 %v1355_v54  ;;  %1352 = vadd.xlane.f32.xlu1 %v1351_v55  ;;  %v1327_v56 = vpop.xlane.xlu0 %1326 }
0x1ac6   :  { %v1328_v57 = vsel %vm1304_vm1, %v1327_v56, %v1294_v23 }
0x1ac7   :  { %v1359_v59 = vmul.f32 %v1335_v26, %v1328_v57 }
0x1ac9   :  { %1360 = vadd.xlane.f32.xlu1 %v1359_v59  ;;  %v1436_v59 = vld [vmem:[#allocation2 + $0x2b] ss:$0 sm:$0xff] }
0x1aca   :  { %v1437_v60 = vxor.u32 2147483648, %v1436_v59 }
0x1adb   :  { %v1341_v63 = vpop.xlane.xlu0 %1340 }
0x1adc   :  { %v1342_v0 = vsel %vm1338_vm2, %v1341_v63, %v1308_v28 }
0x1add   :  { %v1373_v3 = vmul.f32 %v1369_v62, %v1342_v0 }
0x1adf   :  { %1374 = vadd.xlane.f32.xlu1 %v1373_v3 }
0x1b4a   :  { %v1331_v4 = vpop.xlane.xlu1 %1330 }
0x1b4b   :  { %v1332_v5 = vsel %vm1304_vm1, %v1331_v4, %v1298_v32  ;;  %vm1690_vm1 = vcmp.eq.s32.totalorder %v3603_v1, 36 }
0x1b4c   :  { %v1363_v6 = vmul.f32 %v1335_v26, %v1332_v5 }
0x1b4e   :  { %1364 = vadd.xlane.f32.xlu0 %v1363_v6  ;;  %v1345_v9 = vpop.xlane.xlu1 %1344  ;;  %v1349_v10 = vpop.xlane.xlu0 %1348 }
0x1b4f   :  { %v1346_v11 = vsel %vm1338_vm2, %v1345_v9, %v1312_v42  ;;  %v1350_v12 = vsel %vm1338_vm2, %v1349_v10, %v1316_v40 }
0x1b50   :  { %v1377_v13 = vmul.f32 %v1369_v62, %v1346_v11  ;;  %v1381_v14 = vmul.f32 %v1369_v62, %v1350_v12 }
0x1b52   :  { %1378 = vadd.xlane.f32.xlu0 %v1377_v13  ;;  %v1353_v15 = vpop.xlane.xlu1 %1352  ;;  %1382 = vadd.xlane.f32.xlu1 %v1381_v14  ;;  %v1357_v16 = vpop.xlane.xlu0 %1356 }
0x1b53   :  { %v1354_v17 = vsel %vm1338_vm2, %v1353_v15, %v1320_v52  ;;  %v1358_v18 = vsel %vm1338_vm2, %v1357_v16, %v1324_v51 }
0x1b54   :  { %v1385_v19 = vmul.f32 %v1369_v62, %v1354_v17  ;;  %v1389_v20 = vmul.f32 %v1369_v62, %v1358_v18 }
0x1b56   :  { %1386 = vadd.xlane.f32.xlu0 %v1385_v19  ;;  %v1361_v21 = vpop.xlane.xlu1 %1360  ;;  %1390 = vadd.xlane.f32.xlu1 %v1389_v20 }
0x1b57   :  { %v1362_v22 = vsel %vm1338_vm2, %v1361_v21, %v1328_v57 }
0x1b58   :  { %v1393_v23 = vmul.f32 %v1369_v62, %v1362_v22 }
0x1b5a   :  { %1394 = vadd.xlane.f32.xlu0 %v1393_v23  ;;  %v1470_v23 = vld [vmem:[#allocation2 + $0x2a] ss:$0 sm:$0xff] }
0x1b5b   :  { %v1471_v24 = vxor.u32 2147483648, %v1470_v23  ;;  %v59_v23 = vld [vmem:[%s5229_s0 + $0x20] sm:$0xff] }
0x1b6c   :  { %v1375_v26 = vpop.xlane.xlu1 %1374 }
0x1b6d   :  { %v1376_v27 = vsel %vm1372_vm3, %v1375_v26, %v1342_v0 }
0x1b6e   :  { %v1407_v28 = vmul.f32 %v1403_v25, %v1376_v27 }
0x1b70   :  { %1408 = vadd.xlane.f32.xlu0 %v1407_v28 }
0x1bdb   :  { %v1365_v29 = vpop.xlane.xlu0 %1364 }
0x1bdc   :  { %v1366_v30 = vsel %vm1338_vm2, %v1365_v29, %v1332_v5  ;;  %vm1728_vm2 = vcmp.eq.s32.totalorder %v3603_v1, 35 }
0x1bdd   :  { %v1397_v32 = vmul.f32 %v1369_v62, %v1366_v30 }
0x1bdf   :  { %v1383_v35 = vpop.xlane.xlu1 %1382  ;;  %1398 = vadd.xlane.f32.xlu1 %v1397_v32  ;;  %v1379_v37 = vpop.xlane.xlu0 %1378 }
0x1be0   :  { %v1384_v38 = vsel %vm1372_vm3, %v1383_v35, %v1350_v12  ;;  %v1380_v40 = vsel %vm1372_vm3, %v1379_v37, %v1346_v11 }
0x1be1   :  { %v1415_v42 = vmul.f32 %v1403_v25, %v1384_v38  ;;  %v1411_v44 = vmul.f32 %v1403_v25, %v1380_v40 }
0x1be3   :  { %1416 = vadd.xlane.f32.xlu0 %v1415_v42  ;;  %v1391_v45 = vpop.xlane.xlu1 %1390  ;;  %1412 = vadd.xlane.f32.xlu1 %v1411_v44  ;;  %v1387_v46 = vpop.xlane.xlu0 %1386 }
0x1be4   :  { %v1392_v47 = vsel %vm1372_vm3, %v1391_v45, %v1358_v18  ;;  %v1388_v51 = vsel %vm1372_vm3, %v1387_v46, %v1354_v17 }
0x1be5   :  { %v1423_v52 = vmul.f32 %v1403_v25, %v1392_v47  ;;  %v1419_v54 = vmul.f32 %v1403_v25, %v1388_v51 }
0x1be7   :  { %1424 = vadd.xlane.f32.xlu0 %v1423_v52  ;;  %1420 = vadd.xlane.f32.xlu1 %v1419_v54  ;;  %v1395_v55 = vpop.xlane.xlu0 %1394 }
0x1be8   :  { %v1396_v56 = vsel %vm1372_vm3, %v1395_v55, %v1362_v22 }
0x1be9   :  { %v1427_v57 = vmul.f32 %v1403_v25, %v1396_v56 }
0x1beb   :  { %1428 = vadd.xlane.f32.xlu1 %v1427_v57  ;;  %v1504_v57 = vld [vmem:[#allocation2 + $0x29] ss:$0 sm:$0xff] }
0x1bec   :  { %v1505_v59 = vxor.u32 2147483648, %v1504_v57 }
0x1bfd   :  { %v1409_v62 = vpop.xlane.xlu0 %1408 }
0x1bfe   :  { %v1410_v63 = vsel %vm1406_vm4, %v1409_v62, %v1376_v27 }
0x1bff   :  { %v1441_v0 = vmul.f32 %v1437_v60, %v1410_v63 }
0x1c01   :  { %1442 = vadd.xlane.f32.xlu1 %v1441_v0 }
0x1c6c   :  { %v1399_v3 = vpop.xlane.xlu1 %1398 }
0x1c6d   :  { %v1400_v4 = vsel %vm1372_vm3, %v1399_v3, %v1366_v30  ;;  %vm1766_vm3 = vcmp.eq.s32.totalorder %v3603_v1, 34 }
0x1c6e   :  { %v1431_v5 = vmul.f32 %v1403_v25, %v1400_v4 }
0x1c70   :  { %1432 = vadd.xlane.f32.xlu0 %v1431_v5  ;;  %v1413_v6 = vpop.xlane.xlu1 %1412  ;;  %v1417_v9 = vpop.xlane.xlu0 %1416 }
0x1c71   :  { %v1414_v10 = vsel %vm1406_vm4, %v1413_v6, %v1380_v40  ;;  %v1418_v11 = vsel %vm1406_vm4, %v1417_v9, %v1384_v38 }
0x1c72   :  { %v1445_v12 = vmul.f32 %v1437_v60, %v1414_v10  ;;  %v1449_v13 = vmul.f32 %v1437_v60, %v1418_v11 }
0x1c74   :  { %1446 = vadd.xlane.f32.xlu0 %v1445_v12  ;;  %v1421_v14 = vpop.xlane.xlu1 %1420  ;;  %1450 = vadd.xlane.f32.xlu1 %v1449_v13  ;;  %v1425_v15 = vpop.xlane.xlu0 %1424 }
0x1c75   :  { %v1422_v16 = vsel %vm1406_vm4, %v1421_v14, %v1388_v51  ;;  %v1426_v17 = vsel %vm1406_vm4, %v1425_v15, %v1392_v47 }
0x1c76   :  { %v1453_v18 = vmul.f32 %v1437_v60, %v1422_v16  ;;  %v1457_v19 = vmul.f32 %v1437_v60, %v1426_v17 }
0x1c78   :  { %1454 = vadd.xlane.f32.xlu0 %v1453_v18  ;;  %v1429_v20 = vpop.xlane.xlu1 %1428  ;;  %1458 = vadd.xlane.f32.xlu1 %v1457_v19  ;;  %v147_v19 = vadd.s32 32, %v3605_v2 }
0x1c79   :  { %v1430_v21 = vsel %vm1406_vm4, %v1429_v20, %v1396_v56 }
0x1c7a   :  { %v1461_v22 = vmul.f32 %v1437_v60, %v1430_v21  ;;  %vm148_vm7 = vcmp.eq.s32.totalorder %v147_v19, %v3603_v1  ;;  %vm153_vm9 = vcmp.le.s32.totalorder %v147_v19, %v3603_v1  ;;  %vm304_vm11 = vcmp.eq.s32.totalorder %v3603_v1, %v147_v19 }
0x1c7b   :  { %vm154_vm10 = vmand %vm153_vm9, %vm80_vm0  ;;  %vm1842_vm9 = vcmp.eq.s32.totalorder %v3603_v1, 32 }
0x1c7c   :  { %1462 = vadd.xlane.f32.xlu0 %v1461_v22 }
0x1c8e   :  { %v1443_v25 = vpop.xlane.xlu1 %1442 }
0x1c8f   :  { %v1444_v26 = vsel %vm1440_vm5, %v1443_v25, %v1410_v63 }
0x1c90   :  { %v1475_v27 = vmul.f32 %v1471_v24, %v1444_v26 }
0x1c92   :  { %1476 = vadd.xlane.f32.xlu0 %v1475_v27  ;;  %v1538_v27 = vld [vmem:[#allocation2 + $0x28] ss:$0 sm:$0xff] }
0x1cfd   :  { %v1433_v28 = vpop.xlane.xlu0 %1432 }
0x1cfe   :  { %v1434_v29 = vsel %vm1406_vm4, %v1433_v28, %v1400_v4 }
0x1cff   :  { %v1465_v30 = vmul.f32 %v1437_v60, %v1434_v29 }
0x1d01   :  { %v1451_v32 = vpop.xlane.xlu1 %1450  ;;  %1466 = vadd.xlane.f32.xlu1 %v1465_v30  ;;  %v1447_v35 = vpop.xlane.xlu0 %1446 }
0x1d02   :  { %v1452_v37 = vsel %vm1440_vm5, %v1451_v32, %v1418_v11  ;;  %v1448_v38 = vsel %vm1440_vm5, %v1447_v35, %v1414_v10  ;;  %v1539_v32 = vxor.u32 2147483648, %v1538_v27 }
0x1d03   :  { %v1483_v40 = vmul.f32 %v1471_v24, %v1452_v37  ;;  %v1479_v42 = vmul.f32 %v1471_v24, %v1448_v38 }
0x1d05   :  { %1484 = vadd.xlane.f32.xlu0 %v1483_v40  ;;  %v1459_v44 = vpop.xlane.xlu1 %1458  ;;  %1480 = vadd.xlane.f32.xlu1 %v1479_v42  ;;  %v1455_v45 = vpop.xlane.xlu0 %1454 }
0x1d06   :  { %v1460_v46 = vsel %vm1440_vm5, %v1459_v44, %v1426_v17  ;;  %v1456_v47 = vsel %vm1440_vm5, %v1455_v45, %v1422_v16 }
0x1d07   :  { %v1491_v51 = vmul.f32 %v1471_v24, %v1460_v46  ;;  %v1487_v52 = vmul.f32 %v1471_v24, %v1456_v47 }
0x1d09   :  { %1492 = vadd.xlane.f32.xlu0 %v1491_v51  ;;  %1488 = vadd.xlane.f32.xlu1 %v1487_v52  ;;  %v1463_v54 = vpop.xlane.xlu0 %1462 }
0x1d0a   :  { %v1464_v55 = vsel %vm1440_vm5, %v1463_v54, %v1430_v21 }
0x1d0b   :  { %v1495_v56 = vmul.f32 %v1471_v24, %v1464_v55 }
0x1d0d   :  { %1496 = vadd.xlane.f32.xlu1 %v1495_v56 }
0x1d1f   :  { %v1477_v60 = vpop.xlane.xlu0 %1476 }
0x1d20   :  { %v1478_v62 = vsel %vm1474_vm6, %v1477_v60, %v1444_v26 }
0x1d21   :  { %v1509_v63 = vmul.f32 %v1505_v59, %v1478_v62 }
0x1d23   :  { %1510 = vadd.xlane.f32.xlu1 %v1509_v63 }
0x1d8e   :  { %v1467_v0 = vpop.xlane.xlu1 %1466 }
0x1d8f   :  { %v1468_v3 = vsel %vm1440_vm5, %v1467_v0, %v1434_v29  ;;  %vm1804_vm5 = vcmp.eq.s32.totalorder %v3603_v1, 33 }
0x1d90   :  { %v1499_v4 = vmul.f32 %v1471_v24, %v1468_v3  ;;  %v150_v24 = vsel %vm148_vm7, %v59_v23, 0.0 }
0x1d92   :  { %1500 = vadd.xlane.f32.xlu0 %v1499_v4  ;;  %v1481_v5 = vpop.xlane.xlu1 %1480  ;;  %v1485_v6 = vpop.xlane.xlu0 %1484 }
0x1d93   :  { %v1482_v9 = vsel %vm1474_vm6, %v1481_v5, %v1448_v38  ;;  %v1486_v10 = vsel %vm1474_vm6, %v1485_v6, %v1452_v37 }
0x1d94   :  { %v1513_v11 = vmul.f32 %v1505_v59, %v1482_v9  ;;  %v1517_v12 = vmul.f32 %v1505_v59, %v1486_v10 }
0x1d96   :  { %1514 = vadd.xlane.f32.xlu0 %v1513_v11  ;;  %v1489_v13 = vpop.xlane.xlu1 %1488  ;;  %1518 = vadd.xlane.f32.xlu1 %v1517_v12  ;;  %v1493_v14 = vpop.xlane.xlu0 %1492 }
0x1d97   :  { %v1490_v15 = vsel %vm1474_vm6, %v1489_v13, %v1456_v47  ;;  %v1494_v16 = vsel %vm1474_vm6, %v1493_v14, %v1460_v46 }
0x1d98   :  { %v1521_v17 = vmul.f32 %v1505_v59, %v1490_v15  ;;  %v1525_v18 = vmul.f32 %v1505_v59, %v1494_v16 }
0x1d9a   :  { %1522 = vadd.xlane.f32.xlu0 %v1521_v17  ;;  %v1497_v20 = vpop.xlane.xlu1 %1496  ;;  %1526 = vadd.xlane.f32.xlu1 %v1525_v18 }
0x1d9b   :  { %v1498_v21 = vsel %vm1474_vm6, %v1497_v20, %v1464_v55 }
0x1d9c   :  { %v1529_v22 = vmul.f32 %v1505_v59, %v1498_v21 }
0x1d9e   :  { %1530 = vadd.xlane.f32.xlu0 %v1529_v22 }
0x1da2   :  { %151 = vadd.xlane.f32.xlu0 %v150_v24 }
0x1db0   :  { %v1511_v25 = vpop.xlane.xlu1 %1510 }
0x1db1   :  { %v1512_v30 = vsel %vm1508_vm8, %v1511_v25, %v1478_v62  ;;  %v155_v62 = vsel %vm154_vm10, %v59_v23, 0.0  ;;  %vm1880_vm10 = vcmp.eq.s32.totalorder %v3603_v1, 31 }
0x1db2   :  { %v1543_v40 = vmul.f32 %v1539_v32, %v1512_v30 }
0x1e1f   :  { %v1501_v26 = vpop.xlane.xlu0 %1500 }
0x1e20   :  { %v1502_v28 = vsel %vm1474_vm6, %v1501_v26, %v1468_v3  ;;  %v305_v3 = vsel %vm304_vm11, -1.0, %v3592_v43  ;;  %vm1922_vm11 = vcmp.eq.s32.totalorder %v3603_v1, 30 }
0x1e21   :  { %v1533_v29 = vmul.f32 %v1505_v59, %v1502_v28 }
0x1e23   :  { %v1519_v35 = vpop.xlane.xlu1 %1518  ;;  %1534 = vadd.xlane.f32.xlu1 %v1533_v29  ;;  %v1515_v37 = vpop.xlane.xlu0 %1514 }
0x1e24   :  { %v1516_v38 = vsel %vm1508_vm8, %v1515_v37, %v1482_v9  ;;  %v1520_v44 = vsel %vm1508_vm8, %v1519_v35, %v1486_v10 }
0x1e25   :  { %v1547_v42 = vmul.f32 %v1539_v32, %v1516_v38  ;;  %v1551_v51 = vmul.f32 %v1539_v32, %v1520_v44 }
0x1e27   :  { %v1527_v45 = vpop.xlane.xlu1 %1526  ;;  %1544 = vadd.xlane.f32.xlu1 %v1543_v40  ;;  %v1523_v46 = vpop.xlane.xlu0 %1522  ;;  %1548 = vadd.xlane.f32.xlu0 %v1547_v42 }
0x1e28   :  { %v1524_v47 = vsel %vm1508_vm8, %v1523_v46, %v1490_v15  ;;  %v1528_v54 = vsel %vm1508_vm8, %v1527_v45, %v1494_v16 }
0x1e29   :  { %v1555_v52 = vmul.f32 %v1539_v32, %v1524_v47  ;;  %v1559_v57 = vmul.f32 %v1539_v32, %v1528_v54 }
0x1e2b   :  { %1552 = vadd.xlane.f32.xlu1 %v1551_v51  ;;  %v1531_v55 = vpop.xlane.xlu0 %1530  ;;  %1556 = vadd.xlane.f32.xlu0 %v1555_v52 }
0x1e2c   :  { %v1532_v56 = vsel %vm1508_vm8, %v1531_v55, %v1498_v21 }
0x1e2d   :  { %v1563_v59 = vmul.f32 %v1539_v32, %v1532_v56 }
0x1e2f   :  { %1560 = vadd.xlane.f32.xlu1 %v1559_v57  ;;  %1564 = vadd.xlane.f32.xlu0 %v1563_v59  ;;  %v4190_v60 = vpop.xlane.xlu0 %151 }
0x1e30   :  { %3581 = vrcp.f32 %v4190_v60 }
0x1e3a   :  { %v4196_v63 = vpop.eup %3581 }
0x1e3b   :  { %v157_v0 = vmul.f32 %v4196_v63, %v155_v62 }
0x1e3d   :  { %158 = vst [vmem:[#allocation2 + $0x20] sm:$0xff] %v157_v0 }
0x1e44   :  { %v1572_v4 = vld [vmem:[#allocation2 + $0x27] ss:$0 sm:$0xff] }
0x1e45   :  { %v1573_v5 = vxor.u32 2147483648, %v1572_v4 }
0x1e47   :  { %v1577_v6 = vmul.f32 %v1573_v5, %v305_v3 }
0x1e49   :  { %1578 = vadd.xlane.f32.xlu0 %v1577_v6 }
0x1eb0   :  { %v1535_v9 = vpop.xlane.xlu1 %1534 }
0x1eb1   :  { %v1536_v10 = vsel %vm1508_vm8, %v1535_v9, %v1502_v28 }
0x1eb2   :  { %v1567_v11 = vmul.f32 %v1539_v32, %v1536_v10 }
0x1eb4   :  { %1568 = vadd.xlane.f32.xlu1 %v1567_v11  ;;  %v1545_v12 = vpop.xlane.xlu1 %1544  ;;  %v1549_v13 = vpop.xlane.xlu0 %1548  ;;  %v1648_v11 = vld [vmem:[#allocation2 + $0x25] ss:$0 sm:$0xff] }
0x1eb5   :  { %v1546_v14 = vsel %vm1542_vm12, %v1545_v12, %v1512_v30  ;;  %v1550_v15 = vsel %vm1542_vm12, %v1549_v13, %v1516_v38  ;;  %v1610_v30 = vld [vmem:[#allocation2 + $0x26] ss:$0 sm:$0xff]  ;;  %v1649_v12 = vxor.u32 2147483648, %v1648_v11 }
0x1eb6   :  { %v1581_v16 = vmul.f32 %v1573_v5, %v1546_v14  ;;  %v1585_v17 = vmul.f32 %v1573_v5, %v1550_v15  ;;  %v1611_v32 = vxor.u32 2147483648, %v1610_v30 }
0x1eb8   :  { %v1553_v18 = vpop.xlane.xlu1 %1552  ;;  %1582 = vadd.xlane.f32.xlu1 %v1581_v16  ;;  %1586 = vadd.xlane.f32.xlu0 %v1585_v17  ;;  %v1557_v19 = vpop.xlane.xlu0 %1556 }
0x1eb9   :  { %v1554_v20 = vsel %vm1542_vm12, %v1553_v18, %v1520_v44  ;;  %v1558_v21 = vsel %vm1542_vm12, %v1557_v19, %v1524_v47 }
0x1eba   :  { %v1589_v22 = vmul.f32 %v1573_v5, %v1554_v20  ;;  %v1593_v23 = vmul.f32 %v1573_v5, %v1558_v21 }
0x1ebc   :  { %v1561_v24 = vpop.xlane.xlu1 %1560  ;;  %1590 = vadd.xlane.f32.xlu1 %v1589_v22  ;;  %1594 = vadd.xlane.f32.xlu0 %v1593_v23  ;;  %v1565_v25 = vpop.xlane.xlu0 %1564 }
0x1ebd   :  { %v1562_v26 = vsel %vm1542_vm12, %v1561_v24, %v1528_v54  ;;  %v1566_v27 = vsel %vm1542_vm12, %v1565_v25, %v1532_v56 }
0x1ebe   :  { %v1597_v28 = vmul.f32 %v1573_v5, %v1562_v26  ;;  %v1601_v29 = vmul.f32 %v1573_v5, %v1566_v27 }
0x1ec0   :  { %1598 = vadd.xlane.f32.xlu1 %v1597_v28  ;;  %1602 = vadd.xlane.f32.xlu0 %v1601_v29 }
0x1ed6   :  { %v1579_v35 = vpop.xlane.xlu0 %1578 }
0x1ed7   :  { %v1580_v37 = vsel %vm1576_vm13, %v1579_v35, %v305_v3 }
0x1ed8   :  { %v1615_v38 = vmul.f32 %v1611_v32, %v1580_v37 }
0x1eda   :  { %1616 = vadd.xlane.f32.xlu0 %v1615_v38 }
0x1f41   :  { %v1569_v40 = vpop.xlane.xlu1 %1568 }
0x1f42   :  { %v1570_v42 = vsel %vm1542_vm12, %v1569_v40, %v1536_v10  ;;  %vm1964_vm12 = vcmp.eq.s32.totalorder %v3603_v1, 29 }
0x1f43   :  { %v1605_v44 = vmul.f32 %v1573_v5, %v1570_v42 }
0x1f45   :  { %1606 = vadd.xlane.f32.xlu1 %v1605_v44  ;;  %v1583_v45 = vpop.xlane.xlu1 %1582  ;;  %v1587_v46 = vpop.xlane.xlu0 %1586  ;;  %v1686_v44 = vld [vmem:[#allocation2 + $0x24] ss:$0 sm:$0xff] }
0x1f46   :  { %v1584_v47 = vsel %vm1576_vm13, %v1583_v45, %v1546_v14  ;;  %v1588_v51 = vsel %vm1576_vm13, %v1587_v46, %v1550_v15  ;;  %v1687_v45 = vxor.u32 2147483648, %v1686_v44 }
0x1f47   :  { %v1619_v52 = vmul.f32 %v1611_v32, %v1584_v47  ;;  %v1623_v54 = vmul.f32 %v1611_v32, %v1588_v51 }
0x1f49   :  { %1620 = vadd.xlane.f32.xlu1 %v1619_v52  ;;  %v1591_v55 = vpop.xlane.xlu1 %1590  ;;  %1624 = vadd.xlane.f32.xlu0 %v1623_v54  ;;  %v1595_v56 = vpop.xlane.xlu0 %1594 }
0x1f4a   :  { %v1592_v57 = vsel %vm1576_vm13, %v1591_v55, %v1554_v20  ;;  %v1596_v59 = vsel %vm1576_vm13, %v1595_v56, %v1558_v21 }
0x1f4b   :  { %v1627_v62 = vmul.f32 %v1611_v32, %v1592_v57  ;;  %v1631_v0 = vmul.f32 %v1611_v32, %v1596_v59 }
0x1f4d   :  { %1628 = vadd.xlane.f32.xlu1 %v1627_v62  ;;  %v1599_v3 = vpop.xlane.xlu1 %1598  ;;  %1632 = vadd.xlane.f32.xlu0 %v1631_v0  ;;  %v1603_v4 = vpop.xlane.xlu0 %1602 }
0x1f4e   :  { %v1600_v5 = vsel %vm1576_vm13, %v1599_v3, %v1562_v26  ;;  %v1604_v6 = vsel %vm1576_vm13, %v1603_v4, %v1566_v27 }
0x1f4f   :  { %v1635_v9 = vmul.f32 %v1611_v32, %v1600_v5  ;;  %v1639_v10 = vmul.f32 %v1611_v32, %v1604_v6 }
0x1f51   :  { %1636 = vadd.xlane.f32.xlu1 %v1635_v9  ;;  %1640 = vadd.xlane.f32.xlu0 %v1639_v10 }
0x1f67   :  { %v1617_v13 = vpop.xlane.xlu0 %1616 }
0x1f68   :  { %v1618_v14 = vsel %vm1614_vm14, %v1617_v13, %v1580_v37 }
0x1f69   :  { %v1653_v15 = vmul.f32 %v1649_v12, %v1618_v14 }
0x1f6b   :  { %1654 = vadd.xlane.f32.xlu0 %v1653_v15 }
0x1fd2   :  { %v1607_v16 = vpop.xlane.xlu1 %1606 }
0x1fd3   :  { %v1608_v17 = vsel %vm1576_vm13, %v1607_v16, %v1570_v42  ;;  %vm2006_vm13 = vcmp.eq.s32.totalorder %v3603_v1, 28 }
0x1fd4   :  { %v1643_v18 = vmul.f32 %v1611_v32, %v1608_v17 }
0x1fd6   :  { %1644 = vadd.xlane.f32.xlu1 %v1643_v18  ;;  %v1621_v19 = vpop.xlane.xlu1 %1620  ;;  %v1625_v20 = vpop.xlane.xlu0 %1624  ;;  %v1724_v18 = vld [vmem:[#allocation2 + $0x23] ss:$0 sm:$0xff] }
0x1fd7   :  { %v1622_v21 = vsel %vm1614_vm14, %v1621_v19, %v1584_v47  ;;  %v1626_v22 = vsel %vm1614_vm14, %v1625_v20, %v1588_v51  ;;  %v1725_v19 = vxor.u32 2147483648, %v1724_v18 }
0x1fd8   :  { %v1657_v23 = vmul.f32 %v1649_v12, %v1622_v21  ;;  %v1661_v24 = vmul.f32 %v1649_v12, %v1626_v22 }
0x1fda   :  { %1658 = vadd.xlane.f32.xlu1 %v1657_v23  ;;  %v1629_v25 = vpop.xlane.xlu1 %1628  ;;  %1662 = vadd.xlane.f32.xlu0 %v1661_v24  ;;  %v1633_v26 = vpop.xlane.xlu0 %1632 }
0x1fdb   :  { %v1630_v27 = vsel %vm1614_vm14, %v1629_v25, %v1592_v57  ;;  %v1634_v28 = vsel %vm1614_vm14, %v1633_v26, %v1596_v59 }
0x1fdc   :  { %v1665_v29 = vmul.f32 %v1649_v12, %v1630_v27  ;;  %v1669_v30 = vmul.f32 %v1649_v12, %v1634_v28 }
0x1fde   :  { %1666 = vadd.xlane.f32.xlu1 %v1665_v29  ;;  %v1637_v32 = vpop.xlane.xlu1 %1636  ;;  %1670 = vadd.xlane.f32.xlu0 %v1669_v30  ;;  %v1641_v35 = vpop.xlane.xlu0 %1640 }
0x1fdf   :  { %v1638_v37 = vsel %vm1614_vm14, %v1637_v32, %v1600_v5  ;;  %v1642_v38 = vsel %vm1614_vm14, %v1641_v35, %v1604_v6 }
0x1fe0   :  { %v1673_v40 = vmul.f32 %v1649_v12, %v1638_v37  ;;  %v1677_v42 = vmul.f32 %v1649_v12, %v1642_v38 }
0x1fe2   :  { %1674 = vadd.xlane.f32.xlu1 %v1673_v40  ;;  %1678 = vadd.xlane.f32.xlu0 %v1677_v42 }
0x1ff8   :  { %v1655_v46 = vpop.xlane.xlu0 %1654 }
0x1ff9   :  { %v1656_v47 = vsel %vm1652_vm15, %v1655_v46, %v1618_v14 }
0x1ffa   :  { %v1691_v51 = vmul.f32 %v1687_v45, %v1656_v47 }
0x1ffc   :  { %1692 = vadd.xlane.f32.xlu0 %v1691_v51 }
0x2063   :  { %v1645_v52 = vpop.xlane.xlu1 %1644 }
0x2064   :  { %v1646_v54 = vsel %vm1614_vm14, %v1645_v52, %v1608_v17  ;;  %vm2048_vm14 = vcmp.eq.s32.totalorder %v3603_v1, 27 }
0x2065   :  { %v1681_v55 = vmul.f32 %v1649_v12, %v1646_v54 }
0x2067   :  { %1682 = vadd.xlane.f32.xlu1 %v1681_v55  ;;  %v1659_v56 = vpop.xlane.xlu1 %1658  ;;  %v1663_v57 = vpop.xlane.xlu0 %1662  ;;  %v1762_v55 = vld [vmem:[#allocation2 + $0x22] ss:$0 sm:$0xff] }
0x2068   :  { %v1660_v59 = vsel %vm1652_vm15, %v1659_v56, %v1622_v21  ;;  %v1664_v62 = vsel %vm1652_vm15, %v1663_v57, %v1626_v22  ;;  %v1763_v56 = vxor.u32 2147483648, %v1762_v55 }
0x2069   :  { %v1695_v0 = vmul.f32 %v1687_v45, %v1660_v59  ;;  %v1699_v3 = vmul.f32 %v1687_v45, %v1664_v62 }
0x206b   :  { %1696 = vadd.xlane.f32.xlu1 %v1695_v0  ;;  %v1667_v4 = vpop.xlane.xlu1 %1666  ;;  %1700 = vadd.xlane.f32.xlu0 %v1699_v3  ;;  %v1671_v5 = vpop.xlane.xlu0 %1670 }
0x206c   :  { %v1668_v6 = vsel %vm1652_vm15, %v1667_v4, %v1630_v27  ;;  %v1672_v9 = vsel %vm1652_vm15, %v1671_v5, %v1634_v28 }
0x206d   :  { %v1703_v10 = vmul.f32 %v1687_v45, %v1668_v6  ;;  %v1707_v11 = vmul.f32 %v1687_v45, %v1672_v9 }
0x206f   :  { %1704 = vadd.xlane.f32.xlu1 %v1703_v10  ;;  %v1675_v12 = vpop.xlane.xlu1 %1674  ;;  %1708 = vadd.xlane.f32.xlu0 %v1707_v11  ;;  %v1679_v13 = vpop.xlane.xlu0 %1678 }
0x2070   :  { %v1676_v14 = vsel %vm1652_vm15, %v1675_v12, %v1638_v37  ;;  %v1680_v15 = vsel %vm1652_vm15, %v1679_v13, %v1642_v38 }
0x2071   :  { %v1711_v16 = vmul.f32 %v1687_v45, %v1676_v14  ;;  %v1715_v17 = vmul.f32 %v1687_v45, %v1680_v15 }
0x2073   :  { %1712 = vadd.xlane.f32.xlu1 %v1711_v16  ;;  %1716 = vadd.xlane.f32.xlu0 %v1715_v17 }
0x2089   :  { %v1693_v20 = vpop.xlane.xlu0 %1692 }
0x208a   :  { %v1694_v21 = vsel %vm1690_vm1, %v1693_v20, %v1656_v47 }
0x208b   :  { %v1729_v22 = vmul.f32 %v1725_v19, %v1694_v21 }
0x208d   :  { %1730 = vadd.xlane.f32.xlu0 %v1729_v22 }
0x20f4   :  { %v1683_v23 = vpop.xlane.xlu1 %1682 }
0x20f5   :  { %v1684_v24 = vsel %vm1652_vm15, %v1683_v23, %v1646_v54  ;;  %vm2090_vm15 = vcmp.eq.s32.totalorder %v3603_v1, 26 }
0x20f6   :  { %v1719_v25 = vmul.f32 %v1687_v45, %v1684_v24 }
0x20f8   :  { %1720 = vadd.xlane.f32.xlu1 %v1719_v25  ;;  %v1697_v26 = vpop.xlane.xlu1 %1696  ;;  %v1701_v27 = vpop.xlane.xlu0 %1700  ;;  %v1800_v25 = vld [vmem:[#allocation2 + $0x21] ss:$0 sm:$0xff] }
0x20f9   :  { %v1698_v28 = vsel %vm1690_vm1, %v1697_v26, %v1660_v59  ;;  %v1702_v29 = vsel %vm1690_vm1, %v1701_v27, %v1664_v62  ;;  %v1801_v26 = vxor.u32 2147483648, %v1800_v25 }
0x20fa   :  { %v1733_v30 = vmul.f32 %v1725_v19, %v1698_v28  ;;  %v1737_v32 = vmul.f32 %v1725_v19, %v1702_v29 }
0x20fc   :  { %1734 = vadd.xlane.f32.xlu1 %v1733_v30  ;;  %v1705_v35 = vpop.xlane.xlu1 %1704  ;;  %1738 = vadd.xlane.f32.xlu0 %v1737_v32  ;;  %v1709_v37 = vpop.xlane.xlu0 %1708 }
0x20fd   :  { %v1706_v38 = vsel %vm1690_vm1, %v1705_v35, %v1668_v6  ;;  %v1710_v40 = vsel %vm1690_vm1, %v1709_v37, %v1672_v9 }
0x20fe   :  { %v1741_v42 = vmul.f32 %v1725_v19, %v1706_v38  ;;  %v1745_v44 = vmul.f32 %v1725_v19, %v1710_v40 }
0x2100   :  { %1742 = vadd.xlane.f32.xlu1 %v1741_v42  ;;  %v1713_v45 = vpop.xlane.xlu1 %1712  ;;  %1746 = vadd.xlane.f32.xlu0 %v1745_v44  ;;  %v1717_v46 = vpop.xlane.xlu0 %1716 }
0x2101   :  { %v1714_v47 = vsel %vm1690_vm1, %v1713_v45, %v1676_v14  ;;  %v1718_v51 = vsel %vm1690_vm1, %v1717_v46, %v1680_v15 }
0x2102   :  { %v1749_v52 = vmul.f32 %v1725_v19, %v1714_v47  ;;  %v1753_v54 = vmul.f32 %v1725_v19, %v1718_v51 }
0x2104   :  { %1750 = vadd.xlane.f32.xlu1 %v1749_v52  ;;  %1754 = vadd.xlane.f32.xlu0 %v1753_v54 }
0x211a   :  { %v1731_v57 = vpop.xlane.xlu0 %1730 }
0x211b   :  { %v1732_v59 = vsel %vm1728_vm2, %v1731_v57, %v1694_v21 }
0x211c   :  { %v1767_v62 = vmul.f32 %v1763_v56, %v1732_v59 }
0x211e   :  { %1768 = vadd.xlane.f32.xlu0 %v1767_v62 }
0x2185   :  { %v1721_v0 = vpop.xlane.xlu1 %1720 }
0x2186   :  { %v1722_v3 = vsel %vm1690_vm1, %v1721_v0, %v1684_v24 }
0x2187   :  { %v1757_v4 = vmul.f32 %v1725_v19, %v1722_v3 }
0x2189   :  { %1758 = vadd.xlane.f32.xlu1 %v1757_v4  ;;  %v1735_v5 = vpop.xlane.xlu1 %1734  ;;  %v1739_v6 = vpop.xlane.xlu0 %1738 }
0x218a   :  { %v1736_v9 = vsel %vm1728_vm2, %v1735_v5, %v1698_v28  ;;  %v1740_v10 = vsel %vm1728_vm2, %v1739_v6, %v1702_v29  ;;  %v57_v5 = vld [vmem:[%s5229_s0 + $0x18] sm:$0xff] }
0x218b   :  { %v1771_v11 = vmul.f32 %v1763_v56, %v1736_v9  ;;  %v1775_v12 = vmul.f32 %v1763_v56, %v1740_v10 }
0x218d   :  { %1772 = vadd.xlane.f32.xlu1 %v1771_v11  ;;  %v1743_v13 = vpop.xlane.xlu1 %1742  ;;  %1776 = vadd.xlane.f32.xlu0 %v1775_v12  ;;  %v1747_v14 = vpop.xlane.xlu0 %1746  ;;  %v1838_v11 = vld [vmem:[#allocation2 + $0x20] ss:$0 sm:$0xff] }
0x218e   :  { %v1744_v15 = vsel %vm1728_vm2, %v1743_v13, %v1706_v38  ;;  %v1748_v16 = vsel %vm1728_vm2, %v1747_v14, %v1710_v40 }
0x218f   :  { %v1779_v17 = vmul.f32 %v1763_v56, %v1744_v15  ;;  %v1783_v18 = vmul.f32 %v1763_v56, %v1748_v16 }
0x2191   :  { %1780 = vadd.xlane.f32.xlu1 %v1779_v17  ;;  %v1751_v19 = vpop.xlane.xlu1 %1750  ;;  %1784 = vadd.xlane.f32.xlu0 %v1783_v18  ;;  %v1755_v20 = vpop.xlane.xlu0 %1754 }
0x2192   :  { %v1752_v21 = vsel %vm1728_vm2, %v1751_v19, %v1714_v47  ;;  %v1756_v22 = vsel %vm1728_vm2, %v1755_v20, %v1718_v51 }
0x2193   :  { %v1787_v23 = vmul.f32 %v1763_v56, %v1752_v21  ;;  %v1791_v24 = vmul.f32 %v1763_v56, %v1756_v22 }
0x2195   :  { %1788 = vadd.xlane.f32.xlu1 %v1787_v23  ;;  %1792 = vadd.xlane.f32.xlu0 %v1791_v24 }
0x21ab   :  { %v1769_v27 = vpop.xlane.xlu0 %1768 }
0x21ac   :  { %v1770_v28 = vsel %vm1766_vm3, %v1769_v27, %v1732_v59 }
0x21ad   :  { %v1805_v29 = vmul.f32 %v1801_v26, %v1770_v28 }
0x21af   :  { %1806 = vadd.xlane.f32.xlu0 %v1805_v29 }
0x2216   :  { %v1759_v30 = vpop.xlane.xlu1 %1758 }
0x2217   :  { %v1760_v32 = vsel %vm1728_vm2, %v1759_v30, %v1722_v3  ;;  %vm2132_vm2 = vcmp.eq.s32.totalorder %v3603_v1, 25 }
0x2218   :  { %v1795_v35 = vmul.f32 %v1763_v56, %v1760_v32  ;;  %v131_v56 = vadd.s32 24, %v3605_v2 }
0x221a   :  { %1796 = vadd.xlane.f32.xlu1 %v1795_v35  ;;  %v1773_v37 = vpop.xlane.xlu1 %1772  ;;  %v1777_v38 = vpop.xlane.xlu0 %1776  ;;  %vm132_vm4 = vcmp.eq.s32.totalorder %v131_v56, %v3603_v1  ;;  %vm137_vm6 = vcmp.le.s32.totalorder %v131_v56, %v3603_v1  ;;  %vm297_vm8 = vcmp.eq.s32.totalorder %v3603_v1, %v131_v56 }
0x221b   :  { %v1774_v40 = vsel %vm1766_vm3, %v1773_v37, %v1736_v9  ;;  %v1778_v42 = vsel %vm1766_vm3, %v1777_v38, %v1740_v10  ;;  %v134_v6 = vsel %vm132_vm4, %v57_v5, 0.0  ;;  %vm138_vm7 = vmand %vm137_vm6, %vm80_vm0  ;;  %vm2174_vm6 = vcmp.eq.s32.totalorder %v3603_v1, 24 }
0x221c   :  { %v1809_v44 = vmul.f32 %v1801_v26, %v1774_v40  ;;  %v1813_v45 = vmul.f32 %v1801_v26, %v1778_v42 }
0x221e   :  { %1810 = vadd.xlane.f32.xlu1 %v1809_v44  ;;  %v1781_v46 = vpop.xlane.xlu1 %1780  ;;  %1814 = vadd.xlane.f32.xlu0 %v1813_v45  ;;  %v1785_v47 = vpop.xlane.xlu0 %1784 }
0x221f   :  { %v1782_v51 = vsel %vm1766_vm3, %v1781_v46, %v1744_v15  ;;  %v1786_v52 = vsel %vm1766_vm3, %v1785_v47, %v1748_v16  ;;  %v1839_v15 = vxor.u32 2147483648, %v1838_v11  ;;  %v298_v46 = vsel %vm297_vm8, -1.0, %v3592_v43 }
0x2220   :  { %v1817_v54 = vmul.f32 %v1801_v26, %v1782_v51  ;;  %v1821_v55 = vmul.f32 %v1801_v26, %v1786_v52  ;;  %vm2262_vm8 = vcmp.eq.s32.totalorder %v3603_v1, 22 }
0x2222   :  { %1818 = vadd.xlane.f32.xlu1 %v1817_v54  ;;  %v1789_v57 = vpop.xlane.xlu1 %1788  ;;  %1822 = vadd.xlane.f32.xlu0 %v1821_v55  ;;  %v1793_v59 = vpop.xlane.xlu0 %1792 }
0x2223   :  { %v1790_v62 = vsel %vm1766_vm3, %v1789_v57, %v1752_v21  ;;  %v1794_v0 = vsel %vm1766_vm3, %v1793_v59, %v1756_v22 }
0x2224   :  { %v1825_v3 = vmul.f32 %v1801_v26, %v1790_v62  ;;  %v1829_v4 = vmul.f32 %v1801_v26, %v1794_v0 }
0x2226   :  { %1826 = vadd.xlane.f32.xlu1 %v1825_v3  ;;  %1830 = vadd.xlane.f32.xlu0 %v1829_v4 }
0x222a   :  { %135 = vadd.xlane.f32.xlu0 %v134_v6 }
0x223c   :  { %v1807_v9 = vpop.xlane.xlu0 %1806 }
0x223d   :  { %v1808_v14 = vsel %vm1804_vm5, %v1807_v9, %v1770_v28 }
0x223e   :  { %v1843_v19 = vmul.f32 %v1839_v15, %v1808_v14 }
0x22a7   :  { %v1797_v10 = vpop.xlane.xlu1 %1796 }
0x22a8   :  { %v1798_v12 = vsel %vm1766_vm3, %v1797_v10, %v1760_v32 }
0x22a9   :  { %v1833_v13 = vmul.f32 %v1801_v26, %v1798_v12 }
0x22ab   :  { %1834 = vadd.xlane.f32.xlu1 %v1833_v13  ;;  %v1811_v16 = vpop.xlane.xlu1 %1810  ;;  %v1815_v17 = vpop.xlane.xlu0 %1814 }
0x22ac   :  { %v1812_v18 = vsel %vm1804_vm5, %v1811_v16, %v1774_v40  ;;  %v1816_v21 = vsel %vm1804_vm5, %v1815_v17, %v1778_v42  ;;  %v139_v42 = vsel %vm138_vm7, %v57_v5, 0.0  ;;  %vm2216_vm7 = vcmp.eq.s32.totalorder %v3603_v1, 23 }
0x22ad   :  { %v1847_v20 = vmul.f32 %v1839_v15, %v1812_v18  ;;  %v1851_v25 = vmul.f32 %v1839_v15, %v1816_v21 }
0x22af   :  { %v1819_v22 = vpop.xlane.xlu1 %1818  ;;  %1844 = vadd.xlane.f32.xlu1 %v1843_v19  ;;  %v1823_v23 = vpop.xlane.xlu0 %1822  ;;  %1848 = vadd.xlane.f32.xlu0 %v1847_v20 }
0x22b0   :  { %v1820_v24 = vsel %vm1804_vm5, %v1819_v22, %v1782_v51  ;;  %v1824_v27 = vsel %vm1804_vm5, %v1823_v23, %v1786_v52 }
0x22b1   :  { %v1855_v26 = vmul.f32 %v1839_v15, %v1820_v24  ;;  %v1859_v32 = vmul.f32 %v1839_v15, %v1824_v27 }
0x22b3   :  { %v1827_v28 = vpop.xlane.xlu1 %1826  ;;  %1852 = vadd.xlane.f32.xlu1 %v1851_v25  ;;  %v1831_v29 = vpop.xlane.xlu0 %1830  ;;  %1856 = vadd.xlane.f32.xlu0 %v1855_v26 }
0x22b4   :  { %v1828_v30 = vsel %vm1804_vm5, %v1827_v28, %v1790_v62  ;;  %v1832_v37 = vsel %vm1804_vm5, %v1831_v29, %v1794_v0 }
0x22b5   :  { %v1863_v35 = vmul.f32 %v1839_v15, %v1828_v30  ;;  %v1867_v40 = vmul.f32 %v1839_v15, %v1832_v37 }
0x22b7   :  { %1860 = vadd.xlane.f32.xlu1 %v1859_v32  ;;  %1864 = vadd.xlane.f32.xlu0 %v1863_v35  ;;  %v4340_v38 = vpop.xlane.xlu0 %135 }
0x22b8   :  { %3583 = vrcp.f32 %v4340_v38 }
0x22bb   :  { %1868 = vadd.xlane.f32.xlu1 %v1867_v40 }
0x22c2   :  { %v4346_v44 = vpop.eup %3583 }
0x22c3   :  { %v141_v45 = vmul.f32 %v4346_v44, %v139_v42 }
0x22c5   :  { %142 = vst [vmem:[#allocation2 + $0x18] sm:$0xff] %v141_v45 }
0x22cc   :  { %v1876_v47 = vld [vmem:[#allocation2 + $0x1f] ss:$0 sm:$0xff]  ;;  %v1918_v22 = vld [vmem:[#allocation2 + $0x1e] ss:$0 sm:$0xff] }
0x22cd   :  { %v1877_v51 = vxor.u32 2147483648, %v1876_v47  ;;  %v1919_v23 = vxor.u32 2147483648, %v1918_v22 }
0x22cf   :  { %v1881_v52 = vmul.f32 %v1877_v51, %v298_v46 }
0x22d1   :  { %1882 = vadd.xlane.f32.xlu1 %v1881_v52 }
0x2338   :  { %v1835_v54 = vpop.xlane.xlu1 %1834 }
0x2339   :  { %v1836_v55 = vsel %vm1804_vm5, %v1835_v54, %v1798_v12 }
0x233a   :  { %v1871_v57 = vmul.f32 %v1839_v15, %v1836_v55 }
0x233c   :  { %v1845_v59 = vpop.xlane.xlu1 %1844  ;;  %1872 = vadd.xlane.f32.xlu0 %v1871_v57  ;;  %v1849_v62 = vpop.xlane.xlu0 %1848 }
0x233d   :  { %v1846_v0 = vsel %vm1842_vm9, %v1845_v59, %v1808_v14  ;;  %v1850_v56 = vsel %vm1842_vm9, %v1849_v62, %v1812_v18 }
0x233e   :  { %v1885_v3 = vmul.f32 %v1877_v51, %v1846_v0  ;;  %v1889_v4 = vmul.f32 %v1877_v51, %v1850_v56 }
0x2340   :  { %v1853_v5 = vpop.xlane.xlu1 %1852  ;;  %1886 = vadd.xlane.f32.xlu0 %v1885_v3  ;;  %1890 = vadd.xlane.f32.xlu1 %v1889_v4  ;;  %v1857_v6 = vpop.xlane.xlu0 %1856 }
0x2341   :  { %v1854_v9 = vsel %vm1842_vm9, %v1853_v5, %v1816_v21  ;;  %v1858_v10 = vsel %vm1842_vm9, %v1857_v6, %v1820_v24  ;;  %v1960_v6 = vld [vmem:[#allocation2 + $0x1d] ss:$0 sm:$0xff] }
0x2342   :  { %v1893_v11 = vmul.f32 %v1877_v51, %v1854_v9  ;;  %v1897_v12 = vmul.f32 %v1877_v51, %v1858_v10 }
0x2344   :  { %v1861_v13 = vpop.xlane.xlu1 %1860  ;;  %1894 = vadd.xlane.f32.xlu0 %v1893_v11  ;;  %1898 = vadd.xlane.f32.xlu1 %v1897_v12  ;;  %v1865_v14 = vpop.xlane.xlu0 %1864 }
0x2345   :  { %v1862_v15 = vsel %vm1842_vm9, %v1861_v13, %v1824_v27  ;;  %v1866_v16 = vsel %vm1842_vm9, %v1865_v14, %v1828_v30 }
0x2346   :  { %v1901_v17 = vmul.f32 %v1877_v51, %v1862_v15  ;;  %v1905_v18 = vmul.f32 %v1877_v51, %v1866_v16 }
0x2348   :  { %v1869_v19 = vpop.xlane.xlu1 %1868  ;;  %1902 = vadd.xlane.f32.xlu0 %v1901_v17  ;;  %1906 = vadd.xlane.f32.xlu1 %v1905_v18 }
0x2349   :  { %v1870_v20 = vsel %vm1842_vm9, %v1869_v19, %v1832_v37 }
0x234a   :  { %v1909_v21 = vmul.f32 %v1877_v51, %v1870_v20 }
0x234c   :  { %1910 = vadd.xlane.f32.xlu0 %v1909_v21 }
0x235e   :  { %v1883_v24 = vpop.xlane.xlu1 %1882 }
0x235f   :  { %v1884_v25 = vsel %vm1880_vm10, %v1883_v24, %v298_v46 }
0x2360   :  { %v1923_v26 = vmul.f32 %v1919_v23, %v1884_v25 }
0x2362   :  { %1924 = vadd.xlane.f32.xlu0 %v1923_v26 }
0x23c9   :  { %v1873_v27 = vpop.xlane.xlu0 %1872 }
0x23ca   :  { %v1874_v28 = vsel %vm1842_vm9, %v1873_v27, %v1836_v55  ;;  %vm2308_vm9 = vcmp.eq.s32.totalorder %v3603_v1, 21 }
0x23cb   :  { %v1913_v29 = vmul.f32 %v1877_v51, %v1874_v28 }
0x23cd   :  { %v1891_v30 = vpop.xlane.xlu1 %1890  ;;  %1914 = vadd.xlane.f32.xlu1 %v1913_v29  ;;  %v1887_v32 = vpop.xlane.xlu0 %1886 }
0x23ce   :  { %v1892_v35 = vsel %vm1880_vm10, %v1891_v30, %v1850_v56  ;;  %v1888_v37 = vsel %vm1880_vm10, %v1887_v32, %v1846_v0 }
0x23cf   :  { %v1931_v40 = vmul.f32 %v1919_v23, %v1892_v35  ;;  %v1927_v42 = vmul.f32 %v1919_v23, %v1888_v37 }
0x23d1   :  { %1932 = vadd.xlane.f32.xlu0 %v1931_v40  ;;  %v1899_v45 = vpop.xlane.xlu1 %1898  ;;  %1928 = vadd.xlane.f32.xlu1 %v1927_v42  ;;  %v1895_v46 = vpop.xlane.xlu0 %1894 }
0x23d2   :  { %v1900_v47 = vsel %vm1880_vm10, %v1899_v45, %v1858_v10  ;;  %v1896_v51 = vsel %vm1880_vm10, %v1895_v46, %v1854_v9  ;;  %v1961_v9 = vxor.u32 2147483648, %v1960_v6  ;;  %v2002_v46 = vld [vmem:[#allocation2 + $0x1c] ss:$0 sm:$0xff] }
0x23d3   :  { %v1939_v52 = vmul.f32 %v1919_v23, %v1900_v47  ;;  %v1935_v54 = vmul.f32 %v1919_v23, %v1896_v51 }
0x23d5   :  { %1940 = vadd.xlane.f32.xlu0 %v1939_v52  ;;  %v1907_v55 = vpop.xlane.xlu1 %1906  ;;  %1936 = vadd.xlane.f32.xlu1 %v1935_v54  ;;  %v1903_v57 = vpop.xlane.xlu0 %1902 }
0x23d6   :  { %v1908_v59 = vsel %vm1880_vm10, %v1907_v55, %v1866_v16  ;;  %v1904_v62 = vsel %vm1880_vm10, %v1903_v57, %v1862_v15 }
0x23d7   :  { %v1947_v0 = vmul.f32 %v1919_v23, %v1908_v59  ;;  %v1943_v56 = vmul.f32 %v1919_v23, %v1904_v62 }
0x23d9   :  { %1948 = vadd.xlane.f32.xlu0 %v1947_v0  ;;  %1944 = vadd.xlane.f32.xlu1 %v1943_v56  ;;  %v1911_v3 = vpop.xlane.xlu0 %1910 }
0x23da   :  { %v1912_v4 = vsel %vm1880_vm10, %v1911_v3, %v1870_v20 }
0x23db   :  { %v1951_v5 = vmul.f32 %v1919_v23, %v1912_v4 }
0x23dd   :  { %1952 = vadd.xlane.f32.xlu1 %v1951_v5 }
0x23ef   :  { %v1925_v10 = vpop.xlane.xlu0 %1924 }
0x23f0   :  { %v1926_v11 = vsel %vm1922_vm11, %v1925_v10, %v1884_v25 }
0x23f1   :  { %v1965_v12 = vmul.f32 %v1961_v9, %v1926_v11 }
0x23f3   :  { %1966 = vadd.xlane.f32.xlu1 %v1965_v12 }
0x245a   :  { %v1915_v13 = vpop.xlane.xlu1 %1914 }
0x245b   :  { %v1916_v14 = vsel %vm1880_vm10, %v1915_v13, %v1874_v28  ;;  %vm2354_vm10 = vcmp.eq.s32.totalorder %v3603_v1, 20 }
0x245c   :  { %v1955_v15 = vmul.f32 %v1919_v23, %v1916_v14 }
0x245e   :  { %1956 = vadd.xlane.f32.xlu0 %v1955_v15  ;;  %v1929_v16 = vpop.xlane.xlu1 %1928  ;;  %v1933_v17 = vpop.xlane.xlu0 %1932 }
0x245f   :  { %v1930_v18 = vsel %vm1922_vm11, %v1929_v16, %v1888_v37  ;;  %v1934_v19 = vsel %vm1922_vm11, %v1933_v17, %v1892_v35 }
0x2460   :  { %v1969_v20 = vmul.f32 %v1961_v9, %v1930_v18  ;;  %v1973_v21 = vmul.f32 %v1961_v9, %v1934_v19 }
0x2462   :  { %1970 = vadd.xlane.f32.xlu0 %v1969_v20  ;;  %v1937_v22 = vpop.xlane.xlu1 %1936  ;;  %1974 = vadd.xlane.f32.xlu1 %v1973_v21  ;;  %v1941_v24 = vpop.xlane.xlu0 %1940 }
0x2463   :  { %v1938_v25 = vsel %vm1922_vm11, %v1937_v22, %v1896_v51  ;;  %v1942_v23 = vsel %vm1922_vm11, %v1941_v24, %v1900_v47  ;;  %v2003_v47 = vxor.u32 2147483648, %v2002_v46  ;;  %v2044_v24 = vld [vmem:[#allocation2 + $0x1b] ss:$0 sm:$0xff] }
0x2464   :  { %v1977_v26 = vmul.f32 %v1961_v9, %v1938_v25  ;;  %v1981_v27 = vmul.f32 %v1961_v9, %v1942_v23 }
0x2466   :  { %1978 = vadd.xlane.f32.xlu0 %v1977_v26  ;;  %v1945_v28 = vpop.xlane.xlu1 %1944  ;;  %1982 = vadd.xlane.f32.xlu1 %v1981_v27  ;;  %v1949_v29 = vpop.xlane.xlu0 %1948 }
0x2467   :  { %v1946_v30 = vsel %vm1922_vm11, %v1945_v28, %v1904_v62  ;;  %v1950_v32 = vsel %vm1922_vm11, %v1949_v29, %v1908_v59 }
0x2468   :  { %v1985_v35 = vmul.f32 %v1961_v9, %v1946_v30  ;;  %v1989_v37 = vmul.f32 %v1961_v9, %v1950_v32 }
0x246a   :  { %1986 = vadd.xlane.f32.xlu0 %v1985_v35  ;;  %v1953_v40 = vpop.xlane.xlu1 %1952  ;;  %1990 = vadd.xlane.f32.xlu1 %v1989_v37 }
0x246b   :  { %v1954_v42 = vsel %vm1922_vm11, %v1953_v40, %v1912_v4 }
0x246c   :  { %v1993_v45 = vmul.f32 %v1961_v9, %v1954_v42 }
0x246e   :  { %1994 = vadd.xlane.f32.xlu0 %v1993_v45 }
0x2480   :  { %v1967_v51 = vpop.xlane.xlu1 %1966 }
0x2481   :  { %v1968_v52 = vsel %vm1964_vm12, %v1967_v51, %v1926_v11 }
0x2482   :  { %v2007_v54 = vmul.f32 %v2003_v47, %v1968_v52 }
0x2484   :  { %2008 = vadd.xlane.f32.xlu0 %v2007_v54 }
0x24eb   :  { %v1957_v55 = vpop.xlane.xlu0 %1956 }
0x24ec   :  { %v1958_v57 = vsel %vm1922_vm11, %v1957_v55, %v1916_v14  ;;  %vm2400_vm11 = vcmp.eq.s32.totalorder %v3603_v1, 19 }
0x24ed   :  { %v1997_v59 = vmul.f32 %v1961_v9, %v1958_v57 }
0x24ef   :  { %v1975_v62 = vpop.xlane.xlu1 %1974  ;;  %1998 = vadd.xlane.f32.xlu1 %v1997_v59  ;;  %v1971_v0 = vpop.xlane.xlu0 %1970 }
0x24f0   :  { %v1976_v56 = vsel %vm1964_vm12, %v1975_v62, %v1934_v19  ;;  %v1972_v3 = vsel %vm1964_vm12, %v1971_v0, %v1930_v18 }
0x24f1   :  { %v2015_v4 = vmul.f32 %v2003_v47, %v1976_v56  ;;  %v2011_v5 = vmul.f32 %v2003_v47, %v1972_v3 }
0x24f3   :  { %2016 = vadd.xlane.f32.xlu0 %v2015_v4  ;;  %v1983_v6 = vpop.xlane.xlu1 %1982  ;;  %2012 = vadd.xlane.f32.xlu1 %v2011_v5  ;;  %v1979_v10 = vpop.xlane.xlu0 %1978 }
0x24f4   :  { %v1984_v11 = vsel %vm1964_vm12, %v1983_v6, %v1942_v23  ;;  %v1980_v9 = vsel %vm1964_vm12, %v1979_v10, %v1938_v25  ;;  %v2045_v25 = vxor.u32 2147483648, %v2044_v24  ;;  %v2086_v10 = vld [vmem:[#allocation2 + $0x1a] ss:$0 sm:$0xff] }
0x24f5   :  { %v2023_v12 = vmul.f32 %v2003_v47, %v1984_v11  ;;  %v2019_v13 = vmul.f32 %v2003_v47, %v1980_v9 }
0x24f7   :  { %2024 = vadd.xlane.f32.xlu0 %v2023_v12  ;;  %v1991_v14 = vpop.xlane.xlu1 %1990  ;;  %2020 = vadd.xlane.f32.xlu1 %v2019_v13  ;;  %v1987_v15 = vpop.xlane.xlu0 %1986 }
0x24f8   :  { %v1992_v16 = vsel %vm1964_vm12, %v1991_v14, %v1950_v32  ;;  %v1988_v17 = vsel %vm1964_vm12, %v1987_v15, %v1946_v30 }
0x24f9   :  { %v2031_v18 = vmul.f32 %v2003_v47, %v1992_v16  ;;  %v2027_v19 = vmul.f32 %v2003_v47, %v1988_v17 }
0x24fb   :  { %2032 = vadd.xlane.f32.xlu0 %v2031_v18  ;;  %2028 = vadd.xlane.f32.xlu1 %v2027_v19  ;;  %v1995_v20 = vpop.xlane.xlu0 %1994 }
0x24fc   :  { %v1996_v21 = vsel %vm1964_vm12, %v1995_v20, %v1954_v42 }
0x24fd   :  { %v2035_v22 = vmul.f32 %v2003_v47, %v1996_v21 }
0x24ff   :  { %2036 = vadd.xlane.f32.xlu1 %v2035_v22 }
0x2511   :  { %v2009_v23 = vpop.xlane.xlu0 %2008 }
0x2512   :  { %v2010_v26 = vsel %vm2006_vm13, %v2009_v23, %v1968_v52 }
0x2513   :  { %v2049_v27 = vmul.f32 %v2045_v25, %v2010_v26 }
0x2515   :  { %2050 = vadd.xlane.f32.xlu1 %v2049_v27 }
0x257c   :  { %v1999_v28 = vpop.xlane.xlu1 %1998 }
0x257d   :  { %v2000_v29 = vsel %vm1964_vm12, %v1999_v28, %v1958_v57  ;;  %vm2446_vm12 = vcmp.eq.s32.totalorder %v3603_v1, 18 }
0x257e   :  { %v2039_v30 = vmul.f32 %v2003_v47, %v2000_v29 }
0x2580   :  { %2040 = vadd.xlane.f32.xlu0 %v2039_v30  ;;  %v2013_v32 = vpop.xlane.xlu1 %2012  ;;  %v2017_v35 = vpop.xlane.xlu0 %2016 }
0x2581   :  { %v2014_v37 = vsel %vm2006_vm13, %v2013_v32, %v1972_v3  ;;  %v2018_v40 = vsel %vm2006_vm13, %v2017_v35, %v1976_v56 }
0x2582   :  { %v2053_v42 = vmul.f32 %v2045_v25, %v2014_v37  ;;  %v2057_v45 = vmul.f32 %v2045_v25, %v2018_v40 }
0x2584   :  { %2054 = vadd.xlane.f32.xlu0 %v2053_v42  ;;  %v2021_v46 = vpop.xlane.xlu1 %2020  ;;  %2058 = vadd.xlane.f32.xlu1 %v2057_v45  ;;  %v2025_v51 = vpop.xlane.xlu0 %2024 }
0x2585   :  { %v2022_v52 = vsel %vm2006_vm13, %v2021_v46, %v1980_v9  ;;  %v2026_v47 = vsel %vm2006_vm13, %v2025_v51, %v1984_v11  ;;  %v2087_v11 = vxor.u32 2147483648, %v2086_v10  ;;  %v2128_v51 = vld [vmem:[#allocation2 + $0x19] ss:$0 sm:$0xff] }
0x2586   :  { %v2061_v54 = vmul.f32 %v2045_v25, %v2022_v52  ;;  %v2065_v55 = vmul.f32 %v2045_v25, %v2026_v47 }
0x2588   :  { %2062 = vadd.xlane.f32.xlu0 %v2061_v54  ;;  %v2029_v57 = vpop.xlane.xlu1 %2028  ;;  %2066 = vadd.xlane.f32.xlu1 %v2065_v55  ;;  %v2033_v59 = vpop.xlane.xlu0 %2032 }
0x2589   :  { %v2030_v62 = vsel %vm2006_vm13, %v2029_v57, %v1988_v17  ;;  %v2034_v0 = vsel %vm2006_vm13, %v2033_v59, %v1992_v16 }
0x258a   :  { %v2069_v56 = vmul.f32 %v2045_v25, %v2030_v62  ;;  %v2073_v3 = vmul.f32 %v2045_v25, %v2034_v0 }
0x258c   :  { %2070 = vadd.xlane.f32.xlu0 %v2069_v56  ;;  %v2037_v4 = vpop.xlane.xlu1 %2036  ;;  %2074 = vadd.xlane.f32.xlu1 %v2073_v3 }
0x258d   :  { %v2038_v5 = vsel %vm2006_vm13, %v2037_v4, %v1996_v21 }
0x258e   :  { %v2077_v6 = vmul.f32 %v2045_v25, %v2038_v5 }
0x2590   :  { %2078 = vadd.xlane.f32.xlu0 %v2077_v6 }
0x25a2   :  { %v2051_v9 = vpop.xlane.xlu1 %2050 }
0x25a3   :  { %v2052_v12 = vsel %vm2048_vm14, %v2051_v9, %v2010_v26 }
0x25a4   :  { %v2091_v13 = vmul.f32 %v2087_v11, %v2052_v12 }
0x25a6   :  { %2092 = vadd.xlane.f32.xlu0 %v2091_v13 }
0x260d   :  { %v2041_v14 = vpop.xlane.xlu0 %2040 }
0x260e   :  { %v2042_v15 = vsel %vm2006_vm13, %v2041_v14, %v2000_v29 }
0x260f   :  { %v2081_v16 = vmul.f32 %v2045_v25, %v2042_v15 }
0x2611   :  { %v2059_v17 = vpop.xlane.xlu1 %2058  ;;  %2082 = vadd.xlane.f32.xlu1 %v2081_v16  ;;  %v2055_v18 = vpop.xlane.xlu0 %2054 }
0x2612   :  { %v2060_v19 = vsel %vm2048_vm14, %v2059_v17, %v2018_v40  ;;  %v2056_v20 = vsel %vm2048_vm14, %v2055_v18, %v2014_v37 }
0x2613   :  { %v2099_v21 = vmul.f32 %v2087_v11, %v2060_v19  ;;  %v2095_v22 = vmul.f32 %v2087_v11, %v2056_v20 }
0x2615   :  { %2100 = vadd.xlane.f32.xlu0 %v2099_v21  ;;  %v2067_v24 = vpop.xlane.xlu1 %2066  ;;  %2096 = vadd.xlane.f32.xlu1 %v2095_v22  ;;  %v2063_v23 = vpop.xlane.xlu0 %2062  ;;  %v115_v21 = vadd.s32 16, %v3605_v2 }
0x2616   :  { %v2068_v26 = vsel %vm2048_vm14, %v2067_v24, %v2026_v47  ;;  %v2064_v25 = vsel %vm2048_vm14, %v2063_v23, %v2022_v52  ;;  %v2129_v52 = vxor.u32 2147483648, %v2128_v51 }
0x2617   :  { %v2107_v27 = vmul.f32 %v2087_v11, %v2068_v26  ;;  %v2103_v28 = vmul.f32 %v2087_v11, %v2064_v25  ;;  %vm116_vm1 = vcmp.eq.s32.totalorder %v115_v21, %v3603_v1  ;;  %vm121_vm3 = vcmp.le.s32.totalorder %v115_v21, %v3603_v1 }
0x2618   :  { %vm122_vm4 = vmand %vm121_vm3, %vm80_vm0  ;;  %vm290_vm5 = vcmp.eq.s32.totalorder %v3603_v1, %v115_v21  ;;  %vm2538_vm3 = vcmp.eq.s32.totalorder %v3603_v1, 16 }
0x2619   :  { %2108 = vadd.xlane.f32.xlu0 %v2107_v27  ;;  %v2075_v29 = vpop.xlane.xlu1 %2074  ;;  %2104 = vadd.xlane.f32.xlu1 %v2103_v28  ;;  %v2071_v30 = vpop.xlane.xlu0 %2070 }
0x261a   :  { %v2076_v32 = vsel %vm2048_vm14, %v2075_v29, %v2034_v0  ;;  %v2072_v35 = vsel %vm2048_vm14, %v2071_v30, %v2030_v62  ;;  %v2170_v29 = vld [vmem:[#allocation2 + $0x18] ss:$0 sm:$0xff] }
0x261b   :  { %v2115_v37 = vmul.f32 %v2087_v11, %v2076_v32  ;;  %v2111_v40 = vmul.f32 %v2087_v11, %v2072_v35 }
0x261d   :  { %2116 = vadd.xlane.f32.xlu0 %v2115_v37  ;;  %2112 = vadd.xlane.f32.xlu1 %v2111_v40  ;;  %v2079_v42 = vpop.xlane.xlu0 %2078  ;;  %v2171_v37 = vxor.u32 2147483648, %v2170_v29 }
0x261e   :  { %v2080_v45 = vsel %vm2048_vm14, %v2079_v42, %v2038_v5 }
0x261f   :  { %v2119_v46 = vmul.f32 %v2087_v11, %v2080_v45 }
0x2621   :  { %2120 = vadd.xlane.f32.xlu1 %v2119_v46 }
0x2633   :  { %v2093_v47 = vpop.xlane.xlu0 %2092 }
0x2634   :  { %v2094_v54 = vsel %vm2090_vm15, %v2093_v47, %v2052_v12 }
0x2635   :  { %v2133_v55 = vmul.f32 %v2129_v52, %v2094_v54 }
0x2637   :  { %2134 = vadd.xlane.f32.xlu1 %v2133_v55 }
0x269e   :  { %v2083_v57 = vpop.xlane.xlu1 %2082 }
0x269f   :  { %v2084_v59 = vsel %vm2048_vm14, %v2083_v57, %v2042_v15  ;;  %vm2492_vm14 = vcmp.eq.s32.totalorder %v3603_v1, 17 }
0x26a0   :  { %v2123_v62 = vmul.f32 %v2087_v11, %v2084_v59 }
0x26a2   :  { %2124 = vadd.xlane.f32.xlu0 %v2123_v62  ;;  %v2097_v0 = vpop.xlane.xlu1 %2096  ;;  %v2101_v56 = vpop.xlane.xlu0 %2100 }
0x26a3   :  { %v2098_v3 = vsel %vm2090_vm15, %v2097_v0, %v2056_v20  ;;  %v2102_v4 = vsel %vm2090_vm15, %v2101_v56, %v2060_v19 }
0x26a4   :  { %v2137_v5 = vmul.f32 %v2129_v52, %v2098_v3  ;;  %v2141_v6 = vmul.f32 %v2129_v52, %v2102_v4 }
0x26a6   :  { %2138 = vadd.xlane.f32.xlu0 %v2137_v5  ;;  %v2105_v10 = vpop.xlane.xlu1 %2104  ;;  %2142 = vadd.xlane.f32.xlu1 %v2141_v6  ;;  %v2109_v9 = vpop.xlane.xlu0 %2108 }
0x26a7   :  { %v2106_v12 = vsel %vm2090_vm15, %v2105_v10, %v2064_v25  ;;  %v2110_v11 = vsel %vm2090_vm15, %v2109_v9, %v2068_v26  ;;  %v55_v26 = vld [vmem:[%s5229_s0 + $0x10] sm:$0xff] }
0x26a8   :  { %v2145_v13 = vmul.f32 %v2129_v52, %v2106_v12  ;;  %v2149_v14 = vmul.f32 %v2129_v52, %v2110_v11  ;;  %v118_v25 = vsel %vm116_vm1, %v55_v26, 0.0 }
0x26aa   :  { %2146 = vadd.xlane.f32.xlu0 %v2145_v13  ;;  %v2113_v15 = vpop.xlane.xlu1 %2112  ;;  %2150 = vadd.xlane.f32.xlu1 %v2149_v14  ;;  %v2117_v16 = vpop.xlane.xlu0 %2116  ;;  %v123_v14 = vsel %vm122_vm4, %v55_v26, 0.0  ;;  %vm2584_vm4 = vcmp.eq.s32.totalorder %v3603_v1, 15 }
0x26ab   :  { %v2114_v17 = vsel %vm2090_vm15, %v2113_v15, %v2072_v35  ;;  %v2118_v18 = vsel %vm2090_vm15, %v2117_v16, %v2076_v32 }
0x26ac   :  { %v2153_v19 = vmul.f32 %v2129_v52, %v2114_v17  ;;  %v2157_v20 = vmul.f32 %v2129_v52, %v2118_v18 }
0x26ae   :  { %2154 = vadd.xlane.f32.xlu0 %v2153_v19  ;;  %v2121_v22 = vpop.xlane.xlu1 %2120  ;;  %2158 = vadd.xlane.f32.xlu1 %v2157_v20 }
0x26af   :  { %v2122_v24 = vsel %vm2090_vm15, %v2121_v22, %v2080_v45 }
0x26b0   :  { %v2161_v23 = vmul.f32 %v2129_v52, %v2122_v24 }
0x26b2   :  { %2162 = vadd.xlane.f32.xlu0 %v2161_v23 }
0x26b6   :  { %119 = vadd.xlane.f32.xlu0 %v118_v25 }
0x26c4   :  { %v2135_v27 = vpop.xlane.xlu1 %2134 }
0x26c5   :  { %v2136_v35 = vsel %vm2132_vm2, %v2135_v27, %v2094_v54 }
0x26c6   :  { %v2175_v46 = vmul.f32 %v2171_v37, %v2136_v35 }
0x272f   :  { %v2125_v28 = vpop.xlane.xlu0 %2124 }
0x2730   :  { %v2126_v30 = vsel %vm2090_vm15, %v2125_v28, %v2084_v59 }
0x2731   :  { %v2165_v32 = vmul.f32 %v2129_v52, %v2126_v30 }
0x2733   :  { %v2143_v40 = vpop.xlane.xlu1 %2142  ;;  %2166 = vadd.xlane.f32.xlu1 %v2165_v32  ;;  %v2139_v42 = vpop.xlane.xlu0 %2138 }
0x2734   :  { %v2140_v45 = vsel %vm2132_vm2, %v2139_v42, %v2098_v3  ;;  %v2144_v47 = vsel %vm2132_vm2, %v2143_v40, %v2102_v4 }
0x2735   :  { %v2179_v51 = vmul.f32 %v2171_v37, %v2140_v45  ;;  %v2183_v54 = vmul.f32 %v2171_v37, %v2144_v47 }
0x2737   :  { %v2151_v55 = vpop.xlane.xlu1 %2150  ;;  %2176 = vadd.xlane.f32.xlu1 %v2175_v46  ;;  %v2147_v57 = vpop.xlane.xlu0 %2146  ;;  %2180 = vadd.xlane.f32.xlu0 %v2179_v51 }
0x2738   :  { %v2148_v52 = vsel %vm2132_vm2, %v2147_v57, %v2106_v12  ;;  %v2152_v62 = vsel %vm2132_vm2, %v2151_v55, %v2110_v11 }
0x2739   :  { %v2187_v59 = vmul.f32 %v2171_v37, %v2148_v52  ;;  %v2191_v4 = vmul.f32 %v2171_v37, %v2152_v62 }
0x273b   :  { %v2159_v0 = vpop.xlane.xlu1 %2158  ;;  %2184 = vadd.xlane.f32.xlu1 %v2183_v54  ;;  %v2155_v56 = vpop.xlane.xlu0 %2154  ;;  %2188 = vadd.xlane.f32.xlu0 %v2187_v59 }
0x273c   :  { %v2156_v3 = vsel %vm2132_vm2, %v2155_v56, %v2114_v17  ;;  %v2160_v6 = vsel %vm2132_vm2, %v2159_v0, %v2118_v18  ;;  %v291_v18 = vsel %vm290_vm5, -1.0, %v3592_v43  ;;  %vm2634_vm5 = vcmp.eq.s32.totalorder %v3603_v1, 14 }
0x273d   :  { %v2195_v5 = vmul.f32 %v2171_v37, %v2156_v3  ;;  %v2199_v12 = vmul.f32 %v2171_v37, %v2160_v6 }
0x273f   :  { %2192 = vadd.xlane.f32.xlu1 %v2191_v4  ;;  %v2163_v10 = vpop.xlane.xlu0 %2162  ;;  %2196 = vadd.xlane.f32.xlu0 %v2195_v5 }
0x2740   :  { %v2164_v9 = vsel %vm2132_vm2, %v2163_v10, %v2122_v24 }
0x2741   :  { %v2203_v11 = vmul.f32 %v2171_v37, %v2164_v9 }
0x2743   :  { %2200 = vadd.xlane.f32.xlu1 %v2199_v12  ;;  %2204 = vadd.xlane.f32.xlu0 %v2203_v11  ;;  %v4506_v13 = vpop.xlane.xlu0 %119 }
0x2744   :  { %3585 = vrcp.f32 %v4506_v13 }
0x274e   :  { %v4512_v15 = vpop.eup %3585 }
0x274f   :  { %v125_v16 = vmul.f32 %v4512_v15, %v123_v14 }
0x2751   :  { %126 = vst [vmem:[#allocation2 + $0x10] sm:$0xff] %v125_v16 }
0x2758   :  { %v2212_v17 = vld [vmem:[#allocation2 + $0x17] ss:$0 sm:$0xff] }
0x2759   :  { %v2213_v19 = vxor.u32 2147483648, %v2212_v17 }
0x275b   :  { %v2217_v20 = vmul.f32 %v2213_v19, %v291_v18 }
0x275d   :  { %2218 = vadd.xlane.f32.xlu0 %v2217_v20 }
0x27c0   :  { %v2167_v22 = vpop.xlane.xlu1 %2166 }
0x27c1   :  { %v2168_v24 = vsel %vm2132_vm2, %v2167_v22, %v2126_v30 }
0x27c2   :  { %v2207_v23 = vmul.f32 %v2171_v37, %v2168_v24 }
0x27c4   :  { %2208 = vadd.xlane.f32.xlu1 %v2207_v23  ;;  %v2177_v26 = vpop.xlane.xlu1 %2176  ;;  %v2181_v25 = vpop.xlane.xlu0 %2180 }
0x27c5   :  { %v2178_v27 = vsel %vm2174_vm6, %v2177_v26, %v2136_v35  ;;  %v2182_v21 = vsel %vm2174_vm6, %v2181_v25, %v2140_v45 }
0x27c6   :  { %v2221_v28 = vmul.f32 %v2213_v19, %v2178_v27  ;;  %v2225_v29 = vmul.f32 %v2213_v19, %v2182_v21 }
0x27c8   :  { %v2185_v32 = vpop.xlane.xlu1 %2184  ;;  %2222 = vadd.xlane.f32.xlu1 %v2221_v28  ;;  %2226 = vadd.xlane.f32.xlu0 %v2225_v29  ;;  %v2189_v40 = vpop.xlane.xlu0 %2188 }
0x27c9   :  { %v2186_v30 = vsel %vm2174_vm6, %v2185_v32, %v2144_v47  ;;  %v2190_v37 = vsel %vm2174_vm6, %v2189_v40, %v2148_v52 }
0x27ca   :  { %v2229_v42 = vmul.f32 %v2213_v19, %v2186_v30  ;;  %v2233_v46 = vmul.f32 %v2213_v19, %v2190_v37 }
0x27cc   :  { %v2193_v51 = vpop.xlane.xlu1 %2192  ;;  %2230 = vadd.xlane.f32.xlu1 %v2229_v42  ;;  %2234 = vadd.xlane.f32.xlu0 %v2233_v46  ;;  %v2197_v35 = vpop.xlane.xlu0 %2196 }
0x27cd   :  { %v2194_v45 = vsel %vm2174_vm6, %v2193_v51, %v2152_v62  ;;  %v2198_v55 = vsel %vm2174_vm6, %v2197_v35, %v2156_v3  ;;  %v2258_v62 = vld [vmem:[#allocation2 + $0x16] ss:$0 sm:$0xff] }
0x27ce   :  { %v2237_v57 = vmul.f32 %v2213_v19, %v2194_v45  ;;  %v2241_v54 = vmul.f32 %v2213_v19, %v2198_v55  ;;  %v2259_v5 = vxor.u32 2147483648, %v2258_v62 }
0x27d0   :  { %v2201_v59 = vpop.xlane.xlu1 %2200  ;;  %2238 = vadd.xlane.f32.xlu1 %v2237_v57  ;;  %2242 = vadd.xlane.f32.xlu0 %v2241_v54  ;;  %v2205_v47 = vpop.xlane.xlu0 %2204 }
0x27d1   :  { %v2202_v52 = vsel %vm2174_vm6, %v2201_v59, %v2160_v6  ;;  %v2206_v0 = vsel %vm2174_vm6, %v2205_v47, %v2164_v9 }
0x27d2   :  { %v2245_v56 = vmul.f32 %v2213_v19, %v2202_v52  ;;  %v2249_v4 = vmul.f32 %v2213_v19, %v2206_v0 }
0x27d4   :  { %2246 = vadd.xlane.f32.xlu1 %v2245_v56  ;;  %2250 = vadd.xlane.f32.xlu0 %v2249_v4 }
0x27ea   :  { %v2219_v3 = vpop.xlane.xlu0 %2218 }
0x27eb   :  { %v2220_v10 = vsel %vm2216_vm7, %v2219_v3, %v291_v18 }
0x27ec   :  { %v2263_v12 = vmul.f32 %v2259_v5, %v2220_v10 }
0x27ee   :  { %2264 = vadd.xlane.f32.xlu0 %v2263_v12 }
0x2851   :  { %v2209_v11 = vpop.xlane.xlu1 %2208 }
0x2852   :  { %v2210_v6 = vsel %vm2174_vm6, %v2209_v11, %v2168_v24  ;;  %vm2684_vm6 = vcmp.eq.s32.totalorder %v3603_v1, 13 }
0x2853   :  { %v2253_v14 = vmul.f32 %v2213_v19, %v2210_v6 }
0x2855   :  { %2254 = vadd.xlane.f32.xlu1 %v2253_v14  ;;  %v2223_v9 = vpop.xlane.xlu1 %2222  ;;  %v2227_v16 = vpop.xlane.xlu0 %2226 }
0x2856   :  { %v2224_v17 = vsel %vm2216_vm7, %v2223_v9, %v2178_v27  ;;  %v2228_v20 = vsel %vm2216_vm7, %v2227_v16, %v2182_v21 }
0x2857   :  { %v2267_v22 = vmul.f32 %v2259_v5, %v2224_v17  ;;  %v2271_v23 = vmul.f32 %v2259_v5, %v2228_v20 }
0x2859   :  { %2268 = vadd.xlane.f32.xlu1 %v2267_v22  ;;  %v2231_v18 = vpop.xlane.xlu1 %2230  ;;  %2272 = vadd.xlane.f32.xlu0 %v2271_v23  ;;  %v2235_v26 = vpop.xlane.xlu0 %2234 }
0x285a   :  { %v2232_v25 = vsel %vm2216_vm7, %v2231_v18, %v2186_v30  ;;  %v2236_v19 = vsel %vm2216_vm7, %v2235_v26, %v2190_v37 }
0x285b   :  { %v2275_v24 = vmul.f32 %v2259_v5, %v2232_v25  ;;  %v2279_v28 = vmul.f32 %v2259_v5, %v2236_v19 }
0x285d   :  { %2276 = vadd.xlane.f32.xlu1 %v2275_v24  ;;  %v2239_v29 = vpop.xlane.xlu1 %2238  ;;  %2280 = vadd.xlane.f32.xlu0 %v2279_v28  ;;  %v2243_v27 = vpop.xlane.xlu0 %2242 }
0x285e   :  { %v2240_v21 = vsel %vm2216_vm7, %v2239_v29, %v2194_v45  ;;  %v2244_v32 = vsel %vm2216_vm7, %v2243_v27, %v2198_v55  ;;  %v2304_v45 = vld [vmem:[#allocation2 + $0x15] ss:$0 sm:$0xff] }
0x285f   :  { %v2283_v40 = vmul.f32 %v2259_v5, %v2240_v21  ;;  %v2287_v42 = vmul.f32 %v2259_v5, %v2244_v32  ;;  %v2305_v55 = vxor.u32 2147483648, %v2304_v45 }
0x2861   :  { %2284 = vadd.xlane.f32.xlu1 %v2283_v40  ;;  %v2247_v46 = vpop.xlane.xlu1 %2246  ;;  %2288 = vadd.xlane.f32.xlu0 %v2287_v42  ;;  %v2251_v30 = vpop.xlane.xlu0 %2250 }
0x2862   :  { %v2248_v37 = vsel %vm2216_vm7, %v2247_v46, %v2202_v52  ;;  %v2252_v51 = vsel %vm2216_vm7, %v2251_v30, %v2206_v0 }
0x2863   :  { %v2291_v35 = vmul.f32 %v2259_v5, %v2248_v37  ;;  %v2295_v57 = vmul.f32 %v2259_v5, %v2252_v51 }
0x2865   :  { %2292 = vadd.xlane.f32.xlu1 %v2291_v35  ;;  %2296 = vadd.xlane.f32.xlu0 %v2295_v57 }
0x287b   :  { %v2265_v54 = vpop.xlane.xlu0 %2264 }
0x287c   :  { %v2266_v59 = vsel %vm2262_vm8, %v2265_v54, %v2220_v10 }
0x287d   :  { %v2309_v47 = vmul.f32 %v2305_v55, %v2266_v59 }
0x287f   :  { %2310 = vadd.xlane.f32.xlu0 %v2309_v47 }
0x28e2   :  { %v2255_v56 = vpop.xlane.xlu1 %2254 }
0x28e3   :  { %v2256_v52 = vsel %vm2216_vm7, %v2255_v56, %v2210_v6  ;;  %vm2734_vm7 = vcmp.eq.s32.totalorder %v3603_v1, 12 }
0x28e4   :  { %v2299_v4 = vmul.f32 %v2259_v5, %v2256_v52 }
0x28e6   :  { %2300 = vadd.xlane.f32.xlu1 %v2299_v4  ;;  %v2269_v0 = vpop.xlane.xlu1 %2268  ;;  %v2273_v62 = vpop.xlane.xlu0 %2272 }
0x28e7   :  { %v2270_v3 = vsel %vm2262_vm8, %v2269_v0, %v2224_v17  ;;  %v2274_v12 = vsel %vm2262_vm8, %v2273_v62, %v2228_v20 }
0x28e8   :  { %v2313_v11 = vmul.f32 %v2305_v55, %v2270_v3  ;;  %v2317_v14 = vmul.f32 %v2305_v55, %v2274_v12 }
0x28ea   :  { %2314 = vadd.xlane.f32.xlu1 %v2313_v11  ;;  %v2277_v10 = vpop.xlane.xlu1 %2276  ;;  %2318 = vadd.xlane.f32.xlu0 %v2317_v14  ;;  %v2281_v9 = vpop.xlane.xlu0 %2280 }
0x28eb   :  { %v2278_v16 = vsel %vm2262_vm8, %v2277_v10, %v2232_v25  ;;  %v2282_v5 = vsel %vm2262_vm8, %v2281_v9, %v2236_v19 }
0x28ec   :  { %v2321_v6 = vmul.f32 %v2305_v55, %v2278_v16  ;;  %v2325_v22 = vmul.f32 %v2305_v55, %v2282_v5 }
0x28ee   :  { %2322 = vadd.xlane.f32.xlu1 %v2321_v6  ;;  %v2285_v23 = vpop.xlane.xlu1 %2284  ;;  %2326 = vadd.xlane.f32.xlu0 %v2325_v22  ;;  %v2289_v17 = vpop.xlane.xlu0 %2288 }
0x28ef   :  { %v2286_v20 = vsel %vm2262_vm8, %v2285_v23, %v2240_v21  ;;  %v2290_v18 = vsel %vm2262_vm8, %v2289_v17, %v2244_v32  ;;  %v2350_v21 = vld [vmem:[#allocation2 + $0x14] ss:$0 sm:$0xff] }
0x28f0   :  { %v2329_v26 = vmul.f32 %v2305_v55, %v2286_v20  ;;  %v2333_v24 = vmul.f32 %v2305_v55, %v2290_v18  ;;  %v2351_v32 = vxor.u32 2147483648, %v2350_v21 }
0x28f2   :  { %2330 = vadd.xlane.f32.xlu1 %v2329_v26  ;;  %v2293_v28 = vpop.xlane.xlu1 %2292  ;;  %2334 = vadd.xlane.f32.xlu0 %v2333_v24  ;;  %v2297_v25 = vpop.xlane.xlu0 %2296 }
0x28f3   :  { %v2294_v19 = vsel %vm2262_vm8, %v2293_v28, %v2248_v37  ;;  %v2298_v29 = vsel %vm2262_vm8, %v2297_v25, %v2252_v51 }
0x28f4   :  { %v2337_v27 = vmul.f32 %v2305_v55, %v2294_v19  ;;  %v2341_v40 = vmul.f32 %v2305_v55, %v2298_v29 }
0x28f6   :  { %2338 = vadd.xlane.f32.xlu1 %v2337_v27  ;;  %2342 = vadd.xlane.f32.xlu0 %v2341_v40 }
0x290c   :  { %v2311_v42 = vpop.xlane.xlu0 %2310 }
0x290d   :  { %v2312_v46 = vsel %vm2308_vm9, %v2311_v42, %v2266_v59 }
0x290e   :  { %v2355_v30 = vmul.f32 %v2351_v32, %v2312_v46 }
0x2910   :  { %2356 = vadd.xlane.f32.xlu0 %v2355_v30 }
0x2973   :  { %v2301_v35 = vpop.xlane.xlu1 %2300 }
0x2974   :  { %v2302_v37 = vsel %vm2262_vm8, %v2301_v35, %v2256_v52  ;;  %vm2784_vm8 = vcmp.eq.s32.totalorder %v3603_v1, 11 }
0x2975   :  { %v2345_v57 = vmul.f32 %v2305_v55, %v2302_v37 }
0x2977   :  { %2346 = vadd.xlane.f32.xlu1 %v2345_v57  ;;  %v2315_v51 = vpop.xlane.xlu1 %2314  ;;  %v2319_v45 = vpop.xlane.xlu0 %2318 }
0x2978   :  { %v2316_v54 = vsel %vm2308_vm9, %v2315_v51, %v2270_v3  ;;  %v2320_v47 = vsel %vm2308_vm9, %v2319_v45, %v2274_v12 }
0x2979   :  { %v2359_v56 = vmul.f32 %v2351_v32, %v2316_v54  ;;  %v2363_v4 = vmul.f32 %v2351_v32, %v2320_v47 }
0x297b   :  { %2360 = vadd.xlane.f32.xlu1 %v2359_v56  ;;  %v2323_v59 = vpop.xlane.xlu1 %2322  ;;  %2364 = vadd.xlane.f32.xlu0 %v2363_v4  ;;  %v2327_v0 = vpop.xlane.xlu0 %2326 }
0x297c   :  { %v2324_v62 = vsel %vm2308_vm9, %v2323_v59, %v2278_v16  ;;  %v2328_v55 = vsel %vm2308_vm9, %v2327_v0, %v2282_v5 }
0x297d   :  { %v2367_v52 = vmul.f32 %v2351_v32, %v2324_v62  ;;  %v2371_v11 = vmul.f32 %v2351_v32, %v2328_v55 }
0x297f   :  { %2368 = vadd.xlane.f32.xlu1 %v2367_v52  ;;  %v2331_v14 = vpop.xlane.xlu1 %2330  ;;  %2372 = vadd.xlane.f32.xlu0 %v2371_v11  ;;  %v2335_v3 = vpop.xlane.xlu0 %2334 }
0x2980   :  { %v2332_v12 = vsel %vm2308_vm9, %v2331_v14, %v2286_v20  ;;  %v2336_v10 = vsel %vm2308_vm9, %v2335_v3, %v2290_v18  ;;  %v2396_v20 = vld [vmem:[#allocation2 + $0x13] ss:$0 sm:$0xff] }
0x2981   :  { %v2375_v9 = vmul.f32 %v2351_v32, %v2332_v12  ;;  %v2379_v6 = vmul.f32 %v2351_v32, %v2336_v10  ;;  %v2397_v18 = vxor.u32 2147483648, %v2396_v20 }
0x2983   :  { %2376 = vadd.xlane.f32.xlu1 %v2375_v9  ;;  %v2339_v22 = vpop.xlane.xlu1 %2338  ;;  %2380 = vadd.xlane.f32.xlu0 %v2379_v6  ;;  %v2343_v16 = vpop.xlane.xlu0 %2342 }
0x2984   :  { %v2340_v5 = vsel %vm2308_vm9, %v2339_v22, %v2294_v19  ;;  %v2344_v23 = vsel %vm2308_vm9, %v2343_v16, %v2298_v29 }
0x2985   :  { %v2383_v17 = vmul.f32 %v2351_v32, %v2340_v5  ;;  %v2387_v26 = vmul.f32 %v2351_v32, %v2344_v23 }
0x2987   :  { %2384 = vadd.xlane.f32.xlu1 %v2383_v17  ;;  %2388 = vadd.xlane.f32.xlu0 %v2387_v26 }
0x299d   :  { %v2357_v24 = vpop.xlane.xlu0 %2356 }
0x299e   :  { %v2358_v28 = vsel %vm2354_vm10, %v2357_v24, %v2312_v46 }
0x299f   :  { %v2401_v25 = vmul.f32 %v2397_v18, %v2358_v28 }
0x29a1   :  { %2402 = vadd.xlane.f32.xlu0 %v2401_v25 }
0x2a04   :  { %v2347_v27 = vpop.xlane.xlu1 %2346 }
0x2a05   :  { %v2348_v19 = vsel %vm2308_vm9, %v2347_v27, %v2302_v37  ;;  %vm2834_vm9 = vcmp.eq.s32.totalorder %v3603_v1, 10 }
0x2a06   :  { %v2391_v40 = vmul.f32 %v2351_v32, %v2348_v19 }
0x2a08   :  { %2392 = vadd.xlane.f32.xlu1 %v2391_v40  ;;  %v2361_v29 = vpop.xlane.xlu1 %2360  ;;  %v2365_v21 = vpop.xlane.xlu0 %2364 }
0x2a09   :  { %v2362_v42 = vsel %vm2354_vm10, %v2361_v29, %v2316_v54  ;;  %v2366_v30 = vsel %vm2354_vm10, %v2365_v21, %v2320_v47 }
0x2a0a   :  { %v2405_v35 = vmul.f32 %v2397_v18, %v2362_v42  ;;  %v2409_v57 = vmul.f32 %v2397_v18, %v2366_v30 }
0x2a0c   :  { %2406 = vadd.xlane.f32.xlu1 %v2405_v35  ;;  %v2369_v46 = vpop.xlane.xlu1 %2368  ;;  %2410 = vadd.xlane.f32.xlu0 %v2409_v57  ;;  %v2373_v51 = vpop.xlane.xlu0 %2372 }
0x2a0d   :  { %v2370_v45 = vsel %vm2354_vm10, %v2369_v46, %v2324_v62  ;;  %v2374_v32 = vsel %vm2354_vm10, %v2373_v51, %v2328_v55 }
0x2a0e   :  { %v2413_v37 = vmul.f32 %v2397_v18, %v2370_v45  ;;  %v2417_v56 = vmul.f32 %v2397_v18, %v2374_v32 }
0x2a10   :  { %2414 = vadd.xlane.f32.xlu1 %v2413_v37  ;;  %v2377_v4 = vpop.xlane.xlu1 %2376  ;;  %2418 = vadd.xlane.f32.xlu0 %v2417_v56  ;;  %v2381_v54 = vpop.xlane.xlu0 %2380 }
0x2a11   :  { %v2378_v47 = vsel %vm2354_vm10, %v2377_v4, %v2332_v12  ;;  %v2382_v59 = vsel %vm2354_vm10, %v2381_v54, %v2336_v10  ;;  %v2442_v12 = vld [vmem:[#allocation2 + $0x12] ss:$0 sm:$0xff] }
0x2a12   :  { %v2421_v0 = vmul.f32 %v2397_v18, %v2378_v47  ;;  %v2425_v52 = vmul.f32 %v2397_v18, %v2382_v59  ;;  %v2443_v10 = vxor.u32 2147483648, %v2442_v12 }
0x2a14   :  { %2422 = vadd.xlane.f32.xlu1 %v2421_v0  ;;  %v2385_v11 = vpop.xlane.xlu1 %2384  ;;  %2426 = vadd.xlane.f32.xlu0 %v2425_v52  ;;  %v2389_v62 = vpop.xlane.xlu0 %2388 }
0x2a15   :  { %v2386_v55 = vsel %vm2354_vm10, %v2385_v11, %v2340_v5  ;;  %v2390_v14 = vsel %vm2354_vm10, %v2389_v62, %v2344_v23 }
0x2a16   :  { %v2429_v3 = vmul.f32 %v2397_v18, %v2386_v55  ;;  %v2433_v9 = vmul.f32 %v2397_v18, %v2390_v14 }
0x2a18   :  { %2430 = vadd.xlane.f32.xlu1 %v2429_v3  ;;  %2434 = vadd.xlane.f32.xlu0 %v2433_v9 }
0x2a2e   :  { %v2403_v6 = vpop.xlane.xlu0 %2402 }
0x2a2f   :  { %v2404_v22 = vsel %vm2400_vm11, %v2403_v6, %v2358_v28 }
0x2a30   :  { %v2447_v16 = vmul.f32 %v2443_v10, %v2404_v22 }
0x2a32   :  { %2448 = vadd.xlane.f32.xlu0 %v2447_v16 }
0x2a95   :  { %v2393_v17 = vpop.xlane.xlu1 %2392 }
0x2a96   :  { %v2394_v5 = vsel %vm2354_vm10, %v2393_v17, %v2348_v19  ;;  %vm84_vm10 = vcmp.eq.s32.totalorder %v3605_v2, %v3603_v1 }
0x2a97   :  { %v2437_v26 = vmul.f32 %v2397_v18, %v2394_v5 }
0x2a99   :  { %2438 = vadd.xlane.f32.xlu1 %v2437_v26  ;;  %v2407_v23 = vpop.xlane.xlu1 %2406  ;;  %v2411_v20 = vpop.xlane.xlu0 %2410 }
0x2a9a   :  { %v2408_v24 = vsel %vm2400_vm11, %v2407_v23, %v2362_v42  ;;  %v2412_v25 = vsel %vm2400_vm11, %v2411_v20, %v2366_v30 }
0x2a9b   :  { %v2451_v27 = vmul.f32 %v2443_v10, %v2408_v24  ;;  %v2455_v40 = vmul.f32 %v2443_v10, %v2412_v25 }
0x2a9d   :  { %2452 = vadd.xlane.f32.xlu1 %v2451_v27  ;;  %v2415_v28 = vpop.xlane.xlu1 %2414  ;;  %2456 = vadd.xlane.f32.xlu0 %v2455_v40  ;;  %v2419_v29 = vpop.xlane.xlu0 %2418 }
0x2a9e   :  { %v2416_v21 = vsel %vm2400_vm11, %v2415_v28, %v2370_v45  ;;  %v2420_v18 = vsel %vm2400_vm11, %v2419_v29, %v2374_v32 }
0x2a9f   :  { %v2459_v19 = vmul.f32 %v2443_v10, %v2416_v21  ;;  %v2463_v35 = vmul.f32 %v2443_v10, %v2420_v18 }
0x2aa1   :  { %2460 = vadd.xlane.f32.xlu1 %v2459_v19  ;;  %v2423_v57 = vpop.xlane.xlu1 %2422  ;;  %2464 = vadd.xlane.f32.xlu0 %v2463_v35  ;;  %v2427_v42 = vpop.xlane.xlu0 %2426  ;;  %v4659_v35 = vadd.s32 8, %v3605_v2 }
0x2aa2   :  { %v2424_v30 = vsel %vm2400_vm11, %v2423_v57, %v2378_v47  ;;  %v2428_v46 = vsel %vm2400_vm11, %v2427_v42, %v2382_v59  ;;  %v2488_v47 = vld [vmem:[#allocation2 + $0x11] ss:$0 sm:$0xff] }
0x2aa3   :  { %v2467_v51 = vmul.f32 %v2443_v10, %v2424_v30  ;;  %v2471_v37 = vmul.f32 %v2443_v10, %v2428_v46  ;;  %v2489_v59 = vxor.u32 2147483648, %v2488_v47  ;;  %vm100_vm13 = vcmp.eq.s32.totalorder %v4659_v35, %v3603_v1 }
0x2aa4   :  { %vm105_vm15 = vcmp.le.s32.totalorder %v4659_v35, %v3603_v1  ;;  %vm283_vm2 = vcmp.eq.s32.totalorder %v3603_v1, %v4659_v35 }
0x2aa5   :  { %2468 = vadd.xlane.f32.xlu1 %v2467_v51  ;;  %v2431_v56 = vpop.xlane.xlu1 %2430  ;;  %2472 = vadd.xlane.f32.xlu0 %v2471_v37  ;;  %v2435_v45 = vpop.xlane.xlu0 %2434  ;;  %vm106_vm1 = vmand %vm105_vm15, %vm80_vm0  ;;  %vm2984_vm15 = vcmp.eq.s32.totalorder %v3603_v1, 7 }
0x2aa6   :  { %v2432_v32 = vsel %vm2400_vm11, %v2431_v56, %v2386_v55  ;;  %v2436_v4 = vsel %vm2400_vm11, %v2435_v45, %v2390_v14 }
0x2aa7   :  { %v2475_v54 = vmul.f32 %v2443_v10, %v2432_v32  ;;  %v2479_v0 = vmul.f32 %v2443_v10, %v2436_v4 }
0x2aa9   :  { %2476 = vadd.xlane.f32.xlu1 %v2475_v54  ;;  %2480 = vadd.xlane.f32.xlu0 %v2479_v0 }
0x2abf   :  { %v2449_v52 = vpop.xlane.xlu0 %2448 }
0x2ac0   :  { %v2450_v11 = vsel %vm2446_vm12, %v2449_v52, %v2404_v22 }
0x2ac1   :  { %v2493_v62 = vmul.f32 %v2489_v59, %v2450_v11 }
0x2ac3   :  { %2494 = vadd.xlane.f32.xlu0 %v2493_v62 }
0x2b26   :  { %v2439_v3 = vpop.xlane.xlu1 %2438 }
0x2b27   :  { %v2440_v55 = vsel %vm2400_vm11, %v2439_v3, %v2394_v5  ;;  %vm2884_vm11 = vcmp.eq.s32.totalorder %v3603_v1, 9 }
0x2b28   :  { %v2483_v9 = vmul.f32 %v2443_v10, %v2440_v55 }
0x2b2a   :  { %2484 = vadd.xlane.f32.xlu1 %v2483_v9  ;;  %v2453_v14 = vpop.xlane.xlu1 %2452  ;;  %v2457_v12 = vpop.xlane.xlu0 %2456 }
0x2b2b   :  { %v2454_v6 = vsel %vm2446_vm12, %v2453_v14, %v2408_v24  ;;  %v2458_v16 = vsel %vm2446_vm12, %v2457_v12, %v2412_v25 }
0x2b2c   :  { %v2497_v17 = vmul.f32 %v2489_v59, %v2454_v6  ;;  %v2501_v26 = vmul.f32 %v2489_v59, %v2458_v16 }
0x2b2e   :  { %2498 = vadd.xlane.f32.xlu1 %v2497_v17  ;;  %v2461_v22 = vpop.xlane.xlu1 %2460  ;;  %2502 = vadd.xlane.f32.xlu0 %v2501_v26  ;;  %v2465_v23 = vpop.xlane.xlu0 %2464 }
0x2b2f   :  { %v2462_v20 = vsel %vm2446_vm12, %v2461_v22, %v2416_v21  ;;  %v2466_v10 = vsel %vm2446_vm12, %v2465_v23, %v2420_v18 }
0x2b30   :  { %v2505_v5 = vmul.f32 %v2489_v59, %v2462_v20  ;;  %v2509_v27 = vmul.f32 %v2489_v59, %v2466_v10 }
0x2b32   :  { %2506 = vadd.xlane.f32.xlu1 %v2505_v5  ;;  %v2469_v40 = vpop.xlane.xlu1 %2468  ;;  %2510 = vadd.xlane.f32.xlu0 %v2509_v27  ;;  %v2473_v24 = vpop.xlane.xlu0 %2472 }
0x2b33   :  { %v2470_v25 = vsel %vm2446_vm12, %v2469_v40, %v2424_v30  ;;  %v2474_v28 = vsel %vm2446_vm12, %v2473_v24, %v2428_v46  ;;  %v53_v46 = vld [vmem:[%s5229_s0 + $0x8] sm:$0xff] }
0x2b34   :  { %v2513_v29 = vmul.f32 %v2489_v59, %v2470_v25  ;;  %v2517_v19 = vmul.f32 %v2489_v59, %v2474_v28  ;;  %v102_v37 = vsel %vm100_vm13, %v53_v46, 0.0 }
0x2b36   :  { %2514 = vadd.xlane.f32.xlu1 %v2513_v29  ;;  %v2477_v21 = vpop.xlane.xlu1 %2476  ;;  %2518 = vadd.xlane.f32.xlu0 %v2517_v19  ;;  %v2481_v18 = vpop.xlane.xlu0 %2480 }
0x2b37   :  { %v2478_v57 = vsel %vm2446_vm12, %v2477_v21, %v2432_v32  ;;  %v2482_v42 = vsel %vm2446_vm12, %v2481_v18, %v2436_v4  ;;  %v2534_v32 = vld [vmem:[#allocation2 + $0x10] ss:$0 sm:$0xff] }
0x2b38   :  { %v2521_v51 = vmul.f32 %v2489_v59, %v2478_v57  ;;  %v2525_v30 = vmul.f32 %v2489_v59, %v2482_v42  ;;  %v2535_v47 = vxor.u32 2147483648, %v2534_v32 }
0x2b3a   :  { %2522 = vadd.xlane.f32.xlu1 %v2521_v51  ;;  %2526 = vadd.xlane.f32.xlu0 %v2525_v30  ;;  %v284_v30 = vsel %vm283_vm2, -1.0, %v3592_v43  ;;  %vm3092_vm2 = vcmp.eq.s32.totalorder %v3603_v1, 5 }
0x2b3e   :  { %103 = vadd.xlane.f32.xlu0 %v102_v37 }
0x2b50   :  { %v2495_v56 = vpop.xlane.xlu0 %2494 }
0x2b51   :  { %v2496_v0 = vsel %vm2492_vm14, %v2495_v56, %v2450_v11 }
0x2b52   :  { %v2539_v9 = vmul.f32 %v2535_v47, %v2496_v0 }
0x2bb7   :  { %v2485_v45 = vpop.xlane.xlu1 %2484 }
0x2bb8   :  { %v2486_v4 = vsel %vm2446_vm12, %v2485_v45, %v2440_v55  ;;  %vm89_vm12 = vcmp.le.s32.totalorder %v3605_v2, %v3603_v1 }
0x2bb9   :  { %v2529_v54 = vmul.f32 %v2489_v59, %v2486_v4  ;;  %vm90_vm13 = vmand %vm89_vm12, %vm80_vm0  ;;  %vm2934_vm0 = vcmp.eq.s32.totalorder %v3603_v1, 8  ;;  %vm3429_vm12 = vweird.f32 %v4340_v38 }
0x2bbb   :  { %2530 = vadd.xlane.f32.xlu1 %v2529_v54  ;;  %v2499_v52 = vpop.xlane.xlu1 %2498  ;;  %v2503_v62 = vpop.xlane.xlu0 %2502 }
0x2bbc   :  { %v2500_v3 = vsel %vm2492_vm14, %v2499_v52, %v2454_v6  ;;  %v2504_v12 = vsel %vm2492_vm14, %v2503_v62, %v2458_v16 }
0x2bbd   :  { %v2543_v14 = vmul.f32 %v2535_v47, %v2500_v3  ;;  %v2547_v11 = vmul.f32 %v2535_v47, %v2504_v12 }
0x2bbf   :  { %v2507_v17 = vpop.xlane.xlu1 %2506  ;;  %2540 = vadd.xlane.f32.xlu1 %v2539_v9  ;;  %v2511_v26 = vpop.xlane.xlu0 %2510  ;;  %2544 = vadd.xlane.f32.xlu0 %v2543_v14 }
0x2bc0   :  { %v2508_v59 = vsel %vm2492_vm14, %v2507_v17, %v2462_v20  ;;  %v2512_v22 = vsel %vm2492_vm14, %v2511_v26, %v2466_v10 }
0x2bc1   :  { %v2551_v55 = vmul.f32 %v2535_v47, %v2508_v59  ;;  %v2555_v16 = vmul.f32 %v2535_v47, %v2512_v22 }
0x2bc3   :  { %v2515_v23 = vpop.xlane.xlu1 %2514  ;;  %2548 = vadd.xlane.f32.xlu1 %v2547_v11  ;;  %v2519_v6 = vpop.xlane.xlu0 %2518  ;;  %2552 = vadd.xlane.f32.xlu0 %v2551_v55 }
0x2bc4   :  { %v2516_v5 = vsel %vm2492_vm14, %v2515_v23, %v2470_v25  ;;  %v2520_v40 = vsel %vm2492_vm14, %v2519_v6, %v2474_v28  ;;  %v107_v28 = vsel %vm106_vm1, %v53_v46, 0.0  ;;  %vm3038_vm1 = vcmp.eq.s32.totalorder %v3603_v1, 6 }
0x2bc5   :  { %v2559_v27 = vmul.f32 %v2535_v47, %v2516_v5  ;;  %v2563_v10 = vmul.f32 %v2535_v47, %v2520_v40 }
0x2bc7   :  { %v2523_v24 = vpop.xlane.xlu1 %2522  ;;  %2556 = vadd.xlane.f32.xlu1 %v2555_v16  ;;  %v2527_v20 = vpop.xlane.xlu0 %2526  ;;  %2560 = vadd.xlane.f32.xlu0 %v2559_v27 }
0x2bc8   :  { %v2524_v29 = vsel %vm2492_vm14, %v2523_v24, %v2478_v57  ;;  %v2528_v21 = vsel %vm2492_vm14, %v2527_v20, %v2482_v42 }
0x2bc9   :  { %v2567_v19 = vmul.f32 %v2535_v47, %v2524_v29  ;;  %v2571_v18 = vmul.f32 %v2535_v47, %v2528_v21 }
0x2bcb   :  { %2564 = vadd.xlane.f32.xlu1 %v2563_v10  ;;  %2568 = vadd.xlane.f32.xlu0 %v2567_v19  ;;  %v4691_v25 = vpop.xlane.xlu0 %103 }
0x2bcc   :  { %3587 = vrcp.f32 %v4691_v25 }
0x2bcf   :  { %2572 = vadd.xlane.f32.xlu1 %v2571_v18 }
0x2bd6   :  { %v4698_v57 = vpop.eup %3587 }
0x2bd7   :  { %v109_v51 = vmul.f32 %v4698_v57, %v107_v28 }
0x2bd9   :  { %110 = vst [vmem:[#allocation2 + $0x8] sm:$0xff] %v109_v51 }
0x2be0   :  { %v2580_v42 = vld [vmem:[#allocation2 + $0xf] ss:$0 sm:$0xff]  ;;  %v2630_v28 = vld [vmem:[#allocation2 + $0xe] ss:$0 sm:$0xff] }
0x2be1   :  { %v2581_v37 = vxor.u32 2147483648, %v2580_v42  ;;  %v2631_v51 = vxor.u32 2147483648, %v2630_v28 }
0x2be3   :  { %v2585_v56 = vmul.f32 %v2581_v37, %v284_v30 }
0x2be5   :  { %2586 = vadd.xlane.f32.xlu1 %v2585_v56 }
0x2c48   :  { %v2531_v45 = vpop.xlane.xlu1 %2530 }
0x2c49   :  { %v2532_v32 = vsel %vm2492_vm14, %v2531_v45, %v2486_v4  ;;  %vm276_vm14 = vcmp.eq.s32.totalorder %v3603_v1, %v3605_v2 }
0x2c4a   :  { %v2575_v54 = vmul.f32 %v2535_v47, %v2532_v32 }
0x2c4c   :  { %v2541_v46 = vpop.xlane.xlu1 %2540  ;;  %2576 = vadd.xlane.f32.xlu0 %v2575_v54  ;;  %v2545_v52 = vpop.xlane.xlu0 %2544 }
0x2c4d   :  { %v2542_v62 = vsel %vm2538_vm3, %v2541_v46, %v2496_v0  ;;  %v2546_v35 = vsel %vm2538_vm3, %v2545_v52, %v2500_v3 }
0x2c4e   :  { %v2589_v9 = vmul.f32 %v2581_v37, %v2542_v62  ;;  %v2593_v14 = vmul.f32 %v2581_v37, %v2546_v35 }
0x2c50   :  { %v2549_v17 = vpop.xlane.xlu1 %2548  ;;  %2590 = vadd.xlane.f32.xlu0 %v2589_v9  ;;  %2594 = vadd.xlane.f32.xlu1 %v2593_v14  ;;  %v2553_v26 = vpop.xlane.xlu0 %2552 }
0x2c51   :  { %v2550_v4 = vsel %vm2538_vm3, %v2549_v17, %v2504_v12  ;;  %v2554_v47 = vsel %vm2538_vm3, %v2553_v26, %v2508_v59 }
0x2c52   :  { %v2597_v11 = vmul.f32 %v2581_v37, %v2550_v4  ;;  %v2601_v55 = vmul.f32 %v2581_v37, %v2554_v47 }
0x2c54   :  { %v2557_v23 = vpop.xlane.xlu1 %2556  ;;  %2598 = vadd.xlane.f32.xlu0 %v2597_v11  ;;  %2602 = vadd.xlane.f32.xlu1 %v2601_v55  ;;  %v2561_v0 = vpop.xlane.xlu0 %2560 }
0x2c55   :  { %v2558_v3 = vsel %vm2538_vm3, %v2557_v23, %v2512_v22  ;;  %v2562_v6 = vsel %vm2538_vm3, %v2561_v0, %v2516_v5 }
0x2c56   :  { %v2605_v16 = vmul.f32 %v2581_v37, %v2558_v3  ;;  %v2609_v27 = vmul.f32 %v2581_v37, %v2562_v6 }
0x2c58   :  { %v2565_v24 = vpop.xlane.xlu1 %2564  ;;  %2606 = vadd.xlane.f32.xlu0 %v2605_v16  ;;  %2610 = vadd.xlane.f32.xlu1 %v2609_v27  ;;  %v2569_v12 = vpop.xlane.xlu0 %2568 }
0x2c59   :  { %v2566_v59 = vsel %vm2538_vm3, %v2565_v24, %v2520_v40  ;;  %v2570_v20 = vsel %vm2538_vm3, %v2569_v12, %v2524_v29 }
0x2c5a   :  { %v2613_v10 = vmul.f32 %v2581_v37, %v2566_v59  ;;  %v2617_v19 = vmul.f32 %v2581_v37, %v2570_v20 }
0x2c5c   :  { %v2573_v18 = vpop.xlane.xlu1 %2572  ;;  %2614 = vadd.xlane.f32.xlu0 %v2613_v10  ;;  %2618 = vadd.xlane.f32.xlu1 %v2617_v19 }
0x2c5d   :  { %v2574_v22 = vsel %vm2538_vm3, %v2573_v18, %v2528_v21 }
0x2c5e   :  { %v2621_v5 = vmul.f32 %v2581_v37, %v2574_v22 }
0x2c60   :  { %2622 = vadd.xlane.f32.xlu0 %v2621_v5  ;;  %v2680_v5 = vld [vmem:[#allocation2 + $0xd] ss:$0 sm:$0xff] }
0x2c61   :  { %v2681_v28 = vxor.u32 2147483648, %v2680_v5 }
0x2c72   :  { %v2587_v42 = vpop.xlane.xlu1 %2586 }
0x2c73   :  { %v2588_v40 = vsel %vm2584_vm4, %v2587_v42, %v284_v30 }
0x2c74   :  { %v2635_v56 = vmul.f32 %v2631_v51, %v2588_v40 }
0x2c76   :  { %2636 = vadd.xlane.f32.xlu0 %v2635_v56 }
0x2cd9   :  { %v2577_v29 = vpop.xlane.xlu0 %2576 }
0x2cda   :  { %v2578_v45 = vsel %vm2538_vm3, %v2577_v29, %v2532_v32  ;;  %vm3146_vm3 = vcmp.eq.s32.totalorder %v3603_v1, 4 }
0x2cdb   :  { %v2625_v54 = vmul.f32 %v2581_v37, %v2578_v45 }
0x2cdd   :  { %v2595_v46 = vpop.xlane.xlu1 %2594  ;;  %2626 = vadd.xlane.f32.xlu1 %v2625_v54  ;;  %v2591_v21 = vpop.xlane.xlu0 %2590 }
0x2cde   :  { %v2596_v52 = vsel %vm2584_vm4, %v2595_v46, %v2546_v35  ;;  %v2592_v9 = vsel %vm2584_vm4, %v2591_v21, %v2542_v62 }
0x2cdf   :  { %v2643_v14 = vmul.f32 %v2631_v51, %v2596_v52  ;;  %v2639_v17 = vmul.f32 %v2631_v51, %v2592_v9 }
0x2ce1   :  { %2644 = vadd.xlane.f32.xlu0 %v2643_v14  ;;  %v2603_v30 = vpop.xlane.xlu1 %2602  ;;  %2640 = vadd.xlane.f32.xlu1 %v2639_v17  ;;  %v2599_v26 = vpop.xlane.xlu0 %2598 }
0x2ce2   :  { %v2604_v11 = vsel %vm2584_vm4, %v2603_v30, %v2554_v47  ;;  %v2600_v37 = vsel %vm2584_vm4, %v2599_v26, %v2550_v4 }
0x2ce3   :  { %v2651_v32 = vmul.f32 %v2631_v51, %v2604_v11  ;;  %v2647_v55 = vmul.f32 %v2631_v51, %v2600_v37 }
0x2ce5   :  { %2652 = vadd.xlane.f32.xlu0 %v2651_v32  ;;  %v2611_v23 = vpop.xlane.xlu1 %2610  ;;  %2648 = vadd.xlane.f32.xlu1 %v2647_v55  ;;  %v2607_v35 = vpop.xlane.xlu0 %2606 }
0x2ce6   :  { %v2612_v62 = vsel %vm2584_vm4, %v2611_v23, %v2562_v6  ;;  %v2608_v0 = vsel %vm2584_vm4, %v2607_v35, %v2558_v3 }
0x2ce7   :  { %v2659_v16 = vmul.f32 %v2631_v51, %v2612_v62  ;;  %v2655_v27 = vmul.f32 %v2631_v51, %v2608_v0 }
0x2ce9   :  { %2660 = vadd.xlane.f32.xlu0 %v2659_v16  ;;  %v2619_v24 = vpop.xlane.xlu1 %2618  ;;  %2656 = vadd.xlane.f32.xlu1 %v2655_v27  ;;  %v2615_v47 = vpop.xlane.xlu0 %2614 }
0x2cea   :  { %v2620_v4 = vsel %vm2584_vm4, %v2619_v24, %v2570_v20  ;;  %v2616_v12 = vsel %vm2584_vm4, %v2615_v47, %v2566_v59 }
0x2ceb   :  { %v2667_v10 = vmul.f32 %v2631_v51, %v2620_v4  ;;  %v2663_v19 = vmul.f32 %v2631_v51, %v2616_v12 }
0x2ced   :  { %2668 = vadd.xlane.f32.xlu0 %v2667_v10  ;;  %2664 = vadd.xlane.f32.xlu1 %v2663_v19  ;;  %v2623_v6 = vpop.xlane.xlu0 %2622 }
0x2cee   :  { %v2624_v3 = vsel %vm2584_vm4, %v2623_v6, %v2574_v22 }
0x2cef   :  { %v2671_v18 = vmul.f32 %v2631_v51, %v2624_v3 }
0x2cf1   :  { %2672 = vadd.xlane.f32.xlu1 %v2671_v18  ;;  %v2730_v18 = vld [vmem:[#allocation2 + $0xc] ss:$0 sm:$0xff] }
0x2cf2   :  { %v2731_v5 = vxor.u32 2147483648, %v2730_v18 }
0x2d03   :  { %v2637_v42 = vpop.xlane.xlu0 %2636 }
0x2d04   :  { %v2638_v20 = vsel %vm2634_vm5, %v2637_v42, %v2588_v40 }
0x2d05   :  { %v2685_v56 = vmul.f32 %v2681_v28, %v2638_v20 }
0x2d07   :  { %2686 = vadd.xlane.f32.xlu1 %v2685_v56 }
0x2d6a   :  { %v2627_v59 = vpop.xlane.xlu1 %2626 }
0x2d6b   :  { %v2628_v29 = vsel %vm2584_vm4, %v2627_v59, %v2578_v45  ;;  %vm3200_vm4 = vcmp.eq.s32.totalorder %v3603_v1, 3 }
0x2d6c   :  { %v2675_v54 = vmul.f32 %v2631_v51, %v2628_v29 }
0x2d6e   :  { %2676 = vadd.xlane.f32.xlu0 %v2675_v54  ;;  %v2641_v46 = vpop.xlane.xlu1 %2640  ;;  %v2645_v22 = vpop.xlane.xlu0 %2644 }
0x2d6f   :  { %v2642_v21 = vsel %vm2634_vm5, %v2641_v46, %v2592_v9  ;;  %v2646_v14 = vsel %vm2634_vm5, %v2645_v22, %v2596_v52 }
0x2d70   :  { %v2689_v17 = vmul.f32 %v2681_v28, %v2642_v21  ;;  %v2693_v30 = vmul.f32 %v2681_v28, %v2646_v14 }
0x2d72   :  { %2690 = vadd.xlane.f32.xlu0 %v2689_v17  ;;  %v2649_v40 = vpop.xlane.xlu1 %2648  ;;  %2694 = vadd.xlane.f32.xlu1 %v2693_v30  ;;  %v2653_v26 = vpop.xlane.xlu0 %2652 }
0x2d73   :  { %v2650_v32 = vsel %vm2634_vm5, %v2649_v40, %v2600_v37  ;;  %v2654_v51 = vsel %vm2634_vm5, %v2653_v26, %v2604_v11 }
0x2d74   :  { %v2697_v45 = vmul.f32 %v2681_v28, %v2650_v32  ;;  %v2701_v55 = vmul.f32 %v2681_v28, %v2654_v51 }
0x2d76   :  { %2698 = vadd.xlane.f32.xlu0 %v2697_v45  ;;  %v2657_v23 = vpop.xlane.xlu1 %2656  ;;  %2702 = vadd.xlane.f32.xlu1 %v2701_v55  ;;  %v2661_v9 = vpop.xlane.xlu0 %2660 }
0x2d77   :  { %v2658_v52 = vsel %vm2634_vm5, %v2657_v23, %v2608_v0  ;;  %v2662_v35 = vsel %vm2634_vm5, %v2661_v9, %v2612_v62 }
0x2d78   :  { %v2705_v16 = vmul.f32 %v2681_v28, %v2658_v52  ;;  %v2709_v27 = vmul.f32 %v2681_v28, %v2662_v35 }
0x2d7a   :  { %2706 = vadd.xlane.f32.xlu0 %v2705_v16  ;;  %v2665_v24 = vpop.xlane.xlu1 %2664  ;;  %2710 = vadd.xlane.f32.xlu1 %v2709_v27  ;;  %v2669_v37 = vpop.xlane.xlu0 %2668 }
0x2d7b   :  { %v2666_v11 = vsel %vm2634_vm5, %v2665_v24, %v2616_v12  ;;  %v2670_v47 = vsel %vm2634_vm5, %v2669_v37, %v2620_v4 }
0x2d7c   :  { %v2713_v10 = vmul.f32 %v2681_v28, %v2666_v11  ;;  %v2717_v19 = vmul.f32 %v2681_v28, %v2670_v47 }
0x2d7e   :  { %2714 = vadd.xlane.f32.xlu0 %v2713_v10  ;;  %v2673_v6 = vpop.xlane.xlu1 %2672  ;;  %2718 = vadd.xlane.f32.xlu1 %v2717_v19 }
0x2d7f   :  { %v2674_v62 = vsel %vm2634_vm5, %v2673_v6, %v2624_v3 }
0x2d80   :  { %v2721_v0 = vmul.f32 %v2681_v28, %v2674_v62 }
0x2d82   :  { %2722 = vadd.xlane.f32.xlu0 %v2721_v0  ;;  %v2780_v0 = vld [vmem:[#allocation2 + $0xb] ss:$0 sm:$0xff] }
0x2d83   :  { %v2781_v18 = vxor.u32 2147483648, %v2780_v0 }
0x2d94   :  { %v2687_v42 = vpop.xlane.xlu1 %2686 }
0x2d95   :  { %v2688_v12 = vsel %vm2684_vm6, %v2687_v42, %v2638_v20 }
0x2d96   :  { %v2735_v56 = vmul.f32 %v2731_v5, %v2688_v12 }
0x2d98   :  { %2736 = vadd.xlane.f32.xlu0 %v2735_v56 }
0x2dfb   :  { %v2677_v4 = vpop.xlane.xlu0 %2676 }
0x2dfc   :  { %v2678_v59 = vsel %vm2634_vm5, %v2677_v4, %v2628_v29  ;;  %vm3254_vm5 = vcmp.eq.s32.totalorder %v3603_v1, 2 }
0x2dfd   :  { %v2725_v54 = vmul.f32 %v2681_v28, %v2678_v59 }
0x2dff   :  { %v2695_v46 = vpop.xlane.xlu1 %2694  ;;  %2726 = vadd.xlane.f32.xlu1 %v2725_v54  ;;  %v2691_v3 = vpop.xlane.xlu0 %2690 }
0x2e00   :  { %v2696_v22 = vsel %vm2684_vm6, %v2695_v46, %v2646_v14  ;;  %v2692_v17 = vsel %vm2684_vm6, %v2691_v3, %v2642_v21 }
0x2e01   :  { %v2743_v30 = vmul.f32 %v2731_v5, %v2696_v22  ;;  %v2739_v40 = vmul.f32 %v2731_v5, %v2692_v17 }
0x2e03   :  { %2744 = vadd.xlane.f32.xlu0 %v2743_v30  ;;  %v2703_v20 = vpop.xlane.xlu1 %2702  ;;  %2740 = vadd.xlane.f32.xlu1 %v2739_v40  ;;  %v2699_v26 = vpop.xlane.xlu0 %2698 }
0x2e04   :  { %v2704_v45 = vsel %vm2684_vm6, %v2703_v20, %v2654_v51  ;;  %v2700_v28 = vsel %vm2684_vm6, %v2699_v26, %v2650_v32 }
0x2e05   :  { %v2751_v29 = vmul.f32 %v2731_v5, %v2704_v45  ;;  %v2747_v55 = vmul.f32 %v2731_v5, %v2700_v28 }
0x2e07   :  { %2752 = vadd.xlane.f32.xlu0 %v2751_v29  ;;  %v2711_v23 = vpop.xlane.xlu1 %2710  ;;  %2748 = vadd.xlane.f32.xlu1 %v2747_v55  ;;  %v2707_v14 = vpop.xlane.xlu0 %2706 }
0x2e08   :  { %v2712_v21 = vsel %vm2684_vm6, %v2711_v23, %v2662_v35  ;;  %v2708_v9 = vsel %vm2684_vm6, %v2707_v14, %v2658_v52 }
0x2e09   :  { %v2759_v16 = vmul.f32 %v2731_v5, %v2712_v21  ;;  %v2755_v27 = vmul.f32 %v2731_v5, %v2708_v9 }
0x2e0b   :  { %2760 = vadd.xlane.f32.xlu0 %v2759_v16  ;;  %v2719_v24 = vpop.xlane.xlu1 %2718  ;;  %2756 = vadd.xlane.f32.xlu1 %v2755_v27  ;;  %v2715_v51 = vpop.xlane.xlu0 %2714 }
0x2e0c   :  { %v2720_v32 = vsel %vm2684_vm6, %v2719_v24, %v2670_v47  ;;  %v2716_v37 = vsel %vm2684_vm6, %v2715_v51, %v2666_v11 }
0x2e0d   :  { %v2767_v10 = vmul.f32 %v2731_v5, %v2720_v32  ;;  %v2763_v19 = vmul.f32 %v2731_v5, %v2716_v37 }
0x2e0f   :  { %2768 = vadd.xlane.f32.xlu0 %v2767_v10  ;;  %2764 = vadd.xlane.f32.xlu1 %v2763_v19  ;;  %v2723_v35 = vpop.xlane.xlu0 %2722 }
0x2e10   :  { %v2724_v52 = vsel %vm2684_vm6, %v2723_v35, %v2674_v62 }
0x2e11   :  { %v2771_v6 = vmul.f32 %v2731_v5, %v2724_v52 }
0x2e13   :  { %2772 = vadd.xlane.f32.xlu1 %v2771_v6  ;;  %v2830_v6 = vld [vmem:[#allocation2 + $0xa] ss:$0 sm:$0xff] }
0x2e14   :  { %v2831_v0 = vxor.u32 2147483648, %v2830_v6 }
0x2e25   :  { %v2737_v42 = vpop.xlane.xlu0 %2736 }
0x2e26   :  { %v2738_v47 = vsel %vm2734_vm7, %v2737_v42, %v2688_v12 }
0x2e27   :  { %v2785_v56 = vmul.f32 %v2781_v18, %v2738_v47 }
0x2e29   :  { %2786 = vadd.xlane.f32.xlu1 %v2785_v56 }
0x2e8c   :  { %v2727_v11 = vpop.xlane.xlu1 %2726 }
0x2e8d   :  { %v2728_v4 = vsel %vm2684_vm6, %v2727_v11, %v2678_v59  ;;  %vm3308_vm6 = vcmp.eq.s32.totalorder %v3603_v1, 1 }
0x2e8e   :  { %v2775_v54 = vmul.f32 %v2731_v5, %v2728_v4 }
0x2e90   :  { %2776 = vadd.xlane.f32.xlu0 %v2775_v54  ;;  %v2741_v46 = vpop.xlane.xlu1 %2740  ;;  %v2745_v62 = vpop.xlane.xlu0 %2744 }
0x2e91   :  { %v2742_v3 = vsel %vm2734_vm7, %v2741_v46, %v2692_v17  ;;  %v2746_v30 = vsel %vm2734_vm7, %v2745_v62, %v2696_v22 }
0x2e92   :  { %v2789_v40 = vmul.f32 %v2781_v18, %v2742_v3  ;;  %v2793_v20 = vmul.f32 %v2781_v18, %v2746_v30 }
0x2e94   :  { %2790 = vadd.xlane.f32.xlu0 %v2789_v40  ;;  %v2749_v12 = vpop.xlane.xlu1 %2748  ;;  %2794 = vadd.xlane.f32.xlu1 %v2793_v20  ;;  %v2753_v26 = vpop.xlane.xlu0 %2752 }
0x2e95   :  { %v2750_v29 = vsel %vm2734_vm7, %v2749_v12, %v2700_v28  ;;  %v2754_v5 = vsel %vm2734_vm7, %v2753_v26, %v2704_v45 }
0x2e96   :  { %v2797_v59 = vmul.f32 %v2781_v18, %v2750_v29  ;;  %v2801_v55 = vmul.f32 %v2781_v18, %v2754_v5 }
0x2e98   :  { %2798 = vadd.xlane.f32.xlu0 %v2797_v59  ;;  %v2757_v23 = vpop.xlane.xlu1 %2756  ;;  %2802 = vadd.xlane.f32.xlu1 %v2801_v55  ;;  %v2761_v17 = vpop.xlane.xlu0 %2760 }
0x2e99   :  { %v2758_v22 = vsel %vm2734_vm7, %v2757_v23, %v2708_v9  ;;  %v2762_v14 = vsel %vm2734_vm7, %v2761_v17, %v2712_v21 }
0x2e9a   :  { %v2805_v16 = vmul.f32 %v2781_v18, %v2758_v22  ;;  %v2809_v27 = vmul.f32 %v2781_v18, %v2762_v14 }
0x2e9c   :  { %2806 = vadd.xlane.f32.xlu0 %v2805_v16  ;;  %v2765_v24 = vpop.xlane.xlu1 %2764  ;;  %2810 = vadd.xlane.f32.xlu1 %v2809_v27  ;;  %v2769_v28 = vpop.xlane.xlu0 %2768 }
0x2e9d   :  { %v2766_v45 = vsel %vm2734_vm7, %v2765_v24, %v2716_v37  ;;  %v2770_v51 = vsel %vm2734_vm7, %v2769_v28, %v2720_v32 }
0x2e9e   :  { %v2813_v10 = vmul.f32 %v2781_v18, %v2766_v45  ;;  %v2817_v19 = vmul.f32 %v2781_v18, %v2770_v51 }
0x2ea0   :  { %2814 = vadd.xlane.f32.xlu0 %v2813_v10  ;;  %v2773_v35 = vpop.xlane.xlu1 %2772  ;;  %2818 = vadd.xlane.f32.xlu1 %v2817_v19 }
0x2ea1   :  { %v2774_v21 = vsel %vm2734_vm7, %v2773_v35, %v2724_v52 }
0x2ea2   :  { %v2821_v9 = vmul.f32 %v2781_v18, %v2774_v21 }
0x2ea4   :  { %2822 = vadd.xlane.f32.xlu0 %v2821_v9  ;;  %v2880_v9 = vld [vmem:[#allocation2 + $0x9] ss:$0 sm:$0xff] }
0x2ea5   :  { %v2881_v6 = vxor.u32 2147483648, %v2880_v9 }
0x2eb6   :  { %v2787_v42 = vpop.xlane.xlu1 %2786 }
0x2eb7   :  { %v2788_v37 = vsel %vm2784_vm8, %v2787_v42, %v2738_v47 }
0x2eb8   :  { %v2835_v56 = vmul.f32 %v2831_v0, %v2788_v37 }
0x2eba   :  { %2836 = vadd.xlane.f32.xlu0 %v2835_v56 }
0x2f1d   :  { %v2777_v32 = vpop.xlane.xlu0 %2776 }
0x2f1e   :  { %v2778_v11 = vsel %vm2734_vm7, %v2777_v32, %v2728_v4  ;;  %vm3361_vm7 = vcmp.eq.s32.totalorder %v3603_v1, 0 }
0x2f1f   :  { %v2825_v54 = vmul.f32 %v2781_v18, %v2778_v11 }
0x2f21   :  { %v2795_v46 = vpop.xlane.xlu1 %2794  ;;  %2826 = vadd.xlane.f32.xlu1 %v2825_v54  ;;  %v2791_v52 = vpop.xlane.xlu0 %2790 }
0x2f22   :  { %v2796_v62 = vsel %vm2784_vm8, %v2795_v46, %v2746_v30  ;;  %v2792_v40 = vsel %vm2784_vm8, %v2791_v52, %v2742_v3 }
0x2f23   :  { %v2843_v20 = vmul.f32 %v2831_v0, %v2796_v62  ;;  %v2839_v12 = vmul.f32 %v2831_v0, %v2792_v40 }
0x2f25   :  { %2844 = vadd.xlane.f32.xlu0 %v2843_v20  ;;  %v2803_v47 = vpop.xlane.xlu1 %2802  ;;  %2840 = vadd.xlane.f32.xlu1 %v2839_v12  ;;  %v2799_v26 = vpop.xlane.xlu0 %2798 }
0x2f26   :  { %v2804_v59 = vsel %vm2784_vm8, %v2803_v47, %v2754_v5  ;;  %v2800_v18 = vsel %vm2784_vm8, %v2799_v26, %v2750_v29 }
0x2f27   :  { %v2851_v4 = vmul.f32 %v2831_v0, %v2804_v59  ;;  %v2847_v55 = vmul.f32 %v2831_v0, %v2800_v18 }
0x2f29   :  { %2852 = vadd.xlane.f32.xlu0 %v2851_v4  ;;  %v2811_v23 = vpop.xlane.xlu1 %2810  ;;  %2848 = vadd.xlane.f32.xlu1 %v2847_v55  ;;  %v2807_v30 = vpop.xlane.xlu0 %2806 }
0x2f2a   :  { %v2812_v3 = vsel %vm2784_vm8, %v2811_v23, %v2762_v14  ;;  %v2808_v17 = vsel %vm2784_vm8, %v2807_v30, %v2758_v22 }
0x2f2b   :  { %v2859_v16 = vmul.f32 %v2831_v0, %v2812_v3  ;;  %v2855_v27 = vmul.f32 %v2831_v0, %v2808_v17 }
0x2f2d   :  { %2860 = vadd.xlane.f32.xlu0 %v2859_v16  ;;  %v2819_v24 = vpop.xlane.xlu1 %2818  ;;  %2856 = vadd.xlane.f32.xlu1 %v2855_v27  ;;  %v2815_v5 = vpop.xlane.xlu0 %2814 }
0x2f2e   :  { %v2820_v29 = vsel %vm2784_vm8, %v2819_v24, %v2770_v51  ;;  %v2816_v28 = vsel %vm2784_vm8, %v2815_v5, %v2766_v45 }
0x2f2f   :  { %v2867_v10 = vmul.f32 %v2831_v0, %v2820_v29  ;;  %v2863_v19 = vmul.f32 %v2831_v0, %v2816_v28 }
0x2f31   :  { %2868 = vadd.xlane.f32.xlu0 %v2867_v10  ;;  %2864 = vadd.xlane.f32.xlu1 %v2863_v19  ;;  %v2823_v14 = vpop.xlane.xlu0 %2822 }
0x2f32   :  { %v2824_v22 = vsel %vm2784_vm8, %v2823_v14, %v2774_v21 }
0x2f33   :  { %v2871_v35 = vmul.f32 %v2831_v0, %v2824_v22 }
0x2f35   :  { %2872 = vadd.xlane.f32.xlu1 %v2871_v35  ;;  %v51_v35 = vld [vmem:[%s5229_s0] sm:$0xff] }
0x2f47   :  { %v2837_v42 = vpop.xlane.xlu0 %2836 }
0x2f48   :  { %v2838_v51 = vsel %vm2834_vm9, %v2837_v42, %v2788_v37  ;;  %v2930_v42 = vld [vmem:[#allocation2 + $0x8] ss:$0 sm:$0xff] }
0x2f49   :  { %v2885_v56 = vmul.f32 %v2881_v6, %v2838_v51 }
0x2f4b   :  { %2886 = vadd.xlane.f32.xlu1 %v2885_v56 }
0x2fae   :  { %v2827_v45 = vpop.xlane.xlu1 %2826 }
0x2faf   :  { %v2828_v32 = vsel %vm2784_vm8, %v2827_v45, %v2778_v11 }
0x2fb0   :  { %v2875_v54 = vmul.f32 %v2831_v0, %v2828_v32 }
0x2fb2   :  { %2876 = vadd.xlane.f32.xlu0 %v2875_v54  ;;  %v2841_v46 = vpop.xlane.xlu1 %2840  ;;  %v2845_v21 = vpop.xlane.xlu0 %2844  ;;  %v2931_v54 = vxor.u32 2147483648, %v2930_v42  ;;  %v277_v42 = vsel %vm276_vm14, -1.0, %v3592_v43  ;;  %vm3441_vm14 = vweird.f32 %v4056_v58 }
0x2fb3   :  { %v2842_v52 = vsel %vm2834_vm9, %v2841_v46, %v2792_v40  ;;  %v2846_v20 = vsel %vm2834_vm9, %v2845_v21, %v2796_v62 }
0x2fb4   :  { %v2889_v12 = vmul.f32 %v2881_v6, %v2842_v52  ;;  %v2893_v47 = vmul.f32 %v2881_v6, %v2846_v20 }
0x2fb6   :  { %2890 = vadd.xlane.f32.xlu0 %v2889_v12  ;;  %v2849_v37 = vpop.xlane.xlu1 %2848  ;;  %2894 = vadd.xlane.f32.xlu1 %v2893_v47  ;;  %v2853_v26 = vpop.xlane.xlu0 %2852 }
0x2fb7   :  { %v2850_v4 = vsel %vm2834_vm9, %v2849_v37, %v2800_v18  ;;  %v2854_v0 = vsel %vm2834_vm9, %v2853_v26, %v2804_v59 }
0x2fb8   :  { %v2897_v11 = vmul.f32 %v2881_v6, %v2850_v4  ;;  %v2901_v55 = vmul.f32 %v2881_v6, %v2854_v0 }
0x2fba   :  { %2898 = vadd.xlane.f32.xlu0 %v2897_v11  ;;  %v2857_v23 = vpop.xlane.xlu1 %2856  ;;  %2902 = vadd.xlane.f32.xlu1 %v2901_v55  ;;  %v2861_v40 = vpop.xlane.xlu0 %2860 }
0x2fbb   :  { %v2858_v62 = vsel %vm2834_vm9, %v2857_v23, %v2808_v17  ;;  %v2862_v30 = vsel %vm2834_vm9, %v2861_v40, %v2812_v3 }
0x2fbc   :  { %v2905_v16 = vmul.f32 %v2881_v6, %v2858_v62  ;;  %v2909_v27 = vmul.f32 %v2881_v6, %v2862_v30 }
0x2fbe   :  { %2906 = vadd.xlane.f32.xlu0 %v2905_v16  ;;  %v2865_v24 = vpop.xlane.xlu1 %2864  ;;  %2910 = vadd.xlane.f32.xlu1 %v2909_v27  ;;  %v2869_v18 = vpop.xlane.xlu0 %2868 }
0x2fbf   :  { %v2866_v59 = vsel %vm2834_vm9, %v2865_v24, %v2816_v28  ;;  %v2870_v5 = vsel %vm2834_vm9, %v2869_v18, %v2820_v29  ;;  %v86_v28 = vsel %vm84_vm10, %v51_v35, 0.0  ;;  %vm3417_vm10 = vweird.f32 %v4691_v25 }
0x2fc0   :  { %v2913_v10 = vmul.f32 %v2881_v6, %v2866_v59  ;;  %v2917_v19 = vmul.f32 %v2881_v6, %v2870_v5 }
0x2fc2   :  { %2914 = vadd.xlane.f32.xlu0 %v2913_v10  ;;  %v2873_v14 = vpop.xlane.xlu1 %2872  ;;  %2918 = vadd.xlane.f32.xlu1 %v2917_v19 }
0x2fc3   :  { %v2874_v3 = vsel %vm2834_vm9, %v2873_v14, %v2824_v22 }
0x2fc4   :  { %v2921_v17 = vmul.f32 %v2881_v6, %v2874_v3 }
0x2fc6   :  { %2922 = vadd.xlane.f32.xlu0 %v2921_v17 }
0x2fca   :  { %87 = vadd.xlane.f32.xlu0 %v86_v28 }
0x2fd8   :  { %v2887_v29 = vpop.xlane.xlu1 %2886 }
0x2fd9   :  { %v4873_v45 = vsel %vm2884_vm11, %v2887_v29, %v2838_v51 }
0x2fda   :  { %v2935_v47 = vmul.f32 %v2931_v54, %v4873_v45 }
0x303f   :  { %v2877_v9 = vpop.xlane.xlu0 %2876 }
0x3040   :  { %v2878_v56 = vsel %vm2834_vm9, %v2877_v9, %v2828_v32  ;;  %vm3423_vm9 = vweird.f32 %v4506_v13 }
0x3041   :  { %v2925_v22 = vmul.f32 %v2881_v6, %v2878_v56 }
0x3043   :  { %v2895_v46 = vpop.xlane.xlu1 %2894  ;;  %2926 = vadd.xlane.f32.xlu1 %v2925_v22  ;;  %v2891_v21 = vpop.xlane.xlu0 %2890 }
0x3044   :  { %v2892_v12 = vsel %vm2884_vm11, %v2891_v21, %v2842_v52  ;;  %v4880_v26 = vsel %vm2884_vm11, %v2895_v46, %v2846_v20 }
0x3045   :  { %v2939_v37 = vmul.f32 %v2931_v54, %v2892_v12  ;;  %v2943_v11 = vmul.f32 %v2931_v54, %v4880_v26 }
0x3047   :  { %v2903_v32 = vpop.xlane.xlu1 %2902  ;;  %2936 = vadd.xlane.f32.xlu1 %v2935_v47  ;;  %v2899_v6 = vpop.xlane.xlu0 %2898  ;;  %2940 = vadd.xlane.f32.xlu0 %v2939_v37 }
0x3048   :  { %v2900_v51 = vsel %vm2884_vm11, %v2899_v6, %v2850_v4  ;;  %v4887_v52 = vsel %vm2884_vm11, %v2903_v32, %v2854_v0 }
0x3049   :  { %v2947_v55 = vmul.f32 %v2931_v54, %v2900_v51  ;;  %v2951_v16 = vmul.f32 %v2931_v54, %v4887_v52 }
0x304b   :  { %v2911_v23 = vpop.xlane.xlu1 %2910  ;;  %2944 = vadd.xlane.f32.xlu1 %v2943_v11  ;;  %v2907_v40 = vpop.xlane.xlu0 %2906  ;;  %2948 = vadd.xlane.f32.xlu0 %v2947_v55 }
0x304c   :  { %v2908_v20 = vsel %vm2884_vm11, %v2907_v40, %v2858_v62  ;;  %v4894_v4 = vsel %vm2884_vm11, %v2911_v23, %v2862_v30 }
0x304d   :  { %v2955_v27 = vmul.f32 %v2931_v54, %v2908_v20  ;;  %v2959_v10 = vmul.f32 %v2931_v54, %v4894_v4 }
0x304f   :  { %v2919_v24 = vpop.xlane.xlu1 %2918  ;;  %2952 = vadd.xlane.f32.xlu1 %v2951_v16  ;;  %v2915_v18 = vpop.xlane.xlu0 %2914  ;;  %2956 = vadd.xlane.f32.xlu0 %v2955_v27 }
0x3050   :  { %v2916_v0 = vsel %vm2884_vm11, %v2915_v18, %v2866_v59  ;;  %v4901_v62 = vsel %vm2884_vm11, %v2919_v24, %v2870_v5  ;;  %v91_v59 = vsel %vm90_vm13, %v51_v35, 0.0  ;;  %vm3447_vm13 = vweird.f32 %v3938_v31 }
0x3051   :  { %v2963_v19 = vmul.f32 %v2931_v54, %v2916_v0  ;;  %v2967_v17 = vmul.f32 %v2931_v54, %v4901_v62 }
0x3053   :  { %2960 = vadd.xlane.f32.xlu1 %v2959_v10  ;;  %v2923_v14 = vpop.xlane.xlu0 %2922  ;;  %2964 = vadd.xlane.f32.xlu0 %v2963_v19 }
0x3054   :  { %v2924_v30 = vsel %vm2884_vm11, %v2923_v14, %v2874_v3 }
0x3055   :  { %v2971_v28 = vmul.f32 %v2931_v54, %v2924_v30 }
0x3057   :  { %2968 = vadd.xlane.f32.xlu1 %v2967_v17  ;;  %2972 = vadd.xlane.f32.xlu0 %v2971_v28  ;;  %v4906_v29 = vpop.xlane.xlu0 %87 }
0x3058   :  { %3589 = vrcp.f32 %v4906_v29  ;;  %vm3412_vm8 = vweird.f32 %v4906_v29 }
0x3062   :  { %v4913_v5 = vpop.eup %3589 }
0x3063   :  { %v93_v3 = vmul.f32 %v4913_v5, %v91_v59 }
0x3065   :  { %94 = vst [vmem:[#allocation2] sm:$0xff] %v93_v3 }
0x306c   :  { %v2980_v9 = vld [vmem:[#allocation2 + $0x7] ss:$0 sm:$0xff] }
0x306d   :  { %v2981_v22 = vxor.u32 2147483648, %v2980_v9 }
0x306f   :  { %v2985_v46 = vmul.f32 %v2981_v22, %v277_v42 }
0x3071   :  { %2986 = vadd.xlane.f32.xlu0 %v2985_v46 }
0x30d0   :  { %v2927_v21 = vpop.xlane.xlu1 %2926 }
0x30d1   :  { %v2928_v47 = vsel %vm2884_vm11, %v2927_v21, %v2878_v56  ;;  %vm3435_vm11 = vweird.f32 %v4190_v60 }
0x30d2   :  { %v2975_v37 = vmul.f32 %v2931_v54, %v2928_v47 }
0x30d4   :  { %2976 = vadd.xlane.f32.xlu1 %v2975_v37  ;;  %v2937_v35 = vpop.xlane.xlu1 %2936  ;;  %v2941_v32 = vpop.xlane.xlu0 %2940 }
0x30d5   :  { %v2938_v2 = vsel %vm2934_vm0, %v2937_v35, %v4873_v45  ;;  %v2942_v43 = vsel %vm2934_vm0, %v2941_v32, %v2892_v12 }
0x30d6   :  { %v2989_v6 = vmul.f32 %v2981_v22, %v2938_v2  ;;  %v2993_v11 = vmul.f32 %v2981_v22, %v2942_v43 }
0x30d8   :  { %v2945_v55 = vpop.xlane.xlu1 %2944  ;;  %2990 = vadd.xlane.f32.xlu1 %v2989_v6  ;;  %2994 = vadd.xlane.f32.xlu0 %v2993_v11  ;;  %v2949_v23 = vpop.xlane.xlu0 %2948 }
0x30d9   :  { %v2946_v56 = vsel %vm2934_vm0, %v2945_v55, %v4880_v26  ;;  %v2950_v54 = vsel %vm2934_vm0, %v2949_v23, %v2900_v51 }
0x30da   :  { %v2997_v40 = vmul.f32 %v2981_v22, %v2946_v56  ;;  %v3001_v16 = vmul.f32 %v2981_v22, %v2950_v54 }
0x30dc   :  { %v2953_v27 = vpop.xlane.xlu1 %2952  ;;  %2998 = vadd.xlane.f32.xlu1 %v2997_v40  ;;  %3002 = vadd.xlane.f32.xlu0 %v3001_v16  ;;  %v2957_v45 = vpop.xlane.xlu0 %2956 }
0x30dd   :  { %v2954_v12 = vsel %vm2934_vm0, %v2953_v27, %v4887_v52  ;;  %v2958_v24 = vsel %vm2934_vm0, %v2957_v45, %v2908_v20 }
0x30de   :  { %v3005_v18 = vmul.f32 %v2981_v22, %v2954_v12  ;;  %v3009_v10 = vmul.f32 %v2981_v22, %v2958_v24 }
0x30e0   :  { %v2961_v19 = vpop.xlane.xlu1 %2960  ;;  %3006 = vadd.xlane.f32.xlu1 %v3005_v18  ;;  %3010 = vadd.xlane.f32.xlu0 %v3009_v10  ;;  %v2965_v26 = vpop.xlane.xlu0 %2964 }
0x30e1   :  { %v2962_v51 = vsel %vm2934_vm0, %v2961_v19, %v4894_v4  ;;  %v2966_v14 = vsel %vm2934_vm0, %v2965_v26, %v2916_v0  ;;  %v3034_v4 = vld [vmem:[#allocation2 + $0x6] ss:$0 sm:$0xff] }
0x30e2   :  { %v3013_v17 = vmul.f32 %v2981_v22, %v2962_v51  ;;  %v3017_v28 = vmul.f32 %v2981_v22, %v2966_v14  ;;  %v3035_v21 = vxor.u32 2147483648, %v3034_v4 }
0x30e4   :  { %v2969_v59 = vpop.xlane.xlu1 %2968  ;;  %3014 = vadd.xlane.f32.xlu1 %v3013_v17  ;;  %3018 = vadd.xlane.f32.xlu0 %v3017_v28  ;;  %v2973_v52 = vpop.xlane.xlu0 %2972 }
0x30e5   :  { %v2970_v20 = vsel %vm2934_vm0, %v2969_v59, %v4901_v62  ;;  %v2974_v3 = vsel %vm2934_vm0, %v2973_v52, %v2924_v30 }
0x30e6   :  { %v3021_v9 = vmul.f32 %v2981_v22, %v2970_v20  ;;  %v3025_v46 = vmul.f32 %v2981_v22, %v2974_v3 }
0x30e8   :  { %3022 = vadd.xlane.f32.xlu1 %v3021_v9  ;;  %3026 = vadd.xlane.f32.xlu0 %v3025_v46 }
0x30fe   :  { %v2987_v0 = vpop.xlane.xlu0 %2986 }
0x30ff   :  { %v2988_v37 = vsel %vm2984_vm15, %v2987_v0, %v277_v42 }
0x3100   :  { %v3039_v35 = vmul.f32 %v3035_v21, %v2988_v37 }
0x3102   :  { %3040 = vadd.xlane.f32.xlu0 %v3039_v35 }
0x3161   :  { %v2977_v32 = vpop.xlane.xlu1 %2976 }
0x3162   :  { %v2978_v62 = vsel %vm2934_vm0, %v2977_v32, %v2928_v47  ;;  %vm3459_vm0 = vweird.f32 %v3750_v34 }
0x3163   :  { %v3029_v6 = vmul.f32 %v2981_v22, %v2978_v62 }
0x3165   :  { %3030 = vadd.xlane.f32.xlu1 %v3029_v6  ;;  %v2991_v30 = vpop.xlane.xlu1 %2990  ;;  %v2995_v11 = vpop.xlane.xlu0 %2994 }
0x3166   :  { %v2992_v55 = vsel %vm2984_vm15, %v2991_v30, %v2938_v2  ;;  %v2996_v23 = vsel %vm2984_vm15, %v2995_v11, %v2942_v43 }
0x3167   :  { %v3043_v40 = vmul.f32 %v3035_v21, %v2992_v55  ;;  %v3047_v16 = vmul.f32 %v3035_v21, %v2996_v23 }
0x3169   :  { %3044 = vadd.xlane.f32.xlu1 %v3043_v40  ;;  %v2999_v42 = vpop.xlane.xlu1 %2998  ;;  %3048 = vadd.xlane.f32.xlu0 %v3047_v16  ;;  %v3003_v27 = vpop.xlane.xlu0 %3002 }
0x316a   :  { %v3000_v45 = vsel %vm2984_vm15, %v2999_v42, %v2946_v56  ;;  %v3004_v22 = vsel %vm2984_vm15, %v3003_v27, %v2950_v54 }
0x316b   :  { %v3051_v47 = vmul.f32 %v3035_v21, %v3000_v45  ;;  %v3055_v18 = vmul.f32 %v3035_v21, %v3004_v22 }
0x316d   :  { %3052 = vadd.xlane.f32.xlu1 %v3051_v47  ;;  %v3007_v10 = vpop.xlane.xlu1 %3006  ;;  %3056 = vadd.xlane.f32.xlu0 %v3055_v18  ;;  %v3011_v2 = vpop.xlane.xlu0 %3010 }
0x316e   :  { %v3008_v43 = vsel %vm2984_vm15, %v3007_v10, %v2954_v12  ;;  %v3012_v19 = vsel %vm2984_vm15, %v3011_v2, %v2958_v24 }
0x316f   :  { %v3059_v26 = vmul.f32 %v3035_v21, %v3008_v43  ;;  %v3063_v17 = vmul.f32 %v3035_v21, %v3012_v19 }
0x3171   :  { %3060 = vadd.xlane.f32.xlu1 %v3059_v26  ;;  %v3015_v28 = vpop.xlane.xlu1 %3014  ;;  %3064 = vadd.xlane.f32.xlu0 %v3063_v17  ;;  %v3019_v56 = vpop.xlane.xlu0 %3018 }
0x3172   :  { %v3016_v54 = vsel %vm2984_vm15, %v3015_v28, %v2962_v51  ;;  %v3020_v59 = vsel %vm2984_vm15, %v3019_v56, %v2966_v14  ;;  %v3088_v51 = vld [vmem:[#allocation2 + $0x5] ss:$0 sm:$0xff] }
0x3173   :  { %v3067_v52 = vmul.f32 %v3035_v21, %v3016_v54  ;;  %v3071_v9 = vmul.f32 %v3035_v21, %v3020_v59  ;;  %v3089_v14 = vxor.u32 2147483648, %v3088_v51 }
0x3175   :  { %3068 = vadd.xlane.f32.xlu1 %v3067_v52  ;;  %v3023_v46 = vpop.xlane.xlu1 %3022  ;;  %3072 = vadd.xlane.f32.xlu0 %v3071_v9  ;;  %v3027_v12 = vpop.xlane.xlu0 %3026 }
0x3176   :  { %v3024_v24 = vsel %vm2984_vm15, %v3023_v46, %v2970_v20  ;;  %v3028_v4 = vsel %vm2984_vm15, %v3027_v12, %v2974_v3 }
0x3177   :  { %v3075_v0 = vmul.f32 %v3035_v21, %v3024_v24  ;;  %v3079_v35 = vmul.f32 %v3035_v21, %v3028_v4 }
0x3179   :  { %3076 = vadd.xlane.f32.xlu1 %v3075_v0  ;;  %3080 = vadd.xlane.f32.xlu0 %v3079_v35 }
0x318f   :  { %v3041_v32 = vpop.xlane.xlu0 %3040 }
0x3190   :  { %v3042_v6 = vsel %vm3038_vm1, %v3041_v32, %v2988_v37 }
0x3191   :  { %v3093_v30 = vmul.f32 %v3089_v14, %v3042_v6 }
0x3193   :  { %3094 = vadd.xlane.f32.xlu0 %v3093_v30 }
0x31f2   :  { %v3031_v11 = vpop.xlane.xlu1 %3030 }
0x31f3   :  { %v3032_v20 = vsel %vm2984_vm15, %v3031_v11, %v2978_v62  ;;  %vm3453_vm15 = vweird.f32 %v3836_v49 }
0x31f4   :  { %v3083_v40 = vmul.f32 %v3035_v21, %v3032_v20 }
0x31f6   :  { %3084 = vadd.xlane.f32.xlu1 %v3083_v40  ;;  %v3045_v3 = vpop.xlane.xlu1 %3044  ;;  %v3049_v16 = vpop.xlane.xlu0 %3048 }
0x31f7   :  { %v3046_v42 = vsel %vm3038_vm1, %v3045_v3, %v2992_v55  ;;  %v3050_v27 = vsel %vm3038_vm1, %v3049_v16, %v2996_v23 }
0x31f8   :  { %v3097_v47 = vmul.f32 %v3089_v14, %v3046_v42  ;;  %v3101_v18 = vmul.f32 %v3089_v14, %v3050_v27 }
0x31fa   :  { %3098 = vadd.xlane.f32.xlu1 %v3097_v47  ;;  %v3053_v37 = vpop.xlane.xlu1 %3052  ;;  %3102 = vadd.xlane.f32.xlu0 %v3101_v18  ;;  %v3057_v10 = vpop.xlane.xlu0 %3056 }
0x31fb   :  { %v3054_v2 = vsel %vm3038_vm1, %v3053_v37, %v3000_v45  ;;  %v3058_v21 = vsel %vm3038_vm1, %v3057_v10, %v3004_v22 }
0x31fc   :  { %v3105_v62 = vmul.f32 %v3089_v14, %v3054_v2  ;;  %v3109_v26 = vmul.f32 %v3089_v14, %v3058_v21 }
0x31fe   :  { %3106 = vadd.xlane.f32.xlu1 %v3105_v62  ;;  %v3061_v17 = vpop.xlane.xlu1 %3060  ;;  %3110 = vadd.xlane.f32.xlu0 %v3109_v26  ;;  %v3065_v55 = vpop.xlane.xlu0 %3064 }
0x31ff   :  { %v3062_v23 = vsel %vm3038_vm1, %v3061_v17, %v3008_v43  ;;  %v3066_v28 = vsel %vm3038_vm1, %v3065_v55, %v3012_v19 }
0x3200   :  { %v3113_v56 = vmul.f32 %v3089_v14, %v3062_v23  ;;  %v3117_v52 = vmul.f32 %v3089_v14, %v3066_v28 }
0x3202   :  { %3114 = vadd.xlane.f32.xlu1 %v3113_v56  ;;  %v3069_v9 = vpop.xlane.xlu1 %3068  ;;  %3118 = vadd.xlane.f32.xlu0 %v3117_v52  ;;  %v3073_v45 = vpop.xlane.xlu0 %3072 }
0x3203   :  { %v3070_v22 = vsel %vm3038_vm1, %v3069_v9, %v3016_v54  ;;  %v3074_v46 = vsel %vm3038_vm1, %v3073_v45, %v3020_v59  ;;  %v3142_v54 = vld [vmem:[#allocation2 + $0x4] ss:$0 sm:$0xff] }
0x3204   :  { %v3121_v12 = vmul.f32 %v3089_v14, %v3070_v22  ;;  %v3125_v0 = vmul.f32 %v3089_v14, %v3074_v46  ;;  %v3143_v59 = vxor.u32 2147483648, %v3142_v54 }
0x3206   :  { %3122 = vadd.xlane.f32.xlu1 %v3121_v12  ;;  %v3077_v35 = vpop.xlane.xlu1 %3076  ;;  %3126 = vadd.xlane.f32.xlu0 %v3125_v0  ;;  %v3081_v43 = vpop.xlane.xlu0 %3080 }
0x3207   :  { %v3078_v19 = vsel %vm3038_vm1, %v3077_v35, %v3024_v24  ;;  %v3082_v51 = vsel %vm3038_vm1, %v3081_v43, %v3028_v4 }
0x3208   :  { %v3129_v32 = vmul.f32 %v3089_v14, %v3078_v19  ;;  %v3133_v30 = vmul.f32 %v3089_v14, %v3082_v51 }
0x320a   :  { %3130 = vadd.xlane.f32.xlu1 %v3129_v32  ;;  %3134 = vadd.xlane.f32.xlu0 %v3133_v30 }
0x3220   :  { %v3095_v11 = vpop.xlane.xlu0 %3094 }
0x3221   :  { %v3096_v40 = vsel %vm3092_vm2, %v3095_v11, %v3042_v6 }
0x3222   :  { %v3147_v3 = vmul.f32 %v3143_v59, %v3096_v40 }
0x3224   :  { %3148 = vadd.xlane.f32.xlu0 %v3147_v3 }
0x3283   :  { %v3085_v16 = vpop.xlane.xlu1 %3084 }
0x3284   :  { %v3086_v24 = vsel %vm3038_vm1, %v3085_v16, %v3032_v20  ;;  %vm3471_vm1 = vweird.f32 %v3633_v39 }
0x3285   :  { %v3137_v47 = vmul.f32 %v3089_v14, %v3086_v24 }
0x3287   :  { %3138 = vadd.xlane.f32.xlu1 %v3137_v47  ;;  %v3099_v4 = vpop.xlane.xlu1 %3098  ;;  %v3103_v18 = vpop.xlane.xlu0 %3102 }
0x3288   :  { %v3100_v37 = vsel %vm3092_vm2, %v3099_v4, %v3046_v42  ;;  %v3104_v10 = vsel %vm3092_vm2, %v3103_v18, %v3050_v27 }
0x3289   :  { %v3151_v62 = vmul.f32 %v3143_v59, %v3100_v37  ;;  %v3155_v26 = vmul.f32 %v3143_v59, %v3104_v10 }
0x328b   :  { %3152 = vadd.xlane.f32.xlu1 %v3151_v62  ;;  %v3107_v6 = vpop.xlane.xlu1 %3106  ;;  %3156 = vadd.xlane.f32.xlu0 %v3155_v26  ;;  %v3111_v17 = vpop.xlane.xlu0 %3110 }
0x328c   :  { %v3108_v55 = vsel %vm3092_vm2, %v3107_v6, %v3054_v2  ;;  %v3112_v14 = vsel %vm3092_vm2, %v3111_v17, %v3058_v21 }
0x328d   :  { %v3159_v20 = vmul.f32 %v3143_v59, %v3108_v55  ;;  %v3163_v56 = vmul.f32 %v3143_v59, %v3112_v14 }
0x328f   :  { %3160 = vadd.xlane.f32.xlu1 %v3159_v20  ;;  %v3115_v52 = vpop.xlane.xlu1 %3114  ;;  %3164 = vadd.xlane.f32.xlu0 %v3163_v56  ;;  %v3119_v42 = vpop.xlane.xlu0 %3118 }
0x3290   :  { %v3116_v27 = vsel %vm3092_vm2, %v3115_v52, %v3062_v23  ;;  %v3120_v9 = vsel %vm3092_vm2, %v3119_v42, %v3066_v28 }
0x3291   :  { %v3167_v45 = vmul.f32 %v3143_v59, %v3116_v27  ;;  %v3171_v12 = vmul.f32 %v3143_v59, %v3120_v9 }
0x3293   :  { %3168 = vadd.xlane.f32.xlu1 %v3167_v45  ;;  %v3123_v0 = vpop.xlane.xlu1 %3122  ;;  %3172 = vadd.xlane.f32.xlu0 %v3171_v12  ;;  %v3127_v2 = vpop.xlane.xlu0 %3126 }
0x3294   :  { %v3124_v21 = vsel %vm3092_vm2, %v3123_v0, %v3070_v22  ;;  %v3128_v35 = vsel %vm3092_vm2, %v3127_v2, %v3074_v46  ;;  %v3196_v22 = vld [vmem:[#allocation2 + $0x3] ss:$0 sm:$0xff] }
0x3295   :  { %v3175_v43 = vmul.f32 %v3143_v59, %v3124_v21  ;;  %v3179_v32 = vmul.f32 %v3143_v59, %v3128_v35  ;;  %v3197_v46 = vxor.u32 2147483648, %v3196_v22 }
0x3297   :  { %3176 = vadd.xlane.f32.xlu1 %v3175_v43  ;;  %v3131_v30 = vpop.xlane.xlu1 %3130  ;;  %3180 = vadd.xlane.f32.xlu0 %v3179_v32  ;;  %v3135_v23 = vpop.xlane.xlu0 %3134 }
0x3298   :  { %v3132_v28 = vsel %vm3092_vm2, %v3131_v30, %v3078_v19  ;;  %v3136_v54 = vsel %vm3092_vm2, %v3135_v23, %v3082_v51 }
0x3299   :  { %v3183_v11 = vmul.f32 %v3143_v59, %v3132_v28  ;;  %v3187_v3 = vmul.f32 %v3143_v59, %v3136_v54 }
0x329b   :  { %3184 = vadd.xlane.f32.xlu1 %v3183_v11  ;;  %3188 = vadd.xlane.f32.xlu0 %v3187_v3 }
0x32b1   :  { %v3149_v16 = vpop.xlane.xlu0 %3148 }
0x32b2   :  { %v3150_v47 = vsel %vm3146_vm3, %v3149_v16, %v3096_v40 }
0x32b3   :  { %v3201_v4 = vmul.f32 %v3197_v46, %v3150_v47 }
0x32b5   :  { %3202 = vadd.xlane.f32.xlu0 %v3201_v4 }
0x3314   :  { %v3139_v18 = vpop.xlane.xlu1 %3138 }
0x3315   :  { %v3140_v19 = vsel %vm3092_vm2, %v3139_v18, %v3086_v24  ;;  %vm3465_vm2 = vweird.f32 %v3679_v48 }
0x3316   :  { %v3191_v62 = vmul.f32 %v3143_v59, %v3140_v19 }
0x3318   :  { %3192 = vadd.xlane.f32.xlu1 %v3191_v62  ;;  %v3153_v51 = vpop.xlane.xlu1 %3152  ;;  %v3157_v26 = vpop.xlane.xlu0 %3156 }
0x3319   :  { %v3154_v6 = vsel %vm3146_vm3, %v3153_v51, %v3100_v37  ;;  %v3158_v17 = vsel %vm3146_vm3, %v3157_v26, %v3104_v10 }
0x331a   :  { %v3205_v20 = vmul.f32 %v3197_v46, %v3154_v6  ;;  %v3209_v56 = vmul.f32 %v3197_v46, %v3158_v17 }
0x331c   :  { %3206 = vadd.xlane.f32.xlu1 %v3205_v20  ;;  %v3161_v40 = vpop.xlane.xlu1 %3160  ;;  %3210 = vadd.xlane.f32.xlu0 %v3209_v56  ;;  %v3165_v52 = vpop.xlane.xlu0 %3164 }
0x331d   :  { %v3162_v42 = vsel %vm3146_vm3, %v3161_v40, %v3108_v55  ;;  %v3166_v59 = vsel %vm3146_vm3, %v3165_v52, %v3112_v14 }
0x331e   :  { %v3213_v24 = vmul.f32 %v3197_v46, %v3162_v42  ;;  %v3217_v45 = vmul.f32 %v3197_v46, %v3166_v59 }
0x3320   :  { %3214 = vadd.xlane.f32.xlu1 %v3213_v24  ;;  %v3169_v12 = vpop.xlane.xlu1 %3168  ;;  %3218 = vadd.xlane.f32.xlu0 %v3217_v45  ;;  %v3173_v37 = vpop.xlane.xlu0 %3172 }
0x3321   :  { %v3170_v10 = vsel %vm3146_vm3, %v3169_v12, %v3116_v27  ;;  %v3174_v0 = vsel %vm3146_vm3, %v3173_v37, %v3120_v9 }
0x3322   :  { %v3221_v2 = vmul.f32 %v3197_v46, %v3170_v10  ;;  %v3225_v43 = vmul.f32 %v3197_v46, %v3174_v0 }
0x3324   :  { %3222 = vadd.xlane.f32.xlu1 %v3221_v2  ;;  %v3177_v32 = vpop.xlane.xlu1 %3176  ;;  %3226 = vadd.xlane.f32.xlu0 %v3225_v43  ;;  %v3181_v55 = vpop.xlane.xlu0 %3180 }
0x3325   :  { %v3178_v14 = vsel %vm3146_vm3, %v3177_v32, %v3124_v21  ;;  %v3182_v30 = vsel %vm3146_vm3, %v3181_v55, %v3128_v35  ;;  %v3250_v21 = vld [vmem:[#allocation2 + $0x2] ss:$0 sm:$0xff] }
0x3326   :  { %v3229_v23 = vmul.f32 %v3197_v46, %v3178_v14  ;;  %v3233_v11 = vmul.f32 %v3197_v46, %v3182_v30  ;;  %v3251_v35 = vxor.u32 2147483648, %v3250_v21 }
0x3328   :  { %3230 = vadd.xlane.f32.xlu1 %v3229_v23  ;;  %v3185_v3 = vpop.xlane.xlu1 %3184  ;;  %3234 = vadd.xlane.f32.xlu0 %v3233_v11  ;;  %v3189_v27 = vpop.xlane.xlu0 %3188 }
0x3329   :  { %v3186_v9 = vsel %vm3146_vm3, %v3185_v3, %v3132_v28  ;;  %v3190_v22 = vsel %vm3146_vm3, %v3189_v27, %v3136_v54 }
0x332a   :  { %v3237_v16 = vmul.f32 %v3197_v46, %v3186_v9  ;;  %v3241_v4 = vmul.f32 %v3197_v46, %v3190_v22 }
0x332c   :  { %3238 = vadd.xlane.f32.xlu1 %v3237_v16  ;;  %3242 = vadd.xlane.f32.xlu0 %v3241_v4 }
0x3342   :  { %v3203_v18 = vpop.xlane.xlu0 %3202 }
0x3343   :  { %v3204_v62 = vsel %vm3200_vm4, %v3203_v18, %v3150_v47 }
0x3344   :  { %v3255_v51 = vmul.f32 %v3251_v35, %v3204_v62 }
0x3346   :  { %3256 = vadd.xlane.f32.xlu0 %v3255_v51 }
0x33a5   :  { %v3193_v26 = vpop.xlane.xlu1 %3192 }
0x33a6   :  { %v3194_v28 = vsel %vm3146_vm3, %v3193_v26, %v3140_v19  ;;  %vm3477_vm3 = vweird.f32 %v3616_v7 }
0x33a7   :  { %v3245_v20 = vmul.f32 %v3197_v46, %v3194_v28 }
0x33a9   :  { %3246 = vadd.xlane.f32.xlu1 %v3245_v20  ;;  %v3207_v54 = vpop.xlane.xlu1 %3206  ;;  %v3211_v56 = vpop.xlane.xlu0 %3210 }
0x33aa   :  { %v3208_v40 = vsel %vm3200_vm4, %v3207_v54, %v3154_v6  ;;  %v3212_v52 = vsel %vm3200_vm4, %v3211_v56, %v3158_v17 }
0x33ab   :  { %v3259_v24 = vmul.f32 %v3251_v35, %v3208_v40  ;;  %v3263_v45 = vmul.f32 %v3251_v35, %v3212_v52 }
0x33ad   :  { %3260 = vadd.xlane.f32.xlu1 %v3259_v24  ;;  %v3215_v47 = vpop.xlane.xlu1 %3214  ;;  %3264 = vadd.xlane.f32.xlu0 %v3263_v45  ;;  %v3219_v12 = vpop.xlane.xlu0 %3218 }
0x33ae   :  { %v3216_v37 = vsel %vm3200_vm4, %v3215_v47, %v3162_v42  ;;  %v3220_v46 = vsel %vm3200_vm4, %v3219_v12, %v3166_v59 }
0x33af   :  { %v3267_v19 = vmul.f32 %v3251_v35, %v3216_v37  ;;  %v3271_v2 = vmul.f32 %v3251_v35, %v3220_v46 }
0x33b1   :  { %3268 = vadd.xlane.f32.xlu1 %v3267_v19  ;;  %v3223_v43 = vpop.xlane.xlu1 %3222  ;;  %3272 = vadd.xlane.f32.xlu0 %v3271_v2  ;;  %v3227_v6 = vpop.xlane.xlu0 %3226 }
0x33b2   :  { %v3224_v17 = vsel %vm3200_vm4, %v3223_v43, %v3170_v10  ;;  %v3228_v32 = vsel %vm3200_vm4, %v3227_v6, %v3174_v0 }
0x33b3   :  { %v3275_v55 = vmul.f32 %v3251_v35, %v3224_v17  ;;  %v3279_v23 = vmul.f32 %v3251_v35, %v3228_v32 }
0x33b5   :  { %3276 = vadd.xlane.f32.xlu1 %v3275_v55  ;;  %v3231_v11 = vpop.xlane.xlu1 %3230  ;;  %3280 = vadd.xlane.f32.xlu0 %v3279_v23  ;;  %v3235_v42 = vpop.xlane.xlu0 %3234 }
0x33b6   :  { %v3232_v59 = vsel %vm3200_vm4, %v3231_v11, %v3178_v14  ;;  %v3236_v3 = vsel %vm3200_vm4, %v3235_v42, %v3182_v30  ;;  %v3304_v14 = vld [vmem:[#allocation2 + $0x1] ss:$0 sm:$0xff] }
0x33b7   :  { %v3283_v27 = vmul.f32 %v3251_v35, %v3232_v59  ;;  %v3287_v16 = vmul.f32 %v3251_v35, %v3236_v3  ;;  %v3305_v30 = vxor.u32 2147483648, %v3304_v14 }
0x33b9   :  { %3284 = vadd.xlane.f32.xlu1 %v3283_v27  ;;  %v3239_v4 = vpop.xlane.xlu1 %3238  ;;  %3288 = vadd.xlane.f32.xlu0 %v3287_v16  ;;  %v3243_v10 = vpop.xlane.xlu0 %3242 }
0x33ba   :  { %v3240_v0 = vsel %vm3200_vm4, %v3239_v4, %v3186_v9  ;;  %v3244_v21 = vsel %vm3200_vm4, %v3243_v10, %v3190_v22 }
0x33bb   :  { %v3291_v18 = vmul.f32 %v3251_v35, %v3240_v0  ;;  %v3295_v51 = vmul.f32 %v3251_v35, %v3244_v21 }
0x33bd   :  { %3292 = vadd.xlane.f32.xlu1 %v3291_v18  ;;  %3296 = vadd.xlane.f32.xlu0 %v3295_v51 }
0x33d3   :  { %v3257_v26 = vpop.xlane.xlu0 %3256 }
0x33d4   :  { %v3258_v20 = vsel %vm3254_vm5, %v3257_v26, %v3204_v62 }
0x33d5   :  { %v3309_v54 = vmul.f32 %v3305_v30, %v3258_v20 }
0x33d7   :  { %3310 = vadd.xlane.f32.xlu0 %v3309_v54 }
0x3436   :  { %v3247_v56 = vpop.xlane.xlu1 %3246 }
0x3437   :  { %v3248_v9 = vsel %vm3200_vm4, %v3247_v56, %v3194_v28 }
0x3438   :  { %v3299_v24 = vmul.f32 %v3251_v35, %v3248_v9 }
0x343a   :  { %3300 = vadd.xlane.f32.xlu1 %v3299_v24  ;;  %v3261_v22 = vpop.xlane.xlu1 %3260  ;;  %v3265_v45 = vpop.xlane.xlu0 %3264 }
0x343b   :  { %v3262_v47 = vsel %vm3254_vm5, %v3261_v22, %v3208_v40  ;;  %v3266_v12 = vsel %vm3254_vm5, %v3265_v45, %v3212_v52 }
0x343c   :  { %v3313_v19 = vmul.f32 %v3305_v30, %v3262_v47  ;;  %v3317_v2 = vmul.f32 %v3305_v30, %v3266_v12 }
0x343e   :  { %3314 = vadd.xlane.f32.xlu1 %v3313_v19  ;;  %v3269_v62 = vpop.xlane.xlu1 %3268  ;;  %3318 = vadd.xlane.f32.xlu0 %v3317_v2  ;;  %v3273_v43 = vpop.xlane.xlu0 %3272 }
0x343f   :  { %v3270_v6 = vsel %vm3254_vm5, %v3269_v62, %v3216_v37  ;;  %v3274_v35 = vsel %vm3254_vm5, %v3273_v43, %v3220_v46 }
0x3440   :  { %v3321_v28 = vmul.f32 %v3305_v30, %v3270_v6  ;;  %v3325_v55 = vmul.f32 %v3305_v30, %v3274_v35 }
0x3442   :  { %3322 = vadd.xlane.f32.xlu1 %v3321_v28  ;;  %v3277_v23 = vpop.xlane.xlu1 %3276  ;;  %3326 = vadd.xlane.f32.xlu0 %v3325_v55  ;;  %v3281_v40 = vpop.xlane.xlu0 %3280 }
0x3443   :  { %v3278_v52 = vsel %vm3254_vm5, %v3277_v23, %v3224_v17  ;;  %v3282_v11 = vsel %vm3254_vm5, %v3281_v40, %v3228_v32 }
0x3444   :  { %v3329_v42 = vmul.f32 %v3305_v30, %v3278_v52  ;;  %v3333_v27 = vmul.f32 %v3305_v30, %v3282_v11 }
0x3446   :  { %3330 = vadd.xlane.f32.xlu1 %v3329_v42  ;;  %v3285_v16 = vpop.xlane.xlu1 %3284  ;;  %3334 = vadd.xlane.f32.xlu0 %v3333_v27  ;;  %v3289_v37 = vpop.xlane.xlu0 %3288 }
0x3447   :  { %v3286_v46 = vsel %vm3254_vm5, %v3285_v16, %v3232_v59  ;;  %v3290_v4 = vsel %vm3254_vm5, %v3289_v37, %v3236_v3  ;;  %v3357_v59 = vld [vmem:[#allocation2] ss:$0 sm:$0xff] }
0x3448   :  { %v3337_v10 = vmul.f32 %v3305_v30, %v3286_v46  ;;  %v3341_v18 = vmul.f32 %v3305_v30, %v3290_v4  ;;  %v3358_v3 = vxor.u32 2147483648, %v3357_v59 }
0x344a   :  { %3338 = vadd.xlane.f32.xlu1 %v3337_v10  ;;  %v3293_v51 = vpop.xlane.xlu1 %3292  ;;  %3342 = vadd.xlane.f32.xlu0 %v3341_v18  ;;  %v3297_v17 = vpop.xlane.xlu0 %3296 }
0x344b   :  { %v3294_v32 = vsel %vm3254_vm5, %v3293_v51, %v3240_v0  ;;  %v3298_v14 = vsel %vm3254_vm5, %v3297_v17, %v3244_v21 }
0x344c   :  { %v3345_v26 = vmul.f32 %v3305_v30, %v3294_v32  ;;  %v3349_v54 = vmul.f32 %v3305_v30, %v3298_v14 }
0x344e   :  { %3346 = vadd.xlane.f32.xlu1 %v3345_v26  ;;  %3350 = vadd.xlane.f32.xlu0 %v3349_v54 }
0x3464   :  { %v3311_v56 = vpop.xlane.xlu0 %3310 }
0x3465   :  { %v3312_v24 = vsel %vm3308_vm6, %v3311_v56, %v3258_v20 }
0x3466   :  { %v3362_v22 = vmul.f32 %v3358_v3, %v3312_v24 }
0x3468   :  { %3363 = vadd.xlane.f32.xlu0 %v3362_v22 }
0x34c7   :  { %v3301_v45 = vpop.xlane.xlu1 %3300 }
0x34c8   :  { %v3302_v0 = vsel %vm3254_vm5, %v3301_v45, %v3248_v9 }
0x34c9   :  { %v3353_v19 = vmul.f32 %v3305_v30, %v3302_v0 }
0x34cb   :  { %3354 = vadd.xlane.f32.xlu1 %v3353_v19  ;;  %v3315_v21 = vpop.xlane.xlu1 %3314  ;;  %v3319_v2 = vpop.xlane.xlu0 %3318 }
0x34cc   :  { %v3316_v62 = vsel %vm3308_vm6, %v3315_v21, %v3262_v47  ;;  %v3320_v43 = vsel %vm3308_vm6, %v3319_v2, %v3266_v12 }
0x34cd   :  { %v3366_v28 = vmul.f32 %v3358_v3, %v3316_v62  ;;  %v3370_v55 = vmul.f32 %v3358_v3, %v3320_v43 }
0x34cf   :  { %3367 = vadd.xlane.f32.xlu1 %v3366_v28  ;;  %v3323_v20 = vpop.xlane.xlu1 %3322  ;;  %3371 = vadd.xlane.f32.xlu0 %v3370_v55  ;;  %v3327_v23 = vpop.xlane.xlu0 %3326 }
0x34d0   :  { %v3324_v40 = vsel %vm3308_vm6, %v3323_v20, %v3270_v6  ;;  %v3328_v30 = vsel %vm3308_vm6, %v3327_v23, %v3274_v35 }
0x34d1   :  { %v3374_v9 = vmul.f32 %v3358_v3, %v3324_v40  ;;  %v3378_v42 = vmul.f32 %v3358_v3, %v3328_v30 }
0x34d3   :  { %3375 = vadd.xlane.f32.xlu1 %v3374_v9  ;;  %v3331_v27 = vpop.xlane.xlu1 %3330  ;;  %3379 = vadd.xlane.f32.xlu0 %v3378_v42  ;;  %v3335_v47 = vpop.xlane.xlu0 %3334 }
0x34d4   :  { %v3332_v12 = vsel %vm3308_vm6, %v3331_v27, %v3278_v52  ;;  %v3336_v16 = vsel %vm3308_vm6, %v3335_v47, %v3282_v11 }
0x34d5   :  { %v3382_v37 = vmul.f32 %v3358_v3, %v3332_v12  ;;  %v3386_v10 = vmul.f32 %v3358_v3, %v3336_v16 }
0x34d7   :  { %3383 = vadd.xlane.f32.xlu1 %v3382_v37  ;;  %v3339_v18 = vpop.xlane.xlu1 %3338  ;;  %3387 = vadd.xlane.f32.xlu0 %v3386_v10  ;;  %v3343_v6 = vpop.xlane.xlu0 %3342 }
0x34d8   :  { %v5116_v35 = vsel %vm3308_vm6, %v3339_v18, %v3286_v46  ;;  %v5120_v51 = vsel %vm3308_vm6, %v3343_v6, %v3290_v4 }
0x34d9   :  { %v3390_v17 = vmul.f32 %v3358_v3, %v5116_v35  ;;  %v3394_v52 = vmul.f32 %v3358_v3, %v5120_v51 }
0x34db   :  { %3391 = vadd.xlane.f32.xlu1 %v3390_v17  ;;  %v3347_v11 = vpop.xlane.xlu1 %3346  ;;  %3395 = vadd.xlane.f32.xlu0 %v3394_v52  ;;  %v3351_v26 = vpop.xlane.xlu0 %3350 }
0x34dc   :  { %v5126_v54 = vsel %vm3308_vm6, %v3347_v11, %v3294_v32  ;;  %v5130_v46 = vsel %vm3308_vm6, %v3351_v26, %v3298_v14 }
0x34dd   :  { %v3398_v59 = vmul.f32 %v3358_v3, %v5126_v54  ;;  %v3402_v4 = vmul.f32 %v3358_v3, %v5130_v46 }
0x34df   :  { %3399 = vadd.xlane.f32.xlu1 %v3398_v59  ;;  %3403 = vadd.xlane.f32.xlu0 %v3402_v4 }
0x34f5   :  { %v3364_v56 = vpop.xlane.xlu0 %3363 }
0x34f6   :  { %v3365_v22 = vsel %vm3361_vm7, %v3364_v56, %v3312_v24 }
0x34f7   :  { %v3411_v45 = vmul.f32 %v4913_v5, %v3365_v22 }
0x34f9   :  { %v3413_v32 = vsel %vm3412_vm8, %v3365_v22, %v3411_v45 }
0x34fa   :  { %3531 = vst [vmem:[%s5230_s1] sm:$0xff] %v3413_v32 }
0x3558   :  { %v3355_v14 = vpop.xlane.xlu1 %3354 }
0x3559   :  { %v5144_v19 = vsel %vm3308_vm6, %v3355_v14, %v3302_v0 }
0x355a   :  { %v3406_v21 = vmul.f32 %v3358_v3, %v5144_v19 }
0x355c   :  { %3407 = vadd.xlane.f32.xlu1 %v3406_v21  ;;  %v3368_v2 = vpop.xlane.xlu1 %3367  ;;  %v3372_v28 = vpop.xlane.xlu0 %3371 }
0x355d   :  { %v3369_v5 = vsel %vm3361_vm7, %v3368_v2, %v3316_v62  ;;  %v3373_v29 = vsel %vm3361_vm7, %v3372_v28, %v3320_v43 }
0x355e   :  { %v3416_v24 = vmul.f32 %v4698_v57, %v3369_v5  ;;  %v3422_v55 = vmul.f32 %v4512_v15, %v3373_v29 }
0x3560   :  { %v3418_v0 = vsel %vm3417_vm10, %v3369_v5, %v3416_v24  ;;  %v3424_v20 = vsel %vm3423_vm9, %v3373_v29, %v3422_v55  ;;  %v3376_v3 = vpop.xlane.xlu1 %3375  ;;  %v3380_v23 = vpop.xlane.xlu0 %3379 }
0x3561   :  { %3533 = vst [vmem:[%s5230_s1 + $0x8] sm:$0xff] %v3418_v0  ;;  %3535 = vst [vmem:[%s5230_s1 + $0x10] sm:$0xff] %v3424_v20  ;;  %v3377_v57 = vsel %vm3361_vm7, %v3376_v3, %v3324_v40  ;;  %v3381_v13 = vsel %vm3361_vm7, %v3380_v23, %v3328_v30 }
0x3562   :  { %v3428_v15 = vmul.f32 %v4346_v44, %v3377_v57  ;;  %v3434_v25 = vmul.f32 %v4196_v63, %v3381_v13 }
0x3564   :  { %v3430_v62 = vsel %vm3429_vm12, %v3377_v57, %v3428_v15  ;;  %v3436_v43 = vsel %vm3435_vm11, %v3381_v13, %v3434_v25  ;;  %v3384_v9 = vpop.xlane.xlu1 %3383  ;;  %v3388_v42 = vpop.xlane.xlu0 %3387 }
0x3565   :  { %3537 = vst [vmem:[%s5230_s1 + $0x18] sm:$0xff] %v3430_v62  ;;  %3539 = vst [vmem:[%s5230_s1 + $0x20] sm:$0xff] %v3436_v43  ;;  %v3385_v44 = vsel %vm3361_vm7, %v3384_v9, %v3332_v12  ;;  %v3389_v60 = vsel %vm3361_vm7, %v3388_v42, %v3336_v16 }
0x3566   :  { %v3440_v63 = vmul.f32 %v4062_v61, %v3385_v44  ;;  %v3446_v38 = vmul.f32 %v3944_v33, %v3389_v60 }
0x3568   :  { %v3442_v40 = vsel %vm3441_vm14, %v3385_v44, %v3440_v63  ;;  %v3448_v30 = vsel %vm3447_vm13, %v3389_v60, %v3446_v38  ;;  %v3392_v27 = vpop.xlane.xlu1 %3391  ;;  %v3396_v47 = vpop.xlane.xlu0 %3395 }
0x3569   :  { %3541 = vst [vmem:[%s5230_s1 + $0x28] sm:$0xff] %v3442_v40  ;;  %3543 = vst [vmem:[%s5230_s1 + $0x30] sm:$0xff] %v3448_v30  ;;  %v3393_v33 = vsel %vm3361_vm7, %v3392_v27, %v5116_v35  ;;  %v3397_v31 = vsel %vm3361_vm7, %v3396_v47, %v5120_v51 }
0x356a   :  { %v3452_v58 = vmul.f32 %v3842_v53, %v3393_v33  ;;  %v3458_v61 = vmul.f32 %v3756_v36, %v3397_v31 }
0x356c   :  { %v3454_v12 = vsel %vm3453_vm15, %v3393_v33, %v3452_v58  ;;  %v3460_v16 = vsel %vm3459_vm0, %v3397_v31, %v3458_v61  ;;  %v3400_v37 = vpop.xlane.xlu1 %3399  ;;  %v3404_v10 = vpop.xlane.xlu0 %3403 }
0x356d   :  { %3545 = vst [vmem:[%s5230_s1 + $0x38] sm:$0xff] %v3454_v12  ;;  %3547 = vst [vmem:[%s5230_s1 + $0x40] sm:$0xff] %v3460_v16  ;;  %v3401_v36 = vsel %vm3361_vm7, %v3400_v37, %v5126_v54  ;;  %v3405_v34 = vsel %vm3361_vm7, %v3404_v10, %v5130_v46 }
0x356e   :  { %v3464_v49 = vmul.f32 %v3685_v50, %v3401_v36  ;;  %v3470_v53 = vmul.f32 %v3639_v41, %v3405_v34 }
0x3570   :  { %v3466_v18 = vsel %vm3465_vm2, %v3401_v36, %v3464_v49  ;;  %v3472_v6 = vsel %vm3471_vm1, %v3405_v34, %v3470_v53 }
0x3571   :  { %3549 = vst [vmem:[%s5230_s1 + $0x48] sm:$0xff] %v3466_v18  ;;  %3551 = vst [vmem:[%s5230_s1 + $0x50] sm:$0xff] %v3472_v6 }
0x35e9   :  { %v3408_v35 = vpop.xlane.xlu1 %3407 }
0x35ea   :  { %v3409_v50 = vsel %vm3361_vm7, %v3408_v35, %v5144_v19 }
0x35eb   :  { %v3476_v41 = vmul.f32 %v3619_v8, %v3409_v50 }
0x35ed   :  { %v3478_v39 = vsel %vm3477_vm3, %v3409_v50, %v3476_v41 }
0x35ee   :  { %3553 = vst [vmem:[%s5230_s1 + $0x58] sm:$0xff] %v3478_v39 }

// kernel: gkx_forward.4
= control target key start
LH: loop header
LB: loop body
LE: loop exit
PB: predicated region body
PF: predicated region fallthrough
CT: control target
= control target key end

     0   :  { %v304_v1 = vmov 0.0   ;;  %vm305_vm0 = vmmov 0   ;;  %s375_s0 = inlined_call_operand.vmem [shape: f32[1,95], index: 0, kind: input, shape index: {}]   ;;  %s376_s1 = inlined_call_operand.vmem [shape: bf16[95,32], index: 1, kind: input, shape index: {}]   ;;  %s377_s2 = inlined_call_operand.vmem [shape: bf16[32,6], index: 2, kind: input, shape index: {}]   ;;  %s378_s3 = inlined_call_operand.hbm [shape: f32[1,95], index: 3, kind: output, shape index: {0}]   ;;  %s379_s4 = inlined_call_operand.vmem [shape: f32[1,6], index: 4, kind: output, shape index: {1}]  }
   0x1   :  { %v264_v0 = vld [vmem:[%s376_s1] sm:$0xff]   ;;  %236 = vmatprep.subr.bf16.mxu0 %v304_v1  ;;  %252 = vmatprep.subr.bf16.mxu1 %v304_v1  ;;  %v265_v2 = vld [vmem:[%s376_s1 + $0x8] sm:$0xff]   ;;  %v266_v3 = vld [vmem:[%s376_s1 + $0x10] sm:$0xff]  }
   0x2   :  { %237 = vmatpush3.bf16.msra.mxu0 %v264_v0  ;;  %248 = vmatprep.mubr.msk.bf16.mxu0 %vm305_vm0, %v304_v1  ;;  %v18_v4 = vld [vmem:[%s375_s0] sm:$0x1] }
   0x3   :  { %238 = vmatprep.subr.bf16.mxu0 %v304_v1  ;;  %256 = vmatprep.mubr.msk.bf16.mxu1 %vm305_vm0, %v304_v1 }
   0x6   :  { %239 = vmatpush3.bf16.msra.mxu0 %v265_v2 }
   0x7   :  { %240 = vmatprep.subr.bf16.mxu0 %v304_v1 }
   0x8   :  { %10 = vsyncpa [#allocation3], 0  ;;  %vm76_vm1 = vcmask 1046528   ;;  %v267_v5 = vld [vmem:[%s376_s1 + $0x18] sm:$0xff]   ;;  %v19_v6 = vand.u32 2147483647, %v18_v4 }
   0x9   :  { %vm77_vm2 = vcmask 1047552   ;;  %v306_v7 = vmov 65535   ;;  %v268_v9 = vld [vmem:[%s376_s1 + $0x20] sm:$0xff]   ;;  %v269_v10 = vld [vmem:[%s376_s1 + $0x28] sm:$0xff]   ;;  %vm72_vm4 = vcmask 777216   ;;  %vm146_vm5 = vcmask 261120  }
   0xa   :  { %241 = vmatpush3.bf16.msra.mxu0 %v266_v3  ;;  %v78_v8 = vsel %vm76_vm1, 4294967295, %v306_v7  ;;  %vm20_vm3 = vcmp.gt.f32.partialorder %v19_v6, 0.5  ;;  %v270_v15 = vld [vmem:[%s377_s2] sm:$0xff]   ;;  %v271_v16 = vld [vmem:[%s377_s2 + $0x8] sm:$0xff]   ;;  %vm22_vm6 = vcmask 770048   ;;  %s307_s1 = smov [#allocation2]  }
   0xb   :  { %242 = vmatprep.subr.bf16.mxu0 %v304_v1  ;;  %v79_v11 = vsel %vm77_vm2, %v78_v8, 0  ;;  %v21_v13 = vsel %vm20_vm3, 0.0, %v18_v4  ;;  %253 = vmatpush3.bf16.msra.mxu1 %v270_v15  ;;  %s204_s6 = sshll.u32 %s307_s1, 4  ;;  %s205_s6 = int_to_ptr.vmem [resolvable:$true] %s204_s6 }
   0xc   :  { %v81_v12 = vand.u32 %v269_v10, %v79_v11  ;;  %v24_v14 = vpack.c.bf16 %v21_v13, %v21_v13  ;;  %254 = vmatprep.subr.bf16.mxu1 %v304_v1  ;;  %23 = vst.msk [vmem:[#allocation2] sm:$0x1] %vm22_vm6, %v21_v13  ;;  %s280_s2 = scalar_lea.vmem %s205_s6, 16  ;;  %s284_s7 = scalar_lea.vmem %s205_s6, 32 }
   0xd   :  { %p281_p0 = scmp.ne.s32.totalorder %s205_s6, %s280_s2  ;;  %p285_p1 = scmp.lt.s32.totalorder %s205_s6, %s205_s6 }
   0xe   :  { %243 = vmatpush3.bf16.msra.mxu0 %v267_v5  ;;  %p286_p2 = scmp.lt.s32.totalorder %s284_s7, %s280_s2 }
   0xf   :  { %244 = vmatprep.subr.bf16.mxu0 %v304_v1  ;;  %255 = vmatpush3.bf16.msra.mxu1 %v271_v16 }
  0x10   :  { %p287_p3 = por %p286_p2, %p285_p1 }
  0x12   :  { %245 = vmatpush3.bf16.msra.mxu0 %v268_v9  ;;  %p288_p4 = pnand %p287_p3, %p281_p0 }
  0x13   :  { %246 = vmatprep.subr.bf16.mxu0 %v304_v1 }
  0x16   :  { %247 = vmatpush3.bf16.msra.mxu0 %v81_v12 }
  0x19   :  { %249 = vmatmul.mubr.msk.bf16.vlgmr.msra.gmra.mrb[0].mxu0 %vm72_vm4, %v24_v14 }
  0xec   :  { %v117_v17 = vpop.f32.mrb[0].mxu0 }
  0xed   :  { %v123_v18 = vsub.f32 0.0, %v117_v17  ;;  %v250_v19 = vpop.f32.mrb[1].mxu0 }
  0xee   :  { %v120_v20 = vpop.f32.mrb[2].mxu0 }
  0xef   :  { %v124_v21 = vmul.f32 1.442695, %v123_v18  ;;  %v251_v22 = vpop.f32.mrb[3].mxu0 }
  0xf1   :  { %272 = vpow2.f32 %v124_v21 }
  0xfb   :  { %v273_v23 = vpop.eup %272 }
  0xfc   :  { %v126_v24 = vadd.f32 1.0, %v273_v23 }
  0xfe   :  { %274 = vrcp.f32 %v126_v24 }
 0x108   :  { %v275_v25 = vpop.eup %274 }
 0x109   :  { %v128_v26 = vmul.f32 %v275_v25, %v117_v17 }
 0x10b   :  { %v129_v27 = vpack.c.bf16 %v128_v26, %v128_v26 }
 0x10d   :  { %257 = vmatmul.mubr.msk.bf16.vlgmr.msra.gmra.mrb[0].mxu1 %vm146_vm5, %v129_v27 }
 0x10e   :  { %291 = shalt.err (!%p288_p4)
}
 0x10f   :  { %s292_s10 = scalar_lea.hbm %s378_s3, 16 }
 0x110   :  { %p293_p5 = scmp.ne.s32.totalorder %s378_s3, %s292_s10  ;;  %p296_p6 = scmp.lt.u32.totalorder %s292_s10, %s378_s3 }
 0x112   :  { %p298_p7 = pnand %p296_p6, %p293_p5 }
 0x114   :  { %301 = shalt.err (!%p298_p7)
}
 0x115   :  { %207 = dma.vmem_to_hbm [thread:$0]  %s205_s6, 16, %s378_s3, [#allocation3]   ;;  %vm196_vm7 = vcmask 40960  }
 0x1e0   :  { %v184_v28 = vpop.f32.mrb[0].mxu1 }
 0x1e1   :  { %v190_v29 = vsub.f32 0.0, %v184_v28  ;;  %v258_v30 = vpop.f32.mrb[1].mxu1 }
 0x1e2   :  { %v187_v31 = vpop.f32.mrb[2].mxu1 }
 0x1e3   :  { %v191_v32 = vmul.f32 1.442695, %v190_v29  ;;  %v259_v33 = vpop.f32.mrb[3].mxu1 }
 0x1e5   :  { %276 = vpow2.f32 %v191_v32 }
 0x1ef   :  { %v277_v34 = vpop.eup %276 }
 0x1f0   :  { %v193_v35 = vadd.f32 1.0, %v277_v34 }
 0x1f2   :  { %278 = vrcp.f32 %v193_v35 }
 0x1fc   :  { %v279_v36 = vpop.eup %278 }
 0x1fd   :  { %v195_v37 = vmul.f32 %v279_v36, %v184_v28 }
 0x1ff   :  { %197 = vst.msk [vmem:[%s379_s4] sm:$0x1] %vm196_vm7, %v195_v37 }
 0x200   :  { %302 = dma.done.wait [#allocation3], 16  }
 0x201   :  { %303 = vsyncadd [#allocation3], 4294967280 }
 0x202   :  { %215 = vsyncpa [#allocation3], 1 }

// kernel: gkx_forward.5
= control target key start
LH: loop header
LB: loop body
LE: loop exit
PB: predicated region body
PF: predicated region fallthrough
CT: control target
= control target key end

     0   :  { %15 = vsyncpa [#allocation4], 0  ;;  %s1551_s0 = inlined_call_operand.vmem [shape: bf16[95,256], index: 0, kind: input, shape index: {}]   ;;  %s1552_s1 = inlined_call_operand.vmem [shape: bf16[32,95], index: 1, kind: input, shape index: {}]   ;;  %s1553_s2 = inlined_call_operand.vmem [shape: bf16[16,32], index: 2, kind: input, shape index: {}]   ;;  %s1554_s3 = inlined_call_operand.vmem [shape: bf16[8,16], index: 3, kind: input, shape index: {}]   ;;  %s1555_s4 = inlined_call_operand.vmem [shape: bf16[6,8], index: 4, kind: input, shape index: {}]   ;;  %s1556_s5 = inlined_call_operand.vmem [shape: f32[62,1], index: 5, kind: input, shape index: {}]   ;;  %s1557_s6 = inlined_call_operand.vmem [shape: f32[62,1], index: 6, kind: input, shape index: {}]   ;;  %s1558_s7 = inlined_call_operand.vmem [shape: f32[6,1], index: 7, kind: input, shape index: {}]   ;;  %s1559_s8 = inlined_call_operand.hbm [shape: f32[6,256], index: 8, kind: output, shape index: {0}]   ;;  %s1560_s9 = inlined_call_operand.hbm [shape: f32[1,256], index: 9, kind: output, shape index: {1}]  }
   0x1   :  { %17 = vsyncpa [#allocation4 + $0x1], 0 }
   0x2   :  { %18 = vsyncpa [#allocation6], 0 }
   0x3   :  { %20 = vsyncpa [#allocation6 + $0x1], 0  ;;  %s1323_s30 = smov 0   ;;  %s1325_s10 = smov 0  }
   0x4   :  { %s1327_s11 = smov 0   ;;  %s1329_s12 = smov 0  }
   0x5 LB: > { %s1344_s13 = sadd.s32 4294967295, %s1265_s12   ;;  %s1002_s14 = sadd.s32 4294967294, %s1265_s12   ;;  %s1265_s12 = sphi %s1329_s12, %s1566_s12   ;;  %s1261_s11 = sphi %s1327_s11, %s1565_s11   ;;  %s1257_s10 = sphi %s1325_s10, %s1564_s10   ;;  %s1253_s30 = sphi %s1323_s30, %s1563_s30  }
   0x6   : > { %s1348_s15 = sadd.s32 1, %s1265_s12   ;;  %s33_s16 = sadd.s32 1, %s1261_s11 }
   0x7   : > { %s30_s17 = ssub.s32 %s1265_s12, %s1348_s15  ;;  %p40_p0 = scmp.ne.s32.totalorder %s1261_s11, %s1257_s10 }
   0x8   : > { %p31_p1 = scmp.eq.s32.totalorder %s30_s17, 0  ;;  %p41_p2 = scmp.eq.s32.totalorder %s1265_s12, 0 }
   0x9   : > { %p217_p3 = scmp.eq.s32.totalorder %s1344_s13, 1  ;;  %p222_p4 = scmp.ne.s32.totalorder %s1257_s10, %s1253_s30 }
   0xa   : > { %s1360_s18 = scalar_select %p31_p1, %s1261_s11, %s33_s16  }
   0xb   : > { %p42_p5 = por %p41_p2, %p40_p0  ;;  %p1362_p6 = por %p217_p3, %p40_p0 }
   0xc   : > { %p223_p7 = scmp.eq.s32.totalorder %s1002_s14, 1  ;;  %p1004_p9 = scmp.ge.s32.totalorder %s1265_s12, 2 }
   0xe   : > { %p1366_p8 = por %p223_p7, %p222_p4  ;;  %286 = sbr.rel (%p1004_p9) target bundleno = 33 (0x21), region = 44 }
  0x15   : > { %289 = sbr.rel (!%p42_p5) target bundleno = 33 (0x21), region = 48  ;;  %s291_s21 = sand.u32 (%p42_p5), 1, %s1261_s11  }
  0x16   : > { %s1005_s22 = sshll.u32 (%p42_p5), %s1265_s12, 2  ;;  %s1078_s23 = smul.u32 (%p42_p5), 48, %s291_s21 }
  0x17   : > { %s295_s26 = scalar_lea.vmem (%p42_p5), %s1551_s0, %s1005_s22 }
  0x18   : > { %v311_v0 = vld [vmem:[%s295_s26] sm:$0xf] (%p42_p5)  ;;  %v313_v1 = vld [vmem:[%s295_s26 + $0x8] sm:$0xf] (%p42_p5)  ;;  %v315_v2 = vld [vmem:[%s295_s26 + $0x10] sm:$0xf] (%p42_p5) }
  0x19   : > { %v317_v3 = vld [vmem:[%s295_s26 + $0x18] sm:$0xf] (%p42_p5)  ;;  %v319_v4 = vld [vmem:[%s295_s26 + $0x20] sm:$0xf] (%p42_p5)  ;;  %s293_s27 = scalar_lea.vmem (%p42_p5), [#allocation2], %s1078_s23 }
  0x1a   : > { %312 = vst [vmem:[%s293_s27] sm:$0xf] (%p42_p5), %v311_v0  ;;  %314 = vst [vmem:[%s293_s27 + $0x4] sm:$0xf] (%p42_p5), %v313_v1  ;;  %v321_v5 = vld [vmem:[%s295_s26 + $0x28] sm:$0xf] (%p42_p5) }
  0x1b   : > { %316 = vst [vmem:[%s293_s27 + $0x8] sm:$0xf] (%p42_p5), %v315_v2  ;;  %318 = vst [vmem:[%s293_s27 + $0xc] sm:$0xf] (%p42_p5), %v317_v3  ;;  %v323_v6 = vld [vmem:[%s295_s26 + $0x30] sm:$0xf] (%p42_p5) }
  0x1c   : > { %320 = vst [vmem:[%s293_s27 + $0x10] sm:$0xf] %v319_v4  ;;  %v325_v7 = vld [vmem:[%s295_s26 + $0x38] sm:$0xf]  ;;  %322 = vst [vmem:[%s293_s27 + $0x14] sm:$0xf] %v321_v5 }
  0x1d   : > { %324 = vst [vmem:[%s293_s27 + $0x18] sm:$0xf] %v323_v6  ;;  %326 = vst [vmem:[%s293_s27 + $0x1c] sm:$0xf] %v325_v7  ;;  %v327_v8 = vld [vmem:[%s295_s26 + $0x40] sm:$0xf] }
  0x1e   : > { %v329_v9 = vld [vmem:[%s295_s26 + $0x48] sm:$0xf]  ;;  %v331_v10 = vld [vmem:[%s295_s26 + $0x50] sm:$0xf]  ;;  %328 = vst [vmem:[%s293_s27 + $0x20] sm:$0xf] %v327_v8 }
  0x1f   : > { %330 = vst [vmem:[%s293_s27 + $0x24] sm:$0xf] %v329_v9  ;;  %332 = vst [vmem:[%s293_s27 + $0x28] sm:$0xf] %v331_v10  ;;  %v333_v11 = vld [vmem:[%s295_s26 + $0x58] sm:$0xf] }
  0x20   : > { %334 = vst [vmem:[%s293_s27 + $0x2c] sm:$0xf] %v333_v11 }
  0x21 PF: > { %p1006_p10 = scmp.ge.s32.totalorder %s1265_s12, 1  ;;  %p380_p11 = scmp.lt.s32.totalorder %s1265_s12, 3 }
  0x23   : > { %p381_p12 = pnand %p1006_p10, %p380_p11 }
  0x24   : > { %s1381_s28 = sand.u32 (!%p381_p12), 1, %s1257_s10   ;;  %v1136_v12 = vld [vmem:[%s1552_s1] sm:$0xff] (!%p381_p12)   ;;  %vm504_vm0 = vcmask (!%p381_p12), 777216   ;;  %v1267_v16 = vmov (!%p381_p12), 0   ;;  %v428_v18 = vld [vmem:[%s1556_s5 + $0x8] sm:$0xff] (!%p381_p12)  ;;  %v429_v21 = vld [vmem:[%s1556_s5 + $0x10] sm:$0xff] (!%p381_p12) }
  0x25   : > { %384 = sbr.rel (%p381_p12) target bundleno = 1115 (0x45b), region = 89  ;;  %1054 = vmatprep.mubr.msk.bf16.mxu0 (!%p381_p12), %vm504_vm0, %v1136_v12  ;;  %v427_v13 = vld [vmem:[%s1556_s5] sm:$0xff] (!%p381_p12)  ;;  %1128 = vset.pattern.permute.xlu0 (!%p381_p12), %v1267_v16  ;;  %v436_v20 = vld [vmem:[%s1557_s6 + $0x8] sm:$0xff] (!%p381_p12)  ;;  %vm511_vm1 = vcmask (!%p381_p12), 1046528   ;;  %v430_v23 = vld [vmem:[%s1556_s5 + $0x18] sm:$0xff] (!%p381_p12)  ;;  %vm512_vm2 = vcmask (!%p381_p12), 1047552  }
  0x26   : > { %s1079_s29 = smul.u32 (!%p381_p12), 48, %s1381_s28  ;;  %v435_v14 = vld [vmem:[%s1557_s6] sm:$0xff] (!%p381_p12)  ;;  %1129 = vset.pattern.permute.xlu1 (!%p381_p12), %v1267_v16  ;;  %593 = vperm.xlu0 (!%p381_p12), %1128, %v427_v13   ;;  %v1268_v24 = vmov (!%p381_p12), 65535   ;;  %v437_v26 = vld [vmem:[%s1557_s6 + $0x10] sm:$0xff] (!%p381_p12)  ;;  %v438_v29 = vld [vmem:[%s1557_s6 + $0x18] sm:$0xff] (!%p381_p12)  ;;  %v1269_v42 = vmov (!%p381_p12), 0.0  }
  0x27   : > { %617 = vperm.xlu1 (!%p381_p12), %1129, %v435_v14   ;;  %v513_v25 = vsel (!%p381_p12), %vm511_vm1, 4294967295, %v1268_v24  ;;  %v431_v31 = vld [vmem:[%s1556_s5 + $0x20] sm:$0xff] (!%p381_p12)  ;;  %v432_v33 = vld [vmem:[%s1556_s5 + $0x28] sm:$0xff] (!%p381_p12)  ;;  %v433_v37 = vld [vmem:[%s1556_s5 + $0x30] sm:$0xff] (!%p381_p12)  ;;  %1058 = vmatprep.subr.bf16.mxu1 (!%p381_p12), %v1269_v42  ;;  %vm1270_vm3 = vmmov (!%p381_p12), 0   ;;  %vm648_vm4 = vcmask (!%p381_p12), 261120  }
  0x28   : > { %s1394_s24 = scalar_lea.vmem (!%p381_p12), [#allocation2], %s1079_s29  ;;  %v514_v30 = vsel (!%p381_p12), %vm512_vm2, %v513_v25, 0  ;;  %v439_v34 = vld [vmem:[%s1557_s6 + $0x20] sm:$0xff] (!%p381_p12)  ;;  %v440_v35 = vld [vmem:[%s1557_s6 + $0x28] sm:$0xff] (!%p381_p12)  ;;  %v441_v38 = vld [vmem:[%s1557_s6 + $0x30] sm:$0xff] (!%p381_p12)  ;;  %1062 = vmatprep.mubr.msk.bf16.mxu1 (!%p381_p12), %vm1270_vm3, %v1269_v42  ;;  %vm731_vm5 = vcmask (!%p381_p12), 130048  }
  0x29   : > { %v1130_v15 = vld [vmem:[%s1394_s24] sm:$0xff] (!%p381_p12)   ;;  %v1131_v17 = vld [vmem:[%s1394_s24 + $0x8] sm:$0xff] (!%p381_p12)   ;;  %v1132_v19 = vld [vmem:[%s1394_s24 + $0x10] sm:$0xff] (!%p381_p12)   ;;  %vm799_vm6 = vcmask (!%p381_p12), 1043456   ;;  %vm795_vm7 = vcmask (!%p381_p12), 64512   ;;  %s1023_s17 = sshll.u32 (!%p381_p12), %s1344_s13, 7 }
  0x2a   : > { %1042 = vmatprep.subr.bf16.mxu0 (!%p381_p12), %v1130_v15  ;;  %598 = vperm.xlu0 (!%p381_p12), %1128, %v428_v18   ;;  %v1133_v22 = vld [vmem:[%s1394_s24 + $0x18] sm:$0xff] (!%p381_p12)   ;;  %v1134_v27 = vld [vmem:[%s1394_s24 + $0x20] sm:$0xff] (!%p381_p12)   ;;  %v1135_v28 = vld [vmem:[%s1394_s24 + $0x28] sm:$0xff] (!%p381_p12)   ;;  %s1007_s24 = sshll.u32 (!%p381_p12), %s1381_s28, 3  ;;  %s1475_s26 = scalar_lea.hbm (!%p381_p12), %s1559_s8, %s1023_s17  ;;  %vm869_vm8 = vcmask (!%p381_p12), 1045504  }
  0x2b   : > { %1043 = vmatpush3.bf16.msra.mxu0 (!%p381_p12), %v1130_v15  ;;  %622 = vperm.xlu1 (!%p381_p12), %1129, %v436_v20   ;;  %v516_v32 = vand.u32 (!%p381_p12), %v1135_v28, %v514_v30  ;;  %v1137_v36 = vld [vmem:[%s1552_s1 + $0x8] sm:$0xff] (!%p381_p12)   ;;  %v434_v39 = vld [vmem:[%s1556_s5 + $0x38] sm:$0x3f] (!%p381_p12)  ;;  %v862_v41 = vld [vmem:[%s1558_s7] sm:$0x3f] (!%p381_p12)  ;;  %s419_s21 = scalar_lea.vmem (!%p381_p12), [#allocation3], %s1007_s24 }
  0x2c   : > { %1044 = vmatprep.subr.bf16.mxu0 %v1131_v17  ;;  %v442_v40 = vld [vmem:[%s1557_s6 + $0x38] sm:$0x3f]  ;;  %v1138_v25 = vld [vmem:[%s1553_s2] sm:$0xff]   ;;  %s896_s22 = sshll.u32 %s419_s21, 4  ;;  %s879_s27 = scalar_lea.sflag [#allocation4], %s1381_s28  ;;  %s1477_s22 = int_to_ptr.vmem [resolvable:$true] %s896_s22 }
  0x2d   : > { %s1171_s29 = scalar_lea.vmem %s1477_s22, 128  ;;  %s1271_s14 = smov [#allocation3]  }
  0x2e   : > { %603 = vperm.xlu0 %1128, %v429_v21   ;;  %p1172_p13 = scmp.ne.s32.totalorder %s1477_s22, %s1171_s29  ;;  %s1175_s16 = sshll.u32 %s1271_s14, 4  ;;  %s1176_s16 = int_to_ptr.vmem [resolvable:$false] %s1175_s16 }
  0x2f   : > { %1045 = vmatpush3.bf16.msra.mxu0 %v1131_v17  ;;  %608 = vperm.xlu1 %1129, %v430_v23   ;;  %s1177_s24 = scalar_lea.vmem %s1176_s16, 256  ;;  %p1178_p2 = scmp.lt.s32.totalorder %s1477_s22, %s1176_s16 }
  0x30   : > { %1046 = vmatprep.subr.bf16.mxu0 %v1132_v19  ;;  %p1173_p0 = pnand %p1172_p13, %p1362_p6  ;;  %p1179_p3 = scmp.lt.s32.totalorder %s1177_s24, %s1171_s29 }
  0x32   : > { %627 = vperm.xlu0 %1128, %v437_v26   ;;  %p1174_p1 = pneg %p1173_p0  ;;  %p1180_p4 = por %p1179_p3, %p1178_p2 }
  0x33   : > { %1047 = vmatpush3.bf16.msra.mxu0 %v1132_v19  ;;  %632 = vperm.xlu1 %1129, %v438_v29  }
  0x34   : > { %1048 = vmatprep.subr.bf16.mxu0 %v1133_v22  ;;  %p1181_p5 = pnand %p1180_p4, %p1174_p1 }
  0x36   : > { %707 = vperm.xlu0 %1128, %v431_v31  }
  0x37   : > { %1049 = vmatpush3.bf16.msra.mxu0 %v1133_v22  ;;  %712 = vperm.xlu1 %1129, %v432_v33  }
  0x38   : > { %1050 = vmatprep.subr.bf16.mxu0 %v1134_v27 }
  0x3a   : > { %719 = vperm.xlu0 %1128, %v439_v34  }
  0x3b   : > { %1051 = vmatpush3.bf16.msra.mxu0 %v1134_v27  ;;  %724 = vperm.xlu1 %1129, %v440_v35  }
  0x3c   : > { %1052 = vmatprep.subr.bf16.mxu0 %v516_v32 }
  0x3e   : > { %783 = vperm.xlu0 %1128, %v433_v37  }
  0x3f   : > { %1053 = vmatpush3.bf16.msra.mxu0 %v516_v32  ;;  %789 = vperm.xlu1 %1129, %v441_v38  }
  0x42   : > { %1055 = vmatmul.mubr.msk.bf16.vlgmr.msra.gmra.mrb[0].mxu0 %vm504_vm0, %v1137_v36  ;;  %851 = vperm.xlu0 %1128, %v434_v39  }
  0x43   : > { %857 = vperm.xlu1 %1129, %v442_v40  }
  0x46   : > { %865 = vperm.xlu0 %1128, %v862_v41  }
  0xa5   : > { %v594_v57 = vpop.permute.xlu0 %593 }
  0xa6   : > { %v618_v58 = vpop.permute.xlu1 %617 }
  0xa9   : > { %v599_v1 = vpop.permute.xlu0 %598 }
  0xaa   : > { %v623_v2 = vpop.permute.xlu1 %622 }
  0xad   : > { %v604_v4 = vpop.permute.xlu0 %603 }
  0xae   : > { %v609_v5 = vpop.permute.xlu1 %608 }
  0xb1   : > { %v628_v17 = vpop.permute.xlu0 %627 }
  0xb2   : > { %v633_v18 = vpop.permute.xlu1 %632 }
  0xb5   : > { %v708_v39 = vpop.permute.xlu0 %707 }
  0xb6   : > { %v713_v40 = vpop.permute.xlu1 %712 }
 0x115   : > { %v1056_v43 = vpop.f32.mrb[0].mxu0 }
 0x116   : > { %v569_v44 = vsub.f32 0.0, %v1056_v43  ;;  %v552_v45 = vpop.f32.mrb[1].mxu0 }
 0x117   : > { %v567_v46 = vsub.f32 0.0, %v552_v45  ;;  %v1057_v47 = vpop.f32.mrb[2].mxu0 }
 0x118   : > { %v575_v48 = vmul.f32 1.442695, %v569_v44  ;;  %v570_v49 = vsub.f32 0.0, %v1057_v47  ;;  %v555_v50 = vpop.f32.mrb[3].mxu0 }
 0x119   : > { %v571_v51 = vmul.f32 1.442695, %v567_v46  ;;  %v568_v52 = vsub.f32 0.0, %v555_v50 }
 0x11a   : > { %1139 = vpow2.f32 %v575_v48  ;;  %v577_v53 = vmul.f32 1.442695, %v570_v49  ;;  %v725_v48 = vpop.permute.xlu1 %724 }
 0x11b   : > { %1141 = vpow2.f32 %v571_v51  ;;  %v573_v54 = vmul.f32 1.442695, %v568_v52  ;;  %v730_v52 = vld [vmem:[%s1554_s3] sm:$0xf] }
 0x11c   : > { %1143 = vpow2.f32 %v577_v53 }
 0x11d   : > { %1145 = vpow2.f32 %v573_v54 }
 0x124   : > { %v1140_v55 = vpop.eup %1139 }
 0x125   : > { %v1142_v56 = vpop.eup %1141  ;;  %v581_v59 = vadd.f32 1.0, %v1140_v55 }
 0x126   : > { %v1144_v60 = vpop.eup %1143  ;;  %v579_v61 = vadd.f32 1.0, %v1142_v56 }
 0x127   : > { %v1146_v62 = vpop.eup %1145  ;;  %1147 = vrcp.f32 %v581_v59  ;;  %v582_v63 = vadd.f32 1.0, %v1144_v60 }
 0x128   : > { %1149 = vrcp.f32 %v579_v61  ;;  %v580_v0 = vadd.f32 1.0, %v1146_v62 }
 0x129   : > { %1151 = vrcp.f32 %v582_v63 }
 0x12a   : > { %1153 = vrcp.f32 %v580_v0 }
 0x131   : > { %v1148_v3 = vpop.eup %1147 }
 0x132   : > { %v1150_v6 = vpop.eup %1149  ;;  %v588_v7 = vmul.f32 %v1148_v3, %v1056_v43 }
 0x133   : > { %v1152_v8 = vpop.eup %1151  ;;  %v584_v9 = vmul.f32 %v1150_v6, %v552_v45 }
 0x134   : > { %v1154_v10 = vpop.eup %1153  ;;  %v590_v11 = vmul.f32 %v1152_v8, %v1057_v47  ;;  %v613_v12 = vmul.f32 %v604_v4, %v588_v7  ;;  %v720_v47 = vpop.permute.xlu0 %719  ;;  %v794_v4 = vld [vmem:[%s1555_s4] sm:$0x7] }
 0x135   : > { %v611_v13 = vmul.f32 %v594_v57, %v584_v9  ;;  %v586_v14 = vmul.f32 %v1154_v10, %v555_v50 }
 0x136   : > { %v614_v15 = vmul.f32 %v609_v5, %v590_v11  ;;  %v637_v19 = vadd.f32 %v628_v17, %v613_v12 }
 0x137   : > { %v612_v16 = vmul.f32 %v599_v1, %v586_v14  ;;  %v635_v21 = vadd.f32 %v618_v58, %v611_v13  ;;  %v790_v1 = vpop.permute.xlu1 %789 }
 0x138   : > { %v638_v20 = vadd.f32 %v633_v18, %v614_v15  ;;  %v784_v63 = vpop.permute.xlu0 %783 }
 0x139   : > { %v636_v22 = vadd.f32 %v623_v2, %v612_v16 }
 0x13a   : > { %v640_v23 = vpack.c.bf16 %v638_v20, %v637_v19 }
 0x13b   : > { %v639_v24 = vpack.c.bf16 %v636_v22, %v635_v21  ;;  %v858_v17 = vpop.permute.xlu1 %857 }
 0x13c   : > { %v852_v14 = vpop.permute.xlu0 %851 }
 0x13d   : > { %1059 = vmatpush3.bf16.msra.mxu1 %v639_v24 }
 0x13e   : > { %1060 = vmatprep.subr.bf16.mxu1 %v1269_v42 }
 0x140   : > { %v866_v19 = vpop.permute.xlu0 %865 }
 0x141   : > { %1061 = vmatpush3.bf16.msra.mxu1 %v640_v23 }
 0x142   : > { %1066 = vmatprep.subr.bf16.mxu1 %v1269_v42 }
 0x144   : > { %1063 = vmatmul.mubr.msk.bf16.vlgmr.msra.gmra.mrb[0].mxu1 %vm648_vm4, %v1138_v25 }
 0x145   : > { %1068 = vmatprep.mubr.msk.bf16.mxu1 %vm1270_vm3, %v1269_v42 }
 0x217   : > { %v686_v26 = vpop.f32.mrb[0].mxu1 }
 0x218   : > { %v693_v27 = vsub.f32 0.0, %v686_v26  ;;  %v1064_v28 = vpop.f32.mrb[1].mxu1 }
 0x219   : > { %v689_v29 = vpop.f32.mrb[2].mxu1 }
 0x21a   : > { %v695_v30 = vmul.f32 1.442695, %v693_v27  ;;  %v694_v31 = vsub.f32 0.0, %v689_v29  ;;  %v1065_v32 = vpop.f32.mrb[3].mxu1 }
 0x21c   : > { %1155 = vpow2.f32 %v695_v30  ;;  %v697_v33 = vmul.f32 1.442695, %v694_v31 }
 0x21e   : > { %1157 = vpow2.f32 %v697_v33 }
 0x226   : > { %v1156_v34 = vpop.eup %1155 }
 0x227   : > { %v699_v35 = vadd.f32 1.0, %v1156_v34 }
 0x228   : > { %v1158_v36 = vpop.eup %1157 }
 0x229   : > { %1159 = vrcp.f32 %v699_v35  ;;  %v700_v37 = vadd.f32 1.0, %v1158_v36 }
 0x22b   : > { %1161 = vrcp.f32 %v700_v37 }
 0x233   : > { %v1160_v38 = vpop.eup %1159 }
 0x234   : > { %v702_v41 = vmul.f32 %v1160_v38, %v686_v26 }
 0x235   : > { %v1162_v43 = vpop.eup %1161 }
 0x236   : > { %v715_v44 = vmul.f32 %v708_v39, %v702_v41  ;;  %v704_v45 = vmul.f32 %v1162_v43, %v689_v29 }
 0x238   : > { %v716_v46 = vmul.f32 %v713_v40, %v704_v45  ;;  %v727_v49 = vadd.f32 %v720_v47, %v715_v44 }
 0x23a   : > { %v728_v50 = vadd.f32 %v725_v48, %v716_v46 }
 0x23c   : > { %v729_v51 = vpack.c.bf16 %v728_v50, %v727_v49 }
 0x23e   : > { %1067 = vmatpush3.bf16.msra.mxu1 %v729_v51 }
 0x23f   : > { %1072 = vmatprep.subr.bf16.mxu1 %v1269_v42 }
 0x241   : > { %1069 = vmatmul.mubr.msk.bf16.vlgmr.msra.gmra.mrb[4].mxu1 %vm731_vm5, %v730_v52 }
 0x242   : > { %1074 = vmatprep.mubr.msk.bf16.mxu1 %vm1270_vm3, %v1269_v42 }
 0x314   : > { %v769_v53 = vpop.f32.mrb[4].mxu1 }
 0x315   : > { %v775_v54 = vsub.f32 0.0, %v769_v53  ;;  %v1070_v55 = vpop.f32.mrb[5].mxu1 }
 0x316   : > { %v772_v56 = vpop.f32.mrb[6].mxu1 }
 0x317   : > { %v776_v57 = vmul.f32 1.442695, %v775_v54  ;;  %v1071_v58 = vpop.f32.mrb[7].mxu1 }
 0x319   : > { %1163 = vpow2.f32 %v776_v57 }
 0x323   : > { %v1164_v59 = vpop.eup %1163 }
 0x324   : > { %v778_v60 = vadd.f32 1.0, %v1164_v59 }
 0x326   : > { %1165 = vrcp.f32 %v778_v60 }
 0x330   : > { %v1166_v61 = vpop.eup %1165 }
 0x331   : > { %v780_v62 = vmul.f32 %v1166_v61, %v769_v53 }
 0x333   : > { %v786_v0 = vmul.f32 %v784_v63, %v780_v62 }
 0x335   : > { %v792_v2 = vadd.f32 %v790_v1, %v786_v0 }
 0x337   : > { %v793_v3 = vpack.c.bf16 %v792_v2, %v792_v2 }
 0x339   : > { %v801_v42 = vsel %vm799_vm6, %v793_v3, 0 }
 0x33a   : > { %1073 = vmatpush3.bf16.msra.mxu1 %v801_v42 }
 0x33d   : > { %1075 = vmatmul.mubr.msk.bf16.vlgmr.msra.gmra.mrb[8].mxu1 %vm795_vm7, %v794_v4 }
 0x410   : > { %v837_v5 = vpop.f32.mrb[8].mxu1 }
 0x411   : > { %v843_v6 = vsub.f32 0.0, %v837_v5  ;;  %v1076_v7 = vpop.f32.mrb[9].mxu1 }
 0x412   : > { %v840_v8 = vpop.f32.mrb[10].mxu1 }
 0x413   : > { %v844_v9 = vmul.f32 1.442695, %v843_v6  ;;  %v1077_v10 = vpop.f32.mrb[11].mxu1 }
 0x415   : > { %1167 = vpow2.f32 %v844_v9 }
 0x41f   : > { %v1168_v11 = vpop.eup %1167 }
 0x420   : > { %v846_v12 = vadd.f32 1.0, %v1168_v11 }
 0x422   : > { %1169 = vrcp.f32 %v846_v12 }
 0x42c   : > { %v1170_v13 = vpop.eup %1169 }
 0x42d   : > { %v848_v15 = vmul.f32 %v1170_v13, %v837_v5 }
 0x42f   : > { %v854_v16 = vmul.f32 %v852_v14, %v848_v15 }
 0x431   : > { %v860_v18 = vadd.f32 %v858_v17, %v854_v16 }
 0x433   : > { %861 = vst [vmem:[%s419_s21] sm:$0x3f] %v860_v18  ;;  %v868_v20 = vmul.f32 %v866_v19, %v860_v18 }
 0x434   : > { %1184 = shalt.err (!%p1181_p5)
}
 0x435   : > { %s1185_s17 = scalar_lea.hbm %s1475_s26, 128  ;;  %s1189_s25 = scalar_lea.hbm %s1559_s8, 256 }
 0x436   : > { %p1186_p7 = scmp.ne.s32.totalorder %s1475_s26, %s1185_s17  ;;  %p1190_p12 = scmp.lt.u32.totalorder %s1475_s26, %s1559_s8 }
 0x437   : > { %p1191_p13 = scmp.lt.u32.totalorder %s1189_s25, %s1185_s17  ;;  %p1193_p1 = scmp.lt.u32.totalorder %s1185_s17, %s1475_s26 }
 0x438   : > { %p1187_p10 = pnand %p1186_p7, %p1362_p6 }
 0x439   : > { %p1192_p0 = por %p1191_p13, %p1190_p12 }
 0x43a   : > { %p1188_p11 = pneg %p1187_p10 }
 0x43b   : > { %p1194_p2 = por %p1193_p1, %p1192_p0 }
 0x43d   : > { %p1195_p3 = pnand %p1194_p2, %p1188_p11 }
 0x43f   : > { %1198 = shalt.err (!%p1195_p3)
}
 0x440   : > { %1080 = dma.vmem_to_hbm [thread:$0]  (%p1362_p6), %s1477_s22, 128, %s1475_s26, %s879_s27   ;;  %v870_v21 = vsel %vm869_vm8, %v868_v20, 0.0 }
 0x441   : > { %v871_v22 = vrot.slane %v870_v21, 4  ;;  %s1024_s29 = sshll.u32 %s1344_s13, 4  ;;  %s425_s24 = scalar_lea.vmem [#allocation5], %s1381_s28 }
 0x442   : > { %s909_s17 = sshll.u32 %s425_s24, 4  ;;  %s1507_s25 = scalar_lea.hbm %s1560_s9, %s1024_s29  ;;  %s1509_s17 = int_to_ptr.vmem [resolvable:$true] %s909_s17 }
 0x443   : > { %v872_v23 = vadd.f32 %v871_v22, %v870_v21  ;;  %s884_s22 = scalar_lea.sflag [#allocation6], %s1381_s28  ;;  %s1199_s26 = scalar_lea.vmem %s1509_s17, 16 }
 0x444   : > { %p1200_p4 = scmp.ne.s32.totalorder %s1509_s17, %s1199_s26  ;;  %s1272_s13 = smov [#allocation5]  }
 0x445   : > { %v873_v24 = vrot.slane %v872_v23, 2  ;;  %s1203_s27 = sshll.u32 %s1272_s13, 4  ;;  %s1204_s27 = int_to_ptr.vmem [resolvable:$false] %s1203_s27 }
 0x446   : > { %p1201_p5 = pnand %p1200_p4, %p1362_p6  ;;  %s1205_s14 = scalar_lea.vmem %s1204_s27, 32 }
 0x447   : > { %v874_v25 = vadd.f32 %v873_v24, %v872_v23  ;;  %p1206_p10 = scmp.lt.s32.totalorder %s1509_s17, %s1204_s27  ;;  %p1207_p11 = scmp.lt.s32.totalorder %s1205_s14, %s1199_s26 }
 0x448   : > { %p1202_p7 = pneg %p1201_p5 }
 0x449   : > { %v875_v26 = vrot.slane %v874_v25, 1  ;;  %p1208_p12 = por %p1207_p11, %p1206_p10 }
 0x44b   : > { %v876_v27 = vadd.f32 %v875_v26, %v874_v25  ;;  %p1209_p13 = pnand %p1208_p12, %p1202_p7 }
 0x44d   : > { %877 = vst [vmem:[%s425_s24] sm:$0x1] %v876_v27 }
 0x44e   : > { %1212 = shalt.err (!%p1209_p13)
}
 0x44f   : > { %s1213_s28 = scalar_lea.hbm %s1507_s25, 16  ;;  %s1217_s24 = scalar_lea.hbm %s1560_s9, 32 }
 0x450   : > { %p1214_p0 = scmp.ne.s32.totalorder %s1507_s25, %s1213_s28  ;;  %p1218_p3 = scmp.lt.u32.totalorder %s1507_s25, %s1560_s9 }
 0x451   : > { %p1219_p4 = scmp.lt.u32.totalorder %s1217_s24, %s1213_s28  ;;  %p1221_p7 = scmp.lt.u32.totalorder %s1213_s28, %s1507_s25 }
 0x452   : > { %p1215_p1 = pnand %p1214_p0, %p1362_p6 }
 0x453   : > { %p1220_p5 = por %p1219_p4, %p1218_p3 }
 0x454   : > { %p1216_p2 = pneg %p1215_p1 }
 0x455   : > { %p1222_p10 = por %p1221_p7, %p1220_p5 }
 0x457   : > { %p1223_p11 = pnand %p1222_p10, %p1216_p2 }
 0x459   : > { %1226 = shalt.err (!%p1223_p11)
}
 0x45a   : > { %1081 = dma.vmem_to_hbm [thread:$0]  (%p1362_p6), %s1509_s17, 16, %s1507_s25, %s884_s22  }
 0x45b PF: > { %s921_s26 = sand.u32 1, %s1253_s30   ;;  %p1085_p12 = pnand %p1004_p9, %p1366_p8 }
 0x45c   : > { %s922_s13 = scalar_lea.sflag [#allocation4], %s921_s26 }
 0x45d   : > { %1244 = dma.done.wait (!%p1085_p12), %s922_s13, 128  }
 0x45e   : > { %1246 = vsyncadd (!%p1085_p12), %s922_s13, 4294967168  ;;  %s931_s27 = scalar_lea.sflag [#allocation6], %s921_s26 }
 0x45f   : > { %1248 = dma.done.wait (!%p1085_p12), %s931_s27, 16  }
 0x460   : > { %1250 = vsyncadd (!%p1085_p12), %s931_s27, 4294967280  ;;  %p23_p6 = scmp.ge.s32.totalorder %s1348_s15, 4   ;;  %s1563_s30 = smov %s1257_s10 }
 0x461   : > { %s1564_s10 = smov %s1261_s11  ;;  %s1565_s11 = smov %s1360_s18 }
 0x462   : > { %s1566_s12 = smov %s1348_s15  ;;  %25 = sbr.rel (!%p23_p6) target bundleno = 5 (0x5), region = 150 }
 0x469   :  { %935 = vsyncpa [#allocation4], 1 }
 0x46a   :  { %937 = vsyncpa [#allocation4 + $0x1], 1 }
 0x46b   :  { %938 = vsyncpa [#allocation6], 1 }
 0x46c   :  { %940 = vsyncpa [#allocation6 + $0x1], 1 }

</bundles_post_ra>
